<compile_context>
chip_gen: v7x
topology: tpu7x:2x2x1
jax: 0.10.0
libtpu: 0.0.40
codegen_flags: <defaults>
</compile_context>

<pallas_src>
import functools

import jax
import jax.numpy as jnp
from jax import lax
from jax.experimental import pallas as pl
from jax.experimental.pallas import tpu as pltpu  # noqa: F401  (TPU backend target)

# ----------------------------- config (cfg) ---------------------------------
N_HARMONIC_XYZ = 6           # cfg.n_harmonic_functions_xyz
N_HARMONIC_DIR = 4           # cfg.n_harmonic_functions_dir
N_LAYERS_XYZ = 4             # cfg.n_layers_xyz
N_HIDDEN_XYZ = 64            # cfg.n_hidden_neurons_xyz
N_HIDDEN_DIR = 32            # cfg.n_hidden_neurons_dir
APPEND_XYZ = (2,)            # cfg.append_xyz (input skips)

N_RAYS = 4
N_PTS = 192                  # forced by nn.BatchNorm1d(192) in the reference

D_PTS_EMB = N_HARMONIC_XYZ * 2 * 3 + 3   # 39
D_DIR_EMB = N_HARMONIC_DIR * 2 * 3 + 3   # 27

BN_EPS = 1e-5


# --------------------------- plain-JAX glue ---------------------------------
def harmonic_embedding(x, n_harmonic):
    freqs = 2.0 ** jnp.arange(n_harmonic, dtype=jnp.float32)
    embed = (x[..., None] * freqs).reshape(x.shape[:-1] + (-1,))
    return jnp.concatenate([jnp.sin(embed), jnp.cos(embed), x], axis=-1)


# ------------------------------ the kernel ----------------------------------
def nerf_kernel(x_ref, cdir_ref, w_in_ref, w_hid_ref, b_ref, bn_ref,
                wc1a_ref, whd_ref, whc_ref, sel_ref, out_ref):
    """Whole NeRFHiRes trunk + heads, features-by-points (lane-dense) layout.

    x_ref    : (39, N)   harmonic point embedding (N = rays * points, ray-major)
    cdir_ref : (32, R)   per-ray direction-head contribution (dir_emb @ Wc1b + bc1)^T
    w_in_ref : (2, 64, 39)  [W0^T, W2_skip^T]
    w_hid_ref: (3, 64, 64)  [W1^T, W2_hidden^T, W3^T]
    b_ref    : (64, 5)   columns 0..3 = MLP biases, column 4 rows 0..3 = [bd, bc2]
    bn_ref   : (8, N)    rows 0..3 gamma (tiled over rays), rows 4..7 beta
    wc1a_ref : (32, 64)  colour hidden weights (hidden part), transposed
    whd_ref  : (4, 64)   fused head (density row 0, colour rows zero)
    whc_ref  : (4, 32)   fused head (colour rows 1..3, density row zero)
    sel_ref  : (R, N)    exact 0/1 selector: sel[r, n] = 1 iff n // P == r
    out_ref  : (4, N)    row 0 = density, rows 1..3 = rgb
    """
    N = out_ref.shape[1]
    P = N_PTS
    R = N // P
    H = w_hid_ref.shape[1]
    inv_cnt = 1.0 / float(R * H)         # BatchNorm1d(192) averages over (rays, hidden)

    dot = functools.partial(jnp.dot, preferred_element_type=jnp.float32)

    x_emb = x_ref[...]                   # (39, N)
    b_all = b_ref[...]                   # (64, 5)

    def mish(v):
        # x * tanh(softplus(x)) == x * (t^2 + 2t) / (t^2 + 2t + 2), t = e^x
        # (exact rewrite, exact f32 divide; single transcendental per element)
        t = jnp.exp(jnp.minimum(v, 20.0))
        n = t * (t + 2.0)
        return jnp.where(v > 20.0, v, v * (n / (n + 2.0)))

    def bn(y, li):
        # nn.BatchNorm1d(192), training mode: batch statistics per point-channel
        # over (rays, hidden).  Single pass: E[y] and E[y^2] reduced together.
        g = bn_ref[li:li + 1, :]          # (1, N) gamma, pre-tiled over rays
        bta = bn_ref[4 + li:5 + li, :]    # (1, N) beta
        s = jnp.concatenate(
            [jnp.sum(y, axis=0, keepdims=True),
             jnp.sum(y * y, axis=0, keepdims=True)], axis=0)        # (2, N)
        # Columns are ray-major (n = r*P + p): fold the R ray blocks together and
        # broadcast the per-point result back to every ray block.
        sp = s[:, 0:P]
        for r in range(1, R):
            sp = sp + s[:, r * P:(r + 1) * P]
        s = jnp.concatenate([sp] * R, axis=1)                       # (2, N)
        mean = s[0:1] * inv_cnt
        var = jnp.maximum(s[1:2] * inv_cnt - mean * mean, 0.0)
        return (y - mean) * (lax.rsqrt(var + BN_EPS) * g) + bta

    # ------------------- MLP trunk (with input skip at layer 2) -------------
    y = bn(mish(dot(w_in_ref[0], x_emb) + b_all[:, 0:1]), 0)
    y = bn(mish(dot(w_hid_ref[0], y) + b_all[:, 1:2]), 1)
    y = bn(mish(dot(w_hid_ref[1], y) + dot(w_in_ref[1], x_emb) + b_all[:, 2:3]), 2)
    y = bn(mish(dot(w_hid_ref[2], y) + b_all[:, 3:4]), 3)

    # ------------------------- colour hidden layer --------------------------
    # cat(y, dir_emb) @ Wc1 + bc1  ==  Wc1a^T @ y  +  (per-ray constant), where
    # the per-ray constant is broadcast to the point axis by an exact selector.
    cdir_b = dot(cdir_ref[...], sel_ref[...])                       # (32, N)
    h = jnp.maximum(dot(wc1a_ref[...], y) + cdir_b, 0.0)            # (32, N)

    # --------------- fused density (row 0) + colour (rows 1..3) head --------
    fused = dot(whd_ref[...], y) + dot(whc_ref[...], h) + b_all[0:4, 4:5]   # (4, N)

    t = jnp.exp(-jnp.abs(fused))
    sig = jnp.where(fused >= 0.0, 1.0 / (1.0 + t), t / (1.0 + t))   # exact sigmoid
    row = lax.broadcasted_iota(jnp.int32, fused.shape, 0)
    out_ref[...] = jnp.where(row == 0, jnp.maximum(fused, 0.0), sig)


# ------------------ one-time parameter packing (hoisted) ---------------------
def pack_params(p):
    """Pack the module parameters into kernel-friendly lane-dense slabs.

    Runs ONCE, outside the per-call forward path (perf-review item): weight
    transposes, skip/colour splits, fused head, BN affine tiling, selector.
    """
    H, HD, P, R = N_HIDDEN_XYZ, N_HIDDEN_DIR, N_PTS, N_RAYS
    N = R * P

    w2 = p["mlp_w"][2]
    w2y, w2in = w2[:H], w2[H:]                 # hidden part / input-skip part
    wc1 = p["wc1"]
    wc1a, wc1b = wc1[:H], wc1[H:]              # hidden part / direction part

    # transposed weights: every layer becomes  W^T @ (features x points)
    w_in_t = jnp.stack([p["mlp_w"][0].T, w2in.T])                      # (2, 64, 39)
    w_hid_t = jnp.stack([p["mlp_w"][1].T, w2y.T, p["mlp_w"][3].T])     # (3, 64, 64)
    wc1a_t = wc1a.T                                                    # (32, 64)

    # fused (density | colour) head, output rows = [sigma, r, g, b]
    whd_t = jnp.concatenate([p["wd"].T, jnp.zeros((3, H), jnp.float32)], axis=0)    # (4, 64)
    whc_t = jnp.concatenate([jnp.zeros((1, HD), jnp.float32), p["wc2"].T], axis=0)  # (4, 32)

    # feature-direction biases packed as columns of one small (64, 5) slab
    b_cols = jnp.zeros((H, 5), jnp.float32)
    for li in range(N_LAYERS_XYZ):
        b_cols = b_cols.at[:, li].set(p["mlp_b"][li][0])
    b_cols = b_cols.at[:4, 4].set(jnp.concatenate([p["bd"][0], p["bc2"][0]]))

    # BatchNorm affine, lane-dense (8, N): gamma/beta per point, pre-tiled over rays
    bn_pack = jnp.stack(
        [jnp.tile(g[0, :, 0], R) for g in p["bn_g"]]
        + [jnp.tile(b[0, :, 0], R) for b in p["bn_b"]])                # (8, N)

    # exact 0/1 selector broadcasting per-ray vectors onto the flat point axis
    sel = (jnp.arange(N) // P == jnp.arange(R)[:, None]).astype(jnp.float32)  # (R, N)

    return dict(w_in_t=w_in_t, w_hid_t=w_hid_t, wc1a_t=wc1a_t,
                whd_t=whd_t, whc_t=whc_t, b_cols=b_cols, bn_pack=bn_pack,
                sel=sel, wc1b=wc1b, bc1=p["bc1"])


# ------------------------------ wrapper --------------------------------------
def nerf_hires_forward(pts, dirs, packed):
    R, P, _ = pts.shape
    N = R * P

    # point embedding, presented lane-dense (features x points) for the kernel
    x_emb_t = harmonic_embedding(pts, N_HARMONIC_XYZ).reshape(N, D_PTS_EMB).T   # (39, N)

    # point-independent direction-head contribution (per ray): dir_emb @ Wc1b + bc1
    d_emb = harmonic_embedding(dirs, N_HARMONIC_DIR)                            # (R, 27)
    cdir_t = (d_emb @ packed["wc1b"] + packed["bc1"]).T                         # (32, R)

    # single invocation, no grid: the whole problem (<0.5 MiB) lives in VMEM
    out = pl.pallas_call(
        nerf_kernel,
        out_shape=jax.ShapeDtypeStruct((4, N), jnp.float32),
    )(x_emb_t, cdir_t, packed["w_in_t"], packed["w_hid_t"], packed["b_cols"],
      packed["bn_pack"], packed["wc1a_t"], packed["whd_t"], packed["whc_t"],
      packed["sel"])

    density = out[0].reshape(R, P, 1)
    color = jnp.transpose(out[1:4].reshape(3, R, P), (1, 2, 0))
    return {"density": density, "feature": color}


# -------------------------- deterministic params -----------------------------
def init_params(key):
    H, HD, P = N_HIDDEN_XYZ, N_HIDDEN_DIR, N_PTS
    keys = iter(jax.random.split(key, 64))

    def linear(din, dout):
        bound = 1.0 / jnp.sqrt(float(din))
        w = jax.random.uniform(next(keys), (din, dout), jnp.float32, -bound, bound)
        b = jax.random.uniform(next(keys), (1, dout), jnp.float32, -bound, bound)
        return w, b

    mlp_w, mlp_b, bn_g, bn_b = [], [], [], []
    for li in range(N_LAYERS_XYZ):
        if li == 0:
            din = D_PTS_EMB
        elif li in APPEND_XYZ:
            din = H + D_PTS_EMB
        else:
            din = H
        w, b = linear(din, H)
        mlp_w.append(w)
        mlp_b.append(b)
        bn_g.append(jax.random.uniform(next(keys), (1, P, 1), jnp.float32, 0.5, 1.5))
        bn_b.append(0.1 * jax.random.normal(next(keys), (1, P, 1), jnp.float32))

    wd, bd = linear(H, 1)
    wc1, bc1 = linear(H + D_DIR_EMB, HD)
    wc2, bc2 = linear(HD, 3)
    return dict(mlp_w=mlp_w, mlp_b=mlp_b, bn_g=bn_g, bn_b=bn_b,
                wd=wd, bd=bd, wc1=wc1, bc1=bc1, wc2=wc2, bc2=bc2)


# ---------------------------- pure-JAX reference -----------------------------
def _softplus_ref(v):
    return jnp.log1p(jnp.exp(-jnp.abs(v))) + jnp.maximum(v, 0.0)


def _mish_ref(v):
    return v * jnp.tanh(_softplus_ref(v))


def _sigmoid_ref(v):
    return 1.0 / (1.0 + jnp.exp(-v))


def reference_forward(pts, dirs, p):
    R, P, _ = pts.shape
    x = harmonic_embedding(pts, N_HARMONIC_XYZ)
    z = x
    y = x
    for li in range(N_LAYERS_XYZ):
        if li in APPEND_XYZ:
            y = jnp.concatenate([y, z], axis=-1)
        y = y @ p["mlp_w"][li] + p["mlp_b"][li]
        y = _mish_ref(y)
        mean = jnp.mean(y, axis=(0, 2), keepdims=True)
        var = jnp.mean(jnp.square(y - mean), axis=(0, 2), keepdims=True)
        y = (y - mean) * lax.rsqrt(var + BN_EPS) * p["bn_g"][li] + p["bn_b"][li]
    density = jnp.maximum(y @ p["wd"] + p["bd"], 0.0)
    d = harmonic_embedding(dirs, N_HARMONIC_DIR)
    d = jnp.broadcast_to(d[:, None, :], (R, P, D_DIR_EMB))
    h = jnp.maximum(jnp.concatenate([y, d], axis=-1) @ p["wc1"] + p["bc1"], 0.0)
    color = _sigmoid_ref(h @ p["wc2"] + p["bc2"])
    return {"density": density, "feature": color}


# --------------------------------- main ---------------------------------------
if __name__ == "__main__":
    key = jax.random.PRNGKey(0)
    k_pts, k_dir, k_par = jax.random.split(key, 3)
    pts = jax.random.normal(k_pts, (N_RAYS, N_PTS, 3), jnp.float32)
    dirs = jax.random.normal(k_dir, (N_RAYS, 3), jnp.float32)
    params = init_params(k_par)

    packed = pack_params(params)          # one-time packing, outside the fwd path
    fwd = jax.jit(nerf_hires_forward)

    out = fwd(pts, dirs, packed)
    jax.block_until_ready(out)

    ref = reference_forward(pts, dirs, params)
    assert out["density"].shape == (N_RAYS, N_PTS, 1)
    assert out["feature"].shape == (N_RAYS, N_PTS, 3)
    assert jnp.allclose(out["density"], ref["density"], atol=5e-3, rtol=5e-3)
    assert jnp.allclose(out["feature"], ref["feature"], atol=5e-3, rtol=5e-3)

    print("KERNEL_OK")
</pallas_src>

<mosaic_0001>
module attributes {stable_mosaic.version = 11 : i64} {
  func.func @nerf_kernel(%arg0: memref<39x768xf32, #tpu.memory_space<vmem>>, %arg1: memref<32x4xf32, #tpu.memory_space<vmem>>, %arg2: memref<2x64x39xf32, #tpu.memory_space<vmem>>, %arg3: memref<3x64x64xf32, #tpu.memory_space<vmem>>, %arg4: memref<64x5xf32, #tpu.memory_space<vmem>>, %arg5: memref<8x768xf32, #tpu.memory_space<vmem>>, %arg6: memref<32x64xf32, #tpu.memory_space<vmem>>, %arg7: memref<4x64xf32, #tpu.memory_space<vmem>>, %arg8: memref<4x32xf32, #tpu.memory_space<vmem>>, %arg9: memref<4x768xf32, #tpu.memory_space<vmem>>, %arg10: memref<4x768xf32, #tpu.memory_space<vmem>>) attributes {dimension_semantics = [], scalar_prefetch = 0 : i64, scratch_operands = 0 : i64, tpu.core_type = #tpu.core_type<tc>} {
    %c0 = arith.constant 0 : index
    %c0_0 = arith.constant 0 : index
    %0 = vector.load %arg0[%c0, %c0_0] : memref<39x768xf32, #tpu.memory_space<vmem>>, vector<39x768xf32>
    %c0_1 = arith.constant 0 : index
    %c0_2 = arith.constant 0 : index
    %1 = vector.load %arg4[%c0_1, %c0_2] : memref<64x5xf32, #tpu.memory_space<vmem>>, vector<64x5xf32>
    %c0_3 = arith.constant 0 : index
    %c0_4 = arith.constant 0 : index
    %c0_5 = arith.constant 0 : index
    %2 = vector.load %arg2[%c0_3, %c0_4, %c0_5] : memref<2x64x39xf32, #tpu.memory_space<vmem>>, vector<1x64x39xf32>
    %3 = vector.shape_cast %2 : vector<1x64x39xf32> to vector<64x39xf32>
    %cst = arith.constant dense<0.000000e+00> : vector<64x768xf32>
    %4 = tpu.matmul %3, %0, %cst {dimension_numbers = #tpu.dot_dimension_numbers<[1], [0], [0], [1], [0, 0, 1, 1], [], []>} : vector<64x39xf32>, vector<39x768xf32>, vector<64x768xf32> -> vector<64x768xf32>
    %5 = vector.extract_strided_slice %1 {offsets = [0, 0], sizes = [64, 1], strides = [1, 1]} : vector<64x5xf32> to vector<64x1xf32>
    %6 = vector.broadcast %5 : vector<64x1xf32> to vector<64x768xf32>
    %7 = arith.addf %4, %6 : vector<64x768xf32>
    %cst_6 = arith.constant 2.000000e+01 : f32
    %8 = vector.broadcast %cst_6 : f32 to vector<64x768xf32>
    %9 = arith.minimumf %7, %8 : vector<64x768xf32>
    %10 = math.exp %9 : vector<64x768xf32>
    %cst_7 = arith.constant 2.000000e+00 : f32
    %11 = vector.broadcast %cst_7 : f32 to vector<64x768xf32>
    %12 = arith.addf %10, %11 : vector<64x768xf32>
    %13 = arith.mulf %10, %12 : vector<64x768xf32>
    %cst_8 = arith.constant 2.000000e+01 : f32
    %14 = vector.broadcast %cst_8 : f32 to vector<64x768xf32>
    %15 = arith.cmpf ogt, %7, %14 : vector<64x768xf32>
    %cst_9 = arith.constant 2.000000e+00 : f32
    %16 = vector.broadcast %cst_9 : f32 to vector<64x768xf32>
    %17 = arith.addf %13, %16 : vector<64x768xf32>
    %18 = arith.divf %13, %17 : vector<64x768xf32>
    %19 = arith.mulf %7, %18 : vector<64x768xf32>
    %20 = arith.select %15, %7, %19 : vector<64x768xi1>, vector<64x768xf32>
    %c0_10 = arith.constant 0 : index
    %c0_11 = arith.constant 0 : index
    %21 = vector.load %arg5[%c0_10, %c0_11] : memref<8x768xf32, #tpu.memory_space<vmem>>, vector<1x768xf32>
    %c4 = arith.constant 4 : index
    %c0_12 = arith.constant 0 : index
    %22 = vector.load %arg5[%c4, %c0_12] : memref<8x768xf32, #tpu.memory_space<vmem>>, vector<1x768xf32>
    %cst_13 = arith.constant dense<0.000000e+00> : vector<768xf32>
    %23 = vector.multi_reduction <add>, %20, %cst_13 [0] : vector<64x768xf32> to vector<768xf32>
    %24 = vector.shape_cast %23 : vector<768xf32> to vector<1x768xf32>
    %25 = arith.mulf %20, %20 : vector<64x768xf32>
    %cst_14 = arith.constant dense<0.000000e+00> : vector<768xf32>
    %26 = vector.multi_reduction <add>, %25, %cst_14 [0] : vector<64x768xf32> to vector<768xf32>
    %27 = vector.shape_cast %26 : vector<768xf32> to vector<1x768xf32>
    %28 = tpu.concatenate %24, %27 in 0 : vector<1x768xf32>, vector<1x768xf32> -> vector<2x768xf32>
    %29 = vector.extract_strided_slice %28 {offsets = [0, 0], sizes = [2, 192], strides = [1, 1]} : vector<2x768xf32> to vector<2x192xf32>
    %30 = vector.extract_strided_slice %28 {offsets = [0, 192], sizes = [2, 192], strides = [1, 1]} : vector<2x768xf32> to vector<2x192xf32>
    %31 = arith.addf %29, %30 : vector<2x192xf32>
    %32 = vector.extract_strided_slice %28 {offsets = [0, 384], sizes = [2, 192], strides = [1, 1]} : vector<2x768xf32> to vector<2x192xf32>
    %33 = arith.addf %31, %32 : vector<2x192xf32>
    %34 = vector.extract_strided_slice %28 {offsets = [0, 576], sizes = [2, 192], strides = [1, 1]} : vector<2x768xf32> to vector<2x192xf32>
    %35 = arith.addf %33, %34 : vector<2x192xf32>
    %36 = tpu.concatenate %35, %35, %35, %35 in 1 : vector<2x192xf32>, vector<2x192xf32>, vector<2x192xf32>, vector<2x192xf32> -> vector<2x768xf32>
    %37 = vector.extract_strided_slice %36 {offsets = [0, 0], sizes = [1, 768], strides = [1, 1]} : vector<2x768xf32> to vector<1x768xf32>
    %cst_15 = arith.constant 3.906250e-03 : f32
    %38 = vector.broadcast %cst_15 : f32 to vector<1x768xf32>
    %39 = arith.mulf %37, %38 : vector<1x768xf32>
    %40 = vector.extract_strided_slice %36 {offsets = [1, 0], sizes = [1, 768], strides = [1, 1]} : vector<2x768xf32> to vector<1x768xf32>
    %cst_16 = arith.constant 3.906250e-03 : f32
    %41 = vector.broadcast %cst_16 : f32 to vector<1x768xf32>
    %42 = arith.mulf %40, %41 : vector<1x768xf32>
    %43 = arith.mulf %39, %39 : vector<1x768xf32>
    %44 = arith.subf %42, %43 : vector<1x768xf32>
    %cst_17 = arith.constant 0.000000e+00 : f32
    %45 = vector.broadcast %cst_17 : f32 to vector<1x768xf32>
    %46 = arith.maximumf %44, %45 : vector<1x768xf32>
    %47 = vector.broadcast %39 : vector<1x768xf32> to vector<64x768xf32>
    %48 = arith.subf %20, %47 : vector<64x768xf32>
    %cst_18 = arith.constant 9.99999974E-6 : f32
    %49 = vector.broadcast %cst_18 : f32 to vector<1x768xf32>
    %50 = arith.addf %46, %49 : vector<1x768xf32>
    %51 = math.rsqrt %50 : vector<1x768xf32>
    %52 = arith.mulf %51, %21 : vector<1x768xf32>
    %53 = vector.broadcast %52 : vector<1x768xf32> to vector<64x768xf32>
    %54 = arith.mulf %48, %53 : vector<64x768xf32>
    %55 = vector.broadcast %22 : vector<1x768xf32> to vector<64x768xf32>
    %56 = arith.addf %54, %55 : vector<64x768xf32>
    %c0_19 = arith.constant 0 : index
    %c0_20 = arith.constant 0 : index
    %c0_21 = arith.constant 0 : index
    %57 = vector.load %arg3[%c0_19, %c0_20, %c0_21] : memref<3x64x64xf32, #tpu.memory_space<vmem>>, vector<1x64x64xf32>
    %58 = vector.shape_cast %57 : vector<1x64x64xf32> to vector<64x64xf32>
    %cst_22 = arith.constant dense<0.000000e+00> : vector<64x768xf32>
    %59 = tpu.matmul %58, %56, %cst_22 {dimension_numbers = #tpu.dot_dimension_numbers<[1], [0], [0], [1], [0, 0, 1, 1], [], []>} : vector<64x64xf32>, vector<64x768xf32>, vector<64x768xf32> -> vector<64x768xf32>
    %60 = vector.extract_strided_slice %1 {offsets = [0, 1], sizes = [64, 1], strides = [1, 1]} : vector<64x5xf32> to vector<64x1xf32>
    %61 = vector.broadcast %60 : vector<64x1xf32> to vector<64x768xf32>
    %62 = arith.addf %59, %61 : vector<64x768xf32>
    %cst_23 = arith.constant 2.000000e+01 : f32
    %63 = vector.broadcast %cst_23 : f32 to vector<64x768xf32>
    %64 = arith.minimumf %62, %63 : vector<64x768xf32>
    %65 = math.exp %64 : vector<64x768xf32>
    %cst_24 = arith.constant 2.000000e+00 : f32
    %66 = vector.broadcast %cst_24 : f32 to vector<64x768xf32>
    %67 = arith.addf %65, %66 : vector<64x768xf32>
    %68 = arith.mulf %65, %67 : vector<64x768xf32>
    %cst_25 = arith.constant 2.000000e+01 : f32
    %69 = vector.broadcast %cst_25 : f32 to vector<64x768xf32>
    %70 = arith.cmpf ogt, %62, %69 : vector<64x768xf32>
    %cst_26 = arith.constant 2.000000e+00 : f32
    %71 = vector.broadcast %cst_26 : f32 to vector<64x768xf32>
    %72 = arith.addf %68, %71 : vector<64x768xf32>
    %73 = arith.divf %68, %72 : vector<64x768xf32>
    %74 = arith.mulf %62, %73 : vector<64x768xf32>
    %75 = arith.select %70, %62, %74 : vector<64x768xi1>, vector<64x768xf32>
    %c1 = arith.constant 1 : index
    %c0_27 = arith.constant 0 : index
    %76 = vector.load %arg5[%c1, %c0_27] : memref<8x768xf32, #tpu.memory_space<vmem>>, vector<1x768xf32>
    %c5 = arith.constant 5 : index
    %c0_28 = arith.constant 0 : index
    %77 = vector.load %arg5[%c5, %c0_28] : memref<8x768xf32, #tpu.memory_space<vmem>>, vector<1x768xf32>
    %cst_29 = arith.constant dense<0.000000e+00> : vector<768xf32>
    %78 = vector.multi_reduction <add>, %75, %cst_29 [0] : vector<64x768xf32> to vector<768xf32>
    %79 = vector.shape_cast %78 : vector<768xf32> to vector<1x768xf32>
    %80 = arith.mulf %75, %75 : vector<64x768xf32>
    %cst_30 = arith.constant dense<0.000000e+00> : vector<768xf32>
    %81 = vector.multi_reduction <add>, %80, %cst_30 [0] : vector<64x768xf32> to vector<768xf32>
    %82 = vector.shape_cast %81 : vector<768xf32> to vector<1x768xf32>
    %83 = tpu.concatenate %79, %82 in 0 : vector<1x768xf32>, vector<1x768xf32> -> vector<2x768xf32>
    %84 = vector.extract_strided_slice %83 {offsets = [0, 0], sizes = [2, 192], strides = [1, 1]} : vector<2x768xf32> to vector<2x192xf32>
    %85 = vector.extract_strided_slice %83 {offsets = [0, 192], sizes = [2, 192], strides = [1, 1]} : vector<2x768xf32> to vector<2x192xf32>
    %86 = arith.addf %84, %85 : vector<2x192xf32>
    %87 = vector.extract_strided_slice %83 {offsets = [0, 384], sizes = [2, 192], strides = [1, 1]} : vector<2x768xf32> to vector<2x192xf32>
    %88 = arith.addf %86, %87 : vector<2x192xf32>
    %89 = vector.extract_strided_slice %83 {offsets = [0, 576], sizes = [2, 192], strides = [1, 1]} : vector<2x768xf32> to vector<2x192xf32>
    %90 = arith.addf %88, %89 : vector<2x192xf32>
    %91 = tpu.concatenate %90, %90, %90, %90 in 1 : vector<2x192xf32>, vector<2x192xf32>, vector<2x192xf32>, vector<2x192xf32> -> vector<2x768xf32>
    %92 = vector.extract_strided_slice %91 {offsets = [0, 0], sizes = [1, 768], strides = [1, 1]} : vector<2x768xf32> to vector<1x768xf32>
    %cst_31 = arith.constant 3.906250e-03 : f32
    %93 = vector.broadcast %cst_31 : f32 to vector<1x768xf32>
    %94 = arith.mulf %92, %93 : vector<1x768xf32>
    %95 = vector.extract_strided_slice %91 {offsets = [1, 0], sizes = [1, 768], strides = [1, 1]} : vector<2x768xf32> to vector<1x768xf32>
    %cst_32 = arith.constant 3.906250e-03 : f32
    %96 = vector.broadcast %cst_32 : f32 to vector<1x768xf32>
    %97 = arith.mulf %95, %96 : vector<1x768xf32>
    %98 = arith.mulf %94, %94 : vector<1x768xf32>
    %99 = arith.subf %97, %98 : vector<1x768xf32>
    %cst_33 = arith.constant 0.000000e+00 : f32
    %100 = vector.broadcast %cst_33 : f32 to vector<1x768xf32>
    %101 = arith.maximumf %99, %100 : vector<1x768xf32>
    %102 = vector.broadcast %94 : vector<1x768xf32> to vector<64x768xf32>
    %103 = arith.subf %75, %102 : vector<64x768xf32>
    %cst_34 = arith.constant 9.99999974E-6 : f32
    %104 = vector.broadcast %cst_34 : f32 to vector<1x768xf32>
    %105 = arith.addf %101, %104 : vector<1x768xf32>
    %106 = math.rsqrt %105 : vector<1x768xf32>
    %107 = arith.mulf %106, %76 : vector<1x768xf32>
    %108 = vector.broadcast %107 : vector<1x768xf32> to vector<64x768xf32>
    %109 = arith.mulf %103, %108 : vector<64x768xf32>
    %110 = vector.broadcast %77 : vector<1x768xf32> to vector<64x768xf32>
    %111 = arith.addf %109, %110 : vector<64x768xf32>
    %c1_35 = arith.constant 1 : index
    %c0_36 = arith.constant 0 : index
    %c0_37 = arith.constant 0 : index
    %112 = vector.load %arg3[%c1_35, %c0_36, %c0_37] : memref<3x64x64xf32, #tpu.memory_space<vmem>>, vector<1x64x64xf32>
    %113 = vector.shape_cast %112 : vector<1x64x64xf32> to vector<64x64xf32>
    %cst_38 = arith.constant dense<0.000000e+00> : vector<64x768xf32>
    %114 = tpu.matmul %113, %111, %cst_38 {dimension_numbers = #tpu.dot_dimension_numbers<[1], [0], [0], [1], [0, 0, 1, 1], [], []>} : vector<64x64xf32>, vector<64x768xf32>, vector<64x768xf32> -> vector<64x768xf32>
    %c1_39 = arith.constant 1 : index
    %c0_40 = arith.constant 0 : index
    %c0_41 = arith.constant 0 : index
    %115 = vector.load %arg2[%c1_39, %c0_40, %c0_41] : memref<2x64x39xf32, #tpu.memory_space<vmem>>, vector<1x64x39xf32>
    %116 = vector.shape_cast %115 : vector<1x64x39xf32> to vector<64x39xf32>
    %cst_42 = arith.constant dense<0.000000e+00> : vector<64x768xf32>
    %117 = tpu.matmul %116, %0, %cst_42 {dimension_numbers = #tpu.dot_dimension_numbers<[1], [0], [0], [1], [0, 0, 1, 1], [], []>} : vector<64x39xf32>, vector<39x768xf32>, vector<64x768xf32> -> vector<64x768xf32>
    %118 = arith.addf %114, %117 : vector<64x768xf32>
    %119 = vector.extract_strided_slice %1 {offsets = [0, 2], sizes = [64, 1], strides = [1, 1]} : vector<64x5xf32> to vector<64x1xf32>
    %120 = vector.broadcast %119 : vector<64x1xf32> to vector<64x768xf32>
    %121 = arith.addf %118, %120 : vector<64x768xf32>
    %cst_43 = arith.constant 2.000000e+01 : f32
    %122 = vector.broadcast %cst_43 : f32 to vector<64x768xf32>
    %123 = arith.minimumf %121, %122 : vector<64x768xf32>
    %124 = math.exp %123 : vector<64x768xf32>
    %cst_44 = arith.constant 2.000000e+00 : f32
    %125 = vector.broadcast %cst_44 : f32 to vector<64x768xf32>
    %126 = arith.addf %124, %125 : vector<64x768xf32>
    %127 = arith.mulf %124, %126 : vector<64x768xf32>
    %cst_45 = arith.constant 2.000000e+01 : f32
    %128 = vector.broadcast %cst_45 : f32 to vector<64x768xf32>
    %129 = arith.cmpf ogt, %121, %128 : vector<64x768xf32>
    %cst_46 = arith.constant 2.000000e+00 : f32
    %130 = vector.broadcast %cst_46 : f32 to vector<64x768xf32>
    %131 = arith.addf %127, %130 : vector<64x768xf32>
    %132 = arith.divf %127, %131 : vector<64x768xf32>
    %133 = arith.mulf %121, %132 : vector<64x768xf32>
    %134 = arith.select %129, %121, %133 : vector<64x768xi1>, vector<64x768xf32>
    %c2 = arith.constant 2 : index
    %c0_47 = arith.constant 0 : index
    %135 = vector.load %arg5[%c2, %c0_47] : memref<8x768xf32, #tpu.memory_space<vmem>>, vector<1x768xf32>
    %c6 = arith.constant 6 : index
    %c0_48 = arith.constant 0 : index
    %136 = vector.load %arg5[%c6, %c0_48] : memref<8x768xf32, #tpu.memory_space<vmem>>, vector<1x768xf32>
    %cst_49 = arith.constant dense<0.000000e+00> : vector<768xf32>
    %137 = vector.multi_reduction <add>, %134, %cst_49 [0] : vector<64x768xf32> to vector<768xf32>
    %138 = vector.shape_cast %137 : vector<768xf32> to vector<1x768xf32>
    %139 = arith.mulf %134, %134 : vector<64x768xf32>
    %cst_50 = arith.constant dense<0.000000e+00> : vector<768xf32>
    %140 = vector.multi_reduction <add>, %139, %cst_50 [0] : vector<64x768xf32> to vector<768xf32>
    %141 = vector.shape_cast %140 : vector<768xf32> to vector<1x768xf32>
    %142 = tpu.concatenate %138, %141 in 0 : vector<1x768xf32>, vector<1x768xf32> -> vector<2x768xf32>
    %143 = vector.extract_strided_slice %142 {offsets = [0, 0], sizes = [2, 192], strides = [1, 1]} : vector<2x768xf32> to vector<2x192xf32>
    %144 = vector.extract_strided_slice %142 {offsets = [0, 192], sizes = [2, 192], strides = [1, 1]} : vector<2x768xf32> to vector<2x192xf32>
    %145 = arith.addf %143, %144 : vector<2x192xf32>
    %146 = vector.extract_strided_slice %142 {offsets = [0, 384], sizes = [2, 192], strides = [1, 1]} : vector<2x768xf32> to vector<2x192xf32>
    %147 = arith.addf %145, %146 : vector<2x192xf32>
    %148 = vector.extract_strided_slice %142 {offsets = [0, 576], sizes = [2, 192], strides = [1, 1]} : vector<2x768xf32> to vector<2x192xf32>
    %149 = arith.addf %147, %148 : vector<2x192xf32>
    %150 = tpu.concatenate %149, %149, %149, %149 in 1 : vector<2x192xf32>, vector<2x192xf32>, vector<2x192xf32>, vector<2x192xf32> -> vector<2x768xf32>
    %151 = vector.extract_strided_slice %150 {offsets = [0, 0], sizes = [1, 768], strides = [1, 1]} : vector<2x768xf32> to vector<1x768xf32>
    %cst_51 = arith.constant 3.906250e-03 : f32
    %152 = vector.broadcast %cst_51 : f32 to vector<1x768xf32>
    %153 = arith.mulf %151, %152 : vector<1x768xf32>
    %154 = vector.extract_strided_slice %150 {offsets = [1, 0], sizes = [1, 768], strides = [1, 1]} : vector<2x768xf32> to vector<1x768xf32>
    %cst_52 = arith.constant 3.906250e-03 : f32
    %155 = vector.broadcast %cst_52 : f32 to vector<1x768xf32>
    %156 = arith.mulf %154, %155 : vector<1x768xf32>
    %157 = arith.mulf %153, %153 : vector<1x768xf32>
    %158 = arith.subf %156, %157 : vector<1x768xf32>
    %cst_53 = arith.constant 0.000000e+00 : f32
    %159 = vector.broadcast %cst_53 : f32 to vector<1x768xf32>
    %160 = arith.maximumf %158, %159 : vector<1x768xf32>
    %161 = vector.broadcast %153 : vector<1x768xf32> to vector<64x768xf32>
    %162 = arith.subf %134, %161 : vector<64x768xf32>
    %cst_54 = arith.constant 9.99999974E-6 : f32
    %163 = vector.broadcast %cst_54 : f32 to vector<1x768xf32>
    %164 = arith.addf %160, %163 : vector<1x768xf32>
    %165 = math.rsqrt %164 : vector<1x768xf32>
    %166 = arith.mulf %165, %135 : vector<1x768xf32>
    %167 = vector.broadcast %166 : vector<1x768xf32> to vector<64x768xf32>
    %168 = arith.mulf %162, %167 : vector<64x768xf32>
    %169 = vector.broadcast %136 : vector<1x768xf32> to vector<64x768xf32>
    %170 = arith.addf %168, %169 : vector<64x768xf32>
    %c2_55 = arith.constant 2 : index
    %c0_56 = arith.constant 0 : index
    %c0_57 = arith.constant 0 : index
    %171 = vector.load %arg3[%c2_55, %c0_56, %c0_57] : memref<3x64x64xf32, #tpu.memory_space<vmem>>, vector<1x64x64xf32>
    %172 = vector.shape_cast %171 : vector<1x64x64xf32> to vector<64x64xf32>
    %cst_58 = arith.constant dense<0.000000e+00> : vector<64x768xf32>
    %173 = tpu.matmul %172, %170, %cst_58 {dimension_numbers = #tpu.dot_dimension_numbers<[1], [0], [0], [1], [0, 0, 1, 1], [], []>} : vector<64x64xf32>, vector<64x768xf32>, vector<64x768xf32> -> vector<64x768xf32>
    %174 = vector.extract_strided_slice %1 {offsets = [0, 3], sizes = [64, 1], strides = [1, 1]} : vector<64x5xf32> to vector<64x1xf32>
    %175 = vector.broadcast %174 : vector<64x1xf32> to vector<64x768xf32>
    %176 = arith.addf %173, %175 : vector<64x768xf32>
    %cst_59 = arith.constant 2.000000e+01 : f32
    %177 = vector.broadcast %cst_59 : f32 to vector<64x768xf32>
    %178 = arith.minimumf %176, %177 : vector<64x768xf32>
    %179 = math.exp %178 : vector<64x768xf32>
    %cst_60 = arith.constant 2.000000e+00 : f32
    %180 = vector.broadcast %cst_60 : f32 to vector<64x768xf32>
    %181 = arith.addf %179, %180 : vector<64x768xf32>
    %182 = arith.mulf %179, %181 : vector<64x768xf32>
    %cst_61 = arith.constant 2.000000e+01 : f32
    %183 = vector.broadcast %cst_61 : f32 to vector<64x768xf32>
    %184 = arith.cmpf ogt, %176, %183 : vector<64x768xf32>
    %cst_62 = arith.constant 2.000000e+00 : f32
    %185 = vector.broadcast %cst_62 : f32 to vector<64x768xf32>
    %186 = arith.addf %182, %185 : vector<64x768xf32>
    %187 = arith.divf %182, %186 : vector<64x768xf32>
    %188 = arith.mulf %176, %187 : vector<64x768xf32>
    %189 = arith.select %184, %176, %188 : vector<64x768xi1>, vector<64x768xf32>
    %c3 = arith.constant 3 : index
    %c0_63 = arith.constant 0 : index
    %190 = vector.load %arg5[%c3, %c0_63] : memref<8x768xf32, #tpu.memory_space<vmem>>, vector<1x768xf32>
    %c7 = arith.constant 7 : index
    %c0_64 = arith.constant 0 : index
    %191 = vector.load %arg5[%c7, %c0_64] : memref<8x768xf32, #tpu.memory_space<vmem>>, vector<1x768xf32>
    %cst_65 = arith.constant dense<0.000000e+00> : vector<768xf32>
    %192 = vector.multi_reduction <add>, %189, %cst_65 [0] : vector<64x768xf32> to vector<768xf32>
    %193 = vector.shape_cast %192 : vector<768xf32> to vector<1x768xf32>
    %194 = arith.mulf %189, %189 : vector<64x768xf32>
    %cst_66 = arith.constant dense<0.000000e+00> : vector<768xf32>
    %195 = vector.multi_reduction <add>, %194, %cst_66 [0] : vector<64x768xf32> to vector<768xf32>
    %196 = vector.shape_cast %195 : vector<768xf32> to vector<1x768xf32>
    %197 = tpu.concatenate %193, %196 in 0 : vector<1x768xf32>, vector<1x768xf32> -> vector<2x768xf32>
    %198 = vector.extract_strided_slice %197 {offsets = [0, 0], sizes = [2, 192], strides = [1, 1]} : vector<2x768xf32> to vector<2x192xf32>
    %199 = vector.extract_strided_slice %197 {offsets = [0, 192], sizes = [2, 192], strides = [1, 1]} : vector<2x768xf32> to vector<2x192xf32>
    %200 = arith.addf %198, %199 : vector<2x192xf32>
    %201 = vector.extract_strided_slice %197 {offsets = [0, 384], sizes = [2, 192], strides = [1, 1]} : vector<2x768xf32> to vector<2x192xf32>
    %202 = arith.addf %200, %201 : vector<2x192xf32>
    %203 = vector.extract_strided_slice %197 {offsets = [0, 576], sizes = [2, 192], strides = [1, 1]} : vector<2x768xf32> to vector<2x192xf32>
    %204 = arith.addf %202, %203 : vector<2x192xf32>
    %205 = tpu.concatenate %204, %204, %204, %204 in 1 : vector<2x192xf32>, vector<2x192xf32>, vector<2x192xf32>, vector<2x192xf32> -> vector<2x768xf32>
    %206 = vector.extract_strided_slice %205 {offsets = [0, 0], sizes = [1, 768], strides = [1, 1]} : vector<2x768xf32> to vector<1x768xf32>
    %cst_67 = arith.constant 3.906250e-03 : f32
    %207 = vector.broadcast %cst_67 : f32 to vector<1x768xf32>
    %208 = arith.mulf %206, %207 : vector<1x768xf32>
    %209 = vector.extract_strided_slice %205 {offsets = [1, 0], sizes = [1, 768], strides = [1, 1]} : vector<2x768xf32> to vector<1x768xf32>
    %cst_68 = arith.constant 3.906250e-03 : f32
    %210 = vector.broadcast %cst_68 : f32 to vector<1x768xf32>
    %211 = arith.mulf %209, %210 : vector<1x768xf32>
    %212 = arith.mulf %208, %208 : vector<1x768xf32>
    %213 = arith.subf %211, %212 : vector<1x768xf32>
    %cst_69 = arith.constant 0.000000e+00 : f32
    %214 = vector.broadcast %cst_69 : f32 to vector<1x768xf32>
    %215 = arith.maximumf %213, %214 : vector<1x768xf32>
    %216 = vector.broadcast %208 : vector<1x768xf32> to vector<64x768xf32>
    %217 = arith.subf %189, %216 : vector<64x768xf32>
    %cst_70 = arith.constant 9.99999974E-6 : f32
    %218 = vector.broadcast %cst_70 : f32 to vector<1x768xf32>
    %219 = arith.addf %215, %218 : vector<1x768xf32>
    %220 = math.rsqrt %219 : vector<1x768xf32>
    %221 = arith.mulf %220, %190 : vector<1x768xf32>
    %222 = vector.broadcast %221 : vector<1x768xf32> to vector<64x768xf32>
    %223 = arith.mulf %217, %222 : vector<64x768xf32>
    %224 = vector.broadcast %191 : vector<1x768xf32> to vector<64x768xf32>
    %225 = arith.addf %223, %224 : vector<64x768xf32>
    %c0_71 = arith.constant 0 : index
    %c0_72 = arith.constant 0 : index
    %226 = vector.load %arg1[%c0_71, %c0_72] : memref<32x4xf32, #tpu.memory_space<vmem>>, vector<32x4xf32>
    %c0_73 = arith.constant 0 : index
    %c0_74 = arith.constant 0 : index
    %227 = vector.load %arg9[%c0_73, %c0_74] : memref<4x768xf32, #tpu.memory_space<vmem>>, vector<4x768xf32>
    %cst_75 = arith.constant dense<0.000000e+00> : vector<32x768xf32>
    %228 = tpu.matmul %226, %227, %cst_75 {dimension_numbers = #tpu.dot_dimension_numbers<[1], [0], [0], [1], [0, 0, 1, 1], [], []>} : vector<32x4xf32>, vector<4x768xf32>, vector<32x768xf32> -> vector<32x768xf32>
    %c0_76 = arith.constant 0 : index
    %c0_77 = arith.constant 0 : index
    %229 = vector.load %arg6[%c0_76, %c0_77] : memref<32x64xf32, #tpu.memory_space<vmem>>, vector<32x64xf32>
    %cst_78 = arith.constant dense<0.000000e+00> : vector<32x768xf32>
    %230 = tpu.matmul %229, %225, %cst_78 {dimension_numbers = #tpu.dot_dimension_numbers<[1], [0], [0], [1], [0, 0, 1, 1], [], []>} : vector<32x64xf32>, vector<64x768xf32>, vector<32x768xf32> -> vector<32x768xf32>
    %231 = arith.addf %230, %228 : vector<32x768xf32>
    %cst_79 = arith.constant 0.000000e+00 : f32
    %232 = vector.broadcast %cst_79 : f32 to vector<32x768xf32>
    %233 = arith.maximumf %231, %232 : vector<32x768xf32>
    %c0_80 = arith.constant 0 : index
    %c0_81 = arith.constant 0 : index
    %234 = vector.load %arg7[%c0_80, %c0_81] : memref<4x64xf32, #tpu.memory_space<vmem>>, vector<4x64xf32>
    %cst_82 = arith.constant dense<0.000000e+00> : vector<4x768xf32>
    %235 = tpu.matmul %234, %225, %cst_82 {dimension_numbers = #tpu.dot_dimension_numbers<[1], [0], [0], [1], [0, 0, 1, 1], [], []>} : vector<4x64xf32>, vector<64x768xf32>, vector<4x768xf32> -> vector<4x768xf32>
    %c0_83 = arith.constant 0 : index
    %c0_84 = arith.constant 0 : index
    %236 = vector.load %arg8[%c0_83, %c0_84] : memref<4x32xf32, #tpu.memory_space<vmem>>, vector<4x32xf32>
    %cst_85 = arith.constant dense<0.000000e+00> : vector<4x768xf32>
    %237 = tpu.matmul %236, %233, %cst_85 {dimension_numbers = #tpu.dot_dimension_numbers<[1], [0], [0], [1], [0, 0, 1, 1], [], []>} : vector<4x32xf32>, vector<32x768xf32>, vector<4x768xf32> -> vector<4x768xf32>
    %238 = arith.addf %235, %237 : vector<4x768xf32>
    %239 = vector.extract_strided_slice %1 {offsets = [0, 4], sizes = [4, 1], strides = [1, 1]} : vector<64x5xf32> to vector<4x1xf32>
    %240 = vector.broadcast %239 : vector<4x1xf32> to vector<4x768xf32>
    %241 = arith.addf %238, %240 : vector<4x768xf32>
    %242 = math.absf %241 : vector<4x768xf32>
    %cst_86 = arith.constant 0.000000e+00 : f32
    %243 = vector.broadcast %cst_86 : f32 to vector<4x768xf32>
    %244 = arith.subf %243, %242 : vector<4x768xf32>
    %245 = math.exp %244 : vector<4x768xf32>
    %cst_87 = arith.constant 0.000000e+00 : f32
    %246 = vector.broadcast %cst_87 : f32 to vector<4x768xf32>
    %247 = arith.cmpf oge, %241, %246 : vector<4x768xf32>
    %cst_88 = arith.constant 1.000000e+00 : f32
    %248 = vector.broadcast %cst_88 : f32 to vector<4x768xf32>
    %249 = arith.addf %248, %245 : vector<4x768xf32>
    %cst_89 = arith.constant 1.000000e+00 : f32
    %250 = vector.broadcast %cst_89 : f32 to vector<4x768xf32>
    %251 = arith.divf %250, %249 : vector<4x768xf32>
    %cst_90 = arith.constant 1.000000e+00 : f32
    %252 = vector.broadcast %cst_90 : f32 to vector<4x768xf32>
    %253 = arith.addf %252, %245 : vector<4x768xf32>
    %254 = arith.divf %245, %253 : vector<4x768xf32>
    %255 = arith.select %247, %251, %254 : vector<4x768xi1>, vector<4x768xf32>
    %256 = tpu.iota {dimensions = array<i32: 0>} : vector<4x768xi32>
    %c0_i32 = arith.constant 0 : i32
    %257 = vector.broadcast %c0_i32 : i32 to vector<4x768xi32>
    %258 = arith.cmpi eq, %256, %257 : vector<4x768xi32>
    %cst_91 = arith.constant 0.000000e+00 : f32
    %259 = vector.broadcast %cst_91 : f32 to vector<4x768xf32>
    %260 = arith.maximumf %241, %259 : vector<4x768xf32>
    %261 = arith.select %258, %260, %255 : vector<4x768xi1>, vector<4x768xf32>
    %c0_92 = arith.constant 0 : index
    %c0_93 = arith.constant 0 : index
    %262 = vector.load %arg10[%c0_92, %c0_93] : memref<4x768xf32, #tpu.memory_space<vmem>>, vector<4x768xf32>
    tpu.vector_store %arg10[%c0_92, %c0_93], %261 {strides = array<i32>} : memref<4x768xf32, #tpu.memory_space<vmem>>, vector<4x768xf32>,
    return
  }
}

</mosaic_0001>

<bundles_post_ra>
// kernel: squeeze.0
= control target key start
LH: loop header
LB: loop body
LE: loop exit
PB: predicated region body
PF: predicated region fallthrough
CT: control target
= control target key end

     0   :  { %s4_s6 = smov 3  ;;  %vm6_vm0 = vcmask 523264   ;;  %s19_s9 = smov 3  ;;  %s168_s0 = inlined_call_operand.vmem [shape: f32[768], index: 0, kind: input, shape index: {}]   ;;  %s169_s1 = inlined_call_operand.hbm [shape: f32[4,192,1], index: 1, kind: output, shape index: {}]  }
   0x1   :  { %v99_v0 = vld.sshfl [vmem:[%s168_s0 + $0x1] sm:$0xff pattern:$0x44444310]  }
   0x2   :  { %v98_v1 = vld [vmem:[%s168_s0 + $0x1] ss:$3 sm:%s4_s6]   ;;  %v100_v2 = vld [vmem:[%s168_s0 + $0x2] ss:$3 sm:%s19_s9]  }
   0x3   :  { %8 = vst.msk [vmem:[#allocation2 + $0x8] sm:$0x1] %vm6_vm0, %v98_v1   ;;  %10 = vst.msk [vmem:[#allocation2 + $0x27] sm:$0x2] %vm6_vm0, %v98_v1   ;;  %v22_v3 = vsel %vm6_vm0, %v100_v2, %v99_v0 }
   0x4   :  { %2 = vsyncpa [#allocation1], 0  ;;  %s11_s14 = smov 3  ;;  %s127_s15 = smov 64   ;;  %vm30_vm1 = vcmask 1048064  }
   0x5   :  { %23 = vrot.lane.b32.xlu0 %v22_v3, %s127_s15  ;;  %v12_v4 = vld [vmem:[%s168_s0] ss:$3 sm:%s11_s14]   ;;  %s128_s0 = smov [#allocation0]  }
   0x6   :  { %13 = vst [vmem:[#allocation2] sm:$0x1] %v12_v4   ;;  %15 = vst [vmem:[#allocation2 + $0x1f] sm:$0x2] %v12_v4   ;;  %s86_s18 = sshll.u32 %s128_s0, 4  ;;  %s87_s18 = int_to_ptr.vmem [resolvable:$true] %s86_s18 }
   0x7   :  { %s103_s19 = scalar_lea.vmem %s87_s18, 128  ;;  %p108_p1 = scmp.lt.s32.totalorder %s87_s18, %s87_s18 }
   0x8   :  { %p104_p0 = scmp.ne.s32.totalorder %s87_s18, %s103_s19  ;;  %p109_p2 = scmp.lt.s32.totalorder %s103_s19, %s103_s19 }
   0xa   :  { %v42_v5 = vld [vmem:[#allocation2 + $0x8] sm:$0x1]  ;;  %p110_p3 = por %p109_p2, %p108_p1 }
   0xb   :  { %v65_v6 = vld [vmem:[#allocation2 + $0x28] sm:$0x1]  ;;  %45 = vst [vmem:[#allocation0 + $0x1] sm:$0x1] %v42_v5 }
   0xc   :  { %69 = vst [vmem:[#allocation0 + $0x5] sm:$0x1] %v65_v6  ;;  %p111_p4 = pnand %p110_p3, %p104_p0 }
   0xd   :  { %v38_v7 = vld [vmem:[#allocation2] sm:$0x1] }
   0xe   :  { %v59_v8 = vld [vmem:[#allocation2 + $0x20] sm:$0x1]  ;;  %40 = vst [vmem:[#allocation0] sm:$0x1] %v38_v7 }
   0xf   :  { %63 = vst [vmem:[#allocation0 + $0x4] sm:$0x1] %v59_v8 }
  0x77   :  { %v24_v9 = vpop.permute.xlu0 %23  }
  0x78   :  { %27 = vst.msk [vmem:[#allocation2 + $0x10] ss:$8 sm:$0x3] %vm6_vm0, %v24_v9   ;;  %29 = vst.msk [vmem:[#allocation2 + $0x20] ss:$8 sm:$0xc] %vm6_vm0, %v24_v9  }
  0x79   :  { %32 = vst.msk [vmem:[#allocation2 + $0x10] sm:$0x1] %vm30_vm1, %v24_v9   ;;  %34 = vst.msk [vmem:[#allocation2 + $0x2f] sm:$0x2] %vm30_vm1, %v24_v9  }
  0x7f   :  { %v53_v10 = vld [vmem:[#allocation2 + $0x18] sm:$0x1] }
  0x80   :  { %v77_v11 = vld [vmem:[#allocation2 + $0x38] sm:$0x1]  ;;  %v47_v12 = vld [vmem:[#allocation2 + $0x10] sm:$0x1]  ;;  %57 = vst [vmem:[#allocation0 + $0x3] sm:$0x1] %v53_v10 }
  0x81   :  { %v71_v13 = vld [vmem:[#allocation2 + $0x30] sm:$0x1]  ;;  %81 = vst [vmem:[#allocation0 + $0x7] sm:$0x1] %v77_v11  ;;  %51 = vst [vmem:[#allocation0 + $0x2] sm:$0x1] %v47_v12 }
  0x82   :  { %75 = vst [vmem:[#allocation0 + $0x6] sm:$0x1] %v71_v13 }
  0x83   :  { %114 = shalt.err (!%p111_p4)
}
  0x84   :  { %s115_s22 = scalar_lea.hbm %s169_s1, 128 }
  0x85   :  { %p116_p5 = scmp.ne.s32.totalorder %s169_s1, %s115_s22  ;;  %p119_p6 = scmp.lt.u32.totalorder %s115_s22, %s169_s1 }
  0x87   :  { %p121_p7 = pnand %p119_p6, %p116_p5 }
  0x89   :  { %124 = shalt.err (!%p121_p7)
}
  0x8a   :  { %89 = dma.vmem_to_hbm [thread:$0]  %s87_s18, 128, %s169_s1, [#allocation1]  }
  0x8b   :  { %125 = dma.done.wait [#allocation1], 128  }
  0x8c   :  { %126 = vsyncadd [#allocation1], 4294967168 }
  0x8d   :  { %91 = vsyncpa [#allocation1], 1 }

// kernel: nerf_hires_forward.1
= control target key start
LH: loop header
LB: loop body
LE: loop exit
PB: predicated region body
PF: predicated region fallthrough
CT: control target
= control target key end

     0   :  { %v15315_v3 = vmov 0.0   ;;  %v8978_v8 = vmov 0   ;;  %vm146_vm0 = vcmask 1046528   ;;  %vm121_vm1 = vcmask 318464   ;;  %s8979_s25 = smov 64   ;;  %s15304_s0 = inlined_call_operand.vmem [shape: f32[39,768], index: 0, kind: input, shape index: {}]   ;;  %s15305_s2 = inlined_call_operand.vmem [shape: f32[2,64,39], index: 2, kind: input, shape index: {}]   ;;  %s15306_s4 = inlined_call_operand.vmem [shape: f32[64,5], index: 4, kind: input, shape index: {}]   ;;  %s15307_s5 = inlined_call_operand.vmem [shape: f32[8,768], index: 5, kind: input, shape index: {}]   ;;  %s15308_s3 = inlined_call_operand.vmem [shape: f32[3,64,64], index: 3, kind: input, shape index: {}]   ;;  %s15309_s9 = inlined_call_operand.vmem [shape: f32[4,768], index: 9, kind: input, shape index: {}]   ;;  %s15310_s1 = inlined_call_operand.vmem [shape: f32[32,4], index: 1, kind: input, shape index: {}]   ;;  %s15311_s6 = inlined_call_operand.vmem [shape: f32[32,64], index: 6, kind: input, shape index: {}]   ;;  %s15312_s8 = inlined_call_operand.vmem [shape: f32[4,32], index: 8, kind: input, shape index: {}]   ;;  %s15313_s7 = inlined_call_operand.vmem [shape: f32[4,64], index: 7, kind: input, shape index: {}]   ;;  %s15314_s10 = inlined_call_operand.vmem [shape: f32[4,768], index: 10, kind: output, shape index: {}]  }
   0x1   :  { %v36_v0 = vld [vmem:[%s15304_s0 + $0x8] sm:$0xff]  ;;  %v42_v1 = vld [vmem:[%s15304_s0 + $0x38] sm:$0xff]  ;;  %v35_v2 = vld [vmem:[%s15304_s0] sm:$0xff]  ;;  %229 = vmatprep.mubr.f32.mxu0 %v15315_v3  ;;  %259 = vmatprep.mubr.f32.mxu1 %v15315_v3 }
   0x2   :  { %v9050_v4 = vpack.c.bf16 %v42_v1, %v36_v0  ;;  %v41_v5 = vld [vmem:[%s15304_s0 + $0x30] sm:$0xff]  ;;  %v48_v6 = vld [vmem:[%s15304_s0 + $0x68] sm:$0xff]  ;;  %v54_v7 = vld [vmem:[%s15304_s0 + $0x98] sm:$0xff]  ;;  %8118 = vset.pattern.permute.xlu1 %v8978_v8  ;;  %8117 = vset.pattern.permute.xlu0 %v8978_v8 }
   0x3   :  { %v9061_v9 = vpack.c.bf16 %v41_v5, %v35_v2  ;;  %v9063_v10 = vpack.c.bf16 %v54_v7, %v48_v6  ;;  %v47_v11 = vld [vmem:[%s15304_s0 + $0x60] sm:$0xff]  ;;  %v53_v12 = vld [vmem:[%s15304_s0 + $0x90] sm:$0xff]  ;;  %v60_v14 = vld [vmem:[%s15304_s0 + $0xc8] sm:$0x7f] }
   0x4   :  { %15534 = vst [vmem:[#allocation2_spill] sm:$0xff] %v9050_v4  ;;  %7715 = vmatprep.subr.bf16.mxu0 %v9050_v4  ;;  %8026 = vmatprep.subr.bf16.mxu1 %v9050_v4  ;;  %v9075_v13 = vpack.c.bf16 %v53_v12, %v47_v11  ;;  %v59_v15 = vld [vmem:[%s15304_s0 + $0xc0] sm:$0x7f]  ;;  %v38_v16 = vld [vmem:[%s15304_s0 + $0x18] sm:$0xff]  ;;  %v44_v17 = vld [vmem:[%s15304_s0 + $0x48] sm:$0xff] }
   0x5   :  { %15535 = vst [vmem:[#allocation3_spill] sm:$0xff] %v9061_v9  ;;  %15536 = vst [vmem:[#allocation4_spill] sm:$0xff] %v9063_v10  ;;  %7717 = vmatpush1.bf16.msra.mxu0 %v9061_v9  ;;  %8029 = vmatpush1.bf16.msra.mxu1 %v9061_v9  ;;  %v37_v18 = vld [vmem:[%s15304_s0 + $0x10] sm:$0xff]  ;;  %v43_v19 = vld [vmem:[%s15304_s0 + $0x40] sm:$0xff]  ;;  %v9123_v26 = vpack.c.bf16 %v44_v17, %v38_v16 }
   0x6   :  { %15537 = vst [vmem:[#allocation5_spill] sm:$0xff] %v9075_v13  ;;  %7719 = vmatprep.subr.bf16.mxu0 %v9063_v10  ;;  %8027 = vmatprep.subr.bf16.mxu1 %v9063_v10  ;;  %v50_v20 = vld [vmem:[%s15304_s0 + $0x78] sm:$0xff]  ;;  %v56_v21 = vld [vmem:[%s15304_s0 + $0xa8] sm:$0xff]  ;;  %v9116_v24 = vld [vmem:[%s15305_s2] sm:$0xff]  ;;  %v9125_v27 = vpack.c.bf16 %v43_v19, %v37_v18 }
   0x7   :  { %v40_v22 = vld [vmem:[%s15304_s0 + $0x28] sm:$0xff]  ;;  %v46_v23 = vld [vmem:[%s15304_s0 + $0x58] sm:$0xff]  ;;  %15538 = vst [vmem:[#allocation6_spill] sm:$0xff] %v9123_v26  ;;  %v49_v28 = vld [vmem:[%s15304_s0 + $0x70] sm:$0xff]  ;;  %v9132_v29 = vpack.c.bf16 %v56_v21, %v50_v20 }
   0x8   :  { %v9121_v25 = vld [vmem:[%s15305_s2 + $0x28] sm:$0xff]  ;;  %15539 = vst [vmem:[#allocation7_spill] sm:$0xff] %v9125_v27  ;;  %v55_v30 = vld [vmem:[%s15304_s0 + $0xa0] sm:$0xff]  ;;  %v9137_v31 = vpack.c.bf16 %v46_v23, %v40_v22  ;;  %v45_v33 = vld [vmem:[%s15304_s0 + $0x50] sm:$0xff] }
   0x9   :  { %7721 = vmatpush1.bf16.msra.mxu0 %v9075_v13  ;;  %8030 = vmatpush1.bf16.msra.mxu1 %v9075_v13  ;;  %15540 = vst [vmem:[#allocation8_spill] sm:$0xff] %v9132_v29  ;;  %v39_v32 = vld [vmem:[%s15304_s0 + $0x20] sm:$0xff]  ;;  %v52_v34 = vld [vmem:[%s15304_s0 + $0x88] sm:$0xff]  ;;  %v58_v35 = vld [vmem:[%s15304_s0 + $0xb8] sm:$0xff]  ;;  %v9169_v38 = vpack.c.bf16 %v55_v30, %v49_v28 }
   0xa   :  { %7508 = vmatprep.subr.msk.mxu0 %vm146_vm0, %v60_v14  ;;  %8028 = vmatprep.subr.msk.mxu1 %vm146_vm0, %v60_v14  ;;  %15541 = vst [vmem:[#allocation9_spill] sm:$0xff] %v9137_v31  ;;  %v9160_v36 = vld [vmem:[%s15305_s2 + $0x8] sm:$0xff]  ;;  %v9165_v37 = vld [vmem:[%s15305_s2 + $0x30] sm:$0xff]  ;;  %v9171_v39 = vpack.c.bf16 %v45_v33, %v39_v32  ;;  %v9175_v40 = vpack.c.bf16 %v58_v35, %v52_v34  ;;  %v51_v41 = vld [vmem:[%s15304_s0 + $0x80] sm:$0xff] }
   0xb   :  { %15542 = vst [vmem:[#allocation10_spill] sm:$0xff] %v9169_v38  ;;  %v57_v42 = vld [vmem:[%s15304_s0 + $0xb0] sm:$0xff]  ;;  %v62_v43 = vld [vmem:[%s15304_s0 + $0xd8] sm:$0x7f]  ;;  %v64_v48 = vld [vmem:[%s15304_s0 + $0xe8] sm:$0x7f] }
   0xc   :  { %15543 = vst [vmem:[#allocation11_spill] sm:$0xff] %v9171_v39  ;;  %15544 = vst [vmem:[#allocation12_spill] sm:$0xff] %v9175_v40  ;;  %v75_v44 = vld [vmem:[%s15305_s2 + $0x10] sm:$0xff]  ;;  %v9198_v45 = vld [vmem:[%s15305_s2 + $0x38] sm:$0xff]  ;;  %v9202_v46 = vpack.c.bf16 %v57_v42, %v51_v41 }
   0xd   :  { %7509 = vmatpush1.msk.msra.mxu0 %vm146_vm0, %v59_v15  ;;  %8031 = vmatpush1.msk.msra.mxu1 %vm146_vm0, %v59_v15  ;;  %v61_v47 = vld [vmem:[%s15304_s0 + $0xd0] sm:$0x7f]  ;;  %v76_v50 = vld [vmem:[%s15305_s2 + $0x18] sm:$0xff]  ;;  %v63_v51 = vld [vmem:[%s15304_s0 + $0xe0] sm:$0x7f] }
   0xe   :  { %7510 = vmatmul.mubr.msk.f32.vlgmr.msra.gmra.mrb[0].mxu0 %vm121_vm1, %v9116_v24  ;;  %7515 = vmatmul.mubr.msk.f32.vlgmr.msra.gmra.mrb[0].mxu1 %vm121_vm1, %v9121_v25  ;;  %15545 = vst [vmem:[#allocation13_spill] sm:$0xff] %v9202_v46  ;;  %v67_v49 = vld [vmem:[%s15306_s4 + $0x10] sm:$0xff]  ;;  %v65_v52 = vld [vmem:[%s15306_s4] sm:$0xff]  ;;  %v68_v53 = vld [vmem:[%s15306_s4 + $0x18] sm:$0xff] }
   0xf   :  { %7723 = vmatprep.subr.bf16.mxu1 %v9123_v26  ;;  %235 = vmatprep.mubr.f32.mxu0 %v15315_v3  ;;  %v77_v54 = vld [vmem:[%s15305_s2 + $0x20] sm:$0xff]  ;;  %v66_v55 = vld [vmem:[%s15306_s4 + $0x8] sm:$0xff]  ;;  %v72_v58 = vld [vmem:[%s15306_s4 + $0x38] sm:$0xff] }
  0x10   :  { %265 = vmatprep.mubr.f32.mxu1 %v15315_v3  ;;  %7725 = vmatpush1.bf16.msra.mxu1 %v9125_v27  ;;  %v70_v56 = vld [vmem:[%s15306_s4 + $0x28] sm:$0xff]  ;;  %v69_v57 = vld [vmem:[%s15306_s4 + $0x20] sm:$0xff]  ;;  %v71_v59 = vld [vmem:[%s15306_s4 + $0x30] sm:$0xff] }
  0x11   :  { %7727 = vmatprep.subr.bf16.mxu1 %v9132_v29  ;;  %7731 = vmatprep.subr.bf16.mxu0 %v9137_v31 }
  0x12   :  { %7511 = vmatmul.mubr.msk.f32.gmra.mrb[2].mxu0 %vm121_vm1, %v9160_v36  ;;  %7516 = vmatmul.mubr.msk.f32.gmra.mrb[2].mxu1 %vm121_vm1, %v9165_v37 }
  0x13   :  { %241 = vmatprep.mubr.f32.mxu0 %v15315_v3  ;;  %271 = vmatprep.mubr.f32.mxu1 %v15315_v3 }
  0x14   :  { %7729 = vmatpush1.bf16.msra.mxu1 %v9169_v38  ;;  %7733 = vmatpush1.bf16.msra.mxu0 %v9171_v39 }
  0x15   :  { %7518 = vmatprep.subr.msk.mxu1 %vm146_vm0, %v62_v43  ;;  %7735 = vmatprep.subr.bf16.mxu0 %v9175_v40 }
  0x16   :  { %7512 = vmatmul.mubr.msk.f32.gmra.mrb[4].mxu0 %vm121_vm1, %v75_v44  ;;  %7517 = vmatmul.mubr.msk.f32.gmra.mrb[4].mxu1 %vm121_vm1, %v9198_v45 }
  0x17   :  { %247 = vmatprep.mubr.f32.mxu0 %v15315_v3  ;;  %342 = vmatprep.mubr.f32.mxu1 %v15315_v3 }
  0x18   :  { %7519 = vmatpush1.msk.msra.mxu1 %vm146_vm0, %v61_v47  ;;  %7737 = vmatpush1.bf16.msra.mxu0 %v9202_v46 }
  0x19   :  { %7528 = vmatprep.subr.msk.mxu0 %vm146_vm0, %v64_v48  ;;  %93 = vperm.xlu1 %8118, %v67_v49  }
  0x1a   :  { %7513 = vmatmul.mubr.msk.f32.gmra.mrb[6].mxu0 %vm121_vm1, %v76_v50  ;;  %7520 = vmatmul.mubr.msk.f32.vlgmr.msra.gmra.mrb[6].mxu1 %vm121_vm1, %v9116_v24 }
  0x1b   :  { %253 = vmatprep.mubr.f32.mxu0 %v15315_v3  ;;  %348 = vmatprep.mubr.f32.mxu1 %v15315_v3 }
  0x1c   :  { %7529 = vmatpush1.msk.msra.mxu0 %vm146_vm0, %v63_v51  ;;  %83 = vperm.xlu0 %8117, %v65_v52  }
  0x1d   :  { %98 = vperm.xlu1 %8118, %v68_v53  }
  0x1e   :  { %7514 = vmatmul.mubr.msk.f32.gmra.mrb[8].mxu0 %vm121_vm1, %v77_v54  ;;  %7521 = vmatmul.mubr.msk.f32.gmra.mrb[8].mxu1 %vm121_vm1, %v9160_v36 }
  0x1f   :  { %354 = vmatprep.mubr.f32.mxu1 %v15315_v3  ;;  %455 = vmatprep.mubr.f32.mxu0 %v15315_v3 }
  0x20   :  { %88 = vperm.xlu0 %8117, %v66_v55  }
  0x21   :  { %108 = vperm.xlu1 %8118, %v70_v56  }
  0x22   :  { %7522 = vmatmul.mubr.msk.f32.gmra.mrb[10].mxu1 %vm121_vm1, %v75_v44  ;;  %7530 = vmatmul.mubr.msk.f32.vlgmr.msra.gmra.mrb[10].mxu0 %vm121_vm1, %v9116_v24 }
  0x23   :  { %360 = vmatprep.mubr.f32.mxu1 %v15315_v3  ;;  %461 = vmatprep.mubr.f32.mxu0 %v15315_v3 }
  0x24   :  { %103 = vperm.xlu0 %8117, %v69_v57  }
  0x25   :  { %118 = vperm.xlu1 %8118, %v72_v58  }
  0x26   :  { %7523 = vmatmul.mubr.msk.f32.gmra.mrb[12].mxu1 %vm121_vm1, %v76_v50  ;;  %7531 = vmatmul.mubr.msk.f32.gmra.mrb[12].mxu0 %vm121_vm1, %v9160_v36 }
  0x27   :  { %366 = vmatprep.mubr.f32.mxu1 %v15315_v3  ;;  %467 = vmatprep.mubr.f32.mxu0 %v15315_v3 }
  0x28   :  { %113 = vperm.xlu0 %8117, %v71_v59  }
  0x2a   :  { %7524 = vmatmul.mubr.msk.f32.gmra.mrb[14].mxu1 %vm121_vm1, %v77_v54  ;;  %7532 = vmatmul.mubr.msk.f32.gmra.mrb[14].mxu0 %vm121_vm1, %v75_v44 }
  0x2b   :  { %372 = vmatprep.mubr.f32.mxu1 %v15315_v3  ;;  %473 = vmatprep.mubr.f32.mxu0 %v15315_v3 }
  0x2e   :  { %7525 = vmatmul.mubr.msk.f32.gmra.mrb[16].mxu1 %vm121_vm1, %v9121_v25  ;;  %7533 = vmatmul.mubr.msk.f32.gmra.mrb[16].mxu0 %vm121_vm1, %v76_v50 }
  0x2f   :  { %378 = vmatprep.mubr.f32.mxu1 %v15315_v3  ;;  %479 = vmatprep.mubr.f32.mxu0 %v15315_v3 }
  0x32   :  { %7526 = vmatmul.mubr.msk.f32.gmra.mrb[18].mxu1 %vm121_vm1, %v9165_v37  ;;  %7534 = vmatmul.mubr.msk.f32.gmra.mrb[18].mxu0 %vm121_vm1, %v77_v54 }
  0x33   :  { %384 = vmatprep.mubr.f32.mxu1 %v15315_v3  ;;  %485 = vmatprep.mubr.f32.mxu0 %v15315_v3 }
  0x36   :  { %7527 = vmatmul.mubr.msk.f32.gmra.mrb[20].mxu1 %vm121_vm1, %v9198_v45  ;;  %7535 = vmatmul.mubr.msk.f32.gmra.mrb[20].mxu0 %vm121_vm1, %v9121_v25 }
  0x37   :  { %491 = vmatprep.mubr.f32.mxu0 %v15315_v3  ;;  %1688 = vmatprep.mubr.f32.mxu1 %v15315_v3 }
  0x3a   :  { %7536 = vmatmul.mubr.msk.f32.gmra.mrb[22].mxu0 %vm121_vm1, %v9165_v37 }
  0x3b   :  { %497 = vmatprep.mubr.f32.mxu0 %v15315_v3 }
  0x3e   :  { %7537 = vmatmul.mubr.msk.f32.gmra.mrb[24].mxu0 %vm121_vm1, %v9198_v45 }
  0x3f   :  { %1801 = vmatprep.mubr.f32.mxu0 %v15315_v3 }
  0x98   :  { %v9304_v0 = vpop.permute.xlu1 %93 }
  0x9b   :  { %v9306_v1 = vpop.permute.xlu0 %83 }
  0x9c   :  { %15548 = vst [vmem:[#allocation16_spill] sm:$0xff] %v9306_v1  ;;  %v9318_v16 = vpop.permute.xlu1 %98 }
  0x9d   :  { %15554 = vst [vmem:[#allocation22_spill] sm:$0xff] %v9318_v16 }
  0x9f   :  { %v9316_v12 = vpop.permute.xlu0 %88 }
  0xa0   :  { %15553 = vst [vmem:[#allocation21_spill] sm:$0xff] %v9316_v12  ;;  %v9332_v28 = vpop.permute.xlu1 %108 }
  0xa1   :  { %15558 = vst [vmem:[#allocation26_spill] sm:$0xff] %v9332_v28 }
  0xa3   :  { %v9322_v21 = vpop.permute.xlu0 %103 }
  0xa4   :  { %15556 = vst [vmem:[#allocation24_spill] sm:$0xff] %v9322_v21 }
  0xa7   :  { %v9348_v37 = vpop.permute.xlu0 %113 }
  0xe1   :  { %v9300_v60 = vpop.f32.mrb[0].mxu0  ;;  %v9302_v61 = vpop.f32.mrb[0].mxu1 }
  0xe2   :  { %15546 = vst [vmem:[#allocation14_spill] sm:$0xff] %v9300_v60  ;;  %15547 = vst [vmem:[#allocation15_spill] sm:$0xff] %v9302_v61  ;;  %v233_v62 = vpop.f32.mrb[1].mxu0  ;;  %v263_v63 = vpop.f32.mrb[1].mxu1 }
  0xe3   :  { %v9339_v33 = vadd.f32 %v233_v62, %v9306_v1  ;;  %v9346_v36 = vadd.f32 %v263_v63, %v9332_v28  ;;  %v9379_v62 = vpop.permute.xlu1 %118 }
  0xe4   :  { %15559 = vst [vmem:[#allocation27_spill] sm:$0xff] %v9379_v62 }
  0xe5   :  { %v9308_v2 = vpop.f32.mrb[2].mxu0  ;;  %v9310_v5 = vpop.f32.mrb[2].mxu1  ;;  %v505_v44 = vmin.f32 %v9339_v33, 20.0  ;;  %v535_v48 = vmin.f32 %v9346_v36, 20.0  ;;  %vm745_vm2 = vcmp.gt.f32.partialorder %v9339_v33, 20.0  ;;  %vm775_vm4 = vcmp.gt.f32.partialorder %v9346_v36, 20.0 }
  0xe6   :  { %15549 = vst [vmem:[#allocation17_spill] sm:$0xff] %v9308_v2  ;;  %15550 = vst [vmem:[#allocation18_spill] sm:$0xff] %v9310_v5  ;;  %v239_v6 = vpop.f32.mrb[3].mxu0  ;;  %v269_v7 = vpop.f32.mrb[3].mxu1 }
  0xe7   :  { %v9351_v41 = vadd.f32 %v239_v6, %v9316_v12  ;;  %v9364_v49 = vadd.f32 %v269_v7, %v9348_v37  ;;  %v554_v54 = vmul.f32 1.442695, %v505_v44  ;;  %v614_v57 = vmul.f32 1.442695, %v535_v48 }
  0xe9   :  { %v9312_v8 = vpop.f32.mrb[4].mxu0  ;;  %v9314_v11 = vpop.f32.mrb[4].mxu1  ;;  %v511_v50 = vmin.f32 %v9351_v41, 20.0  ;;  %v541_v58 = vmin.f32 %v9364_v49, 20.0  ;;  %8130 = vpow2.f32 %v554_v54  ;;  %vm751_vm3 = vcmp.gt.f32.partialorder %v9351_v41, 20.0 }
  0xea   :  { %15551 = vst [vmem:[#allocation19_spill] sm:$0xff] %v9312_v8  ;;  %15552 = vst [vmem:[#allocation20_spill] sm:$0xff] %v9314_v11  ;;  %v245_v14 = vpop.f32.mrb[5].mxu0  ;;  %v275_v15 = vpop.f32.mrb[5].mxu1  ;;  %8132 = vpow2.f32 %v614_v57  ;;  %vm781_vm5 = vcmp.gt.f32.partialorder %v9364_v49, 20.0 }
  0xeb   :  { %v9368_v51 = vadd.f32 %v245_v14, %v9304_v0  ;;  %v566_v59 = vmul.f32 1.442695, %v511_v50  ;;  %v626_v48 = vmul.f32 1.442695, %v541_v58  ;;  %v9394_v50 = vadd.f32 %v275_v15, %v9379_v62 }
  0xed   :  { %v9320_v17 = vpop.f32.mrb[6].mxu0  ;;  %v344_v18 = vpop.f32.mrb[6].mxu1  ;;  %v517_v63 = vmin.f32 %v9368_v51, 20.0  ;;  %8134 = vpow2.f32 %v566_v59  ;;  %v547_v57 = vmin.f32 %v9394_v50, 20.0  ;;  %vm757_vm6 = vcmp.gt.f32.partialorder %v9368_v51, 20.0 }
  0xee   :  { %15555 = vst [vmem:[#allocation23_spill] sm:$0xff] %v9320_v17  ;;  %v251_v19 = vpop.f32.mrb[7].mxu0  ;;  %v346_v20 = vpop.f32.mrb[7].mxu1  ;;  %8136 = vpow2.f32 %v626_v48  ;;  %v9410_v15 = vadd.f32 %v344_v18, %v9306_v1  ;;  %vm787_vm10 = vcmp.gt.f32.partialorder %v9394_v50, 20.0 }
  0xef   :  { %v9387_v14 = vadd.f32 %v346_v20, %v9306_v1  ;;  %v578_v46 = vmul.f32 1.442695, %v517_v63  ;;  %v9397_v40 = vadd.f32 %v251_v19, %v9318_v16  ;;  %v638_v13 = vmul.f32 1.442695, %v547_v57 }
  0xf0   :  { %v506_v10 = vmin.f32 %v9410_v15, 20.0  ;;  %vm746_vm11 = vcmp.gt.f32.partialorder %v9410_v15, 20.0 }
  0xf1   :  { %v9324_v22 = vpop.f32.mrb[8].mxu0  ;;  %v9326_v23 = vpop.f32.mrb[8].mxu1  ;;  %v507_v20 = vmin.f32 %v9387_v14, 20.0  ;;  %8138 = vpow2.f32 %v578_v46  ;;  %v523_v19 = vmin.f32 %v9397_v40, 20.0  ;;  %vm747_vm7 = vcmp.gt.f32.partialorder %v9387_v14, 20.0 }
  0xf2   :  { %15557 = vst [vmem:[#allocation25_spill] sm:$0xff] %v9324_v22  ;;  %v9328_v24 = vpop.f32.mrb[9].mxu0  ;;  %v9330_v25 = vpop.f32.mrb[9].mxu1  ;;  %v556_v22 = vmul.f32 1.442695, %v506_v10  ;;  %vm763_vm8 = vcmp.gt.f32.partialorder %v9397_v40, 20.0 }
  0xf3   :  { %v558_v63 = vmul.f32 1.442695, %v507_v20  ;;  %v8131_v26 = vpop.eup %8130  ;;  %v590_v46 = vmul.f32 1.442695, %v523_v19 }
  0xf4   :  { %v8133_v48 = vpop.eup %8132  ;;  %v649_v11 = vadd.f32 2.0, %v8131_v26 }
  0xf5   :  { %v9334_v30 = vpop.f32.mrb[10].mxu1  ;;  %v9336_v32 = vpop.f32.mrb[10].mxu0  ;;  %8140 = vpow2.f32 %v558_v63  ;;  %v679_v5 = vadd.f32 2.0, %v8133_v48 }
  0xf6   :  { %v9341_v34 = vpop.f32.mrb[11].mxu1  ;;  %v9343_v35 = vpop.f32.mrb[11].mxu0  ;;  %8142 = vpow2.f32 %v638_v13  ;;  %v9430_v60 = vmul.f32 %v8131_v26, %v649_v11  ;;  %v9443_v26 = vadd.f32 %v9326_v23, %v9316_v12 }
  0xf7   :  { %v8135_v18 = vpop.eup %8134  ;;  %8144 = vpow2.f32 %v590_v46  ;;  %v9432_v19 = vmul.f32 %v8133_v48, %v679_v5 }
  0xf8   :  { %v8137_v20 = vpop.eup %8136  ;;  %v655_v61 = vadd.f32 2.0, %v8135_v18  ;;  %8146 = vpow2.f32 %v556_v22  ;;  %v793_v13 = vadd.f32 2.0, %v9430_v60  ;;  %v9453_v22 = vadd.f32 %v9330_v25, %v9316_v12 }
  0xf9   :  { %v9353_v42 = vpop.f32.mrb[12].mxu1  ;;  %v9355_v43 = vpop.f32.mrb[12].mxu0  ;;  %v685_v2 = vadd.f32 2.0, %v8137_v20  ;;  %v823_v10 = vadd.f32 2.0, %v9432_v19  ;;  %v512_v23 = vmin.f32 %v9443_v26, 20.0  ;;  %vm752_vm13 = vcmp.gt.f32.partialorder %v9443_v26, 20.0 }
  0xfa   :  { %v9358_v45 = vpop.f32.mrb[13].mxu1  ;;  %v9360_v47 = vpop.f32.mrb[13].mxu0  ;;  %v9434_v63 = vmul.f32 %v8135_v18, %v655_v61  ;;  %v9449_v61 = vadd.f32 %v9328_v24, %v9322_v21  ;;  %8148 = vrcp.f32 %v793_v13  ;;  %vm753_vm9 = vcmp.gt.f32.partialorder %v9453_v22, 20.0 }
  0xfb   :  { %v8139_v8 = vpop.eup %8138  ;;  %v9438_v46 = vmul.f32 %v8137_v20, %v685_v2  ;;  %v9457_v2 = vadd.f32 %v9334_v30, %v9304_v0  ;;  %8150 = vrcp.f32 %v823_v10  ;;  %v568_v20 = vmul.f32 1.442695, %v512_v23 }
  0xfc   :  { %v529_v24 = vmin.f32 %v9449_v61, 20.0  ;;  %v513_v30 = vmin.f32 %v9453_v22, 20.0  ;;  %v9478_v23 = vadd.f32 %v9343_v35, %v9306_v1  ;;  %v9492_v35 = vadd.f32 %v9355_v43, %v9316_v12 }
  0xfd   :  { %v9370_v52 = vpop.f32.mrb[14].mxu1  ;;  %v9372_v53 = vpop.f32.mrb[14].mxu0  ;;  %vm769_vm12 = vcmp.gt.f32.partialorder %v9449_v61, 20.0  ;;  %vm758_vm14 = vcmp.gt.f32.partialorder %v9457_v2, 20.0 }
  0xfe   :  { %v9374_v55 = vpop.f32.mrb[15].mxu1  ;;  %v9376_v56 = vpop.f32.mrb[15].mxu0  ;;  %15570 = vst [vmem:[#allocation38_spill] sm:$0xff] %v9478_v23  ;;  %15571 = vst [vmem:[#allocation39_spill] sm:$0xff] %v9492_v35 }
 0x101   :  { %v9382_v6 = vpop.f32.mrb[16].mxu1  ;;  %v9384_v7 = vpop.f32.mrb[16].mxu0 }
 0x102   :  { %v9389_v44 = vpop.f32.mrb[17].mxu1  ;;  %v9391_v3 = vpop.f32.mrb[17].mxu0 }
 0x103   :  { %15560 = vst [vmem:[#allocation28_spill] sm:$0xff] %v9391_v3 }
 0x105   :  { %v9399_v39 = vpop.f32.mrb[18].mxu1  ;;  %v9401_v54 = vpop.f32.mrb[18].mxu0 }
 0x106   :  { %v9404_v38 = vpop.f32.mrb[19].mxu1  ;;  %v9406_v29 = vpop.f32.mrb[19].mxu0 }
 0x107   :  { %15561 = vst [vmem:[#allocation29_spill] sm:$0xff] %v9406_v29 }
 0x109   :  { %v9413_v58 = vpop.f32.mrb[20].mxu1  ;;  %v9415_v59 = vpop.f32.mrb[20].mxu0 }
 0x10a   :  { %15562 = vst [vmem:[#allocation30_spill] sm:$0xff] %v9413_v58  ;;  %15563 = vst [vmem:[#allocation31_spill] sm:$0xff] %v9415_v59  ;;  %v9417_v27 = vpop.f32.mrb[21].mxu1  ;;  %v9419_v31 = vpop.f32.mrb[21].mxu0 }
 0x10b   :  { %15564 = vst [vmem:[#allocation32_spill] sm:$0xff] %v9417_v27  ;;  %15565 = vst [vmem:[#allocation33_spill] sm:$0xff] %v9419_v31  ;;  %v602_v31 = vmul.f32 1.442695, %v529_v24  ;;  %v518_v27 = vmin.f32 %v9457_v2, 20.0 }
 0x10d   :  { %v9422_v9 = vpop.f32.mrb[22].mxu0  ;;  %v580_v58 = vmul.f32 1.442695, %v518_v27 }
 0x10e   :  { %15566 = vst [vmem:[#allocation34_spill] sm:$0xff] %v9422_v9  ;;  %v9424_v4 = vpop.f32.mrb[23].mxu0  ;;  %v8141_v9 = vpop.eup %8140 }
 0x10f   :  { %15567 = vst [vmem:[#allocation35_spill] sm:$0xff] %v9424_v4  ;;  %v661_v4 = vadd.f32 2.0, %v8139_v8  ;;  %v8143_v5 = vpop.eup %8142  ;;  %v651_v18 = vadd.f32 2.0, %v8141_v9 }
 0x110   :  { %v8145_v48 = vpop.eup %8144  ;;  %v691_v25 = vadd.f32 2.0, %v8143_v5 }
 0x111   :  { %v9426_v17 = vpop.f32.mrb[24].mxu0  ;;  %v9445_v11 = vmul.f32 %v8139_v8, %v661_v4  ;;  %v9462_v4 = vadd.f32 %v9336_v32, %v9306_v1  ;;  %v829_v8 = vadd.f32 2.0, %v9438_v46  ;;  %v667_v13 = vadd.f32 2.0, %v8145_v48  ;;  %v8147_v29 = vpop.eup %8146 }
 0x112   :  { %15568 = vst [vmem:[#allocation36_spill] sm:$0xff] %v9426_v17  ;;  %v9428_v57 = vpop.f32.mrb[25].mxu0  ;;  %v799_v17 = vadd.f32 2.0, %v9434_v63  ;;  %v9469_v59 = vmul.f32 %v8141_v9, %v651_v18  ;;  %v570_v32 = vmul.f32 1.442695, %v513_v30  ;;  %v9480_v24 = vmul.f32 %v8143_v5, %v691_v25 }
 0x113   :  { %15569 = vst [vmem:[#allocation37_spill] sm:$0xff] %v9428_v57  ;;  %v805_v57 = vadd.f32 2.0, %v9445_v11  ;;  %v508_v10 = vmin.f32 %v9462_v4, 20.0  ;;  %v9484_v9 = vadd.f32 %v9353_v42, %v9318_v16  ;;  %v650_v18 = vadd.f32 2.0, %v8147_v29 }
 0x114   :  { %8152 = vrcp.f32 %v799_v17  ;;  %v9474_v17 = vadd.f32 %v9341_v34, %v9304_v0  ;;  %v9488_v34 = vmul.f32 %v8145_v48, %v667_v13  ;;  %v795_v5 = vadd.f32 2.0, %v9469_v59 }
 0x115   :  { %8154 = vpow2.f32 %v568_v20  ;;  %v560_v62 = vmul.f32 1.442695, %v508_v10  ;;  %v524_v42 = vmin.f32 %v9484_v9, 20.0  ;;  %v8149_v20 = vpop.eup %8148  ;;  %v9498_v30 = vadd.f32 %v9358_v45, %v9318_v16 }
 0x116   :  { %8156 = vpow2.f32 %v602_v31  ;;  %v519_v27 = vmin.f32 %v9474_v17, 20.0  ;;  %v509_v31 = vmin.f32 %v9478_v23, 20.0  ;;  %v835_v48 = vadd.f32 2.0, %v9480_v24 }
 0x117   :  { %8158 = vpow2.f32 %v570_v32  ;;  %15572 = vst [vmem:[#allocation40_spill] sm:$0xff] %v9498_v30  ;;  %v9501_v13 = vmul.f32 %v8147_v29, %v650_v18  ;;  %v514_v32 = vmin.f32 %v9492_v35, 20.0  ;;  %v9507_v10 = vadd.f32 %v9360_v47, %v9316_v12 }
 0x118   :  { %8160 = vpow2.f32 %v580_v58  ;;  %v582_v25 = vmul.f32 1.442695, %v519_v27  ;;  %v562_v58 = vmul.f32 1.442695, %v509_v31  ;;  %v525_v45 = vmin.f32 %v9498_v30, 20.0 }
 0x119   :  { %8162 = vrcp.f32 %v829_v8  ;;  %v8151_v8 = vpop.eup %8150  ;;  %v843_v29 = vmul.f32 %v8149_v20, %v9430_v60  ;;  %v515_v12 = vmin.f32 %v9507_v10, 20.0  ;;  %vm748_vm15 = vcmp.gt.f32.partialorder %v9462_v4, 20.0 }
 0x11a   :  { %8164 = vrcp.f32 %v805_v57  ;;  %v811_v57 = vadd.f32 2.0, %v9488_v34  ;;  %v594_v20 = vmul.f32 1.442695, %v525_v45 }
 0x11b   :  { %8166 = vpow2.f32 %v560_v62  ;;  %v592_v62 = vmul.f32 1.442695, %v524_v42  ;;  %v572_v42 = vmul.f32 1.442695, %v514_v32  ;;  %v937_v23 = vmul.f32 %v843_v29, %v9339_v33 }
 0x11c   :  { %8168 = vpow2.f32 %v582_v25  ;;  %v794_v25 = vadd.f32 2.0, %v9501_v13 }
 0x11d   :  { %8170 = vrcp.f32 %v795_v5 }
 0x11e   :  { %v8153_v43 = vpop.eup %8152  ;;  %8172 = vpow2.f32 %v562_v58 }
 0x11f   :  { %v8155_v27 = vpop.eup %8154  ;;  %v855_v31 = vmul.f32 %v8153_v43, %v9434_v63  ;;  %8174 = vrcp.f32 %v835_v48  ;;  %v903_v63 = vmul.f32 %v8151_v8, %v9432_v19  ;;  %v574_v19 = vmul.f32 1.442695, %v515_v12 }
 0x120   :  { %v8157_v18 = vpop.eup %8156  ;;  %v656_v47 = vadd.f32 2.0, %v8155_v27  ;;  %8176 = vrcp.f32 %v811_v57  ;;  %v9542_v12 = vsel %vm745_vm2, %v9339_v33, %v937_v23  ;;  %vm759_vm2 = vcmp.gt.f32.partialorder %v9474_v17, 20.0 }
 0x121   :  { %v8159_v1 = vpop.eup %8158  ;;  %v673_v5 = vadd.f32 2.0, %v8157_v18  ;;  %8178 = vpow2.f32 %v592_v62  ;;  %v943_v57 = vmul.f32 %v855_v31, %v9351_v41  ;;  %v9528_v62 = vadd.f32 %v9370_v52, %v9322_v21  ;;  %15573 = vst [vmem:[#allocation41_spill] sm:$0xff] %v9542_v12 }
 0x122   :  { %v8161_v30 = vpop.eup %8160  ;;  %v9516_v3 = vmul.f32 %v8155_v27, %v656_v47  ;;  %v657_v60 = vadd.f32 2.0, %v8159_v1  ;;  %8180 = vrcp.f32 %v794_v25  ;;  %v967_v25 = vmul.f32 %v903_v63, %v9346_v36 }
 0x123   :  { %v8163_v58 = vpop.eup %8162  ;;  %v9520_v48 = vmul.f32 %v8157_v18, %v673_v5  ;;  %v662_v43 = vadd.f32 2.0, %v8161_v30  ;;  %8182 = vpow2.f32 %v572_v42  ;;  %v9548_v42 = vsel %vm751_vm3, %v9351_v41, %v943_v57 }
 0x124   :  { %v8165_v35 = vpop.eup %8164  ;;  %v9524_v32 = vmul.f32 %v8159_v1, %v657_v60  ;;  %v915_v8 = vmul.f32 %v8163_v58, %v9438_v46  ;;  %v800_v18 = vadd.f32 2.0, %v9516_v3  ;;  %8184 = vpow2.f32 %v594_v20  ;;  %15574 = vst [vmem:[#allocation42_spill] sm:$0xff] %v9548_v42 }
 0x125   :  { %v8167_v45 = vpop.eup %8166  ;;  %v817_v27 = vadd.f32 2.0, %v9520_v48  ;;  %v9531_v29 = vmul.f32 %v8161_v30, %v662_v43  ;;  %v867_v52 = vmul.f32 %v8165_v35, %v9445_v11  ;;  %v530_v11 = vmin.f32 %v9528_v62, 20.0 }
 0x126   :  { %v801_v31 = vadd.f32 2.0, %v9524_v32  ;;  %v8169_v1 = vpop.eup %8168  ;;  %v652_v30 = vadd.f32 2.0, %v8167_v45  ;;  %v9553_v35 = vadd.f32 %v9372_v53, %v9304_v0  ;;  %v973_v33 = vmul.f32 %v915_v8, %v9364_v49 }
 0x127   :  { %8186 = vrcp.f32 %v817_v27  ;;  %v8171_v47 = vpop.eup %8170  ;;  %v806_v46 = vadd.f32 2.0, %v9531_v29  ;;  %v663_v23 = vadd.f32 2.0, %v8169_v1  ;;  %v1118_v58 = vmul.f32 %v9542_v12, %v9542_v12 }
 0x128   :  { %8188 = vrcp.f32 %v801_v31  ;;  %v8173_v5 = vpop.eup %8172  ;;  %v949_v41 = vmul.f32 %v867_v52, %v9368_v51  ;;  %v847_v63 = vmul.f32 %v8171_v47, %v9469_v59  ;;  %v1124_v53 = vmul.f32 %v9548_v42, %v9548_v42 }
 0x129   :  { %8190 = vpow2.f32 %v574_v19  ;;  %v8175_v60 = vpop.eup %8174  ;;  %v9564_v57 = vmul.f32 %v8167_v45, %v652_v30  ;;  %v653_v27 = vadd.f32 2.0, %v8173_v5  ;;  %v9569_v19 = vsel %vm775_vm4, %v9346_v36, %v967_v25 }
 0x12a   :  { %8192 = vrcp.f32 %v800_v18  ;;  %v8177_v20 = vpop.eup %8176  ;;  %15575 = vst [vmem:[#allocation43_spill] sm:$0xff] %v9569_v19  ;;  %v927_v8 = vmul.f32 %v8175_v60, %v9480_v24  ;;  %v604_v18 = vmul.f32 1.442695, %v530_v11  ;;  %v520_v31 = vmin.f32 %v9553_v35, 20.0 }
 0x12b   :  { %v8179_v43 = vpop.eup %8178  ;;  %8194 = vrcp.f32 %v806_v46  ;;  %v9575_v59 = vadd.f32 %v9548_v42, %v9542_v12  ;;  %v9580_v45 = vsel %vm781_vm5, %v9364_v49, %v973_v33  ;;  %v9582_v47 = vmul.f32 %v8169_v1, %v663_v23 }
 0x12c   :  { %v8181_v52 = vpop.eup %8180  ;;  %v9586_v36 = vadd.f32 %v9374_v55, %v9322_v21  ;;  %v9591_v25 = vsel %vm757_vm6, %v9368_v51, %v949_v41  ;;  %v879_v46 = vmul.f32 %v8177_v20, %v9488_v34  ;;  %v939_v30 = vmul.f32 %v847_v63, %v9387_v14 }
 0x12d   :  { %v8183_v24 = vpop.eup %8182  ;;  %15576 = vst [vmem:[#allocation44_spill] sm:$0xff] %v9591_v25  ;;  %v668_v11 = vadd.f32 2.0, %v8179_v43  ;;  %v9595_v49 = vadd.f32 %v1124_v53, %v1118_v58  ;;  %v796_v1 = vadd.f32 2.0, %v9564_v57  ;;  %v9598_v33 = vmul.f32 %v8173_v5, %v653_v27 }
 0x12e   :  { %v8185_v60 = vpop.eup %8184  ;;  %v9602_v55 = vadd.f32 %v9376_v56, %v9304_v0  ;;  %v979_v51 = vmul.f32 %v927_v8, %v9394_v50  ;;  %v845_v41 = vmul.f32 %v8181_v52, %v9501_v13  ;;  %8196 = vpow2.f32 %v604_v18 }
 0x12f   :  { %v584_v34 = vmul.f32 1.442695, %v520_v31  ;;  %v1130_v58 = vmul.f32 %v9591_v25, %v9591_v25  ;;  %v807_v5 = vadd.f32 2.0, %v9582_v47  ;;  %v658_v63 = vadd.f32 2.0, %v8183_v24 }
 0x130   :  { %v531_v53 = vmin.f32 %v9586_v36, 20.0  ;;  %v955_v27 = vmul.f32 %v879_v46, %v9397_v40  ;;  %v9615_v13 = vsel %vm747_vm7, %v9387_v14, %v939_v30  ;;  %v9618_v18 = vmul.f32 %v8179_v43, %v668_v11 }
 0x131   :  { %v8187_v23 = vpop.eup %8186  ;;  %15577 = vst [vmem:[#allocation45_spill] sm:$0xff] %v9615_v13  ;;  %8198 = vrcp.f32 %v796_v1  ;;  %v797_v52 = vadd.f32 2.0, %v9598_v33  ;;  %v521_v42 = vmin.f32 %v9602_v55, 20.0  ;;  %v669_v14 = vadd.f32 2.0, %v8185_v60 }
 0x132   :  { %v8189_v20 = vpop.eup %8188  ;;  %v891_v46 = vmul.f32 %v8187_v23, %v9520_v48  ;;  %8200 = vpow2.f32 %v584_v34  ;;  %v9629_v43 = vmul.f32 %v8183_v24, %v658_v63  ;;  %v606_v11 = vmul.f32 1.442695, %v531_v53 }
 0x133   :  { %v8191_v56 = vpop.eup %8190  ;;  %v859_v8 = vmul.f32 %v8189_v20, %v9524_v32  ;;  %v1120_v32 = vmul.f32 %v9615_v13, %v9615_v13  ;;  %8202 = vrcp.f32 %v807_v5  ;;  %v812_v23 = vadd.f32 2.0, %v9618_v18 }
 0x134   :  { %v8193_v31 = vpop.eup %8192  ;;  %v659_v34 = vadd.f32 2.0, %v8191_v56  ;;  %v586_v24 = vmul.f32 1.442695, %v521_v42  ;;  %v9646_v63 = vadd.f32 %v9382_v6, %v9332_v28  ;;  %8204 = vrcp.f32 %v797_v52 }
 0x135   :  { %v945_v12 = vmul.f32 %v859_v8, %v9453_v22  ;;  %v8195_v30 = vpop.eup %8194  ;;  %v857_v1 = vmul.f32 %v8193_v31, %v9516_v3  ;;  %v961_v3 = vmul.f32 %v891_v46, %v9449_v61  ;;  %v9655_v53 = vsel %vm763_vm8, %v9397_v40, %v955_v27 }
 0x136   :  { %15579 = vst [vmem:[#allocation47_spill] sm:$0xff] %v9655_v53  ;;  %v802_v42 = vadd.f32 2.0, %v9629_v43  ;;  %8206 = vpow2.f32 %v606_v11  ;;  %v938_v6 = vmul.f32 %v845_v41, %v9410_v15  ;;  %v536_v40 = vmin.f32 %v9646_v63, 20.0 }
 0x137   :  { %v9635_v48 = vsel %vm753_vm9, %v9453_v22, %v945_v12  ;;  %v869_v22 = vmul.f32 %v8195_v30, %v9531_v29  ;;  %v9650_v12 = vmul.f32 %v8185_v60, %v669_v14  ;;  %v944_v46 = vmul.f32 %v857_v1, %v9443_v26 }
 0x138   :  { %15578 = vst [vmem:[#allocation46_spill] sm:$0xff] %v9635_v48  ;;  %v9640_v20 = vadd.f32 %v9635_v48, %v9615_v13  ;;  %v1126_v5 = vmul.f32 %v9635_v48, %v9635_v48  ;;  %v8197_v31 = vpop.eup %8196  ;;  %8208 = vrcp.f32 %v812_v23  ;;  %v9662_v29 = vmul.f32 %v8191_v56, %v659_v34  ;;  %v15591_v13 = vld [vmem:[#allocation31_spill] sm:$0xff] }
 0x139   :  { %v1053_v60 = vadd.f32 %v9575_v59, %v9591_v25  ;;  %8210 = vpow2.f32 %v586_v24  ;;  %v1136_v27 = vmul.f32 %v9655_v53, %v9655_v53  ;;  %v9671_v52 = vsel %vm769_vm12, %v9449_v61, %v961_v3 }
 0x13a   :  { %v9657_v8 = vadd.f32 %v1126_v5, %v1120_v32  ;;  %15580 = vst [vmem:[#allocation48_spill] sm:$0xff] %v9671_v52  ;;  %v950_v41 = vmul.f32 %v869_v22, %v9457_v2  ;;  %v813_v14 = vadd.f32 2.0, %v9650_v12  ;;  %v9678_v59 = vsel %vm787_vm10, %v9394_v50, %v979_v51 }
 0x13b   :  { %v8199_v56 = vpop.eup %8198  ;;  %8212 = vrcp.f32 %v802_v42  ;;  %v674_v30 = vadd.f32 2.0, %v8197_v31  ;;  %v1179_v11 = vadd.f32 %v9595_v49, %v1130_v58  ;;  %v9685_v61 = vsel %vm746_vm11, %v9410_v15, %v938_v6 }
 0x13c   :  { %v8201_v32 = vpop.eup %8200  ;;  %15581 = vst [vmem:[#allocation49_spill] sm:$0xff] %v9685_v61  ;;  %v9688_v1 = vsel %vm752_vm13, %v9443_v26, %v944_v46  ;;  %v803_v23 = vadd.f32 2.0, %v9662_v29  ;;  %v1054_v50 = vadd.f32 %v1053_v60, %v9655_v53  ;;  %v1142_v51 = vmul.f32 %v9671_v52, %v9671_v52 }
 0x13d   :  { %15582 = vst [vmem:[#allocation50_spill] sm:$0xff] %v9688_v1  ;;  %v8203_v34 = vpop.eup %8202  ;;  %v616_v5 = vmul.f32 1.442695, %v536_v40  ;;  %v1148_v49 = vmul.f32 %v9569_v19, %v9569_v19  ;;  %v1180_v58 = vadd.f32 %v1179_v11, %v1136_v27  ;;  %v9698_v15 = vsel %vm758_vm14, %v9457_v2, %v950_v41 }
 0x13e   :  { %15583 = vst [vmem:[#allocation51_spill] sm:$0xff] %v9698_v15  ;;  %8214 = vrcp.f32 %v813_v14  ;;  %v1125_v26 = vmul.f32 %v9688_v1, %v9688_v1  ;;  %v1055_v24 = vadd.f32 %v1054_v50, %v9671_v52  ;;  %v849_v3 = vmul.f32 %v8199_v56, %v9564_v57  ;;  %v8205_v42 = vpop.eup %8204 }
 0x13f   :  { %v9704_v22 = vmul.f32 %v8197_v31, %v674_v30  ;;  %v9708_v6 = vmul.f32 %v9580_v45, %v9580_v45  ;;  %v9712_v46 = vmul.f32 %v9678_v59, %v9678_v59  ;;  %v1119_v2 = vmul.f32 %v9685_v61, %v9685_v61 }
 0x140   :  { %8216 = vrcp.f32 %v803_v23  ;;  %v8207_v60 = vpop.eup %8206  ;;  %v1181_v40 = vadd.f32 %v1180_v58, %v1142_v51  ;;  %v1131_v57 = vmul.f32 %v9698_v15, %v9698_v15  ;;  %v1065_v27 = vadd.f32 %v9688_v1, %v9685_v61  ;;  %v15590_v1 = vld [vmem:[#allocation30_spill] sm:$0xff] }
 0x141   :  { %8218 = vpow2.f32 %v616_v5  ;;  %v664_v41 = vadd.f32 2.0, %v8201_v32  ;;  %v9723_v14 = vadd.f32 %v9384_v7, %v9318_v16  ;;  %v9727_v56 = vadd.f32 %v9389_v44, %v9332_v28 }
 0x142   :  { %v8209_v31 = vpop.eup %8208  ;;  %v1191_v11 = vadd.f32 %v1125_v26, %v1119_v2  ;;  %v9730_v23 = vadd.f32 %v1055_v24, %v9569_v19  ;;  %v940_v50 = vmul.f32 %v849_v3, %v9462_v4  ;;  %v818_v51 = vadd.f32 2.0, %v9704_v22 }
 0x143   :  { %v8211_v30 = vpop.eup %8210  ;;  %v9735_v5 = vadd.f32 %v1065_v27, %v9698_v15  ;;  %v871_v58 = vmul.f32 %v8203_v34, %v9582_v47  ;;  %v675_v7 = vadd.f32 2.0, %v8207_v60  ;;  %v526_v52 = vmin.f32 %v9723_v14, 20.0  ;;  %v15588_v15 = vld [vmem:[#allocation40_spill] sm:$0xff] }
 0x144   :  { %v9739_v44 = vadd.f32 %v1181_v40, %v1148_v49  ;;  %v9741_v25 = vadd.f32 %v1191_v11, %v1131_v57  ;;  %v851_v26 = vmul.f32 %v8205_v42, %v9598_v33  ;;  %v537_v24 = vmin.f32 %v9727_v56, 20.0  ;;  %v15585_v42 = vld [vmem:[#allocation39_spill] sm:$0xff] }
 0x145   :  { %v8213_v53 = vpop.eup %8212  ;;  %v881_v3 = vmul.f32 %v8209_v31, %v9618_v18  ;;  %v9746_v2 = vmul.f32 %v8201_v32, %v664_v41  ;;  %v665_v27 = vadd.f32 2.0, %v8211_v30  ;;  %v9750_v47 = vadd.f32 %v9399_v39, %v9348_v37  ;;  %v15586_v31 = vld [vmem:[#allocation38_spill] sm:$0xff] }
 0x146   :  { %v9755_v34 = vsel %vm748_vm15, %v9462_v4, %v940_v50  ;;  %vm764_vm3 = vcmp.gt.f32.partialorder %v9484_v9, 20.0  ;;  %v618_v33 = vmul.f32 1.442695, %v537_v24  ;;  %v9761_v18 = vadd.f32 %v9401_v54, %v9322_v21  ;;  %v15587_v54 = vld [vmem:[#allocation28_spill] sm:$0xff] }
 0x147   :  { %15584 = vst [vmem:[#allocation52_spill] sm:$0xff] %v9755_v34  ;;  %v9765_v32 = vadd.f32 %v9404_v38, %v9348_v37  ;;  %v951_v49 = vmul.f32 %v871_v58, %v9474_v17  ;;  %vm754_vm4 = vcmp.gt.f32.partialorder %v15585_v42, 20.0  ;;  %v861_v4 = vmul.f32 %v8213_v53, %v9629_v43 }
 0x148   :  { %v8215_v39 = vpop.eup %8214  ;;  %v9770_v40 = vmul.f32 %v8207_v60, %v675_v7  ;;  %v596_v57 = vmul.f32 1.442695, %v526_v52  ;;  %vm749_vm5 = vcmp.gt.f32.partialorder %v15586_v31, 20.0  ;;  %v941_v41 = vmul.f32 %v851_v26, %v15586_v31 }
 0x149   :  { %8220 = vpow2.f32 %v618_v33  ;;  %v9776_v11 = vadd.f32 %v15587_v54, %v9318_v16  ;;  %v542_v38 = vmin.f32 %v9750_v47, 20.0  ;;  %v9781_v58 = vmul.f32 %v9755_v34, %v9755_v34 }
 0x14a   :  { %v8217_v50 = vpop.eup %8216  ;;  %8222 = vrcp.f32 %v818_v51  ;;  %v808_v43 = vadd.f32 2.0, %v9746_v2  ;;  %v9784_v53 = vmul.f32 %v8211_v30, %v665_v27  ;;  %v956_v60 = vmul.f32 %v881_v3, %v9484_v9  ;;  %v15589_v27 = vld [vmem:[#allocation27_spill] sm:$0xff] }
 0x14b   :  { %v8219_v52 = vpop.eup %8218  ;;  %v628_v7 = vmul.f32 1.442695, %v542_v38  ;;  %v532_v26 = vmin.f32 %v9761_v18, 20.0  ;;  %v543_v24 = vmin.f32 %v9765_v32, 20.0  ;;  %v946_v33 = vmul.f32 %v861_v4, %v15585_v42 }
 0x14c   :  { %v819_v54 = vadd.f32 2.0, %v9770_v40  ;;  %v680_v19 = vadd.f32 2.0, %v8219_v52  ;;  %8224 = vpow2.f32 %v596_v57  ;;  %vm765_vm6 = vcmp.gt.f32.partialorder %v15588_v15, 20.0 }
 0x14d   :  { %v527_v51 = vmin.f32 %v9776_v11, 20.0  ;;  %8226 = vpow2.f32 %v628_v7  ;;  %v630_v30 = vmul.f32 1.442695, %v543_v24  ;;  %v9795_v3 = vadd.f32 %v15590_v1, %v15589_v27 }
 0x14e   :  { %v883_v38 = vmul.f32 %v8215_v39, %v9650_v12  ;;  %8228 = vrcp.f32 %v808_v43  ;;  %v809_v61 = vadd.f32 2.0, %v9784_v53  ;;  %v9799_v4 = vmul.f32 %v8219_v52, %v680_v19 }
 0x14f   :  { %v608_v48 = vmul.f32 1.442695, %v532_v26  ;;  %8230 = vpow2.f32 %v630_v30  ;;  %v548_v57 = vmin.f32 %v9795_v3, 20.0  ;;  %v9804_v16 = vadd.f32 %v15591_v13, %v9332_v28 }
 0x150   :  { %v9809_v1 = vsel %vm759_vm2, %v9474_v17, %v951_v49  ;;  %v9814_v12 = vsel %vm764_vm3, %v9484_v9, %v956_v60  ;;  %vm755_vm7 = vcmp.gt.f32.partialorder %v9507_v10, 20.0  ;;  %8232 = vrcp.f32 %v819_v54  ;;  %v15595_v17 = vld [vmem:[#allocation29_spill] sm:$0xff] }
 0x151   :  { %15592 = vst [vmem:[#allocation39_spill] sm:$0xff] %v9809_v1  ;;  %15593 = vst [vmem:[#allocation38_spill] sm:$0xff] %v9814_v12  ;;  %v824_v19 = vadd.f32 2.0, %v9799_v4  ;;  %v9821_v13 = vsel %vm754_vm4, %v15585_v42, %v946_v33  ;;  %v863_v39 = vmul.f32 %v8217_v50, %v9662_v29  ;;  %v598_v43 = vmul.f32 1.442695, %v527_v51 }
 0x152   :  { %15594 = vst [vmem:[#allocation28_spill] sm:$0xff] %v9821_v13  ;;  %v9826_v49 = vadd.f32 %v15595_v17, %v9322_v21  ;;  %v9831_v9 = vsel %vm749_vm5, %v15586_v31, %v941_v41  ;;  %v957_v52 = vmul.f32 %v883_v38, %v15588_v15  ;;  %8234 = vrcp.f32 %v809_v61  ;;  %v15597_v61 = vld [vmem:[#allocation32_spill] sm:$0xff] }
 0x153   :  { %15596 = vst [vmem:[#allocation40_spill] sm:$0xff] %v9831_v9  ;;  %v640_v60 = vmul.f32 1.442695, %v548_v57  ;;  %v8221_v7 = vpop.eup %8220  ;;  %v1079_v42 = vadd.f32 %v9640_v20, %v9809_v1  ;;  %v1132_v29 = vmul.f32 %v9809_v1, %v9809_v1  ;;  %8236 = vpow2.f32 %v608_v48 }
 0x154   :  { %v538_v50 = vmin.f32 %v9804_v16, 20.0  ;;  %v8223_v26 = vpop.eup %8222  ;;  %v1137_v24 = vmul.f32 %v9814_v12, %v9814_v12  ;;  %v1127_v31 = vmul.f32 %v9821_v13, %v9821_v13  ;;  %8238 = vrcp.f32 %v824_v19 }
 0x155   :  { %v9845_v41 = vadd.f32 %v15597_v61, %v15589_v27  ;;  %v947_v20 = vmul.f32 %v863_v39, %v9507_v10  ;;  %v681_v33 = vadd.f32 2.0, %v8221_v7  ;;  %8240 = vpow2.f32 %v598_v43 }
 0x156   :  { %v533_v48 = vmin.f32 %v9826_v49, 20.0  ;;  %v8225_v54 = vpop.eup %8224  ;;  %v9851_v51 = vmul.f32 %v9831_v9, %v9831_v9  ;;  %v9855_v30 = vadd.f32 %v9735_v5, %v9814_v12  ;;  %v9860_v38 = vsel %vm765_vm6, %v15588_v15, %v957_v52 }
 0x157   :  { %8242 = vpow2.f32 %v640_v60  ;;  %v8227_v57 = vpop.eup %8226  ;;  %v1205_v19 = vadd.f32 %v9657_v8, %v1132_v29  ;;  %v9865_v39 = vadd.f32 %v9821_v13, %v9755_v34  ;;  %v893_v43 = vmul.f32 %v8223_v26, %v9704_v22 }
 0x158   :  { %v620_v17 = vmul.f32 1.442695, %v538_v50  ;;  %v8229_v61 = vpop.eup %8228  ;;  %v9869_v5 = vadd.f32 %v9741_v25, %v1137_v24  ;;  %v9872_v12 = vadd.f32 %v1127_v31, %v9781_v58  ;;  %v686_v15 = vadd.f32 2.0, %v8227_v57 }
 0x159   :  { %v549_v52 = vmin.f32 %v9845_v41, 20.0  ;;  %v8231_v60 = vpop.eup %8230  ;;  %v1138_v8 = vmul.f32 %v9860_v38, %v9860_v38  ;;  %v9880_v29 = vsel %vm755_vm7, %v9507_v10, %v947_v20  ;;  %vm770_vm8 = vcmp.gt.f32.partialorder %v9528_v62, 20.0  ;;  %v15599_v10 = vld [vmem:[#allocation33_spill] sm:$0xff] }
 0x15a   :  { %15598 = vst [vmem:[#allocation27_spill] sm:$0xff] %v9880_v29  ;;  %v9883_v22 = vmul.f32 %v8221_v7, %v681_v33  ;;  %v610_v25 = vmul.f32 1.442695, %v533_v48  ;;  %v8233_v50 = vpop.eup %8232  ;;  %v670_v58 = vadd.f32 2.0, %v8225_v54  ;;  %v9885_v26 = vmul.f32 %v8227_v57, %v686_v15  ;;  %v15600_v57 = vld [vmem:[#allocation34_spill] sm:$0xff] }
 0x15b   :  { %v687_v24 = vadd.f32 2.0, %v8231_v60  ;;  %v642_v31 = vmul.f32 1.442695, %v549_v52  ;;  %v962_v13 = vmul.f32 %v893_v43, %v9528_v62  ;;  %vm760_vm9 = vcmp.gt.f32.partialorder %v9553_v35, 20.0 }
 0x15c   :  { %v873_v34 = vmul.f32 %v8229_v61, %v9746_v2  ;;  %8244 = vpow2.f32 %v620_v17  ;;  %v9892_v20 = vadd.f32 %v15599_v10, %v9332_v28  ;;  %v8235_v7 = vpop.eup %8234  ;;  %v830_v33 = vadd.f32 2.0, %v9885_v26  ;;  %v15601_v28 = vld [vmem:[#allocation35_spill] sm:$0xff] }
 0x15d   :  { %v9895_v48 = vmul.f32 %v8231_v60, %v687_v24  ;;  %8246 = vpow2.f32 %v642_v31  ;;  %v9899_v15 = vadd.f32 %v15600_v57, %v9348_v37  ;;  %v8237_v43 = vpop.eup %8236  ;;  %vm771_vm10 = vcmp.gt.f32.partialorder %v9586_v36, 20.0 }
 0x15e   :  { %v895_v2 = vmul.f32 %v8233_v50, %v9770_v40  ;;  %v825_v17 = vadd.f32 2.0, %v9883_v22  ;;  %8248 = vpow2.f32 %v610_v25  ;;  %v539_v61 = vmin.f32 %v9892_v20, 20.0  ;;  %v8239_v52 = vpop.eup %8238 }
 0x15f   :  { %v9905_v10 = vmul.f32 %v8225_v54, %v670_v58  ;;  %8250 = vrcp.f32 %v830_v33  ;;  %v831_v60 = vadd.f32 2.0, %v9895_v48  ;;  %v544_v24 = vmin.f32 %v9899_v15, 20.0  ;;  %v8241_v31 = vpop.eup %8240 }
 0x160   :  { %v1080_v57 = vadd.f32 %v1079_v42, %v9860_v38  ;;  %v9910_v1 = vadd.f32 %v1205_v19, %v1138_v8  ;;  %v1128_v40 = vmul.f32 %v9880_v29, %v9880_v29  ;;  %vm761_vm11 = vcmp.gt.f32.partialorder %v9602_v55, 20.0 }
 0x161   :  { %v622_v25 = vmul.f32 1.442695, %v539_v61  ;;  %v8243_v50 = vpop.eup %8242  ;;  %v952_v54 = vmul.f32 %v873_v34, %v9553_v35  ;;  %v875_v58 = vmul.f32 %v8235_v7, %v9784_v53  ;;  %vm776_vm12 = vcmp.gt.f32.partialorder %v9646_v63, 20.0 }
 0x162   :  { %v632_v33 = vmul.f32 1.442695, %v544_v24  ;;  %v9920_v21 = vadd.f32 %v15601_v28, %v9348_v37  ;;  %v905_v42 = vmul.f32 %v8239_v52, %v9799_v4  ;;  %8252 = vrcp.f32 %v825_v17 }
 0x163   :  { %v676_v19 = vadd.f32 2.0, %v8237_v43  ;;  %v692_v8 = vadd.f32 2.0, %v8243_v50  ;;  %v9926_v61 = vsel %vm770_vm8, %v9528_v62, %v962_v13  ;;  %v963_v34 = vmul.f32 %v895_v2, %v9586_v36 }
 0x164   :  { %15602 = vst [vmem:[#allocation30_spill] sm:$0xff] %v9926_v61  ;;  %v814_v53 = vadd.f32 2.0, %v9905_v10  ;;  %8254 = vrcp.f32 %v831_v60  ;;  %v671_v7 = vadd.f32 2.0, %v8241_v31  ;;  %v545_v28 = vmin.f32 %v9920_v21, 20.0 }
 0x165   :  { %v9930_v24 = vmul.f32 %v8243_v50, %v692_v8  ;;  %8256 = vpow2.f32 %v622_v25  ;;  %v1104_v4 = vadd.f32 %v9880_v29, %v9831_v9  ;;  %v9938_v17 = vsel %vm760_vm9, %v9553_v35, %v952_v54  ;;  %v15605_v54 = vld [vmem:[#allocation36_spill] sm:$0xff] }
 0x166   :  { %15603 = vst [vmem:[#allocation31_spill] sm:$0xff] %v9938_v17  ;;  %v953_v62 = vmul.f32 %v875_v58, %v9602_v55  ;;  %8258 = vpow2.f32 %v632_v33  ;;  %v8245_v13 = vpop.eup %8244  ;;  %v968_v2 = vmul.f32 %v905_v42, %v9646_v63  ;;  %v9942_v52 = vmul.f32 %v8237_v43, %v676_v19 }
 0x167   :  { %v836_v60 = vadd.f32 2.0, %v9930_v24  ;;  %v634_v25 = vmul.f32 1.442695, %v545_v28  ;;  %v8247_v50 = vpop.eup %8246  ;;  %v1143_v8 = vmul.f32 %v9926_v61, %v9926_v61  ;;  %v9950_v35 = vsel %vm771_vm10, %v9586_v36, %v963_v34 }
 0x168   :  { %15604 = vst [vmem:[#allocation29_spill] sm:$0xff] %v9950_v35  ;;  %8260 = vrcp.f32 %v814_v53  ;;  %v9954_v58 = vadd.f32 %v15605_v54, %v15589_v27  ;;  %v8249_v33 = vpop.eup %8248  ;;  %v1230_v43 = vadd.f32 %v1128_v40, %v9851_v51  ;;  %v1133_v42 = vmul.f32 %v9938_v17, %v9938_v17 }
 0x169   :  { %v9959_v19 = vmul.f32 %v8241_v31, %v671_v7  ;;  %8262 = vrcp.f32 %v836_v60  ;;  %v8251_v28 = vpop.eup %8250  ;;  %v9964_v36 = vsel %vm761_vm11, %v9602_v55, %v953_v62  ;;  %v682_v34 = vadd.f32 2.0, %v8245_v13 }
 0x16a   :  { %v693_v53 = vadd.f32 2.0, %v8247_v50  ;;  %8264 = vpow2.f32 %v634_v25  ;;  %v1144_v54 = vmul.f32 %v9950_v35, %v9950_v35  ;;  %v9971_v51 = vsel %vm776_vm12, %v9646_v63, %v968_v2 }
 0x16b   :  { %v917_v31 = vmul.f32 %v8251_v28, %v9885_v26  ;;  %v820_v40 = vadd.f32 2.0, %v9942_v52  ;;  %v1068_v7 = vadd.f32 %v9855_v30, %v9926_v61  ;;  %v1194_v55 = vadd.f32 %v9869_v5, %v1143_v8 }
 0x16c   :  { %vm782_vm13 = vcmp.gt.f32.partialorder %v9750_v47, 20.0  ;;  %v550_v62 = vmin.f32 %v9954_v58, 20.0  ;;  %v8253_v60 = vpop.eup %8252  ;;  %v9982_v25 = vadd.f32 %v9865_v39, %v9938_v17  ;;  %v1134_v63 = vmul.f32 %v9964_v36, %v9964_v36 }
 0x16d   :  { %v815_v26 = vadd.f32 2.0, %v9959_v19  ;;  %v677_v2 = vadd.f32 2.0, %v8249_v33  ;;  %v9988_v30 = vadd.f32 %v1080_v57, %v9950_v35  ;;  %v1149_v5 = vmul.f32 %v9971_v51, %v9971_v51 }
 0x16e   :  { %v8255_v28 = vpop.eup %8254  ;;  %v9992_v8 = vmul.f32 %v8245_v13, %v682_v34  ;;  %v9994_v29 = vmul.f32 %v8247_v50, %v693_v53  ;;  %v9997_v39 = vadd.f32 %v9872_v12, %v1133_v42  ;;  %v10000_v17 = vadd.f32 %v9910_v1, %v1144_v54  ;;  %v15606_v53 = vld [vmem:[#allocation37_spill] sm:$0xff] }
 0x16f   :  { %v8257_v9 = vpop.eup %8256  ;;  %vm777_vm14 = vcmp.gt.f32.partialorder %v9727_v56, 20.0  ;;  %v974_v61 = vmul.f32 %v917_v31, %v9750_v47  ;;  %8266 = vrcp.f32 %v820_v40  ;;  %vm788_vm15 = vcmp.gt.f32.partialorder %v9795_v3, 20.0 }
 0x170   :  { %v8259_v57 = vpop.eup %8258  ;;  %v907_v13 = vmul.f32 %v8253_v60, %v9883_v22  ;;  %v837_v50 = vadd.f32 2.0, %v9994_v29  ;;  %v644_v34 = vmul.f32 1.442695, %v550_v62  ;;  %v10009_v12 = vadd.f32 %v15606_v53, %v15589_v27 }
 0x171   :  { %v10012_v1 = vadd.f32 %v1104_v4, %v9964_v36  ;;  %v10014_v42 = vadd.f32 %v1230_v43, %v1134_v63  ;;  %8268 = vrcp.f32 %v815_v26  ;;  %v10016_v54 = vmul.f32 %v8249_v33, %v677_v2 }
 0x172   :  { %v8261_v31 = vpop.eup %8260  ;;  %v1069_v40 = vadd.f32 %v1068_v7, %v9971_v51  ;;  %v1195_v35 = vadd.f32 %v1194_v55, %v1149_v5  ;;  %vm783_vm2 = vcmp.gt.f32.partialorder %v9765_v32, 20.0  ;;  %v826_v22 = vadd.f32 2.0, %v9992_v8 }
 0x173   :  { %8270 = vrcp.f32 %v837_v50  ;;  %v8263_v62 = vpop.eup %8262  ;;  %v10024_v4 = vsel %vm782_vm13, %v9750_v47, %v974_v61  ;;  %v919_v43 = vmul.f32 %v8255_v28, %v9895_v48  ;;  %v683_v60 = vadd.f32 2.0, %v8257_v9 }
 0x174   :  { %v688_v33 = vadd.f32 2.0, %v8259_v57  ;;  %v8265_v63 = vpop.eup %8264  ;;  %v969_v26 = vmul.f32 %v907_v13, %v9727_v56  ;;  %v929_v7 = vmul.f32 %v8263_v62, %v9930_v24  ;;  %8272 = vpow2.f32 %v644_v34 }
 0x175   :  { %v551_v55 = vmin.f32 %v10009_v12, 20.0  ;;  %v885_v2 = vmul.f32 %v8261_v31, %v9905_v10  ;;  %v821_v5 = vadd.f32 2.0, %v10016_v54  ;;  %v689_v47 = vadd.f32 2.0, %v8265_v63 }
 0x176   :  { %v10032_v50 = vmul.f32 %v8259_v57, %v688_v33  ;;  %v1155_v48 = vmul.f32 %v10024_v4, %v10024_v4  ;;  %v980_v61 = vmul.f32 %v929_v7, %v9795_v3  ;;  %v10037_v28 = vmul.f32 %v8257_v9, %v683_v60 }
 0x177   :  { %v1057_v24 = vadd.f32 %v9730_v23, %v9580_v45  ;;  %v1070_v13 = vadd.f32 %v1069_v40, %v10024_v4  ;;  %v975_v34 = vmul.f32 %v919_v43, %v9765_v32  ;;  %8274 = vrcp.f32 %v826_v22 }
 0x178   :  { %v832_v10 = vadd.f32 2.0, %v10032_v50  ;;  %v10047_v57 = vsel %vm777_vm14, %v9727_v56, %v969_v26  ;;  %v10052_v9 = vsel %vm788_vm15, %v9795_v3, %v980_v61  ;;  %vm789_vm3 = vcmp.gt.f32.partialorder %v9845_v41, 20.0 }
 0x179   :  { %v10055_v23 = vmul.f32 %v8265_v63, %v689_v47  ;;  %v646_v53 = vmul.f32 1.442695, %v551_v55  ;;  %v8267_v31 = vpop.eup %8266  ;;  %v958_v40 = vmul.f32 %v885_v2, %v9723_v14  ;;  %8276 = vrcp.f32 %v821_v5 }
 0x17a   :  { %v1071_v22 = vadd.f32 %v1070_v13, %v10052_v9  ;;  %v1161_v56 = vmul.f32 %v10052_v9, %v10052_v9  ;;  %vm766_vm4 = vcmp.gt.f32.partialorder %v9723_v14, 20.0  ;;  %v1196_v62 = vadd.f32 %v1195_v35, %v1155_v48 }
 0x17b   :  { %v827_v3 = vadd.f32 2.0, %v10037_v28  ;;  %8278 = vrcp.f32 %v832_v10  ;;  %v1058_v43 = vadd.f32 %v1057_v24, %v9678_v59  ;;  %v8269_v60 = vpop.eup %8268  ;;  %v1082_v33 = vadd.f32 %v9988_v30, %v10047_v57 }
 0x17c   :  { %v10069_v63 = vsel %vm783_vm2, %v9765_v32, %v975_v34  ;;  %v1183_v26 = vadd.f32 %v9739_v44, %v9708_v6  ;;  %v1072_v7 = vrot.slane %v1071_v22, 4  ;;  %v833_v35 = vadd.f32 2.0, %v10055_v23 }
 0x17d   :  { %v8271_v55 = vpop.eup %8270  ;;  %8280 = vpow2.f32 %v646_v53  ;;  %v1059_v2 = vrot.slane %v1058_v43, 4  ;;  %v1197_v5 = vadd.f32 %v1196_v62, %v1161_v56  ;;  %v1150_v47 = vmul.f32 %v10047_v57, %v10047_v57 }
 0x17e   :  { %v897_v30 = vmul.f32 %v8267_v31, %v9942_v52  ;;  %v931_v48 = vmul.f32 %v8271_v55, %v9994_v29  ;;  %v1184_v32 = vadd.f32 %v1183_v26, %v9712_v46  ;;  %v8273_v61 = vpop.eup %8272  ;;  %8282 = vrcp.f32 %v827_v3 }
 0x17f   :  { %v1060_v24 = vadd.f32 %v1059_v2, %v1058_v43  ;;  %v1073_v6 = vadd.f32 %v1072_v7, %v1071_v22  ;;  %v1198_v44 = vrot.slane %v1197_v5, 4  ;;  %vm772_vm5 = vcmp.gt.f32.partialorder %v9761_v18, 20.0 }
 0x180   :  { %v1083_v13 = vadd.f32 %v1082_v33, %v10069_v63  ;;  %v981_v34 = vmul.f32 %v931_v48, %v9845_v41  ;;  %v694_v10 = vadd.f32 2.0, %v8273_v61  ;;  %v1185_v53 = vrot.slane %v1184_v32, 4 }
 0x181   :  { %v1156_v52 = vmul.f32 %v10069_v63, %v10069_v63  ;;  %8284 = vrcp.f32 %v833_v35  ;;  %v1061_v29 = vrot.slane %v1060_v24, 2  ;;  %v1199_v31 = vadd.f32 %v1198_v44, %v1197_v5  ;;  %v8275_v46 = vpop.eup %8274 }
 0x182   :  { %v10087_v22 = vsel %vm789_vm3, %v9845_v41, %v981_v34  ;;  %v10089_v56 = vmul.f32 %v8273_v61, %v694_v10  ;;  %v1186_v62 = vadd.f32 %v1185_v53, %v1184_v32  ;;  %v1074_v3 = vrot.slane %v1073_v6, 2 }
 0x183   :  { %v1208_v43 = vadd.f32 %v10000_v17, %v1150_v47  ;;  %vm767_vm6 = vcmp.gt.f32.partialorder %v9776_v11, 20.0  ;;  %v1084_v33 = vadd.f32 %v1083_v13, %v10087_v22  ;;  %v1162_v26 = vmul.f32 %v10087_v22, %v10087_v22  ;;  %v8277_v55 = vpop.eup %8276 }
 0x184   :  { %v1062_v7 = vadd.f32 %v1061_v29, %v1060_v24  ;;  %v10099_v41 = vsel %vm766_vm4, %v9723_v14, %v958_v40  ;;  %v887_v35 = vmul.f32 %v8269_v60, %v9959_v19  ;;  %vm778_vm7 = vcmp.gt.f32.partialorder %v9804_v16, 20.0 }
 0x185   :  { %v838_v17 = vadd.f32 2.0, %v10089_v56  ;;  %v1187_v2 = vrot.slane %v1186_v62, 2  ;;  %v8279_v5 = vpop.eup %8278  ;;  %v964_v47 = vmul.f32 %v897_v30, %v9761_v18  ;;  %v1209_v48 = vadd.f32 %v1208_v43, %v1156_v52 }
 0x186   :  { %v909_v32 = vmul.f32 %v8275_v46, %v9992_v8  ;;  %v1200_v61 = vrot.slane %v1199_v31, 2  ;;  %v1085_v24 = vrot.slane %v1084_v33, 4  ;;  %vm784_vm8 = vcmp.gt.f32.partialorder %v9899_v15, 20.0 }
 0x187   :  { %8286 = vrcp.f32 %v838_v17  ;;  %v1188_v14 = vadd.f32 %v1187_v2, %v1186_v62  ;;  %v1075_v40 = vadd.f32 %v1074_v3, %v1073_v6  ;;  %v8281_v44 = vpop.eup %8280  ;;  %v1093_v19 = vadd.f32 %v9982_v25, %v10099_v41 }
 0x188   :  { %v1210_v60 = vadd.f32 %v1209_v48, %v1162_v26  ;;  %v921_v13 = vmul.f32 %v8279_v5, %v10032_v50  ;;  %v1063_v34 = vrot.slane %v1062_v7, 1  ;;  %v1139_v30 = vmul.f32 %v10099_v41, %v10099_v41  ;;  %v8283_v52 = vpop.eup %8282 }
 0x189   :  { %v959_v8 = vmul.f32 %v887_v35, %v9776_v11  ;;  %v695_v10 = vadd.f32 2.0, %v8281_v44  ;;  %v1189_v53 = vrot.slane %v1188_v14, 1  ;;  %v10116_v6 = vsel %vm772_vm5, %v9761_v18, %v964_v47 }
 0x18a   :  { %vm773_vm9 = vcmp.gt.f32.partialorder %v9826_v49, 20.0  ;;  %v899_v25 = vmul.f32 %v8277_v55, %v10016_v54  ;;  %v970_v50 = vmul.f32 %v909_v32, %v9804_v16  ;;  %v1201_v29 = vadd.f32 %v1200_v61, %v1199_v31 }
 0x18b   :  { %v1086_v46 = vadd.f32 %v1085_v24, %v1084_v33  ;;  %v10121_v62 = vmul.f32 %v8281_v44, %v695_v10  ;;  %vm1243_vm10 = vcmask 1040384   ;;  %v1076_v3 = vrot.slane %v1075_v40, 1  ;;  %v8285_v43 = vpop.eup %8284 }
 0x18c   :  { %v1211_v26 = vrot.slane %v1210_v60, 4  ;;  %vm779_vm11 = vcmp.gt.f32.partialorder %v9892_v20, 20.0  ;;  %v976_v35 = vmul.f32 %v921_v13, %v9899_v15  ;;  %v1064_v18 = vadd.f32 %v1063_v34, %v1062_v7 }
 0x18d   :  { %v1190_v17 = vadd.f32 %v1189_v53, %v1188_v14  ;;  %v1219_v2 = vadd.f32 %v9997_v39, %v1139_v30  ;;  %v10129_v54 = vsel %vm767_vm6, %v9776_v11, %v959_v8  ;;  %v911_v31 = vmul.f32 %v8283_v52, %v10037_v28 }
 0x18e   :  { %v839_v33 = vadd.f32 2.0, %v10121_v62  ;;  %v1145_v55 = vmul.f32 %v10116_v6, %v10116_v6  ;;  %v10138_v5 = vsel %vm778_vm7, %v9804_v16, %v970_v50  ;;  %vm785_vm12 = vcmp.gt.f32.partialorder %v9920_v21, 20.0 }
 0x18f   :  { %15607 = vst [vmem:[#allocation32_spill] sm:$0xff] %v10138_v5  ;;  %v10142_v39 = vsel %vm1243_vm10, %v1064_v18, %v1190_v17  ;;  %v1202_v7 = vrot.slane %v1201_v29, 1  ;;  %v965_v11 = vmul.f32 %v899_v25, %v9826_v49  ;;  %v923_v28 = vmul.f32 %v8285_v43, %v10055_v23 }
 0x190   :  { %8288 = vrcp.f32 %v839_v33  ;;  %1252 = vrot.lane.b32.xlu0 %v10142_v39, %s8979_s25  ;;  %v1087_v47 = vrot.slane %v1086_v46, 2  ;;  %v10151_v16 = vsel %vm784_vm8, %v9899_v15, %v976_v35  ;;  %v1077_v48 = vadd.f32 %v1076_v3, %v1075_v40 }
 0x191   :  { %15608 = vst [vmem:[#allocation33_spill] sm:$0xff] %v10151_v16  ;;  %v1203_v32 = vadd.f32 %v1202_v7, %v1201_v29  ;;  %v1212_v61 = vadd.f32 %v1211_v26, %v1210_v60  ;;  %v8287_v24 = vpop.eup %8286  ;;  %v1094_v14 = vadd.f32 %v1093_v19, %v10116_v6  ;;  %v1151_v23 = vmul.f32 %v10138_v5, %v10138_v5 }
 0x192   :  { %v971_v44 = vmul.f32 %v911_v31, %v9892_v20  ;;  %v1088_v13 = vadd.f32 %v1087_v47, %v1086_v46  ;;  %v1220_v34 = vadd.f32 %v1219_v2, %v1145_v55  ;;  %v933_v30 = vmul.f32 %v8287_v24, %v10089_v56 }
 0x193   :  { %v1246_v8 = vsel %vm1243_vm10, %v1077_v48, %v1203_v32  ;;  %v1213_v10 = vrot.slane %v1212_v61, 2  ;;  %v10162_v15 = vsel %vm773_vm9, %v9826_v49, %v965_v11  ;;  %v1095_v40 = vadd.f32 %v1094_v14, %v10138_v5 }
 0x194   :  { %v1157_v19 = vmul.f32 %v10151_v16, %v10151_v16  ;;  %v977_v60 = vmul.f32 %v923_v28, %v9920_v21  ;;  %1254 = vrot.lane.b32.xlu1 %v1246_v8, %s8979_s25  ;;  %v1140_v56 = vmul.f32 %v10129_v54, %v10129_v54  ;;  %v982_v53 = vmul.f32 %v933_v30, %v9954_v58 }
 0x195   :  { %v1089_v52 = vrot.slane %v1088_v13, 1  ;;  %v1214_v25 = vadd.f32 %v1213_v10, %v1212_v61  ;;  %v1221_v50 = vadd.f32 %v1220_v34, %v1151_v23  ;;  %v10175_v49 = vsel %vm779_vm11, %v9892_v20, %v971_v44 }
 0x196   :  { %v1096_v29 = vadd.f32 %v1095_v40, %v10151_v16  ;;  %vm790_vm13 = vcmp.gt.f32.partialorder %v9954_v58, 20.0  ;;  %v1106_v46 = vadd.f32 %v10012_v1, %v10129_v54  ;;  %v1146_v3 = vmul.f32 %v10162_v15, %v10162_v15 }
 0x197   :  { %v10184_v43 = vsel %vm790_vm13, %v9954_v58, %v982_v53  ;;  %v1215_v26 = vrot.slane %v1214_v25, 1  ;;  %v1222_v35 = vadd.f32 %v1221_v50, %v1157_v19  ;;  %v10189_v20 = vsel %vm785_vm12, %v9920_v21, %v977_v60 }
 0x198   :  { %15609 = vst [vmem:[#allocation34_spill] sm:$0xff] %v10184_v43  ;;  %15610 = vst [vmem:[#allocation35_spill] sm:$0xff] %v10189_v20  ;;  %v1097_v18 = vadd.f32 %v1096_v29, %v10184_v43  ;;  %v1163_v17 = vmul.f32 %v10184_v43, %v10184_v43  ;;  %v1232_v1 = vadd.f32 %v10014_v42, %v1140_v56  ;;  %vm791_vm14 = vcmp.gt.f32.partialorder %v10009_v12, 20.0 }
 0x199   :  { %v1152_v2 = vmul.f32 %v10175_v49, %v10175_v49  ;;  %v1090_v31 = vadd.f32 %v1089_v52, %v1088_v13  ;;  %v1216_v58 = vadd.f32 %v1215_v26, %v1214_v25  ;;  %v1107_v55 = vadd.f32 %v1106_v46, %v10162_v15 }
 0x19a   :  { %v8289_v33 = vpop.eup %8288  ;;  %v1098_v7 = vrot.slane %v1097_v18, 4  ;;  %v1223_v11 = vadd.f32 %v1222_v35, %v1163_v17  ;;  %v1233_v28 = vadd.f32 %v1232_v1, %v1146_v3  ;;  %v1158_v21 = vmul.f32 %v10189_v20, %v10189_v20 }
 0x19b   :  { %v935_v47 = vmul.f32 %v8289_v33, %v10121_v62  ;;  %v10202_v48 = vsel %vm1243_vm10, %v1090_v31, %v1216_v58  ;;  %v1108_v42 = vadd.f32 %v1107_v55, %v10175_v49  ;;  %v15612_v33 = vld [vmem:[#allocation21_spill] sm:$0xff]  ;;  %vm1256_vm9 = vcmask 523264  }
 0x19c   :  { %v1099_v32 = vadd.f32 %v1098_v7, %v1097_v18  ;;  %v1224_v61 = vrot.slane %v1223_v11, 4  ;;  %v1234_v24 = vadd.f32 %v1233_v28, %v1152_v2  ;;  %v15613_v55 = vld [vmem:[#allocation17_spill] sm:$0xff]  ;;  %v15615_v28 = vld [vmem:[#allocation14_spill] sm:$0xff] }
 0x19d   :  { %v983_v14 = vmul.f32 %v935_v47, %v10009_v12  ;;  %v1109_v23 = vadd.f32 %v1108_v42, %v10189_v20  ;;  %v10221_v7 = vadd.f32 %v15613_v55, %v15612_v33  ;;  %v15616_v42 = vld [vmem:[#allocation19_spill] sm:$0xff] }
 0x19e   :  { %v1100_v44 = vrot.slane %v1099_v32, 2  ;;  %v1225_v13 = vadd.f32 %v1224_v61, %v1223_v11  ;;  %v1235_v34 = vadd.f32 %v1234_v24, %v1158_v21  ;;  %v15614_v11 = vld [vmem:[#allocation16_spill] sm:$0xff]  ;;  %v15617_v24 = vld [vmem:[#allocation22_spill] sm:$0xff] }
 0x19f   :  { %v10209_v30 = vsel %vm791_vm14, %v10009_v12, %v983_v14  ;;  %v10225_v21 = vadd.f32 %v15615_v28, %v15614_v11  ;;  %v510_v61 = vmin.f32 %v10221_v7, 20.0  ;;  %v15618_v14 = vld [vmem:[#allocation23_spill] sm:$0xff]  ;;  %vm750_vm15 = vcmp.gt.f32.partialorder %v10221_v7, 20.0 }
 0x1a0   :  { %15611 = vst [vmem:[#allocation36_spill] sm:$0xff] %v10209_v30  ;;  %v1110_v62 = vadd.f32 %v1109_v23, %v10209_v30  ;;  %v1164_v8 = vmul.f32 %v10209_v30, %v10209_v30  ;;  %v1101_v10 = vadd.f32 %v1100_v44, %v1099_v32  ;;  %v1226_v40 = vrot.slane %v1225_v13, 2 }
 0x1a1   :  { %v10230_v32 = vadd.f32 %v15616_v42, %v9304_v0  ;;  %v10236_v23 = vadd.f32 %v15618_v14, %v15617_v24  ;;  %v504_v44 = vmin.f32 %v10225_v21, 20.0  ;;  %vm744_vm2 = vcmp.gt.f32.partialorder %v10225_v21, 20.0 }
 0x1a2   :  { %v1102_v19 = vrot.slane %v1101_v10, 1  ;;  %v1227_v60 = vadd.f32 %v1226_v40, %v1225_v13  ;;  %v1111_v56 = vrot.slane %v1110_v62, 4  ;;  %v1236_v53 = vadd.f32 %v1235_v34, %v1164_v8  ;;  %v15619_v34 = vld [vmem:[#allocation24_spill] sm:$0xff] }
 0x1a3   :  { %v516_v13 = vmin.f32 %v10230_v32, 20.0  ;;  %v522_v0 = vmin.f32 %v10236_v23, 20.0  ;;  %v552_v40 = vmul.f32 1.442695, %v504_v44  ;;  %vm756_vm3 = vcmp.gt.f32.partialorder %v10230_v32, 20.0 }
 0x1a4   :  { %v1228_v52 = vrot.slane %v1227_v60, 1  ;;  %v1112_v25 = vadd.f32 %v1111_v56, %v1110_v62  ;;  %v1237_v50 = vrot.slane %v1236_v53, 4  ;;  %v1103_v29 = vadd.f32 %v1102_v19, %v1101_v10  ;;  %v15620_v62 = vld [vmem:[#allocation25_spill] sm:$0xff]  ;;  %v15621_v56 = vld [vmem:[#allocation26_spill] sm:$0xff] }
 0x1a5   :  { %v10242_v8 = vadd.f32 %v15620_v62, %v15619_v34  ;;  %v564_v10 = vmul.f32 1.442695, %v510_v61  ;;  %v576_v19 = vmul.f32 1.442695, %v516_v13  ;;  %vm762_vm4 = vcmp.gt.f32.partialorder %v10236_v23, 20.0 }
 0x1a6   :  { %v1229_v46 = vadd.f32 %v1228_v52, %v1227_v60  ;;  %v1113_v3 = vrot.slane %v1112_v25, 2  ;;  %v1238_v26 = vadd.f32 %v1237_v50, %v1236_v53  ;;  %v15622_v53 = vld [vmem:[#allocation15_spill] sm:$0xff] }
 0x1a7   :  { %v528_v60 = vmin.f32 %v10242_v8, 20.0  ;;  %v10248_v52 = vadd.f32 %v15622_v53, %v15621_v56  ;;  %8290 = vpow2.f32 %v564_v10  ;;  %vm768_vm5 = vcmp.gt.f32.partialorder %v10242_v8, 20.0 }
 0x1a8   :  { %v10215_v12 = vsel %vm1243_vm10, %v1103_v29, %v1229_v46  ;;  %v1114_v35 = vadd.f32 %v1113_v3, %v1112_v25  ;;  %v1239_v18 = vrot.slane %v1238_v26, 2  ;;  %v588_v25 = vmul.f32 1.442695, %v522_v0  ;;  %v15623_v46 = vld [vmem:[#allocation18_spill] sm:$0xff] }
 0x1a9   :  { %1266 = vrot.lane.b32.xlu0 %v10215_v12, %s8979_s25  ;;  %8292 = vpow2.f32 %v552_v40  ;;  %v600_v50 = vmul.f32 1.442695, %v528_v60  ;;  %v534_v29 = vmin.f32 %v10248_v52, 20.0  ;;  %v10253_v3 = vadd.f32 %v15623_v46, %v9348_v37 }
 0x1aa   :  { %v1115_v17 = vrot.slane %v1114_v35, 1  ;;  %v1240_v1 = vadd.f32 %v1239_v18, %v1238_v26  ;;  %8294 = vpow2.f32 %v576_v19  ;;  %v15624_v18 = vld [vmem:[#allocation20_spill] sm:$0xff]  ;;  %vm774_vm6 = vcmp.gt.f32.partialorder %v10248_v52, 20.0 }
 0x1ab   :  { %8296 = vpow2.f32 %v588_v25  ;;  %v612_v26 = vmul.f32 1.442695, %v534_v29  ;;  %vm780_vm7 = vcmp.gt.f32.partialorder %v10253_v3, 20.0 }
 0x1ac   :  { %v1241_v2 = vrot.slane %v1240_v1, 1  ;;  %v1116_v31 = vadd.f32 %v1115_v17, %v1114_v35  ;;  %8298 = vpow2.f32 %v600_v50  ;;  %v540_v35 = vmin.f32 %v10253_v3, 20.0 }
 0x1ad   :  { %v10258_v17 = vadd.f32 %v15624_v18, %v15589_v27  ;;  %8300 = vpow2.f32 %v612_v26 }
 0x1ae   :  { %v1242_v58 = vadd.f32 %v1241_v2, %v1240_v1 }
 0x1af   :  { %v546_v33 = vmin.f32 %v10258_v17, 20.0  ;;  %vm786_vm8 = vcmp.gt.f32.partialorder %v10258_v17, 20.0 }
 0x1b0   :  { %v1249_v47 = vsel %vm1243_vm10, %v1116_v31, %v1242_v58  ;;  %v624_v58 = vmul.f32 1.442695, %v540_v35 }
 0x1b1   :  { %1268 = vrot.lane.b32.xlu1 %v1249_v47, %s8979_s25  ;;  %v8291_v1 = vpop.eup %8290  ;;  %v636_v42 = vmul.f32 1.442695, %v546_v33 }
 0x1b2   :  { %v654_v55 = vadd.f32 2.0, %v8291_v1  ;;  %8302 = vpow2.f32 %v624_v58 }
 0x1b3   :  { %v8293_v2 = vpop.eup %8292  ;;  %8304 = vpow2.f32 %v636_v42 }
 0x1b4   :  { %v8295_v31 = vpop.eup %8294  ;;  %v648_v37 = vadd.f32 2.0, %v8293_v2  ;;  %v702_v61 = vmul.f32 %v8291_v1, %v654_v55 }
 0x1b5   :  { %v8297_v11 = vpop.eup %8296  ;;  %v660_v28 = vadd.f32 2.0, %v8295_v31 }
 0x1b6   :  { %v8299_v47 = vpop.eup %8298  ;;  %v666_v24 = vadd.f32 2.0, %v8297_v11  ;;  %v696_v14 = vmul.f32 %v8293_v2, %v648_v37  ;;  %v798_v13 = vadd.f32 2.0, %v702_v61 }
 0x1b7   :  { %v708_v44 = vmul.f32 %v8295_v31, %v660_v28  ;;  %v672_v27 = vadd.f32 2.0, %v8299_v47  ;;  %v8301_v62 = vpop.eup %8300 }
 0x1b8   :  { %v714_v34 = vmul.f32 %v8297_v11, %v666_v24  ;;  %v792_v10 = vadd.f32 2.0, %v696_v14  ;;  %v678_v19 = vadd.f32 2.0, %v8301_v62  ;;  %8306 = vrcp.f32 %v798_v13 }
 0x1b9   :  { %v804_v0 = vadd.f32 2.0, %v708_v44  ;;  %v720_v40 = vmul.f32 %v8299_v47, %v672_v27 }
 0x1ba   :  { %v810_v60 = vadd.f32 2.0, %v714_v34  ;;  %8308 = vrcp.f32 %v792_v10  ;;  %v726_v25 = vmul.f32 %v8301_v62, %v678_v19 }
 0x1bb   :  { %8310 = vrcp.f32 %v804_v0  ;;  %v816_v53 = vadd.f32 2.0, %v720_v40 }
 0x1bc   :  { %v8303_v56 = vpop.eup %8302  ;;  %8312 = vrcp.f32 %v810_v60  ;;  %v822_v46 = vadd.f32 2.0, %v726_v25 }
 0x1bd   :  { %v684_v50 = vadd.f32 2.0, %v8303_v56  ;;  %v8305_v29 = vpop.eup %8304  ;;  %8314 = vrcp.f32 %v816_v53 }
 0x1be   :  { %v690_v35 = vadd.f32 2.0, %v8305_v29  ;;  %8316 = vrcp.f32 %v822_v46 }
 0x1bf   :  { %v732_v26 = vmul.f32 %v8303_v56, %v684_v50 }
 0x1c0   :  { %v738_v58 = vmul.f32 %v8305_v29, %v690_v35 }
 0x1c1   :  { %v828_v31 = vadd.f32 2.0, %v732_v26 }
 0x1c2   :  { %v8307_v18 = vpop.eup %8306  ;;  %v834_v47 = vadd.f32 2.0, %v738_v58 }
 0x1c3   :  { %v853_v33 = vmul.f32 %v8307_v18, %v702_v61  ;;  %8318 = vrcp.f32 %v828_v31 }
 0x1c4   :  { %v8309_v1 = vpop.eup %8308  ;;  %8320 = vrcp.f32 %v834_v47 }
 0x1c5   :  { %v8311_v2 = vpop.eup %8310  ;;  %v841_v11 = vmul.f32 %v8309_v1, %v696_v14  ;;  %v942_v42 = vmul.f32 %v853_v33, %v10221_v7 }
 0x1c6   :  { %v8313_v55 = vpop.eup %8312  ;;  %v865_v37 = vmul.f32 %v8311_v2, %v708_v44 }
 0x1c7   :  { %v8315_v28 = vpop.eup %8314  ;;  %v877_v24 = vmul.f32 %v8313_v55, %v714_v34  ;;  %v936_v27 = vmul.f32 %v841_v11, %v10225_v21  ;;  %v10266_v10 = vsel %vm750_vm15, %v10221_v7, %v942_v42 }
 0x1c8   :  { %v948_v13 = vmul.f32 %v865_v37, %v10230_v32  ;;  %v889_v62 = vmul.f32 %v8315_v28, %v720_v40  ;;  %v8317_v14 = vpop.eup %8316  ;;  %v1123_v40 = vmul.f32 %v10266_v10, %v10266_v10 }
 0x1c9   :  { %v954_v61 = vmul.f32 %v877_v24, %v10236_v23  ;;  %v10272_v44 = vsel %vm744_vm2, %v10225_v21, %v936_v27  ;;  %v901_v7 = vmul.f32 %v8317_v14, %v726_v25 }
 0x1ca   :  { %v10275_v34 = vsel %vm756_vm3, %v10230_v32, %v948_v13  ;;  %v960_v0 = vmul.f32 %v889_v62, %v10242_v8  ;;  %v1117_v56 = vmul.f32 %v10272_v44, %v10272_v44  ;;  %v1039_v46 = vadd.f32 %v10266_v10, %v10272_v44 }
 0x1cb   :  { %v10282_v19 = vsel %vm762_vm4, %v10236_v23, %v954_v61  ;;  %v1129_v21 = vmul.f32 %v10275_v34, %v10275_v34  ;;  %v966_v25 = vmul.f32 %v901_v7, %v10248_v52 }
 0x1cc   :  { %v10290_v32 = vsel %vm768_vm5, %v10242_v8, %v960_v0  ;;  %v1165_v53 = vadd.f32 %v1123_v40, %v1117_v56  ;;  %v1135_v50 = vmul.f32 %v10282_v19, %v10282_v19  ;;  %v1040_v8 = vadd.f32 %v1039_v46, %v10275_v34 }
 0x1cd   :  { %v8319_v60 = vpop.eup %8318  ;;  %v1141_v18 = vmul.f32 %v10290_v32, %v10290_v32  ;;  %v10302_v2 = vsel %vm774_vm6, %v10248_v52, %v966_v25 }
 0x1ce   :  { %v913_v23 = vmul.f32 %v8319_v60, %v732_v26  ;;  %v8321_v29 = vpop.eup %8320  ;;  %v1166_v35 = vadd.f32 %v1165_v53, %v1129_v21  ;;  %v1041_v26 = vadd.f32 %v1040_v8, %v10282_v19  ;;  %v1147_v11 = vmul.f32 %v10302_v2, %v10302_v2 }
 0x1cf   :  { %v925_v33 = vmul.f32 %v8321_v29, %v738_v58 }
 0x1d0   :  { %v1167_v1 = vadd.f32 %v1166_v35, %v1135_v50  ;;  %v972_v31 = vmul.f32 %v913_v23, %v10253_v3  ;;  %v1042_v37 = vadd.f32 %v1041_v26, %v10290_v32 }
 0x1d1   :  { %v978_v47 = vmul.f32 %v925_v33, %v10258_v17 }
 0x1d2   :  { %v1168_v55 = vadd.f32 %v1167_v1, %v1141_v18  ;;  %v10311_v28 = vsel %vm780_vm7, %v10253_v3, %v972_v31  ;;  %v1043_v58 = vadd.f32 %v1042_v37, %v10302_v2  ;;  %v1306_v18 = vlaneseq }
 0x1d3   :  { %v1153_v42 = vmul.f32 %v10311_v28, %v10311_v28  ;;  %v10319_v24 = vsel %vm786_vm8, %v10258_v17, %v978_v47 }
 0x1d4   :  { %v1169_v52 = vadd.f32 %v1168_v55, %v1147_v11  ;;  %v1159_v13 = vmul.f32 %v10319_v24, %v10319_v24  ;;  %v1044_v3 = vadd.f32 %v1043_v58, %v10311_v28  ;;  %v10328_v26 = vshrl.u32 %v1306_v18, 7 }
 0x1d6   :  { %v1170_v27 = vadd.f32 %v1169_v52, %v1153_v42  ;;  %v1045_v61 = vadd.f32 %v1044_v3, %v10319_v24  ;;  %15625 = vst [vmem:[#allocation37_spill] sm:$0xff] %v10328_v26  ;;  %v10336_v42 = vsub.s32 0, %v10328_v26 }
 0x1d8   :  { %v1171_v62 = vadd.f32 %v1170_v27, %v1159_v13  ;;  %v1046_v0 = vrot.slane %v1045_v61, 4  ;;  %15626 = vst [vmem:[#allocation21_spill] sm:$0xff] %v10336_v42 }
 0x1da   :  { %v1172_v14 = vrot.slane %v1171_v62, 4  ;;  %v1047_v7 = vadd.f32 %v1046_v0, %v1045_v61 }
 0x1dc   :  { %v1173_v40 = vadd.f32 %v1172_v14, %v1171_v62  ;;  %v1048_v56 = vrot.slane %v1047_v7, 2  ;;  %v15628_v62 = vld [vmem:[#allocation46_spill] sm:$0xff] }
 0x1de   :  { %v1174_v60 = vrot.slane %v1173_v40, 2  ;;  %v1049_v53 = vadd.f32 %v1048_v56, %v1047_v7  ;;  %v1032_v7 = vld [vmem:[%s15307_s5] ss:$8 sm:$0xf]  ;;  %v10355_v56 = vsub.s32 3, %v10328_v26 }
 0x1e0   :  { %v1175_v21 = vadd.f32 %v1174_v60, %v1173_v40  ;;  %v1050_v17 = vrot.slane %v1049_v53, 1  ;;  %v1033_v60 = vld [vmem:[%s15307_s5] ss:$8 sm:$0x30]  ;;  %15629 = vst [vmem:[#allocation17_spill] sm:$0xff] %v10355_v56 }
 0x1e2   :  { %v1176_v50 = vrot.slane %v1175_v21, 1  ;;  %v1051_v46 = vadd.f32 %v1050_v17, %v1049_v53  ;;  %v7538_v53 = vld [vmem:[%s15307_s5 + $0x4] ss:$8 sm:$0xf] }
 0x1e4   :  { %v1177_v23 = vadd.f32 %v1176_v50, %v1175_v21  ;;  %v10357_v21 = vor.u32 %v1033_v60, %v1032_v7  ;;  %v7539_v50 = vld [vmem:[%s15307_s5 + $0x4] ss:$8 sm:$0x30] }
 0x1e5   :  { %v10365_v17 = vor.u32 %v7539_v50, %v7538_v53 }
 0x1e6   :  { %v1244_v8 = vsel %vm1243_vm10, %v1051_v46, %v1177_v23  ;;  %v1388_v23 = vrot.slane %v10357_v21, %v10355_v56 }
 0x202   :  { %v1253_v29 = vpop.permute.xlu0 %1252 }
 0x206   :  { %v1255_v25 = vpop.permute.xlu1 %1254 }
 0x207   :  { %v1257_v35 = vsel %vm1256_vm9, %v1253_v29, %v1255_v25  ;;  %v1261_v1 = vadd.f32 %v1255_v25, %v10142_v39  ;;  %v1376_v25 = vrot.slane %v10357_v21, %v10336_v42  ;;  %v10372_v29 = vsub.s32 1, %v10328_v26 }
 0x208   :  { %v1260_v31 = vadd.f32 %v1257_v35, %v1244_v8  ;;  %v1497_v35 = vrot.slane %v10365_v17, %v10355_v56 }
 0x209   :  { %v1263_v55 = vadd.f32 %v1261_v1, %v10215_v12  ;;  %15630 = vst [vmem:[#allocation16_spill] sm:$0xff] %v10372_v29  ;;  %v1485_v1 = vrot.slane %v10365_v17, %v10336_v42 }
 0x20a   :  { %v1262_v37 = vadd.f32 %v1260_v31, %v10202_v48  ;;  %v15627_v48 = vld [vmem:[#allocation45_spill] sm:$0xff] }
 0x21b   :  { %v1267_v33 = vpop.permute.xlu0 %1266 }
 0x223   :  { %v1269_v11 = vpop.permute.xlu1 %1268 }
 0x224   :  { %v1270_v47 = vsel %vm1256_vm9, %v1267_v33, %v1269_v11  ;;  %v10333_v52 = vadd.f32 %v1269_v11, %v1263_v55  ;;  %v15631_v55 = vld [vmem:[#allocation39_spill] sm:$0xff] }
 0x225   :  { %v1273_v58 = vadd.f32 %v1270_v47, %v1262_v37 }
 0x226   :  { %1279 = vrot.lane.b32.xlu1 %v10333_v52, %s8979_s25 }
 0x227   :  { %v1285_v39 = vmul.f32 0.00390625, %v1273_v58  ;;  %1277 = vrot.lane.b32.xlu0 %v1273_v58, %s8979_s25  ;;  %v15632_v58 = vld [vmem:[#allocation29_spill] sm:$0xff] }
 0x229   :  { %v1288_v27 = vmul.f32 %v1285_v39, %v1285_v39  ;;  %v10342_v12 = vrot.slane %v1285_v39, %v10336_v42 }
 0x22b   :  { %v1294_v13 = vrot.slane %v1288_v27, 7  ;;  %v1321_v3 = vsub.f32 %v15627_v48, %v10342_v12  ;;  %v1327_v61 = vsub.f32 %v15628_v62, %v10342_v12  ;;  %v1318_v18 = vsub.f32 %v10272_v44, %v10342_v12 }
 0x22c   :  { %v1324_v8 = vsub.f32 %v10266_v10, %v10342_v12  ;;  %v1333_v11 = vsub.f32 %v15631_v55, %v10342_v12  ;;  %v1339_v37 = vsub.f32 %v9860_v38, %v10342_v12  ;;  %v1330_v47 = vsub.f32 %v10275_v34, %v10342_v12 }
 0x22d   :  { %v1300_v14 = vsub.f32 %v1285_v39, %v1294_v13  ;;  %v1336_v44 = vsub.f32 %v10282_v19, %v10342_v12  ;;  %v1345_v10 = vsub.f32 %v15632_v58, %v10342_v12  ;;  %v1351_v39 = vsub.f32 %v10047_v57, %v10342_v12 }
 0x22e   :  { %v1342_v48 = vsub.f32 %v10290_v32, %v10342_v12  ;;  %v1348_v38 = vsub.f32 %v10302_v2, %v10342_v12  ;;  %v1357_v34 = vsub.f32 %v10069_v63, %v10342_v12  ;;  %v1363_v19 = vsub.f32 %v10087_v22, %v10342_v12 }
 0x22f   :  { %v1303_v0 = vmax.f32 %v1300_v14, 0.0  ;;  %v1354_v62 = vsub.f32 %v10311_v28, %v10342_v12  ;;  %v1360_v57 = vsub.f32 %v10319_v24, %v10342_v12 }
 0x231   :  { %v1366_v40 = vadd.f32 1e-05, %v1303_v0 }
 0x233   :  { %8322 = vrsqrt.f32 %v1366_v40 }
 0x23d   :  { %v8323_v46 = vpop.eup %8322 }
 0x23e   :  { %v1403_v31 = vmul.f32 %v8323_v46, %v1376_v25  ;;  %v1406_v33 = vmul.f32 %v8323_v46, %v1388_v23 }
 0x240   :  { %v1412_v27 = vrot.slane %v1403_v31, %v10372_v29  ;;  %v1424_v13 = vrot.slane %v1406_v33, %v10372_v29 }
 0x242   :  { %v1436_v14 = vmul.f32 %v1424_v13, %v1321_v3  ;;  %v1442_v0 = vmul.f32 %v1424_v13, %v1327_v61  ;;  %v1433_v40 = vmul.f32 %v1412_v27, %v1318_v18  ;;  %v1439_v7 = vmul.f32 %v1412_v27, %v1324_v8 }
 0x243   :  { %v1448_v32 = vmul.f32 %v1424_v13, %v1333_v11  ;;  %v1454_v60 = vmul.f32 %v1424_v13, %v1339_v37  ;;  %v1445_v53 = vmul.f32 %v1412_v27, %v1330_v47  ;;  %v1451_v2 = vmul.f32 %v1412_v27, %v1336_v44 }
 0x244   :  { %v1515_v50 = vadd.f32 %v1497_v35, %v1436_v14  ;;  %v1521_v25 = vadd.f32 %v1497_v35, %v1442_v0  ;;  %v10408_v63 = vadd.f32 %v1485_v1, %v1433_v40  ;;  %v10410_v23 = vadd.f32 %v1485_v1, %v1439_v7  ;;  %v15643_v0 = vld [vmem:[#allocation51_spill] sm:$0xff] }
 0x245   :  { %v10412_v22 = vadd.f32 %v1497_v35, %v1448_v32  ;;  %v10414_v28 = vadd.f32 %v1497_v35, %v1454_v60  ;;  %v10416_v46 = vadd.f32 %v1485_v1, %v1445_v53  ;;  %v10418_v24 = vadd.f32 %v1485_v1, %v1451_v2  ;;  %v8950_v32 = vld [vmem:[%s15306_s4 + $0x20] sm:$0xff]  ;;  %v8951_v60 = vld [vmem:[%s15306_s4 + $0x28] sm:$0xff]  ;;  %v8952_v53 = vld [vmem:[%s15306_s4 + $0x30] sm:$0xff] }
 0x246   :  { %v7754_v12 = vpack.c.bf16 %v1521_v25, %v1515_v50  ;;  %v1460_v61 = vmul.f32 %v1424_v13, %v1345_v10  ;;  %v1466_v18 = vmul.f32 %v1424_v13, %v1351_v39  ;;  %v1457_v33 = vmul.f32 %v1412_v27, %v1342_v48  ;;  %v8953_v2 = vld [vmem:[%s15306_s4 + $0x38] sm:$0xff] }
 0x247   :  { %v1463_v55 = vmul.f32 %v1412_v27, %v1348_v38  ;;  %v1472_v47 = vmul.f32 %v1424_v13, %v1357_v34  ;;  %v1478_v44 = vmul.f32 %v1424_v13, %v1363_v19  ;;  %v1469_v10 = vmul.f32 %v1412_v27, %v1354_v62  ;;  %v8947_v62 = vld [vmem:[%s15306_s4 + $0x8] sm:$0xff] }
 0x248   :  { %7755 = vmatprep.subr.bf16.mxu0 %v7754_v12  ;;  %v10426_v11 = vadd.f32 %v1497_v35, %v1460_v61  ;;  %v10428_v37 = vadd.f32 %v1497_v35, %v1466_v18  ;;  %v10430_v58 = vadd.f32 %v1485_v1, %v1457_v33  ;;  %v1475_v39 = vmul.f32 %v1412_v27, %v1360_v57  ;;  %v8949_v57 = vld [vmem:[%s15306_s4 + $0x18] sm:$0xff]  ;;  %v15641_v27 = vld [vmem:[#allocation44_spill] sm:$0xff]  ;;  %v15642_v38 = vld [vmem:[#allocation47_spill] sm:$0xff] }
 0x249   :  { %v10432_v14 = vadd.f32 %v1485_v1, %v1463_v55  ;;  %v10436_v40 = vadd.f32 %v1497_v35, %v1472_v47  ;;  %v10438_v48 = vadd.f32 %v1497_v35, %v1478_v44  ;;  %v10442_v7 = vadd.f32 %v1485_v1, %v1469_v10  ;;  %v8946_v35 = vld [vmem:[%s15306_s4] sm:$0xff] }
 0x24a   :  { %v10444_v34 = vadd.f32 %v1485_v1, %v1475_v39  ;;  %v8980_v19 = vmov 1   ;;  %v8948_v1 = vld [vmem:[%s15306_s4 + $0x10] sm:$0xff] }
 0x24b   :  { %15633 = vst [vmem:[#allocation14_spill] sm:$0xff] %v10442_v7  ;;  %8119 = vset.pattern.permute.xlu0 %v8980_v19  ;;  %8120 = vset.pattern.permute.xlu1 %v8980_v19 }
 0x24c   :  { %1569 = vperm.xlu0 %8119, %v8946_v35   ;;  %1573 = vperm.xlu1 %8120, %v8947_v62  }
 0x250   :  { %1577 = vperm.xlu1 %8120, %v8948_v1   ;;  %1581 = vperm.xlu0 %8119, %v8949_v57  }
 0x254   :  { %1585 = vperm.xlu1 %8120, %v8950_v32   ;;  %1589 = vperm.xlu0 %8119, %v8951_v60   ;;  %v10478_v32 = vsub.s32 2, %v10328_v26  ;;  %v10481_v60 = vsub.s32 4, %v10328_v26 }
 0x256   :  { %15634 = vst [vmem:[#allocation19_spill] sm:$0xff] %v10478_v32  ;;  %15635 = vst [vmem:[#allocation22_spill] sm:$0xff] %v10481_v60 }
 0x258   :  { %1593 = vperm.xlu1 %8120, %v8952_v53   ;;  %1597 = vperm.xlu0 %8119, %v8953_v2  }
 0x298   :  { %v1280_v50 = vpop.permute.xlu1 %1279 }
 0x299   :  { %v1278_v25 = vpop.permute.xlu0 %1277 }
 0x29a   :  { %v1281_v12 = vsel %vm1256_vm9, %v1278_v25, %v1280_v50  ;;  %v1284_v61 = vsel %vm1256_vm9, %v10333_v52, %v1278_v25  ;;  %v10484_v52 = vsub.s32 5, %v10328_v26  ;;  %v1380_v50 = vrot.slane %v10357_v21, %v10372_v29 }
 0x29b   :  { %v1286_v18 = vmul.f32 0.00390625, %v1284_v61  ;;  %v1287_v33 = vmul.f32 0.00390625, %v1281_v12  ;;  %v1384_v25 = vrot.slane %v10357_v21, %v10478_v32  ;;  %v1392_v12 = vrot.slane %v10357_v21, %v10481_v60 }
 0x29c   :  { %15636 = vst [vmem:[#allocation23_spill] sm:$0xff] %v10484_v52  ;;  %v1396_v61 = vrot.slane %v10357_v21, %v10484_v52  ;;  %v15639_v21 = vld [vmem:[#allocation49_spill] sm:$0xff] }
 0x29d   :  { %v1289_v55 = vmul.f32 %v1286_v18, %v1286_v18  ;;  %v1290_v47 = vmul.f32 %v1287_v33, %v1287_v33  ;;  %v10487_v53 = vrot.slane %v1286_v18, %v10336_v42  ;;  %v10490_v2 = vrot.slane %v1287_v33, %v10336_v42 }
 0x29f   :  { %v1295_v44 = vrot.slane %v1289_v55, 7  ;;  %v1296_v10 = vrot.slane %v1290_v47, 7  ;;  %v10502_v55 = vrot.slane %v10365_v17, %v10372_v29  ;;  %v15637_v47 = vld [vmem:[#allocation41_spill] sm:$0xff]  ;;  %v1331_v13 = vsub.f32 %v15641_v27, %v10487_v53  ;;  %v15647_v27 = vld [vmem:[#allocation30_spill] sm:$0xff] }
 0x2a1   :  { %v1301_v39 = vsub.f32 %v1286_v18, %v1295_v44  ;;  %v1302_v19 = vsub.f32 %v1287_v33, %v1296_v10  ;;  %v10506_v18 = vrot.slane %v10365_v17, %v10478_v32  ;;  %v10510_v33 = vrot.slane %v10365_v17, %v10484_v52  ;;  %v15638_v10 = vld [vmem:[#allocation42_spill] sm:$0xff]  ;;  %v15646_v52 = vld [vmem:[#allocation43_spill] sm:$0xff] }
 0x2a2   :  { %v1319_v44 = vsub.f32 %v15637_v47, %v10487_v53  ;;  %v1337_v47 = vsub.f32 %v15642_v38, %v10487_v53  ;;  %v1344_v32 = vsub.f32 %v15647_v27, %v10490_v2  ;;  %v1350_v38 = vsub.f32 %v9971_v51, %v10490_v2  ;;  %v15648_v51 = vld [vmem:[#allocation40_spill] sm:$0xff] }
 0x2a3   :  { %v1304_v35 = vmax.f32 %v1301_v39, 0.0  ;;  %v1305_v62 = vmax.f32 %v1302_v19, 0.0  ;;  %v1325_v39 = vsub.f32 %v15638_v10, %v10487_v53  ;;  %v1320_v19 = vsub.f32 %v15639_v21, %v10490_v2  ;;  %v15644_v21 = vld [vmem:[#allocation38_spill] sm:$0xff] }
 0x2a4   :  { %v1332_v10 = vsub.f32 %v15643_v0, %v10490_v2  ;;  %v1338_v3 = vsub.f32 %v15644_v21, %v10490_v2  ;;  %v1355_v0 = vsub.f32 %v9580_v45, %v10487_v53  ;;  %v1361_v21 = vsub.f32 %v9678_v59, %v10487_v53 }
 0x2a5   :  { %v1367_v1 = vadd.f32 1e-05, %v1304_v35  ;;  %v1368_v57 = vadd.f32 1e-05, %v1305_v62  ;;  %v10520_v35 = vrot.slane %v10365_v17, %v10481_v60  ;;  %v15645_v17 = vld [vmem:[#allocation48_spill] sm:$0xff]  ;;  %v1323_v42 = vsub.f32 %v15648_v51, %v10490_v2 }
 0x2a6   :  { %v1343_v26 = vsub.f32 %v15645_v17, %v10487_v53  ;;  %v1356_v17 = vsub.f32 %v10024_v4, %v10490_v2 }
 0x2a7   :  { %8324 = vrsqrt.f32 %v1367_v1  ;;  %v15640_v1 = vld [vmem:[#allocation50_spill] sm:$0xff] }
 0x2a8   :  { %8326 = vrsqrt.f32 %v1368_v57  ;;  %v1326_v57 = vsub.f32 %v15640_v1, %v10490_v2  ;;  %v1349_v1 = vsub.f32 %v15646_v52, %v10487_v53  ;;  %v1362_v52 = vsub.f32 %v10052_v9, %v10490_v2 }
 0x2b1   :  { %v8325_v62 = vpop.eup %8324 }
 0x2b2   :  { %v8327_v31 = vpop.eup %8326  ;;  %v1404_v8 = vmul.f32 %v8325_v62, %v1380_v50 }
 0x2b3   :  { %v1405_v60 = vmul.f32 %v8327_v31, %v1384_v25  ;;  %v1407_v25 = vmul.f32 %v8325_v62, %v1392_v12  ;;  %v1408_v56 = vmul.f32 %v8327_v31, %v1396_v61 }
 0x2b4   :  { %v1416_v50 = vrot.slane %v1404_v8, %v10372_v29 }
 0x2b5   :  { %v1420_v27 = vrot.slane %v1405_v60, %v10372_v29  ;;  %v10557_v60 = vrot.slane %v1408_v56, %v10372_v29 }
 0x2b6   :  { %v1434_v43 = vmul.f32 %v1416_v50, %v1319_v44  ;;  %v1440_v45 = vmul.f32 %v1416_v50, %v1325_v39  ;;  %v1446_v16 = vmul.f32 %v1416_v50, %v1331_v13  ;;  %v1452_v8 = vmul.f32 %v1416_v50, %v1337_v47 }
 0x2b7   :  { %v1435_v30 = vmul.f32 %v1420_v27, %v1320_v19  ;;  %v1441_v20 = vmul.f32 %v1420_v27, %v1326_v57  ;;  %v1447_v59 = vmul.f32 %v1420_v27, %v1332_v10  ;;  %v1453_v5 = vmul.f32 %v1420_v27, %v1338_v3 }
 0x2b8   :  { %v1513_v4 = vadd.f32 %v10502_v55, %v1434_v43  ;;  %v1519_v7 = vadd.f32 %v10502_v55, %v1440_v45  ;;  %v1525_v9 = vadd.f32 %v10502_v55, %v1446_v16  ;;  %v1531_v31 = vadd.f32 %v10502_v55, %v1452_v8 }
 0x2b9   :  { %v1514_v12 = vadd.f32 %v10506_v18, %v1435_v30  ;;  %v1520_v13 = vadd.f32 %v10506_v18, %v1441_v20  ;;  %v1526_v61 = vadd.f32 %v10506_v18, %v1447_v59  ;;  %v1532_v3 = vadd.f32 %v10506_v18, %v1453_v5 }
 0x2ba   :  { %v7738_v44 = vpack.c.bf16 %v1519_v7, %v1513_v4  ;;  %v1458_v39 = vmul.f32 %v1416_v50, %v1343_v26  ;;  %v1464_v43 = vmul.f32 %v1416_v50, %v1349_v1  ;;  %v7742_v62 = vpack.c.bf16 %v1531_v31, %v1525_v9  ;;  %v15650_v26 = vld [vmem:[#allocation27_spill] sm:$0xff] }
 0x2bb   :  { %v7756_v19 = vpack.c.bf16 %v1520_v13, %v1514_v12  ;;  %v1459_v57 = vmul.f32 %v1420_v27, %v1344_v32  ;;  %v1465_v16 = vmul.f32 %v1420_v27, %v1350_v38  ;;  %v1470_v10 = vmul.f32 %v1416_v50, %v1355_v0  ;;  %v15651_v32 = vld [vmem:[#allocation52_spill] sm:$0xff] }
 0x2bc   :  { %7739 = vmatprep.subr.bf16.mxu1 %v7738_v44  ;;  %v1537_v47 = vadd.f32 %v10502_v55, %v1458_v39  ;;  %v1543_v56 = vadd.f32 %v10502_v55, %v1464_v43  ;;  %v1476_v30 = vmul.f32 %v1416_v50, %v1361_v21  ;;  %v10566_v20 = vrot.slane %v1407_v25, %v10372_v29  ;;  %v15653_v21 = vld [vmem:[#allocation28_spill] sm:$0xff] }
 0x2bd   :  { %7757 = vmatpush1.bf16.msra.mxu0 %v7756_v19  ;;  %v15649_v5 = vpack.c.bf16 %v10410_v23, %v10408_v63  ;;  %v1329_v7 = vsub.f32 %v15650_v26, %v10490_v2  ;;  %v1322_v1 = vsub.f32 %v15651_v32, %v10487_v53  ;;  %v15652_v38 = vpack.c.bf16 %v10414_v28, %v10412_v22 }
 0x2be   :  { %v1538_v0 = vadd.f32 %v10506_v18, %v1459_v57  ;;  %v1544_v50 = vadd.f32 %v10506_v18, %v1465_v16  ;;  %v1328_v25 = vsub.f32 %v15653_v21, %v10487_v53  ;;  %v7760_v63 = vpack.c.bf16 %v1532_v3, %v1526_v61 }
 0x2bf   :  { %7741 = vmatpush1.bf16.msra.mxu1 %v15649_v5  ;;  %7759 = vmatprep.subr.bf16.mxu0 %v15652_v38  ;;  %v7746_v23 = vpack.c.bf16 %v1543_v56, %v1537_v47  ;;  %v1471_v51 = vmul.f32 %v1420_v27, %v1356_v17  ;;  %v1477_v45 = vmul.f32 %v1420_v27, %v1362_v52  ;;  %v15656_v27 = vld [vmem:[#allocation31_spill] sm:$0xff]  ;;  %v10634_v56 = vld [vmem:[%s15308_s3] sm:$0xff] }
 0x2c0   :  { %7743 = vmatprep.subr.bf16.mxu1 %v7742_v62  ;;  %v1549_v8 = vadd.f32 %v10502_v55, %v1470_v10  ;;  %v1555_v59 = vadd.f32 %v10502_v55, %v1476_v30  ;;  %v1438_v4 = vmul.f32 %v10557_v60, %v1323_v42  ;;  %v1444_v22 = vmul.f32 %v10557_v60, %v1329_v7  ;;  %v15661_v10 = vld [vmem:[#allocation32_spill] sm:$0xff]  ;;  %v15662_v5 = vld [vmem:[#allocation35_spill] sm:$0xff]  ;;  %v15664_v38 = vld [vmem:[#allocation2_spill] sm:$0xff] }
 0x2c1   :  { %7761 = vmatpush1.bf16.msra.mxu0 %v7760_v63  ;;  %v15654_v28 = vpack.c.bf16 %v10418_v24, %v10416_v46  ;;  %v1437_v9 = vmul.f32 %v10566_v20, %v1322_v1  ;;  %v1335_v31 = vsub.f32 %v9964_v36, %v10490_v2  ;;  %v1341_v17 = vsub.f32 %v10129_v54, %v10490_v2  ;;  %v15663_v7 = vld [vmem:[#allocation36_spill] sm:$0xff] }
 0x2c2   :  { %v15655_v55 = vpack.c.bf16 %v10428_v37, %v10426_v11  ;;  %v7764_v42 = vpack.c.bf16 %v1544_v50, %v1538_v0  ;;  %v1443_v52 = vmul.f32 %v10566_v20, %v1328_v25  ;;  %v1334_v46 = vsub.f32 %v15656_v27, %v10487_v53 }
 0x2c3   :  { %7745 = vmatpush1.bf16.msra.mxu1 %v15654_v28  ;;  %v1550_v24 = vadd.f32 %v10506_v18, %v1471_v51  ;;  %v1556_v12 = vadd.f32 %v10506_v18, %v1477_v45  ;;  %v1450_v36 = vmul.f32 %v10557_v60, %v1335_v31  ;;  %v1456_v13 = vmul.f32 %v10557_v60, %v1341_v17  ;;  %v10659_v45 = vld [vmem:[%s15308_s3 + $0x8] sm:$0xff] }
 0x2c4   :  { %7763 = vmatprep.subr.bf16.mxu0 %v15655_v55  ;;  %7747 = vmatprep.subr.bf16.mxu1 %v7746_v23  ;;  %v7750_v54 = vpack.c.bf16 %v1555_v59, %v1549_v8  ;;  %v1517_v61 = vadd.f32 %v10510_v33, %v1438_v4  ;;  %v1523_v11 = vadd.f32 %v10510_v33, %v1444_v22  ;;  %v15665_v51 = vmov 0.0   ;;  %v15666_v8 = vld [vmem:[#allocation33_spill] sm:$0xff]  ;;  %v15667_v4 = vld [vmem:[#allocation34_spill] sm:$0xff]  ;;  %v15668_v55 = vld [vmem:[#allocation3_spill] sm:$0xff] }
 0x2c5   :  { %v1340_v37 = vsub.f32 %v10099_v41, %v10487_v53  ;;  %7765 = vmatpush1.bf16.msra.mxu0 %v7764_v42  ;;  %v15657_v44 = vpack.c.bf16 %v10432_v14, %v10430_v58  ;;  %v1516_v3 = vadd.f32 %v10520_v35, %v1437_v9  ;;  %v1347_v18 = vsub.f32 %v10162_v15, %v10490_v2 }
 0x2c6   :  { %v1353_v39 = vsub.f32 %v10175_v49, %v10490_v2  ;;  %v15658_v43 = vpack.c.bf16 %v10438_v48, %v10436_v40  ;;  %v1522_v41 = vadd.f32 %v10520_v35, %v1443_v52  ;;  %v1449_v19 = vmul.f32 %v10566_v20, %v1334_v46  ;;  %v15659_v48 = vld [vmem:[#allocation14_spill] sm:$0xff] }
 0x2c7   :  { %7749 = vmatpush1.bf16.msra.mxu1 %v15657_v44  ;;  %v1455_v58 = vmul.f32 %v10566_v20, %v1340_v37  ;;  %v7768_v14 = vpack.c.bf16 %v1556_v12, %v1550_v24  ;;  %v1529_v62 = vadd.f32 %v10510_v33, %v1450_v36  ;;  %v1535_v57 = vadd.f32 %v10510_v33, %v1456_v13  ;;  %v15669_v12 = vld [vmem:[#allocation4_spill] sm:$0xff]  ;;  %v1563_v36 = vld [vmem:[%s15308_s3 + $0x18] sm:$0xff]  ;;  %v1565_v37 = vld [vmem:[%s15308_s3 + $0x28] sm:$0xff] }
 0x2c8   :  { %7767 = vmatprep.subr.bf16.mxu0 %v15658_v43  ;;  %7751 = vmatprep.subr.bf16.mxu1 %v7750_v54  ;;  %v1462_v15 = vmul.f32 %v10557_v60, %v1347_v18  ;;  %v7770_v16 = vpack.c.bf16 %v1523_v11, %v1517_v61  ;;  %v1468_v49 = vmul.f32 %v10557_v60, %v1353_v39  ;;  %v15670_v54 = vld [vmem:[#allocation5_spill] sm:$0xff]  ;;  %v15671_v61 = vld [vmem:[#allocation6_spill] sm:$0xff]  ;;  %v8954_v11 = vld [vmem:[%s15304_s0 + $0xc8] sm:$0x7f] }
 0x2c9   :  { %v1346_v40 = vsub.f32 %v10116_v6, %v10487_v53  ;;  %7769 = vmatpush1.bf16.msra.mxu0 %v7768_v14  ;;  %v15660_v47 = vpack.c.bf16 %v10444_v34, %v15659_v48  ;;  %v1352_v30 = vsub.f32 %v15661_v10, %v10487_v53  ;;  %v1359_v26 = vsub.f32 %v15662_v5, %v10490_v2  ;;  %v8955_v44 = vld [vmem:[%s15304_s0 + $0xc0] sm:$0x7f]  ;;  %v1566_v18 = vld [vmem:[%s15308_s3 + $0x30] sm:$0xff]  ;;  %v1567_v39 = vld [vmem:[%s15308_s3 + $0x38] sm:$0xff] }
 0x2ca   :  { %v1365_v32 = vsub.f32 %v15663_v7, %v10490_v2  ;;  %v7772_v6 = vpack.c.bf16 %v1522_v41, %v1516_v3  ;;  %v1528_v1 = vadd.f32 %v10520_v35, %v1449_v19  ;;  %v1534_v34 = vadd.f32 %v10520_v35, %v1455_v58  ;;  %7787 = vmatprep.subr.bf16.mxu0 %v15664_v38  ;;  %v15672_v3 = vld [vmem:[#allocation9_spill] sm:$0xff]  ;;  %v15673_v43 = vld [vmem:[#allocation7_spill] sm:$0xff]  ;;  %v15674_v41 = vld [vmem:[#allocation8_spill] sm:$0xff] }
 0x2cb   :  { %7753 = vmatpush1.bf16.msra.mxu1 %v15660_v47  ;;  %v7774_v0 = vpack.c.bf16 %v1535_v57, %v1529_v62  ;;  %v1541_v50 = vadd.f32 %v10510_v33, %v1462_v15  ;;  %v1461_v21 = vmul.f32 %v10566_v20, %v1346_v40  ;;  %v1467_v25 = vmul.f32 %v10566_v20, %v1352_v30  ;;  %v15675_v19 = vld [vmem:[#allocation10_spill] sm:$0xff]  ;;  %v8956_v58 = vld [vmem:[%s15304_s0 + $0xd8] sm:$0x7f]  ;;  %v8957_v14 = vld [vmem:[%s15304_s0 + $0xd0] sm:$0x7f]  ;;  %v10764_v62 = vpop.permute.xlu0 %1569  ;;  %v10771_v48 = vpop.permute.xlu1 %1573 }
 0x2cc   :  { %7771 = vmatprep.subr.bf16.mxu1 %v7770_v16  ;;  %7548 = vmatmul.mubr.msk.f32.vlgmr.msra.gmra.mrb[26].mxu0 %vm1256_vm9, %v10634_v56  ;;  %v1547_v2 = vadd.f32 %v10510_v33, %v1468_v49  ;;  %v1474_v63 = vmul.f32 %v10557_v60, %v1359_v26  ;;  %v1480_v23 = vmul.f32 %v10557_v60, %v1365_v32 }
 0x2cd   :  { %1807 = vmatprep.mubr.f32.mxu0 %v15665_v51  ;;  %v1358_v59 = vsub.f32 %v15666_v8, %v10487_v53  ;;  %v1364_v22 = vsub.f32 %v15667_v4, %v10487_v53  ;;  %v7776_v28 = vpack.c.bf16 %v1534_v34, %v1528_v1  ;;  %v1540_v60 = vadd.f32 %v10520_v35, %v1461_v21 }
 0x2ce   :  { %7540 = vmatmul.mubr.msk.f32.vlgmr.msra.gmra.mrb[22].mxu1 %vm1256_vm9, %v10634_v56  ;;  %v1546_v9 = vadd.f32 %v10520_v35, %v1467_v25  ;;  %7789 = vmatpush1.bf16.msra.mxu0 %v15668_v55  ;;  %v7778_v53 = vpack.c.bf16 %v1547_v2, %v1541_v50  ;;  %v1553_v42 = vadd.f32 %v10510_v33, %v1474_v63 }
 0x2cf   :  { %7773 = vmatpush1.bf16.msra.mxu1 %v7772_v6  ;;  %1694 = vmatprep.mubr.f32.mxu1 %v15665_v51  ;;  %v1473_v31 = vmul.f32 %v10566_v20, %v1358_v59  ;;  %v1479_v17 = vmul.f32 %v10566_v20, %v1364_v22  ;;  %v1559_v52 = vadd.f32 %v10510_v33, %v1480_v23  ;;  %v1562_v20 = vld [vmem:[%s15308_s3 + $0x10] sm:$0xff] }
 0x2d0   :  { %7775 = vmatprep.subr.bf16.mxu1 %v7774_v0  ;;  %7549 = vmatmul.mubr.msk.f32.gmra.mrb[28].mxu0 %vm1256_vm9, %v10659_v45  ;;  %v7780_v27 = vpack.c.bf16 %v1546_v9, %v1540_v60 }
 0x2d1   :  { %1813 = vmatprep.mubr.f32.mxu0 %v15665_v51  ;;  %v1552_v46 = vadd.f32 %v10520_v35, %v1473_v31  ;;  %v1558_v24 = vadd.f32 %v10520_v35, %v1479_v17  ;;  %7791 = vmatprep.subr.bf16.mxu0 %v15669_v12  ;;  %v7782_v33 = vpack.c.bf16 %v1559_v52, %v1553_v42  ;;  %v1564_v35 = vld [vmem:[%s15308_s3 + $0x20] sm:$0xff] }
 0x2d2   :  { %7541 = vmatmul.mubr.msk.f32.gmra.mrb[24].mxu1 %vm1256_vm9, %v10659_v45  ;;  %7793 = vmatpush1.bf16.msra.mxu0 %v15670_v54 }
 0x2d3   :  { %7777 = vmatpush1.bf16.msra.mxu1 %v7776_v28  ;;  %1700 = vmatprep.mubr.f32.mxu1 %v15665_v51  ;;  %v7784_v13 = vpack.c.bf16 %v1558_v24, %v1552_v46 }
 0x2d4   :  { %7779 = vmatprep.subr.bf16.mxu1 %v7778_v53  ;;  %7550 = vmatmul.mubr.msk.f32.gmra.mrb[30].mxu0 %vm1256_vm9, %v1562_v20 }
 0x2d5   :  { %1819 = vmatprep.mubr.f32.mxu0 %v15665_v51  ;;  %7584 = vmatprep.subr.msk.mxu0 %vm146_vm0, %v8954_v11 }
 0x2d6   :  { %7542 = vmatmul.mubr.msk.f32.gmra.mrb[26].mxu1 %vm1256_vm9, %v1562_v20  ;;  %7585 = vmatpush1.msk.msra.mxu0 %vm146_vm0, %v8955_v44 }
 0x2d7   :  { %7781 = vmatpush1.bf16.msra.mxu1 %v7780_v27  ;;  %1706 = vmatprep.mubr.f32.mxu1 %v15665_v51 }
 0x2d8   :  { %7783 = vmatprep.subr.bf16.mxu1 %v7782_v33  ;;  %7551 = vmatmul.mubr.msk.f32.gmra.mrb[32].mxu0 %vm1256_vm9, %v1563_v36 }
 0x2d9   :  { %1825 = vmatprep.mubr.f32.mxu0 %v15665_v51  ;;  %7803 = vmatprep.subr.bf16.mxu0 %v15672_v3  ;;  %v10836_v3 = vpop.permute.xlu1 %1577 }
 0x2da   :  { %7543 = vmatmul.mubr.msk.f32.gmra.mrb[28].mxu1 %vm1256_vm9, %v1563_v36 }
 0x2db   :  { %7785 = vmatpush1.bf16.msra.mxu1 %v7784_v13  ;;  %1712 = vmatprep.mubr.f32.mxu1 %v15665_v51 }
 0x2dc   :  { %7795 = vmatprep.subr.bf16.mxu1 %v15671_v61  ;;  %7552 = vmatmul.mubr.msk.f32.gmra.mrb[34].mxu0 %vm1256_vm9, %v1564_v35 }
 0x2dd   :  { %1831 = vmatprep.mubr.f32.mxu0 %v15665_v51 }
 0x2de   :  { %7544 = vmatmul.mubr.msk.f32.gmra.mrb[30].mxu1 %vm1256_vm9, %v1564_v35 }
 0x2df   :  { %1718 = vmatprep.mubr.f32.mxu1 %v15665_v51 }
 0x2e0   :  { %7553 = vmatmul.mubr.msk.f32.gmra.mrb[36].mxu0 %vm1256_vm9, %v1565_v37 }
 0x2e1   :  { %1837 = vmatprep.mubr.f32.mxu0 %v15665_v51 }
 0x2e2   :  { %7545 = vmatmul.mubr.msk.f32.gmra.mrb[32].mxu1 %vm1256_vm9, %v1565_v37 }
 0x2e3   :  { %1724 = vmatprep.mubr.f32.mxu1 %v15665_v51 }
 0x2e4   :  { %7554 = vmatmul.mubr.msk.f32.gmra.mrb[38].mxu0 %vm1256_vm9, %v1566_v18 }
 0x2e5   :  { %1843 = vmatprep.mubr.f32.mxu0 %v15665_v51 }
 0x2e6   :  { %7546 = vmatmul.mubr.msk.f32.gmra.mrb[34].mxu1 %vm1256_vm9, %v1566_v18 }
 0x2e7   :  { %1730 = vmatprep.mubr.f32.mxu1 %v15665_v51 }
 0x2e8   :  { %7555 = vmatmul.mubr.msk.f32.gmra.mrb[40].mxu0 %vm1256_vm9, %v1567_v39 }
 0x2e9   :  { %3124 = vmatprep.mubr.f32.mxu0 %v15665_v51 }
 0x2ea   :  { %7547 = vmatmul.mubr.msk.f32.gmra.mrb[36].mxu1 %vm1256_vm9, %v1567_v39 }
 0x2eb   :  { %1914 = vmatprep.mubr.f32.mxu1 %v15665_v51 }
 0x2ee   :  { %7556 = vmatmul.mubr.msk.f32.vlgmr.msra.gmra.mrb[38].mxu1 %vm1256_vm9, %v10634_v56 }
 0x2ef   :  { %1920 = vmatprep.mubr.f32.mxu1 %v15665_v51  ;;  %7797 = vmatpush1.bf16.msra.mxu1 %v15673_v43 }
 0x2f0   :  { %7799 = vmatprep.subr.bf16.mxu1 %v15674_v41 }
 0x2f2   :  { %7557 = vmatmul.mubr.msk.f32.gmra.mrb[40].mxu1 %vm1256_vm9, %v10659_v45 }
 0x2f3   :  { %1926 = vmatprep.mubr.f32.mxu1 %v15665_v51  ;;  %7801 = vmatpush1.bf16.msra.mxu1 %v15675_v19 }
 0x2f4   :  { %7594 = vmatprep.subr.msk.mxu1 %vm146_vm0, %v8956_v58 }
 0x2f6   :  { %7558 = vmatmul.mubr.msk.f32.gmra.mrb[42].mxu1 %vm1256_vm9, %v1562_v20 }
 0x2f7   :  { %1932 = vmatprep.mubr.f32.mxu1 %v15665_v51  ;;  %7595 = vmatpush1.msk.msra.mxu1 %vm146_vm0, %v8957_v14 }
 0x2fa   :  { %7559 = vmatmul.mubr.msk.f32.gmra.mrb[44].mxu1 %vm1256_vm9, %v1563_v36 }
 0x2fb   :  { %1938 = vmatprep.mubr.f32.mxu1 %v15665_v51 }
 0x2fe   :  { %7560 = vmatmul.mubr.msk.f32.gmra.mrb[46].mxu1 %vm1256_vm9, %v1564_v35 }
 0x2ff   :  { %1944 = vmatprep.mubr.f32.mxu1 %v15665_v51 }
 0x302   :  { %7561 = vmatmul.mubr.msk.f32.gmra.mrb[48].mxu1 %vm1256_vm9, %v1565_v37 }
 0x303   :  { %1950 = vmatprep.mubr.f32.mxu1 %v15665_v51 }
 0x306   :  { %7562 = vmatmul.mubr.msk.f32.gmra.mrb[50].mxu1 %vm1256_vm9, %v1566_v18 }
 0x307   :  { %1956 = vmatprep.mubr.f32.mxu1 %v15665_v51 }
 0x30a   :  { %7563 = vmatmul.mubr.msk.f32.gmra.mrb[52].mxu1 %vm1256_vm9, %v1567_v39 }
 0x30b   :  { %3237 = vmatprep.mubr.f32.mxu1 %v15665_v51 }
 0x39f   :  { %v1803_v57 = vpop.f32.mrb[26].mxu0 }
 0x3a0   :  { %v1805_v16 = vpop.f32.mrb[27].mxu0  ;;  %v10807_v55 = vadd.f32 %v1803_v57, %v10764_v62 }
 0x3a1   :  { %v10766_v15 = vpop.f32.mrb[22].mxu1  ;;  %v10769_v40 = vadd.f32 %v1805_v16, %v10764_v62 }
 0x3a2   :  { %15676 = vst [vmem:[#allocation24_spill] sm:$0xff] %v10766_v15  ;;  %v1692_v49 = vpop.f32.mrb[23].mxu1  ;;  %v1965_v33 = vmin.f32 %v10807_v55, 20.0  ;;  %vm2205_vm13 = vcmp.gt.f32.partialorder %v10807_v55, 20.0 }
 0x3a3   :  { %v1966_v47 = vmin.f32 %v10769_v40, 20.0  ;;  %v1809_v56 = vpop.f32.mrb[28].mxu0  ;;  %v10810_v42 = vadd.f32 %v1692_v49, %v10764_v62  ;;  %vm2206_vm11 = vcmp.gt.f32.partialorder %v10769_v40, 20.0 }
 0x3a4   :  { %v1811_v30 = vpop.f32.mrb[29].mxu0  ;;  %v10822_v36 = vadd.f32 %v1809_v56, %v10771_v48  ;;  %v2015_v18 = vmul.f32 1.442695, %v1965_v33 }
 0x3a5   :  { %v10774_v10 = vpop.f32.mrb[24].mxu1  ;;  %v2017_v26 = vmul.f32 1.442695, %v1966_v47  ;;  %v10777_v7 = vadd.f32 %v1811_v30, %v10771_v48  ;;  %v1964_v13 = vmin.f32 %v10810_v42, 20.0  ;;  %vm2204_vm14 = vcmp.gt.f32.partialorder %v10810_v42, 20.0 }
 0x3a6   :  { %15677 = vst [vmem:[#allocation25_spill] sm:$0xff] %v10774_v10  ;;  %v1698_v5 = vpop.f32.mrb[25].mxu1  ;;  %v1971_v39 = vmin.f32 %v10822_v36, 20.0  ;;  %vm2211_vm15 = vcmp.gt.f32.partialorder %v10822_v36, 20.0 }
 0x3a7   :  { %v1972_v32 = vmin.f32 %v10777_v7, 20.0  ;;  %v1815_v6 = vpop.f32.mrb[30].mxu0  ;;  %8328 = vpow2.f32 %v2017_v26  ;;  %v10830_v11 = vadd.f32 %v1698_v5, %v10771_v48  ;;  %v2013_v43 = vmul.f32 1.442695, %v1964_v13 }
 0x3a8   :  { %v1817_v34 = vpop.f32.mrb[31].mxu0  ;;  %v10843_v58 = vadd.f32 %v1815_v6, %v10836_v3  ;;  %v2027_v57 = vmul.f32 1.442695, %v1971_v39  ;;  %vm2212_vm12 = vcmp.gt.f32.partialorder %v10777_v7, 20.0 }
 0x3a9   :  { %v10780_v1 = vpop.f32.mrb[26].mxu1  ;;  %v2029_v38 = vmul.f32 1.442695, %v1972_v32  ;;  %v1970_v19 = vmin.f32 %v10830_v11, 20.0  ;;  %v10848_v49 = vadd.f32 %v1817_v34, %v10836_v3  ;;  %vm2210_vm2 = vcmp.gt.f32.partialorder %v10830_v11, 20.0 }
 0x3aa   :  { %15678 = vst [vmem:[#allocation26_spill] sm:$0xff] %v10780_v1  ;;  %v1704_v0 = vpop.f32.mrb[27].mxu1  ;;  %v1977_v5 = vmin.f32 %v10843_v58, 20.0  ;;  %vm2217_vm3 = vcmp.gt.f32.partialorder %v10843_v58, 20.0 }
 0x3ab   :  { %v10782_v50 = vpop.f32.mrb[32].mxu0  ;;  %8330 = vpow2.f32 %v2029_v38  ;;  %v2025_v30 = vmul.f32 1.442695, %v1970_v19  ;;  %v10854_v26 = vadd.f32 %v1704_v0, %v10836_v3  ;;  %v10882_v19 = vpop.permute.xlu1 %1585  ;;  %vm2218_vm4 = vcmp.gt.f32.partialorder %v10848_v49, 20.0 }
 0x3ac   :  { %v10786_v25 = vpop.f32.mrb[33].mxu0  ;;  %15688 = vst [vmem:[#allocation49_spill] sm:$0xff] %v10882_v19 }
 0x3ad   :  { %v10784_v21 = vpop.f32.mrb[28].mxu1  ;;  %vm2216_vm5 = vcmp.gt.f32.partialorder %v10854_v26, 20.0 }
 0x3ae   :  { %15679 = vst [vmem:[#allocation15_spill] sm:$0xff] %v10784_v21  ;;  %v10788_v2 = vpop.f32.mrb[29].mxu1 }
 0x3af   :  { %v10790_v63 = vpop.f32.mrb[34].mxu0 }
 0x3b0   :  { %v10794_v45 = vpop.f32.mrb[35].mxu0 }
 0x3b1   :  { %v10792_v23 = vpop.f32.mrb[30].mxu1  ;;  %v8329_v59 = vpop.eup %8328 }
 0x3b2   :  { %15680 = vst [vmem:[#allocation18_spill] sm:$0xff] %v10792_v23  ;;  %v10796_v8 = vpop.f32.mrb[31].mxu1  ;;  %v2110_v4 = vadd.f32 2.0, %v8329_v59 }
 0x3b3   :  { %v10798_v22 = vpop.f32.mrb[36].mxu0 }
 0x3b4   :  { %v10802_v60 = vpop.f32.mrb[37].mxu0  ;;  %v2158_v31 = vmul.f32 %v8329_v59, %v2110_v4  ;;  %v1978_v59 = vmin.f32 %v10848_v49, 20.0  ;;  %v10860_v4 = vpop.permute.xlu0 %1581 }
 0x3b5   :  { %v10800_v28 = vpop.f32.mrb[32].mxu1  ;;  %v8331_v17 = vpop.eup %8330  ;;  %15684 = vst [vmem:[#allocation39_spill] sm:$0xff] %v10860_v4  ;;  %v10874_v13 = vadd.f32 %v10782_v50, %v10860_v4 }
 0x3b6   :  { %15681 = vst [vmem:[#allocation20_spill] sm:$0xff] %v10800_v28  ;;  %v10804_v9 = vpop.f32.mrb[33].mxu1  ;;  %v2254_v53 = vadd.f32 2.0, %v2158_v31  ;;  %v2116_v52 = vadd.f32 2.0, %v8331_v17  ;;  %v2041_v39 = vmul.f32 1.442695, %v1978_v59 }
 0x3b7   :  { %v10812_v20 = vpop.f32.mrb[38].mxu0  ;;  %vm2223_vm6 = vcmp.gt.f32.partialorder %v10874_v13, 20.0 }
 0x3b8   :  { %v10816_v46 = vpop.f32.mrb[39].mxu0  ;;  %8332 = vrcp.f32 %v2254_v53  ;;  %v2164_v12 = vmul.f32 %v8331_v17, %v2116_v52  ;;  %v1976_v53 = vmin.f32 %v10854_v26, 20.0 }
 0x3b9   :  { %v10814_v27 = vpop.f32.mrb[34].mxu1 }
 0x3ba   :  { %15682 = vst [vmem:[#allocation45_spill] sm:$0xff] %v10814_v27  ;;  %v10818_v24 = vpop.f32.mrb[35].mxu1  ;;  %v2260_v54 = vadd.f32 2.0, %v2164_v12 }
 0x3bb   :  { %v10825_v35 = vpop.f32.mrb[40].mxu0 }
 0x3bc   :  { %v10832_v37 = vpop.f32.mrb[41].mxu0  ;;  %8334 = vrcp.f32 %v2260_v54 }
 0x3bd   :  { %v10827_v61 = vpop.f32.mrb[36].mxu1  ;;  %8336 = vpow2.f32 %v2015_v18 }
 0x3be   :  { %15683 = vst [vmem:[#allocation46_spill] sm:$0xff] %v10827_v61  ;;  %v10834_v44 = vpop.f32.mrb[37].mxu1  ;;  %8338 = vpow2.f32 %v2013_v43  ;;  %v2037_v43 = vmul.f32 1.442695, %v1976_v53 }
 0x3bf   :  { %8340 = vpow2.f32 %v2027_v57 }
 0x3c0   :  { %8342 = vpow2.f32 %v2025_v30  ;;  %v1983_v30 = vmin.f32 %v10874_v13, 20.0 }
 0x3c1   :  { %v10839_v41 = vpop.f32.mrb[38].mxu1 }
 0x3c2   :  { %v10845_v14 = vpop.f32.mrb[39].mxu1  ;;  %v8333_v16 = vpop.eup %8332 }
 0x3c3   :  { %v2306_v56 = vmul.f32 %v8333_v16, %v2158_v31  ;;  %v2039_v31 = vmul.f32 1.442695, %v1977_v5  ;;  %v10901_v5 = vadd.f32 %v10788_v2, %v10860_v4  ;;  %v2051_v2 = vmul.f32 1.442695, %v1983_v30 }
 0x3c5   :  { %v10850_v47 = vpop.f32.mrb[40].mxu1  ;;  %v2398_v6 = vmul.f32 %v2306_v56, %v10769_v40  ;;  %8344 = vpow2.f32 %v2039_v31  ;;  %vm2222_vm8 = vcmp.gt.f32.partialorder %v10901_v5, 20.0 }
 0x3c6   :  { %v10856_v32 = vpop.f32.mrb[41].mxu1  ;;  %v8335_v38 = vpop.eup %8334  ;;  %8346 = vpow2.f32 %v2041_v39 }
 0x3c7   :  { %v2318_v17 = vmul.f32 %v8335_v38, %v2164_v12  ;;  %v10869_v0 = vsel %vm2206_vm11, %v10769_v40, %v2398_v6  ;;  %v8337_v54 = vpop.eup %8336  ;;  %v10907_v38 = vadd.f32 %v10790_v63, %v10882_v19  ;;  %8348 = vpow2.f32 %v2037_v43 }
 0x3c8   :  { %15685 = vst [vmem:[#allocation29_spill] sm:$0xff] %v10869_v0  ;;  %v8339_v57 = vpop.eup %8338  ;;  %v2580_v50 = vmul.f32 %v10869_v0, %v10869_v0  ;;  %v2109_v31 = vadd.f32 2.0, %v8337_v54  ;;  %8350 = vpow2.f32 %v2051_v2 }
 0x3c9   :  { %v10862_v34 = vpop.f32.mrb[42].mxu1  ;;  %v2404_v33 = vmul.f32 %v2318_v17, %v10777_v7  ;;  %v8341_v17 = vpop.eup %8340  ;;  %vm2229_vm11 = vcmp.gt.f32.partialorder %v10907_v38, 20.0 }
 0x3ca   :  { %v10865_v52 = vpop.f32.mrb[43].mxu1  ;;  %v8343_v29 = vpop.eup %8342 }
 0x3cb   :  { %v10880_v18 = vsel %vm2212_vm12, %v10777_v7, %v2404_v33  ;;  %v10896_v7 = vadd.f32 %v10786_v25, %v10860_v4  ;;  %v2108_v25 = vadd.f32 2.0, %v8339_v57  ;;  %v2114_v61 = vadd.f32 2.0, %v8343_v29 }
 0x3cc   :  { %15687 = vst [vmem:[#allocation42_spill] sm:$0xff] %v10880_v18  ;;  %v10890_v16 = vadd.f32 %v10880_v18, %v10869_v0  ;;  %v2586_v56 = vmul.f32 %v10880_v18, %v10880_v18  ;;  %v1989_v18 = vmin.f32 %v10907_v38, 20.0  ;;  %v10918_v0 = vmul.f32 %v8337_v54, %v2109_v31 }
 0x3cd   :  { %v10877_v12 = vpop.f32.mrb[44].mxu1  ;;  %v1984_v33 = vmin.f32 %v10896_v7, 20.0  ;;  %v10922_v39 = vmul.f32 %v8339_v57, %v2108_v25  ;;  %v10932_v31 = vmul.f32 %v8343_v29, %v2114_v61  ;;  %v10934_v57 = vpop.permute.xlu0 %1589  ;;  %vm2224_vm7 = vcmp.gt.f32.partialorder %v10896_v7, 20.0 }
 0x3ce   :  { %15686 = vst [vmem:[#allocation41_spill] sm:$0xff] %v10877_v12  ;;  %v10884_v40 = vpop.f32.mrb[45].mxu1  ;;  %v10903_v6 = vadd.f32 %v2586_v56, %v2580_v50  ;;  %v1982_v50 = vmin.f32 %v10901_v5, 20.0  ;;  %v2115_v56 = vadd.f32 2.0, %v8341_v17  ;;  %v2063_v30 = vmul.f32 1.442695, %v1989_v18 }
 0x3cf   :  { %15689 = vst [vmem:[#allocation50_spill] sm:$0xff] %v10884_v40  ;;  %v2053_v27 = vmul.f32 1.442695, %v1984_v33  ;;  %v8345_v43 = vpop.eup %8344  ;;  %v2253_v1 = vadd.f32 2.0, %v10918_v0  ;;  %v2252_v54 = vadd.f32 2.0, %v10922_v39  ;;  %15696 = vst [vmem:[#allocation30_spill] sm:$0xff] %v10934_v57  ;;  %v10939_v18 = vadd.f32 %v10794_v45, %v10882_v19 }
 0x3d0   :  { %v2049_v28 = vmul.f32 1.442695, %v1982_v50  ;;  %v10924_v23 = vmul.f32 %v8341_v17, %v2115_v56  ;;  %v8347_v25 = vpop.eup %8346  ;;  %v2121_v33 = vadd.f32 2.0, %v8345_v43  ;;  %v10943_v50 = vadd.f32 %v10796_v8, %v10882_v19 }
 0x3d1   :  { %v10909_v59 = vpop.f32.mrb[46].mxu1  ;;  %8352 = vpow2.f32 %v2053_v27  ;;  %v8349_v2 = vpop.eup %8348  ;;  %v10949_v27 = vadd.f32 %v10798_v22, %v10934_v57  ;;  %v2258_v61 = vadd.f32 2.0, %v10932_v31  ;;  %v2122_v56 = vadd.f32 2.0, %v8347_v25 }
 0x3d2   :  { %15690 = vst [vmem:[#allocation44_spill] sm:$0xff] %v10909_v59  ;;  %v10911_v53 = vpop.f32.mrb[47].mxu1  ;;  %8354 = vpow2.f32 %v2049_v28  ;;  %v2259_v17 = vadd.f32 2.0, %v10924_v23  ;;  %v1990_v45 = vmin.f32 %v10939_v18, 20.0  ;;  %v2120_v10 = vadd.f32 2.0, %v8349_v2 }
 0x3d3   :  { %15691 = vst [vmem:[#allocation47_spill] sm:$0xff] %v10911_v53  ;;  %8356 = vpow2.f32 %v2063_v30  ;;  %v10955_v30 = vmul.f32 %v8345_v43, %v2121_v33  ;;  %v1988_v8 = vmin.f32 %v10943_v50, 20.0  ;;  %v10961_v22 = vadd.f32 %v10802_v60, %v10934_v57 }
 0x3d4   :  { %8358 = vrcp.f32 %v2253_v1  ;;  %v2065_v1 = vmul.f32 1.442695, %v1990_v45  ;;  %v10969_v43 = vadd.f32 %v10804_v9, %v10934_v57  ;;  %vm2230_vm12 = vcmp.gt.f32.partialorder %v10939_v18, 20.0 }
 0x3d5   :  { %v10916_v63 = vpop.f32.mrb[48].mxu1  ;;  %8360 = vrcp.f32 %v2252_v54  ;;  %v8351_v54 = vpop.eup %8350  ;;  %v2265_v33 = vadd.f32 2.0, %v10955_v30 }
 0x3d6   :  { %15692 = vst [vmem:[#allocation51_spill] sm:$0xff] %v10916_v63  ;;  %v10920_v51 = vpop.f32.mrb[49].mxu1  ;;  %8362 = vrcp.f32 %v2259_v17  ;;  %v10972_v17 = vmul.f32 %v8349_v2, %v2120_v10  ;;  %v2127_v63 = vadd.f32 2.0, %v8351_v54 }
 0x3d7   :  { %15693 = vst [vmem:[#allocation38_spill] sm:$0xff] %v10920_v51  ;;  %8364 = vrcp.f32 %v2258_v61  ;;  %v10965_v51 = vmul.f32 %v8347_v25, %v2122_v56  ;;  %v1994_v61 = vmin.f32 %v10969_v43, 20.0 }
 0x3d8   :  { %8366 = vpow2.f32 %v2065_v1  ;;  %v10988_v57 = vmul.f32 %v8351_v54, %v2127_v63  ;;  %v10996_v63 = vpop.permute.xlu0 %1597 }
 0x3d9   :  { %v10926_v21 = vpop.f32.mrb[50].mxu1  ;;  %v2266_v2 = vadd.f32 2.0, %v10965_v51  ;;  %v2073_v40 = vmul.f32 1.442695, %v1994_v61 }
 0x3da   :  { %15694 = vst [vmem:[#allocation48_spill] sm:$0xff] %v10926_v21  ;;  %v10929_v15 = vpop.f32.mrb[51].mxu1 }
 0x3db   :  { %15695 = vst [vmem:[#allocation43_spill] sm:$0xff] %v10929_v15  ;;  %v2061_v15 = vmul.f32 1.442695, %v1988_v8  ;;  %v8353_v45 = vpop.eup %8352  ;;  %v2264_v8 = vadd.f32 2.0, %v10972_v17 }
 0x3dc   :  { %v8355_v9 = vpop.eup %8354 }
 0x3dd   :  { %v10945_v29 = vpop.f32.mrb[52].mxu1  ;;  %8368 = vpow2.f32 %v2061_v15  ;;  %v8357_v10 = vpop.eup %8356  ;;  %v2126_v59 = vadd.f32 2.0, %v8355_v9 }
 0x3de   :  { %15697 = vst [vmem:[#allocation40_spill] sm:$0xff] %v10945_v29  ;;  %v10951_v28 = vpop.f32.mrb[53].mxu1  ;;  %v1995_v29 = vmin.f32 %v10949_v27, 20.0  ;;  %v2133_v19 = vadd.f32 2.0, %v8357_v10 }
 0x3df   :  { %15698 = vst [vmem:[#allocation27_spill] sm:$0xff] %v10951_v28  ;;  %v10963_v28 = vpop.permute.xlu1 %1593 }
 0x3e0   :  { %15699 = vst [vmem:[#allocation52_spill] sm:$0xff] %v10963_v28  ;;  %v2075_v21 = vmul.f32 1.442695, %v1995_v29  ;;  %v10976_v60 = vadd.f32 %v10812_v20, %v10963_v28  ;;  %v1996_v29 = vmin.f32 %v10961_v22, 20.0  ;;  %v10981_v25 = vadd.f32 %v10816_v46, %v10963_v28  ;;  %v8359_v20 = vpop.eup %8358 }
 0x3e1   :  { %v8361_v1 = vpop.eup %8360  ;;  %v2128_v46 = vadd.f32 2.0, %v8353_v45 }
 0x3e2   :  { %15700 = vst [vmem:[#allocation28_spill] sm:$0xff] %v10976_v60  ;;  %15701 = vst [vmem:[#allocation31_spill] sm:$0xff] %v10981_v25  ;;  %8370 = vpow2.f32 %v2075_v21  ;;  %v2001_v56 = vmin.f32 %v10976_v60, 20.0  ;;  %v2002_v15 = vmin.f32 %v10981_v25, 20.0  ;;  %v2077_v53 = vmul.f32 1.442695, %v1996_v29  ;;  %v8363_v12 = vpop.eup %8362 }
 0x3e3   :  { %8372 = vrcp.f32 %v2265_v33  ;;  %v10992_v21 = vadd.f32 %v10818_v24, %v10963_v28  ;;  %v2304_v60 = vmul.f32 %v8359_v20, %v10918_v0  ;;  %v8365_v54 = vpop.eup %8364  ;;  %v2302_v29 = vmul.f32 %v8361_v1, %v10922_v39 }
 0x3e4   :  { %8374 = vrcp.f32 %v2266_v2  ;;  %v2087_v4 = vmul.f32 1.442695, %v2001_v56  ;;  %v2089_v25 = vmul.f32 1.442695, %v2002_v15  ;;  %v2271_v24 = vadd.f32 2.0, %v10988_v57  ;;  %v8367_v61 = vpop.eup %8366 }
 0x3e5   :  { %15702 = vst [vmem:[#allocation14_spill] sm:$0xff] %v10992_v21  ;;  %v2000_v33 = vmin.f32 %v10992_v21, 20.0  ;;  %8376 = vrcp.f32 %v2264_v8  ;;  %v11000_v28 = vmul.f32 %v8353_v45, %v2128_v46  ;;  %v2316_v2 = vmul.f32 %v8363_v12, %v10924_v23 }
 0x3e6   :  { %8378 = vpow2.f32 %v2077_v53  ;;  %v11003_v56 = vmul.f32 %v8355_v9, %v2126_v59  ;;  %v11005_v21 = vmul.f32 %v8357_v10, %v2133_v19  ;;  %v2134_v20 = vadd.f32 2.0, %v8367_v61 }
 0x3e7   :  { %8380 = vpow2.f32 %v2073_v40  ;;  %v8369_v0 = vpop.eup %8368  ;;  %v2085_v8 = vmul.f32 1.442695, %v2000_v33  ;;  %v11009_v39 = vadd.f32 %v10825_v35, %v10996_v63  ;;  %v2314_v45 = vmul.f32 %v8365_v54, %v10932_v31 }
 0x3e8   :  { %8382 = vpow2.f32 %v2087_v4  ;;  %v2132_v53 = vadd.f32 2.0, %v8369_v0  ;;  %v2397_v23 = vmul.f32 %v2304_v60, %v10807_v55  ;;  %v2272_v12 = vadd.f32 2.0, %v11000_v28 }
 0x3e9   :  { %8384 = vpow2.f32 %v2089_v25  ;;  %v2403_v4 = vmul.f32 %v2316_v2, %v10822_v36  ;;  %v2270_v40 = vadd.f32 2.0, %v11003_v56  ;;  %v11017_v59 = vmul.f32 %v8367_v61, %v2134_v20 }
 0x3ea   :  { %8386 = vrcp.f32 %v2271_v24  ;;  %v2396_v9 = vmul.f32 %v2302_v29, %v10810_v42  ;;  %v2277_v31 = vadd.f32 2.0, %v11005_v21  ;;  %v2007_v25 = vmin.f32 %v11009_v39, 20.0 }
 0x3eb   :  { %8388 = vpow2.f32 %v2085_v8  ;;  %v2402_v60 = vmul.f32 %v2314_v45, %v10830_v11  ;;  %v11025_v10 = vmul.f32 %v8369_v0, %v2132_v53  ;;  %v11030_v46 = vsel %vm2205_vm13, %v10807_v55, %v2397_v23 }
 0x3ec   :  { %v8371_v15 = vpop.eup %8370  ;;  %15703 = vst [vmem:[#allocation32_spill] sm:$0xff] %v11030_v46  ;;  %8390 = vrcp.f32 %v2272_v12  ;;  %v11035_v29 = vsel %vm2211_vm15, %v10822_v36, %v2403_v4  ;;  %v2278_v24 = vadd.f32 2.0, %v11017_v59  ;;  %v11041_v0 = vsel %vm2204_vm14, %v10810_v42, %v2396_v9 }
 0x3ed   :  { %v8373_v19 = vpop.eup %8372  ;;  %v2139_v35 = vadd.f32 2.0, %v8371_v15  ;;  %15704 = vst [vmem:[#allocation35_spill] sm:$0xff] %v11035_v29  ;;  %8392 = vrcp.f32 %v2270_v40  ;;  %15705 = vst [vmem:[#allocation36_spill] sm:$0xff] %v11041_v0  ;;  %v2099_v55 = vmul.f32 1.442695, %v2007_v25  ;;  %v11045_v20 = vadd.f32 %v10832_v37, %v10996_v63 }
 0x3ee   :  { %v8375_v1 = vpop.eup %8374  ;;  %v2328_v33 = vmul.f32 %v8373_v19, %v10955_v30  ;;  %8394 = vrcp.f32 %v2277_v31  ;;  %v11048_v8 = vsel %vm2210_vm2, %v10830_v11, %v2402_v60  ;;  %v2579_v42 = vmul.f32 %v11030_v46, %v11030_v46 }
 0x3ef   :  { %v8377_v54 = vpop.eup %8376  ;;  %v11038_v61 = vmul.f32 %v8371_v15, %v2139_v35  ;;  %15706 = vst [vmem:[#allocation2_spill] sm:$0xff] %v11048_v8  ;;  %v2330_v36 = vmul.f32 %v8375_v1, %v10965_v51  ;;  %v2276_v15 = vadd.f32 2.0, %v11025_v10  ;;  %v2585_v53 = vmul.f32 %v11035_v29, %v11035_v29 }
 0x3f0   :  { %v8379_v2 = vpop.eup %8378  ;;  %v2409_v37 = vmul.f32 %v2328_v33, %v10843_v58  ;;  %v2578_v11 = vmul.f32 %v11041_v0, %v11041_v0  ;;  %8396 = vrcp.f32 %v2278_v24  ;;  %v2584_v4 = vmul.f32 %v11048_v8, %v11048_v8 }
 0x3f1   :  { %v8381_v30 = vpop.eup %8380  ;;  %v2283_v51 = vadd.f32 2.0, %v11038_v61  ;;  %v2140_v12 = vadd.f32 2.0, %v8379_v2  ;;  %8398 = vpow2.f32 %v2099_v55  ;;  %v2008_v35 = vmin.f32 %v11045_v20, 20.0 }
 0x3f2   :  { %v8383_v45 = vpop.eup %8382  ;;  %v2138_v40 = vadd.f32 2.0, %v8381_v30  ;;  %v2525_v9 = vadd.f32 %v11035_v29, %v11030_v46  ;;  %v2410_v31 = vmul.f32 %v2330_v36, %v10848_v49  ;;  %8400 = vrcp.f32 %v2276_v15 }
 0x3f3   :  { %v8385_v23 = vpop.eup %8384  ;;  %v2145_v25 = vadd.f32 2.0, %v8383_v45  ;;  %v2651_v1 = vadd.f32 %v2585_v53, %v2579_v42  ;;  %v11072_v33 = vsel %vm2217_vm3, %v10843_v58, %v2409_v37  ;;  %v2326_v24 = vmul.f32 %v8377_v54, %v10972_v17 }
 0x3f4   :  { %v8387_v19 = vpop.eup %8386  ;;  %15707 = vst [vmem:[#allocation33_spill] sm:$0xff] %v11072_v33  ;;  %v2146_v55 = vadd.f32 2.0, %v8385_v23  ;;  %8402 = vrcp.f32 %v2283_v51  ;;  %v11077_v36 = vmul.f32 %v8379_v2, %v2140_v12  ;;  %v11081_v15 = vadd.f32 %v10834_v44, %v10996_v63 }
 0x3f5   :  { %v8389_v60 = vpop.eup %8388  ;;  %v2340_v29 = vmul.f32 %v8387_v19, %v10988_v57  ;;  %v2512_v53 = vadd.f32 %v11048_v8, %v11041_v0  ;;  %v11085_v58 = vadd.f32 %v2584_v4, %v2578_v11  ;;  %v11087_v37 = vmul.f32 %v8381_v30, %v2138_v40  ;;  %v15734_v8 = vld [vmem:[#allocation52_spill] sm:$0xff] }
 0x3f6   :  { %v8391_v42 = vpop.eup %8390  ;;  %v2101_v17 = vmul.f32 1.442695, %v2008_v35  ;;  %v2591_v57 = vmul.f32 %v11072_v33, %v11072_v33  ;;  %v11094_v2 = vsel %vm2218_vm4, %v10848_v49, %v2410_v31  ;;  %v11096_v44 = vmul.f32 %v8383_v45, %v2145_v25  ;;  %v15735_v0 = vld [vmem:[#allocation48_spill] sm:$0xff] }
 0x3f7   :  { %v8393_v54 = vpop.eup %8392  ;;  %v2144_v51 = vadd.f32 2.0, %v8389_v60  ;;  %v2526_v19 = vadd.f32 %v2525_v9, %v11072_v33  ;;  %v2408_v11 = vmul.f32 %v2326_v24, %v10854_v26  ;;  %v11101_v30 = vmul.f32 %v8385_v23, %v2146_v55 }
 0x3f8   :  { %v8395_v12 = vpop.eup %8394  ;;  %v11105_v4 = vadd.f32 %v10839_v41, %v10764_v62  ;;  %v2415_v40 = vmul.f32 %v2340_v29, %v10874_v13  ;;  %v2342_v49 = vmul.f32 %v8391_v42, %v11000_v28  ;;  %v2284_v45 = vadd.f32 2.0, %v11077_v36 }
 0x3f9   :  { %v2006_v35 = vmin.f32 %v11081_v15, 20.0  ;;  %v2592_v9 = vmul.f32 %v11094_v2, %v11094_v2  ;;  %v2338_v23 = vmul.f32 %v8393_v54, %v11003_v56  ;;  %v2282_v31 = vadd.f32 2.0, %v11087_v37 }
 0x3fa   :  { %8404 = vpow2.f32 %v2101_v17  ;;  %v8397_v41 = vpop.eup %8396  ;;  %v2652_v25 = vadd.f32 %v2651_v1, %v2591_v57  ;;  %v2352_v29 = vmul.f32 %v8395_v12, %v11005_v21  ;;  %v2289_v28 = vadd.f32 2.0, %v11096_v44 }
 0x3fb   :  { %v11118_v24 = vmul.f32 %v8389_v60, %v2144_v51  ;;  %v8399_v55 = vpop.eup %8398  ;;  %v2539_v42 = vadd.f32 %v10890_v16, %v11094_v2  ;;  %v11125_v33 = vsel %vm2216_vm5, %v10854_v26, %v2408_v11  ;;  %v2290_v56 = vadd.f32 2.0, %v11101_v30 }
 0x3fc   :  { %15708 = vst [vmem:[#allocation34_spill] sm:$0xff] %v11125_v33  ;;  %v1967_v17 = vmin.f32 %v11105_v4, 20.0  ;;  %v8401_v1 = vpop.eup %8400  ;;  %v11132_v21 = vsel %vm2223_vm6, %v10874_v13, %v2415_v40  ;;  %v2416_v60 = vmul.f32 %v2342_v49, %v10896_v7  ;;  %8406 = vrcp.f32 %v2284_v45 }
 0x3fd   :  { %15709 = vst [vmem:[#allocation3_spill] sm:$0xff] %v11132_v21  ;;  %v2097_v54 = vmul.f32 1.442695, %v2006_v35  ;;  %v2665_v16 = vadd.f32 %v10903_v6, %v2592_v9  ;;  %v2414_v57 = vmul.f32 %v2338_v23, %v10901_v5  ;;  %v2354_v26 = vmul.f32 %v8397_v41, %v11017_v59 }
 0x3fe   :  { %8408 = vrcp.f32 %v2282_v31  ;;  %v8403_v51 = vpop.eup %8402  ;;  %v2421_v12 = vmul.f32 %v2352_v29, %v10907_v38  ;;  %v2288_v11 = vadd.f32 2.0, %v11118_v24  ;;  %v2151_v46 = vadd.f32 2.0, %v8399_v55 }
 0x3ff   :  { %8410 = vrcp.f32 %v2289_v28  ;;  %v2350_v13 = vmul.f32 %v8401_v1, %v11025_v10  ;;  %v2019_v40 = vmul.f32 1.442695, %v1967_v17  ;;  %v11143_v49 = vadd.f32 %v10845_v14, %v10764_v62 }
 0x400   :  { %8412 = vrcp.f32 %v2290_v56  ;;  %v2590_v6 = vmul.f32 %v11125_v33, %v11125_v33  ;;  %v2597_v59 = vmul.f32 %v11132_v21, %v11132_v21  ;;  %v11152_v45 = vsel %vm2224_vm7, %v10896_v7, %v2416_v60 }
 0x401   :  { %15710 = vst [vmem:[#allocation4_spill] sm:$0xff] %v11152_v45  ;;  %8414 = vpow2.f32 %v2097_v54  ;;  %v11157_v10 = vsel %vm2222_vm8, %v10901_v5, %v2414_v57  ;;  %v2422_v14 = vmul.f32 %v2354_v26, %v10939_v18  ;;  %v2364_v35 = vmul.f32 %v8403_v51, %v11038_v61 }
 0x402   :  { %15711 = vst [vmem:[#allocation5_spill] sm:$0xff] %v11157_v10  ;;  %v2513_v9 = vadd.f32 %v2512_v53, %v11125_v33  ;;  %v11164_v23 = vsel %vm2229_vm11, %v10907_v38, %v2421_v12  ;;  %8416 = vrcp.f32 %v2288_v11  ;;  %v11166_v7 = vmul.f32 %v8399_v55, %v2151_v46 }
 0x403   :  { %15712 = vst [vmem:[#allocation6_spill] sm:$0xff] %v11164_v23  ;;  %v2598_v41 = vmul.f32 %v11152_v45, %v11152_v45  ;;  %v2420_v5 = vmul.f32 %v2350_v13, %v10943_v50  ;;  %8418 = vpow2.f32 %v2019_v40  ;;  %v1968_v29 = vmin.f32 %v11143_v49, 20.0 }
 0x404   :  { %v8405_v31 = vpop.eup %8404  ;;  %v2639_v28 = vadd.f32 %v11085_v58, %v2590_v6  ;;  %v2527_v61 = vadd.f32 %v2526_v19, %v11132_v21  ;;  %v2596_v38 = vmul.f32 %v11157_v10, %v11157_v10  ;;  %v2653_v46 = vadd.f32 %v2652_v25, %v2597_v59 }
 0x405   :  { %v2603_v53 = vmul.f32 %v11164_v23, %v11164_v23  ;;  %v11180_v55 = vsel %vm2230_vm12, %v10939_v18, %v2422_v14  ;;  %v2427_v56 = vmul.f32 %v2364_v35, %v10949_v27  ;;  %v2540_v1 = vadd.f32 %v2539_v42, %v11152_v45 }
 0x406   :  { %15713 = vst [vmem:[#allocation9_spill] sm:$0xff] %v11180_v55  ;;  %v8407_v17 = vpop.eup %8406  ;;  %vm2228_vm13 = vcmp.gt.f32.partialorder %v10943_v50, 20.0  ;;  %v2295_v58 = vadd.f32 2.0, %v11166_v7  ;;  %v2152_v19 = vadd.f32 2.0, %v8405_v31  ;;  %v2666_v54 = vadd.f32 %v2665_v16, %v2598_v41 }
 0x407   :  { %v11187_v25 = vsel %vm2228_vm13, %v10943_v50, %v2420_v5  ;;  %vm2235_vm14 = vcmp.gt.f32.partialorder %v10949_v27, 20.0  ;;  %v2021_v57 = vmul.f32 1.442695, %v1968_v29  ;;  %v2514_v26 = vadd.f32 %v2513_v9, %v11157_v10 }
 0x408   :  { %v8409_v60 = vpop.eup %8408  ;;  %15714 = vst [vmem:[#allocation7_spill] sm:$0xff] %v11187_v25  ;;  %v11191_v51 = vadd.f32 %v2639_v28, %v2596_v38  ;;  %v2604_v42 = vmul.f32 %v11180_v55, %v11180_v55  ;;  %v11197_v12 = vadd.f32 %v10850_v47, %v10771_v48  ;;  %v2528_v16 = vadd.f32 %v2527_v61, %v11164_v23 }
 0x409   :  { %v8411_v18 = vpop.eup %8410  ;;  %v11200_v50 = vadd.f32 %v2653_v46, %v2603_v53  ;;  %v11203_v13 = vsel %vm2235_vm14, %v10949_v27, %v2427_v56  ;;  %v2366_v40 = vmul.f32 %v8407_v17, %v11077_v36  ;;  %v11207_v59 = vadd.f32 %v2540_v1, %v11180_v55  ;;  %v15716_v1 = vld [vmem:[#allocation28_spill] sm:$0xff] }
 0x40a   :  { %v8413_v11 = vpop.eup %8412  ;;  %15715 = vst [vmem:[#allocation8_spill] sm:$0xff] %v11203_v13  ;;  %v11210_v14 = vadd.f32 %v2514_v26, %v11187_v25  ;;  %8420 = vrcp.f32 %v2295_v58  ;;  %v11212_v47 = vmul.f32 %v8405_v31, %v2152_v19  ;;  %v11216_v35 = vmul.f32 %v11187_v25, %v11187_v25  ;;  %v15717_v19 = vld [vmem:[#allocation39_spill] sm:$0xff] }
 0x40b   :  { %v8415_v6 = vpop.eup %8414  ;;  %vm2236_vm15 = vcmp.gt.f32.partialorder %v10961_v22, 20.0  ;;  %v2362_v27 = vmul.f32 %v8409_v60, %v11087_v37  ;;  %v2376_v36 = vmul.f32 %v8411_v18, %v11096_v44  ;;  %8422 = vpow2.f32 %v2021_v57  ;;  %v15718_v60 = vld [vmem:[#allocation41_spill] sm:$0xff] }
 0x40c   :  { %v8417_v9 = vpop.eup %8416  ;;  %v11221_v41 = vadd.f32 %v2666_v54, %v2604_v42  ;;  %v11224_v5 = vadd.f32 %v2528_v16, %v11203_v13  ;;  %v11228_v31 = vmul.f32 %v11203_v13, %v11203_v13  ;;  %v1973_v29 = vmin.f32 %v11197_v12, 20.0 }
 0x40d   :  { %v8419_v28 = vpop.eup %8418  ;;  %v2428_v61 = vmul.f32 %v2366_v40, %v10961_v22  ;;  %v2378_v37 = vmul.f32 %v8413_v11, %v11101_v30  ;;  %v2150_v38 = vadd.f32 2.0, %v8415_v6  ;;  %v11235_v44 = vadd.f32 %v10856_v32, %v10771_v48 }
 0x40e   :  { %vm2234_vm2 = vcmp.gt.f32.partialorder %v10969_v43, 20.0  ;;  %v2296_v46 = vadd.f32 2.0, %v11212_v47  ;;  %v2031_v53 = vmul.f32 1.442695, %v1973_v29  ;;  %v11241_v56 = vadd.f32 %v10862_v34, %v10836_v3  ;;  %v15720_v29 = vld [vmem:[#allocation31_spill] sm:$0xff] }
 0x40f   :  { %v11245_v17 = vadd.f32 %v10865_v52, %v10836_v3  ;;  %v2426_v30 = vmul.f32 %v2362_v27, %v10969_v43  ;;  %vm2241_vm3 = vcmp.gt.f32.partialorder %v15716_v1, 20.0  ;;  %v2433_v32 = vmul.f32 %v2376_v36, %v15716_v1  ;;  %v15719_v27 = vld [vmem:[#allocation50_spill] sm:$0xff] }
 0x410   :  { %v1974_v58 = vmin.f32 %v11235_v44, 20.0  ;;  %v11253_v54 = vadd.f32 %v15718_v60, %v15717_v19  ;;  %v2374_v57 = vmul.f32 %v8417_v9, %v11118_v24  ;;  %v2111_v34 = vadd.f32 2.0, %v8419_v28  ;;  %v15721_v9 = vld [vmem:[#allocation49_spill] sm:$0xff]  ;;  %v15722_v60 = vld [vmem:[#allocation44_spill] sm:$0xff] }
 0x411   :  { %v1979_v18 = vmin.f32 %v11241_v56, 20.0  ;;  %v1980_v52 = vmin.f32 %v11245_v17, 20.0  ;;  %v11258_v26 = vmul.f32 %v8415_v6, %v2150_v38  ;;  %8424 = vpow2.f32 %v2031_v53  ;;  %v15723_v6 = vld [vmem:[#allocation47_spill] sm:$0xff] }
 0x412   :  { %v2033_v42 = vmul.f32 1.442695, %v1974_v58  ;;  %v1985_v11 = vmin.f32 %v11253_v54, 20.0  ;;  %8426 = vrcp.f32 %v2296_v46  ;;  %v11263_v36 = vadd.f32 %v15719_v27, %v15717_v19  ;;  %v15725_v58 = vld [vmem:[#allocation14_spill] sm:$0xff] }
 0x413   :  { %v2043_v16 = vmul.f32 1.442695, %v1979_v18  ;;  %v2045_v40 = vmul.f32 1.442695, %v1980_v52  ;;  %vm2242_vm4 = vcmp.gt.f32.partialorder %v15720_v29, 20.0  ;;  %v11268_v13 = vadd.f32 %v15722_v60, %v15721_v9  ;;  %v15726_v52 = vld [vmem:[#allocation30_spill] sm:$0xff] }
 0x414   :  { %8428 = vpow2.f32 %v2033_v42  ;;  %v2055_v24 = vmul.f32 1.442695, %v1985_v11  ;;  %v11272_v38 = vadd.f32 %v15723_v6, %v15721_v9  ;;  %v8421_v53 = vpop.eup %8420  ;;  %v11277_v46 = vsel %vm2236_vm15, %v10961_v22, %v2428_v61  ;;  %v15727_v42 = vld [vmem:[#allocation51_spill] sm:$0xff] }
 0x415   :  { %15724 = vst [vmem:[#allocation10_spill] sm:$0xff] %v11277_v46  ;;  %vm2240_vm5 = vcmp.gt.f32.partialorder %v15725_v58, 20.0  ;;  %8430 = vpow2.f32 %v2043_v16  ;;  %v1986_v18 = vmin.f32 %v11263_v36, 20.0  ;;  %v11283_v11 = vadd.f32 %v15727_v42, %v15726_v52  ;;  %v8423_v27 = vpop.eup %8422 }
 0x416   :  { %v2294_v60 = vadd.f32 2.0, %v11258_v26  ;;  %v11286_v6 = vmul.f32 %v8419_v28, %v2111_v34  ;;  %8432 = vpow2.f32 %v2045_v40  ;;  %v1991_v23 = vmin.f32 %v11268_v13, 20.0 }
 0x417   :  { %v2112_v25 = vadd.f32 2.0, %v8423_v27  ;;  %8434 = vpow2.f32 %v2055_v24  ;;  %v2057_v22 = vmul.f32 1.442695, %v1986_v18  ;;  %v1992_v61 = vmin.f32 %v11272_v38, 20.0 }
 0x418   :  { %v11293_v16 = vsel %vm2234_vm2, %v10969_v43, %v2426_v30  ;;  %v2434_v42 = vmul.f32 %v2378_v37, %v15720_v29  ;;  %v2067_v21 = vmul.f32 1.442695, %v1991_v23  ;;  %v1997_v10 = vmin.f32 %v11283_v11, 20.0 }
 0x419   :  { %15728 = vst [vmem:[#allocation28_spill] sm:$0xff] %v11293_v16  ;;  %v2610_v28 = vmul.f32 %v11277_v46, %v11277_v46  ;;  %v11302_v34 = vsel %vm2241_vm3, %v15716_v1, %v2433_v32  ;;  %8436 = vpow2.f32 %v2057_v22  ;;  %v2069_v40 = vmul.f32 1.442695, %v1992_v61 }
 0x41a   :  { %15729 = vst [vmem:[#allocation39_spill] sm:$0xff] %v11302_v34  ;;  %v2432_v24 = vmul.f32 %v2374_v57, %v15725_v58  ;;  %v2255_v43 = vadd.f32 2.0, %v11286_v6  ;;  %v11306_v30 = vmul.f32 %v8423_v27, %v2112_v25  ;;  %8438 = vpow2.f32 %v2067_v21 }
 0x41b   :  { %v2641_v23 = vadd.f32 %v11191_v51, %v11216_v35  ;;  %v2608_v37 = vmul.f32 %v11293_v16, %v11293_v16  ;;  %8440 = vrcp.f32 %v2294_v60  ;;  %v2079_v18 = vmul.f32 1.442695, %v1997_v10  ;;  %v8425_v33 = vpop.eup %8424 }
 0x41c   :  { %v2655_v1 = vadd.f32 %v11200_v50, %v11228_v31  ;;  %v2542_v32 = vadd.f32 %v11207_v59, %v11277_v46  ;;  %v2615_v25 = vmul.f32 %v11302_v34, %v11302_v34  ;;  %8442 = vpow2.f32 %v2069_v40  ;;  %v8427_v21 = vpop.eup %8426 }
 0x41d   :  { %v2668_v57 = vadd.f32 %v11221_v41, %v2610_v28  ;;  %v2516_v51 = vadd.f32 %v11210_v14, %v11293_v16  ;;  %v11323_v10 = vadd.f32 %v11224_v5, %v11302_v34  ;;  %v11328_v50 = vsel %vm2242_vm4, %v15720_v29, %v2434_v42  ;;  %v15732_v42 = vld [vmem:[#allocation38_spill] sm:$0xff] }
 0x41e   :  { %15730 = vst [vmem:[#allocation41_spill] sm:$0xff] %v11328_v50  ;;  %vm2247_vm6 = vcmp.gt.f32.partialorder %v11009_v39, 20.0  ;;  %v8429_v59 = vpop.eup %8428  ;;  %v11334_v35 = vsel %vm2240_vm5, %v15725_v58, %v2432_v24  ;;  %v2388_v41 = vmul.f32 %v8421_v53, %v11166_v7  ;;  %8444 = vrcp.f32 %v2255_v43 }
 0x41f   :  { %15731 = vst [vmem:[#allocation50_spill] sm:$0xff] %v11334_v35  ;;  %v2256_v14 = vadd.f32 2.0, %v11306_v30  ;;  %v8431_v5 = vpop.eup %8430  ;;  %v2642_v31 = vadd.f32 %v2641_v23, %v2608_v37  ;;  %v2117_v27 = vadd.f32 2.0, %v8425_v33  ;;  %v2118_v60 = vadd.f32 2.0, %v8429_v59 }
 0x420   :  { %8446 = vpow2.f32 %v2079_v18  ;;  %v8433_v29 = vpop.eup %8432  ;;  %v11338_v22 = vadd.f32 %v2655_v1, %v2615_v25  ;;  %v11341_v61 = vadd.f32 %v2542_v32, %v11328_v50  ;;  %v2616_v58 = vmul.f32 %v11328_v50, %v11328_v50 }
 0x421   :  { %v11347_v7 = vadd.f32 %v15732_v42, %v15726_v52  ;;  %v8435_v53 = vpop.eup %8434  ;;  %v11350_v28 = vadd.f32 %v2516_v51, %v11334_v35  ;;  %v11352_v40 = vmul.f32 %v8425_v33, %v2117_v27  ;;  %v11354_v24 = vmul.f32 %v8429_v59, %v2118_v60 }
 0x422   :  { %v2123_v43 = vadd.f32 2.0, %v8431_v5  ;;  %v2439_v23 = vmul.f32 %v2388_v41, %v11009_v39  ;;  %vm2248_vm7 = vcmp.gt.f32.partialorder %v11045_v20, 20.0  ;;  %v2390_v37 = vmul.f32 %v8427_v21, %v11212_v47 }
 0x423   :  { %8448 = vrcp.f32 %v2256_v14  ;;  %v2124_v18 = vadd.f32 2.0, %v8433_v29  ;;  %v8437_v1 = vpop.eup %8436  ;;  %v2261_v32 = vadd.f32 2.0, %v11352_v40  ;;  %v2262_v25 = vadd.f32 2.0, %v11354_v24 }
 0x424   :  { %v11361_v51 = vmul.f32 %v8431_v5, %v2123_v43  ;;  %v2129_v33 = vadd.f32 2.0, %v8435_v53  ;;  %v8439_v27 = vpop.eup %8438  ;;  %v2614_v59 = vmul.f32 %v11334_v35, %v11334_v35  ;;  %v2130_v41 = vadd.f32 2.0, %v8437_v1 }
 0x425   :  { %v11365_v60 = vmul.f32 %v8433_v29, %v2124_v18  ;;  %v1998_v42 = vmin.f32 %v11347_v7, 20.0  ;;  %v8441_v47 = vpop.eup %8440  ;;  %8450 = vrcp.f32 %v2261_v32  ;;  %v2135_v34 = vadd.f32 2.0, %v8439_v27 }
 0x426   :  { %v2267_v21 = vadd.f32 2.0, %v11361_v51  ;;  %v11369_v14 = vmul.f32 %v8435_v53, %v2129_v33  ;;  %v8443_v16 = vpop.eup %8442  ;;  %v11374_v5 = vsel %vm2247_vm6, %v11009_v39, %v2439_v23  ;;  %v2440_v43 = vmul.f32 %v2390_v37, %v11045_v20  ;;  %v15736_v39 = vld [vmem:[#allocation43_spill] sm:$0xff] }
 0x427   :  { %15733 = vst [vmem:[#allocation31_spill] sm:$0xff] %v11374_v5  ;;  %8452 = vrcp.f32 %v2262_v25  ;;  %v2268_v29 = vadd.f32 2.0, %v11365_v60  ;;  %v11379_v32 = vmul.f32 %v8437_v1, %v2130_v41  ;;  %v2136_v35 = vadd.f32 2.0, %v8443_v16 }
 0x428   :  { %8454 = vrcp.f32 %v2267_v21  ;;  %v2273_v18 = vadd.f32 2.0, %v11369_v14  ;;  %v8445_v53 = vpop.eup %8444  ;;  %v2386_v33 = vmul.f32 %v8441_v47, %v11258_v26  ;;  %v11384_v50 = vadd.f32 %v15735_v0, %v15734_v8 }
 0x429   :  { %8456 = vrcp.f32 %v2268_v29  ;;  %v11388_v23 = vadd.f32 %v15736_v39, %v15734_v8  ;;  %v2669_v25 = vadd.f32 %v2668_v57, %v2616_v58  ;;  %v11390_v21 = vmul.f32 %v8439_v27, %v2135_v34 }
 0x42a   :  { %v8447_v37 = vpop.eup %8446  ;;  %8458 = vrcp.f32 %v2273_v18  ;;  %v2081_v1 = vmul.f32 1.442695, %v1998_v42  ;;  %v11392_v41 = vadd.f32 %v2642_v31, %v2614_v59  ;;  %v11396_v26 = vadd.f32 %v11323_v10, %v11374_v5 }
 0x42b   :  { %vm2246_vm8 = vcmp.gt.f32.partialorder %v11081_v15, 20.0  ;;  %v2141_v0 = vadd.f32 2.0, %v8447_v37  ;;  %v2003_v47 = vmin.f32 %v11384_v50, 20.0  ;;  %v11403_v29 = vsel %vm2248_vm7, %v11045_v20, %v2440_v43 }
 0x42c   :  { %15737 = vst [vmem:[#allocation49_spill] sm:$0xff] %v11403_v29  ;;  %v2274_v34 = vadd.f32 2.0, %v11379_v32  ;;  %v11406_v57 = vmul.f32 %v8443_v16, %v2136_v35  ;;  %v2004_v31 = vmin.f32 %v11388_v23, 20.0  ;;  %v11411_v10 = vmul.f32 %v11374_v5, %v11374_v5  ;;  %v15738_v16 = vld [vmem:[#allocation40_spill] sm:$0xff] }
 0x42d   :  { %v8449_v58 = vpop.eup %8448  ;;  %v2438_v27 = vmul.f32 %v2386_v33, %v11081_v15  ;;  %v2308_v59 = vmul.f32 %v8445_v53, %v11286_v6  ;;  %v2091_v42 = vmul.f32 1.442695, %v2003_v47  ;;  %vm2213_vm11 = vcmp.gt.f32.partialorder %v11197_v12, 20.0  ;;  %v15739_v6 = vld [vmem:[#allocation27_spill] sm:$0xff] }
 0x42e   :  { %v2279_v20 = vadd.f32 2.0, %v11390_v21  ;;  %8460 = vpow2.f32 %v2081_v1  ;;  %v2093_v43 = vmul.f32 1.442695, %v2004_v31  ;;  %v11419_v35 = vadd.f32 %v15738_v16, %v10996_v63 }
 0x42f   :  { %v2544_v18 = vadd.f32 %v11341_v61, %v11403_v29  ;;  %vm2207_vm12 = vcmp.gt.f32.partialorder %v11105_v4, 20.0  ;;  %vm2214_vm13 = vcmp.gt.f32.partialorder %v11235_v44, 20.0  ;;  %v11425_v33 = vmul.f32 %v8447_v37, %v2141_v0  ;;  %v8451_v39 = vpop.eup %8450 }
 0x430   :  { %8462 = vpow2.f32 %v2091_v42  ;;  %v11429_v53 = vadd.f32 %v15739_v6, %v10996_v63  ;;  %v2622_v1 = vmul.f32 %v11403_v29, %v11403_v29  ;;  %vm2208_vm14 = vcmp.gt.f32.partialorder %v11143_v49, 20.0 }
 0x431   :  { %vm2219_vm15 = vcmp.gt.f32.partialorder %v11241_v56, 20.0  ;;  %8464 = vrcp.f32 %v2274_v34  ;;  %v2280_v61 = vadd.f32 2.0, %v11406_v57  ;;  %v2009_v47 = vmin.f32 %v11419_v35, 20.0  ;;  %v8453_v37 = vpop.eup %8452 }
 0x432   :  { %v2310_v0 = vmul.f32 %v8449_v58, %v11306_v30  ;;  %v2320_v31 = vmul.f32 %v8451_v39, %v11352_v40  ;;  %8466 = vpow2.f32 %v2093_v43  ;;  %v2010_v42 = vmin.f32 %v11429_v53, 20.0  ;;  %v8455_v16 = vpop.eup %8454 }
 0x433   :  { %v2399_v6 = vmul.f32 %v2308_v59, %v11105_v4  ;;  %v2322_v5 = vmul.f32 %v8453_v37, %v11354_v24  ;;  %8468 = vrcp.f32 %v2279_v20  ;;  %v2103_v29 = vmul.f32 1.442695, %v2009_v47  ;;  %v8457_v34 = vpop.eup %8456 }
 0x434   :  { %v2405_v46 = vmul.f32 %v2320_v31, %v11197_v12  ;;  %v2332_v55 = vmul.f32 %v8455_v16, %v11361_v51  ;;  %v2285_v45 = vadd.f32 2.0, %v11425_v33  ;;  %v2105_v30 = vmul.f32 1.442695, %v2010_v42  ;;  %v8459_v58 = vpop.eup %8458 }
 0x435   :  { %v11448_v40 = vsel %vm2246_vm8, %v11081_v15, %v2438_v27  ;;  %v2406_v59 = vmul.f32 %v2322_v5, %v11235_v44  ;;  %v2334_v24 = vmul.f32 %v8457_v34, %v11365_v60  ;;  %8470 = vrcp.f32 %v2280_v61 }
 0x436   :  { %v2400_v20 = vmul.f32 %v2310_v0, %v11143_v49  ;;  %v2411_v43 = vmul.f32 %v2332_v55, %v11241_v56  ;;  %v2344_v51 = vmul.f32 %v8459_v58, %v11369_v14  ;;  %8472 = vpow2.f32 %v2103_v29 }
 0x437   :  { %v2545_v39 = vrot.slane %v2544_v18, 4  ;;  %v11455_v47 = vadd.f32 %v2669_v25, %v2622_v1  ;;  %v2412_v37 = vmul.f32 %v2334_v24, %v11245_v17  ;;  %8474 = vpow2.f32 %v2105_v30 }
 0x438   :  { %v11461_v15 = vsel %vm2213_vm11, %v11197_v12, %v2405_v46  ;;  %vm2220_vm2 = vcmp.gt.f32.partialorder %v11245_v17, 20.0  ;;  %v2417_v60 = vmul.f32 %v2344_v51, %v11253_v54  ;;  %8476 = vrcp.f32 %v2285_v45  ;;  %v8461_v55 = vpop.eup %8460 }
 0x439   :  { %v11468_v14 = vsel %vm2207_vm12, %v11105_v4, %v2399_v6  ;;  %v11473_v5 = vsel %vm2214_vm13, %v11235_v44, %v2406_v59  ;;  %vm2225_vm3 = vcmp.gt.f32.partialorder %v11253_v54, 20.0  ;;  %v2532_v12 = vrot.slane %v11396_v26, 4 }
 0x43a   :  { %v8463_v46 = vpop.eup %8462  ;;  %v2518_v25 = vadd.f32 %v11350_v28, %v11448_v40  ;;  %v11481_v45 = vmul.f32 %v11448_v40, %v11448_v40  ;;  %v11486_v4 = vsel %vm2208_vm14, %v11143_v49, %v2400_v20  ;;  %v11491_v44 = vsel %vm2219_vm15, %v11241_v56, %v2411_v43 }
 0x43b   :  { %v8465_v29 = vpop.eup %8464  ;;  %v11493_v27 = vadd.f32 %v2545_v39, %v2544_v18  ;;  %v2587_v28 = vmul.f32 %v11461_v15, %v11461_v15  ;;  %v11501_v61 = vsel %vm2220_vm2, %v11245_v17, %v2412_v37  ;;  %v2581_v0 = vmul.f32 %v11468_v14, %v11468_v14 }
 0x43c   :  { %v8467_v49 = vpop.eup %8466  ;;  %v2588_v56 = vmul.f32 %v11473_v5, %v11473_v5  ;;  %v11508_v18 = vsel %vm2225_vm3, %v11253_v54, %v2417_v60  ;;  %v2142_v31 = vadd.f32 2.0, %v8461_v55  ;;  %v2582_v16 = vmul.f32 %v11486_v4, %v11486_v4 }
 0x43d   :  { %v8469_v42 = vpop.eup %8468  ;;  %v2593_v6 = vmul.f32 %v11491_v44, %v11491_v44  ;;  %v2147_v17 = vadd.f32 2.0, %v8463_v46  ;;  %v2533_v34 = vadd.f32 %v2532_v12, %v11396_v26  ;;  %v2551_v30 = vadd.f32 %v11461_v15, %v11468_v14 }
 0x43e   :  { %v2594_v58 = vmul.f32 %v11501_v61, %v11501_v61  ;;  %v11519_v59 = vmul.f32 %v8461_v55, %v2142_v31  ;;  %v2657_v54 = vadd.f32 %v11338_v22, %v11411_v10  ;;  %v2677_v20 = vadd.f32 %v2587_v28, %v2581_v0 }
 0x43f   :  { %v8471_v24 = vpop.eup %8470  ;;  %v2599_v43 = vmul.f32 %v11508_v18, %v11508_v18  ;;  %v11525_v51 = vmul.f32 %v8463_v46, %v2147_v17  ;;  %v2148_v39 = vadd.f32 2.0, %v8467_v49  ;;  %v2564_v37 = vadd.f32 %v11473_v5, %v11486_v4 }
 0x440   :  { %v8473_v26 = vpop.eup %8472  ;;  %v2690_v60 = vadd.f32 %v2588_v56, %v2582_v16  ;;  %v2552_v12 = vadd.f32 %v2551_v30, %v11491_v44  ;;  %vm2226_vm4 = vcmp.gt.f32.partialorder %v11263_v36, 20.0  ;;  %v2346_v55 = vmul.f32 %v8465_v29, %v11379_v32 }
 0x441   :  { %vm2231_vm5 = vcmp.gt.f32.partialorder %v11268_v13, 20.0  ;;  %v8475_v22 = vpop.eup %8474  ;;  %v2678_v10 = vadd.f32 %v2677_v20, %v2593_v6  ;;  %v2356_v28 = vmul.f32 %v8469_v42, %v11390_v21  ;;  %v2534_v46 = vrot.slane %v2533_v34, 2 }
 0x442   :  { %v2519_v0 = vrot.slane %v2518_v25, 4  ;;  %v8477_v31 = vpop.eup %8476  ;;  %v2565_v17 = vadd.f32 %v2564_v37, %v11501_v61  ;;  %v11535_v1 = vadd.f32 %v2690_v60, %v2594_v58  ;;  %v2553_v56 = vadd.f32 %v2552_v12, %v11508_v18 }
 0x443   :  { %vm2232_vm6 = vcmp.gt.f32.partialorder %v11272_v38, 20.0  ;;  %v2286_v16 = vadd.f32 2.0, %v11519_v59  ;;  %v11540_v32 = vadd.f32 %v2678_v10, %v2599_v43  ;;  %v2358_v29 = vmul.f32 %v8471_v24, %v11406_v57 }
 0x444   :  { %v2291_v6 = vadd.f32 2.0, %v11525_v51  ;;  %v11544_v21 = vmul.f32 %v8467_v49, %v2148_v39  ;;  %v2418_v42 = vmul.f32 %v2346_v55, %v11263_v36  ;;  %v2153_v30 = vadd.f32 2.0, %v8473_v26 }
 0x445   :  { %8478 = vrcp.f32 %v2286_v16  ;;  %v2154_v58 = vadd.f32 2.0, %v8475_v22  ;;  %v2423_v20 = vmul.f32 %v2356_v28, %v11268_v13  ;;  %v2368_v37 = vmul.f32 %v8477_v31, %v11425_v33 }
 0x446   :  { %8480 = vrcp.f32 %v2291_v6  ;;  %v2292_v60 = vadd.f32 2.0, %v11544_v21  ;;  %vm2237_vm7 = vcmp.gt.f32.partialorder %v11283_v11, 20.0  ;;  %v11551_v43 = vmul.f32 %v8473_v26, %v2153_v30 }
 0x447   :  { %v11553_v57 = vmul.f32 %v8475_v22, %v2154_v58  ;;  %v2658_v49 = vrot.slane %v2657_v54, 4  ;;  %v2520_v24 = vadd.f32 %v2519_v0, %v2518_v25  ;;  %v2424_v39 = vmul.f32 %v2358_v29, %v11272_v38 }
 0x448   :  { %8482 = vrcp.f32 %v2292_v60  ;;  %v2535_v12 = vadd.f32 %v2534_v46, %v2533_v34  ;;  %v2644_v55 = vadd.f32 %v11392_v41, %v11481_v45  ;;  %v2297_v33 = vadd.f32 2.0, %v11551_v43 }
 0x449   :  { %v2298_v10 = vadd.f32 2.0, %v11553_v57  ;;  %v2659_v28 = vadd.f32 %v2658_v49, %v2657_v54  ;;  %v2521_v31 = vrot.slane %v2520_v24, 2  ;;  %v11563_v26 = vsel %vm2226_vm4, %v11263_v36, %v2418_v42 }
 0x44a   :  { %v11568_v25 = vsel %vm2231_vm5, %v11268_v13, %v2423_v20  ;;  %v2429_v34 = vmul.f32 %v2368_v37, %v11283_v11  ;;  %v2645_v22 = vrot.slane %v2644_v55, 4  ;;  %vm2238_vm8 = vcmp.gt.f32.partialorder %v11347_v7, 20.0 }
 0x44b   :  { %15740 = vst [vmem:[#allocation44_spill] sm:$0xff] %v11568_v25  ;;  %8484 = vrcp.f32 %v2297_v33  ;;  %v2660_v41 = vrot.slane %v2659_v28, 2  ;;  %v2547_v45 = vrot.slane %v11493_v27, 2  ;;  %v15741_v54 = vrot.slane %v11455_v47, 4 }
 0x44c   :  { %v11579_v36 = vsel %vm2232_vm6, %v11272_v38, %v2424_v39  ;;  %vm2243_vm11 = vcmp.gt.f32.partialorder %v11384_v50, 20.0  ;;  %8486 = vrcp.f32 %v2298_v10  ;;  %v2522_v13 = vadd.f32 %v2521_v31, %v2520_v24 }
 0x44d   :  { %v2672_v46 = vadd.f32 %v15741_v54, %v11455_v47  ;;  %v2646_v0 = vadd.f32 %v2645_v22, %v2644_v55  ;;  %v2566_v16 = vadd.f32 %v2565_v17, %v11563_v26  ;;  %v2536_v29 = vrot.slane %v2535_v12, 1 }
 0x44e   :  { %v2661_v6 = vadd.f32 %v2660_v41, %v2659_v28  ;;  %v2600_v30 = vmul.f32 %v11563_v26, %v11563_v26  ;;  %v2554_v47 = vadd.f32 %v2553_v56, %v11568_v25  ;;  %v2605_v58 = vmul.f32 %v11568_v25, %v11568_v25 }
 0x44f   :  { %v2673_v42 = vrot.slane %v2672_v46, 2  ;;  %vm2244_vm12 = vcmp.gt.f32.partialorder %v11388_v23, 20.0  ;;  %v2647_v38 = vrot.slane %v2646_v0, 2  ;;  %v8479_v20 = vpop.eup %8478  ;;  %v2606_v37 = vmul.f32 %v11579_v36, %v11579_v36 }
 0x450   :  { %v2662_v60 = vrot.slane %v2661_v6, 1  ;;  %v2548_v17 = vadd.f32 %v2547_v45, %v11493_v27  ;;  %v8481_v24 = vpop.eup %8480  ;;  %v11595_v39 = vsel %vm2237_vm7, %v11283_v11, %v2429_v34  ;;  %v2370_v56 = vmul.f32 %v8479_v20, %v11519_v59 }
 0x451   :  { %v2674_v49 = vadd.f32 %v2673_v42, %v2672_v46  ;;  %15742 = vst [vmem:[#allocation47_spill] sm:$0xff] %v11595_v39  ;;  %v2523_v55 = vrot.slane %v2522_v13, 1  ;;  %v2648_v33 = vadd.f32 %v2647_v38, %v2646_v0  ;;  %v2380_v10 = vmul.f32 %v8481_v24, %v11525_v51 }
 0x452   :  { %vm2249_vm13 = vcmp.gt.f32.partialorder %v11419_v35, 20.0  ;;  %v2537_v28 = vadd.f32 %v2536_v29, %v2535_v12  ;;  %v2663_v31 = vadd.f32 %v2662_v60, %v2661_v6  ;;  %v8483_v41 = vpop.eup %8482  ;;  %v2692_v27 = vadd.f32 %v11535_v1, %v2600_v30 }
 0x453   :  { %v2675_v22 = vrot.slane %v2674_v49, 1  ;;  %v2567_v45 = vadd.f32 %v2566_v16, %v11579_v36  ;;  %v2430_v54 = vmul.f32 %v2370_v56, %v11347_v7  ;;  %v2649_v11 = vrot.slane %v2648_v33, 1 }
 0x454   :  { %v2435_v34 = vmul.f32 %v2380_v10, %v11384_v50  ;;  %v2382_v59 = vmul.f32 %v8483_v41, %v11544_v21  ;;  %v2705_v46 = vsel %vm1243_vm10, %v2537_v28, %v2663_v31  ;;  %v2549_v51 = vrot.slane %v2548_v17, 1 }
 0x455   :  { %v2611_v12 = vmul.f32 %v11595_v39, %v11595_v39  ;;  %v11611_v0 = vsel %vm2238_vm8, %v11347_v7, %v2430_v54  ;;  %2713 = vrot.lane.b32.xlu0 %v2705_v46, %s8979_s25  ;;  %v2524_v1 = vadd.f32 %v2523_v55, %v2522_v13  ;;  %v2650_v16 = vadd.f32 %v2649_v11, %v2648_v33  ;;  %v8485_v29 = vpop.eup %8484 }
 0x456   :  { %v2680_v6 = vadd.f32 %v11540_v32, %v2605_v58  ;;  %v11618_v21 = vsel %vm2243_vm11, %v11384_v50, %v2435_v34  ;;  %v2436_v42 = vmul.f32 %v2382_v59, %v11388_v23  ;;  %v2676_v30 = vadd.f32 %v2675_v22, %v2674_v49  ;;  %v8487_v38 = vpop.eup %8486 }
 0x457   :  { %15743 = vst [vmem:[#allocation14_spill] sm:$0xff] %v11618_v21  ;;  %v2555_v20 = vadd.f32 %v2554_v47, %v11595_v39  ;;  %v2612_v7 = vmul.f32 %v11611_v0, %v11611_v0  ;;  %v2392_v13 = vmul.f32 %v8485_v29, %v11551_v43  ;;  %v11626_v60 = vsel %vm1243_vm10, %v2524_v1, %v2650_v16 }
 0x458   :  { %v2617_v32 = vmul.f32 %v11618_v21, %v11618_v21  ;;  %v11633_v50 = vsel %vm2244_vm12, %v11388_v23, %v2436_v42  ;;  %v2394_v58 = vmul.f32 %v8487_v38, %v11553_v57  ;;  %2711 = vrot.lane.b32.xlu1 %v11626_v60, %s8979_s25  ;;  %v2550_v47 = vadd.f32 %v2549_v51, %v2548_v17 }
 0x459   :  { %15744 = vst [vmem:[#allocation30_spill] sm:$0xff] %v11633_v50  ;;  %v2693_v49 = vadd.f32 %v2692_v27, %v2606_v37  ;;  %v2568_v43 = vadd.f32 %v2567_v45, %v11611_v0  ;;  %v2618_v24 = vmul.f32 %v11633_v50, %v11633_v50  ;;  %v2441_v56 = vmul.f32 %v2392_v13, %v11419_v35 }
 0x45a   :  { %v2681_v55 = vadd.f32 %v2680_v6, %v2611_v12  ;;  %v2556_v33 = vadd.f32 %v2555_v20, %v11618_v21  ;;  %v2442_v23 = vmul.f32 %v2394_v58, %v11429_v53  ;;  %v11645_v10 = vsel %vm1243_vm10, %v2550_v47, %v2676_v30 }
 0x45b   :  { %v2694_v57 = vadd.f32 %v2693_v49, %v2612_v7  ;;  %v2569_v28 = vadd.f32 %v2568_v43, %v11633_v50  ;;  %v11651_v37 = vsel %vm2249_vm13, %v11419_v35, %v2441_v56  ;;  %vm2250_vm14 = vcmp.gt.f32.partialorder %v11429_v53, 20.0 }
 0x45c   :  { %15745 = vst [vmem:[#allocation51_spill] sm:$0xff] %v11651_v37  ;;  %v2682_v17 = vadd.f32 %v2681_v55, %v2617_v32  ;;  %v2557_v31 = vadd.f32 %v2556_v33, %v11651_v37  ;;  %v2623_v22 = vmul.f32 %v11651_v37, %v11651_v37  ;;  %v11658_v41 = vsel %vm2250_vm14, %v11429_v53, %v2442_v23 }
 0x45d   :  { %15746 = vst [vmem:[#allocation38_spill] sm:$0xff] %v11658_v41  ;;  %v2695_v27 = vadd.f32 %v2694_v57, %v2618_v24  ;;  %v2570_v45 = vadd.f32 %v2569_v28, %v11658_v41  ;;  %v2624_v54 = vmul.f32 %v11658_v41, %v11658_v41  ;;  %v15747_v57 = vld [vmem:[#allocation25_spill] sm:$0xff] }
 0x45e   :  { %v2558_v11 = vrot.slane %v2557_v31, 4  ;;  %v2683_v35 = vadd.f32 %v2682_v17, %v2623_v22  ;;  %v11672_v28 = vadd.f32 %v15747_v57, %v10771_v48  ;;  %v15748_v17 = vld [vmem:[#allocation24_spill] sm:$0xff]  ;;  %v15749_v22 = vld [vmem:[#allocation26_spill] sm:$0xff] }
 0x45f   :  { %v2571_v34 = vrot.slane %v2570_v45, 4  ;;  %v2696_v59 = vadd.f32 %v2695_v27, %v2624_v54  ;;  %v11680_v27 = vadd.f32 %v15749_v22, %v10836_v3  ;;  %v15750_v54 = vld [vmem:[#allocation15_spill] sm:$0xff]  ;;  %v15751_v48 = vld [vmem:[#allocation18_spill] sm:$0xff]  ;;  %v15752_v3 = vld [vmem:[#allocation20_spill] sm:$0xff] }
 0x460   :  { %v2559_v46 = vadd.f32 %v2558_v11, %v2557_v31  ;;  %v2684_v51 = vrot.slane %v2683_v35, 4  ;;  %v11676_v31 = vadd.f32 %v15748_v17, %v10764_v62  ;;  %v11685_v11 = vadd.f32 %v15750_v54, %v15717_v19  ;;  %v8958_v22 = vld [vmem:[%s15304_s0 + $0xe8] sm:$0x7f] }
 0x461   :  { %v2572_v12 = vadd.f32 %v2571_v34, %v2570_v45  ;;  %v2697_v1 = vrot.slane %v2696_v59, 4  ;;  %v1969_v45 = vmin.f32 %v11672_v28, 20.0  ;;  %v1975_v34 = vmin.f32 %v11680_v27, 20.0 }
 0x462   :  { %v2560_v16 = vrot.slane %v2559_v46, 2  ;;  %v2685_v29 = vadd.f32 %v2684_v51, %v2683_v35  ;;  %v1963_v35 = vmin.f32 %v11676_v31, 20.0  ;;  %v11696_v51 = vadd.f32 %v15752_v3, %v15726_v52 }
 0x463   :  { %v2573_v6 = vrot.slane %v2572_v12, 2  ;;  %v2698_v42 = vadd.f32 %v2697_v1, %v2696_v59  ;;  %v11691_v59 = vadd.f32 %v15751_v48, %v15721_v9  ;;  %v2023_v62 = vmul.f32 1.442695, %v1969_v45  ;;  %v11752_v48 = vld [vmem:[%s15305_s2 + $0x58] sm:$0xff] }
 0x464   :  { %v2561_v53 = vadd.f32 %v2560_v16, %v2559_v46  ;;  %v2686_v30 = vrot.slane %v2685_v29, 2  ;;  %v1981_v46 = vmin.f32 %v11685_v11, 20.0  ;;  %v2035_v1 = vmul.f32 1.442695, %v1975_v34  ;;  %v15753_v16 = vld [vmem:[#allocation45_spill] sm:$0xff] }
 0x465   :  { %v2574_v38 = vadd.f32 %v2573_v6, %v2572_v12  ;;  %v2699_v20 = vrot.slane %v2698_v42, 2  ;;  %v2011_v12 = vmul.f32 1.442695, %v1963_v35  ;;  %v1987_v19 = vmin.f32 %v11691_v59, 20.0 }
 0x466   :  { %v2562_v7 = vrot.slane %v2561_v53, 1  ;;  %v2687_v13 = vadd.f32 %v2686_v30, %v2685_v29  ;;  %v11701_v29 = vadd.f32 %v15753_v16, %v15734_v8  ;;  %8488 = vpow2.f32 %v2023_v62  ;;  %v8959_v62 = vld [vmem:[%s15304_s0 + $0xe0] sm:$0x7f] }
 0x467   :  { %v2575_v32 = vrot.slane %v2574_v38, 1  ;;  %v2700_v58 = vadd.f32 %v2699_v20, %v2698_v42  ;;  %v2047_v6 = vmul.f32 1.442695, %v1981_v46  ;;  %v1993_v9 = vmin.f32 %v11696_v51, 20.0  ;;  %v15754_v42 = vld [vmem:[#allocation46_spill] sm:$0xff] }
 0x468   :  { %v2688_v47 = vrot.slane %v2687_v13, 1  ;;  %v2563_v43 = vadd.f32 %v2562_v7, %v2561_v53  ;;  %v11706_v53 = vadd.f32 %v15754_v42, %v10996_v63  ;;  %8490 = vpow2.f32 %v2011_v12  ;;  %v11713_v7 = vld [vmem:[%s15305_s2 + $0x40] sm:$0xff] }
 0x469   :  { %v2701_v49 = vrot.slane %v2700_v58, 1  ;;  %v2576_v56 = vadd.f32 %v2575_v32, %v2574_v38  ;;  %8492 = vpow2.f32 %v2035_v1  ;;  %v2059_v52 = vmul.f32 1.442695, %v1987_v19  ;;  %7586 = vmatmul.mubr.msk.f32.vlgmr.msra.gmra.mrb[42].mxu0 %vm121_vm1, %v11713_v7  ;;  %7596 = vmatmul.mubr.msk.f32.vlgmr.msra.gmra.mrb[54].mxu1 %vm121_vm1, %v11713_v7  ;;  %v11723_v32 = vld [vmem:[%s15305_s2 + $0x48] sm:$0xff] }
 0x46a   :  { %v2689_v24 = vadd.f32 %v2688_v47, %v2687_v13  ;;  %v1999_v30 = vmin.f32 %v11701_v29, 20.0  ;;  %8494 = vpow2.f32 %v2047_v6  ;;  %v2071_v38 = vmul.f32 1.442695, %v1993_v9 }
 0x46b   :  { %v2702_v55 = vadd.f32 %v2701_v49, %v2700_v58  ;;  %v2005_v20 = vmin.f32 %v11706_v53, 20.0  ;;  %8496 = vpow2.f32 %v2059_v52  ;;  %v15755_v63 = vmov 0.0   ;;  %v15756_v58 = vld [vmem:[#allocation11_spill] sm:$0xff]  ;;  %v15757_v49 = vld [vmem:[#allocation12_spill] sm:$0xff] }
 0x46c   :  { %v11664_v33 = vsel %vm1243_vm10, %v2563_v43, %v2689_v24  ;;  %v2083_v8 = vmul.f32 1.442695, %v1999_v30  ;;  %8498 = vpow2.f32 %v2071_v38  ;;  %3130 = vmatprep.mubr.f32.mxu0 %v15755_v63  ;;  %7805 = vmatpush1.bf16.msra.mxu0 %v15756_v58  ;;  %vm2203_vm15 = vcmp.gt.f32.partialorder %v11676_v31, 20.0 }
 0x46d   :  { %2724 = vrot.lane.b32.xlu1 %v11664_v33, %s8979_s25  ;;  %v2708_v23 = vsel %vm1243_vm10, %v2576_v56, %v2702_v55  ;;  %v2095_v13 = vmul.f32 1.442695, %v2005_v20  ;;  %7807 = vmatprep.subr.bf16.mxu0 %v15757_v49  ;;  %v11736_v55 = vld [vmem:[%s15305_s2 + $0x50] sm:$0xff]  ;;  %vm2215_vm2 = vcmp.gt.f32.partialorder %v11680_v27, 20.0  ;;  %vm2221_vm3 = vcmp.gt.f32.partialorder %v11685_v11, 20.0 }
 0x46e   :  { %2726 = vrot.lane.b32.xlu0 %v2708_v23, %s8979_s25  ;;  %8500 = vpow2.f32 %v2083_v8  ;;  %3243 = vmatprep.mubr.f32.mxu1 %v15755_v63  ;;  %v15758_v23 = vld [vmem:[#allocation13_spill] sm:$0xff]  ;;  %vm2227_vm4 = vcmp.gt.f32.partialorder %v11691_v59, 20.0  ;;  %vm2233_vm5 = vcmp.gt.f32.partialorder %v11696_v51, 20.0  ;;  %vm2239_vm6 = vcmp.gt.f32.partialorder %v11701_v29, 20.0 }
 0x46f   :  { %8502 = vpow2.f32 %v2095_v13  ;;  %7587 = vmatmul.mubr.msk.f32.gmra.mrb[44].mxu0 %vm121_vm1, %v11723_v32  ;;  %7597 = vmatmul.mubr.msk.f32.gmra.mrb[56].mxu1 %vm121_vm1, %v11723_v32  ;;  %vm2245_vm7 = vcmp.gt.f32.partialorder %v11706_v53, 20.0 }
 0x470   :  { %v8489_v47 = vpop.eup %8488  ;;  %3136 = vmatprep.mubr.f32.mxu0 %v15755_v63  ;;  %7809 = vmatpush1.bf16.msra.mxu0 %v15758_v23 }
 0x471   :  { %v2113_v56 = vadd.f32 2.0, %v8489_v47  ;;  %7604 = vmatprep.subr.msk.mxu0 %vm146_vm0, %v8958_v22  ;;  %3249 = vmatprep.mubr.f32.mxu1 %v15755_v63 }
 0x472   :  { %v8491_v43 = vpop.eup %8490 }
 0x473   :  { %v8493_v24 = vpop.eup %8492  ;;  %v2107_v17 = vadd.f32 2.0, %v8491_v43  ;;  %7588 = vmatmul.mubr.msk.f32.gmra.mrb[46].mxu0 %vm121_vm1, %v11736_v55  ;;  %7598 = vmatmul.mubr.msk.f32.gmra.mrb[58].mxu1 %vm121_vm1, %v11736_v55  ;;  %v2161_v35 = vmul.f32 %v8489_v47, %v2113_v56 }
 0x474   :  { %v8495_v57 = vpop.eup %8494  ;;  %v2119_v45 = vadd.f32 2.0, %v8493_v24  ;;  %3142 = vmatprep.mubr.f32.mxu0 %v15755_v63  ;;  %7605 = vmatpush1.msk.msra.mxu0 %vm146_vm0, %v8959_v62  ;;  %vm2209_vm0 = vcmp.gt.f32.partialorder %v11672_v28, 20.0 }
 0x475   :  { %v8497_v54 = vpop.eup %8496  ;;  %v2125_v34 = vadd.f32 2.0, %v8495_v57  ;;  %v2155_v3 = vmul.f32 %v8491_v43, %v2107_v17  ;;  %3255 = vmatprep.mubr.f32.mxu1 %v15755_v63  ;;  %v2257_v16 = vadd.f32 2.0, %v2161_v35 }
 0x476   :  { %v8499_v46 = vpop.eup %8498  ;;  %v2167_v12 = vmul.f32 %v8493_v24, %v2119_v45  ;;  %v2131_v1 = vadd.f32 2.0, %v8497_v54 }
 0x477   :  { %7589 = vmatmul.mubr.msk.f32.gmra.mrb[48].mxu0 %vm121_vm1, %v11752_v48  ;;  %7599 = vmatmul.mubr.msk.f32.gmra.mrb[60].mxu1 %vm121_vm1, %v11752_v48  ;;  %v2173_v6 = vmul.f32 %v8495_v57, %v2125_v34  ;;  %v2137_v9 = vadd.f32 2.0, %v8499_v46  ;;  %v2251_v52 = vadd.f32 2.0, %v2155_v3  ;;  %8504 = vrcp.f32 %v2257_v16 }
 0x478   :  { %v8501_v19 = vpop.eup %8500  ;;  %3148 = vmatprep.mubr.f32.mxu0 %v15755_v63  ;;  %3261 = vmatprep.mubr.f32.mxu1 %v15755_v63  ;;  %v2263_v30 = vadd.f32 2.0, %v2167_v12  ;;  %v2179_v38 = vmul.f32 %v8497_v54, %v2131_v1 }
 0x479   :  { %v8503_v42 = vpop.eup %8502  ;;  %v2143_v20 = vadd.f32 2.0, %v8501_v19  ;;  %v2269_v8 = vadd.f32 2.0, %v2173_v6  ;;  %v2185_v13 = vmul.f32 %v8499_v46, %v2137_v9  ;;  %8506 = vrcp.f32 %v2251_v52 }
 0x47a   :  { %v2149_v58 = vadd.f32 2.0, %v8503_v42  ;;  %8508 = vrcp.f32 %v2263_v30  ;;  %v2275_v47 = vadd.f32 2.0, %v2179_v38 }
 0x47b   :  { %v2191_v49 = vmul.f32 %v8501_v19, %v2143_v20  ;;  %8510 = vrcp.f32 %v2269_v8  ;;  %v2281_v43 = vadd.f32 2.0, %v2185_v13 }
 0x47c   :  { %v2197_v24 = vmul.f32 %v8503_v42, %v2149_v58  ;;  %8512 = vrcp.f32 %v2275_v47 }
 0x47d   :  { %v2287_v56 = vadd.f32 2.0, %v2191_v49  ;;  %8514 = vrcp.f32 %v2281_v43 }
 0x47e   :  { %v2293_v23 = vadd.f32 2.0, %v2197_v24 }
 0x47f   :  { %8516 = vrcp.f32 %v2287_v56 }
 0x480   :  { %8518 = vrcp.f32 %v2293_v23 }
 0x481   :  { %v8505_v57 = vpop.eup %8504 }
 0x482   :  { %v2312_v45 = vmul.f32 %v8505_v57, %v2161_v35 }
 0x483   :  { %v8507_v17 = vpop.eup %8506 }
 0x484   :  { %v8509_v22 = vpop.eup %8508  ;;  %v2300_v34 = vmul.f32 %v8507_v17, %v2155_v3  ;;  %v2401_v1 = vmul.f32 %v2312_v45, %v11672_v28 }
 0x485   :  { %v8511_v54 = vpop.eup %8510  ;;  %v2324_v62 = vmul.f32 %v8509_v22, %v2167_v12 }
 0x486   :  { %v8513_v46 = vpop.eup %8512  ;;  %v2336_v19 = vmul.f32 %v8511_v54, %v2173_v6  ;;  %v2395_v9 = vmul.f32 %v2300_v34, %v11676_v31  ;;  %v11770_v20 = vsel %vm2209_vm0, %v11672_v28, %v2401_v1 }
 0x487   :  { %v8515_v16 = vpop.eup %8514  ;;  %v2407_v42 = vmul.f32 %v2324_v62, %v11680_v27  ;;  %v2348_v52 = vmul.f32 %v8513_v46, %v2179_v38  ;;  %v2583_v28 = vmul.f32 %v11770_v20, %v11770_v20 }
 0x488   :  { %v2413_v35 = vmul.f32 %v2336_v19, %v11685_v11  ;;  %v2360_v3 = vmul.f32 %v8515_v16, %v2185_v13  ;;  %v11776_v6 = vsel %vm2203_vm15, %v11676_v31, %v2395_v9 }
 0x489   :  { %v8517_v30 = vpop.eup %8516  ;;  %v11779_v8 = vsel %vm2215_vm2, %v11680_v27, %v2407_v42  ;;  %v2419_v38 = vmul.f32 %v2348_v52, %v11691_v59  ;;  %v2577_v31 = vmul.f32 %v11776_v6, %v11776_v6  ;;  %v2499_v17 = vadd.f32 %v11770_v20, %v11776_v6 }
 0x48a   :  { %v8519_v12 = vpop.eup %8518  ;;  %v2372_v58 = vmul.f32 %v8517_v30, %v2191_v49  ;;  %v11786_v13 = vsel %vm2221_vm3, %v11685_v11, %v2413_v35  ;;  %v2425_v47 = vmul.f32 %v2360_v3, %v11696_v51  ;;  %v2589_v27 = vmul.f32 %v11779_v8, %v11779_v8 }
 0x48b   :  { %v2384_v43 = vmul.f32 %v8519_v12, %v2197_v24  ;;  %v11795_v49 = vsel %vm2227_vm4, %v11691_v59, %v2419_v38  ;;  %v2625_v23 = vadd.f32 %v2583_v28, %v2577_v31  ;;  %v2595_v11 = vmul.f32 %v11786_v13, %v11786_v13 }
 0x48c   :  { %v2431_v56 = vmul.f32 %v2372_v58, %v11701_v29  ;;  %v11802_v24 = vsel %vm2233_vm5, %v11696_v51, %v2425_v47  ;;  %v2601_v59 = vmul.f32 %v11795_v49, %v11795_v49  ;;  %v2500_v54 = vadd.f32 %v2499_v17, %v11779_v8 }
 0x48d   :  { %v2437_v57 = vmul.f32 %v2384_v43, %v11706_v53  ;;  %v2626_v22 = vadd.f32 %v2625_v23, %v2589_v27  ;;  %v2607_v51 = vmul.f32 %v11802_v24, %v11802_v24 }
 0x48e   :  { %v11811_v45 = vsel %vm2239_vm6, %v11701_v29, %v2431_v56  ;;  %v2501_v46 = vadd.f32 %v2500_v54, %v11786_v13 }
 0x48f   :  { %v2627_v34 = vadd.f32 %v2626_v22, %v2595_v11  ;;  %v11818_v62 = vsel %vm2245_vm7, %v11706_v53, %v2437_v57  ;;  %v2613_v19 = vmul.f32 %v11811_v45, %v11811_v45 }
 0x490   :  { %v2502_v29 = vadd.f32 %v2501_v46, %v11795_v49  ;;  %v2619_v9 = vmul.f32 %v11818_v62, %v11818_v62 }
 0x491   :  { %v2628_v1 = vadd.f32 %v2627_v34, %v2601_v59 }
 0x492   :  { %v2503_v42 = vadd.f32 %v2502_v29, %v11802_v24 }
 0x493   :  { %v2629_v16 = vadd.f32 %v2628_v1, %v2607_v51 }
 0x494   :  { %v2504_v30 = vadd.f32 %v2503_v42, %v11811_v45 }
 0x495   :  { %v2630_v52 = vadd.f32 %v2629_v16, %v2613_v19 }
 0x496   :  { %v2505_v53 = vadd.f32 %v2504_v30, %v11818_v62 }
 0x497   :  { %v2631_v35 = vadd.f32 %v2630_v52, %v2619_v9  ;;  %v15759_v52 = vld [vmem:[#allocation21_spill] sm:$0xff] }
 0x498   :  { %v2506_v12 = vrot.slane %v2505_v53, 4 }
 0x499   :  { %v2632_v3 = vrot.slane %v2631_v35, 4 }
 0x49a   :  { %v2507_v58 = vadd.f32 %v2506_v12, %v2505_v53 }
 0x49b   :  { %v2633_v38 = vadd.f32 %v2632_v3, %v2631_v35  ;;  %v15760_v35 = vld [vmem:[#allocation29_spill] sm:$0xff]  ;;  %v15761_v3 = vld [vmem:[#allocation42_spill] sm:$0xff] }
 0x49c   :  { %v2508_v47 = vrot.slane %v2507_v58, 2 }
 0x49d   :  { %v2634_v28 = vrot.slane %v2633_v38, 2 }
 0x49e   :  { %v2509_v31 = vadd.f32 %v2508_v47, %v2507_v58  ;;  %v11861_v58 = vld [vmem:[%s15305_s2 + $0x68] sm:$0xff] }
 0x49f   :  { %v2635_v43 = vadd.f32 %v2634_v28, %v2633_v38 }
 0x4a0   :  { %v2510_v56 = vrot.slane %v2509_v31, 1 }
 0x4a1   :  { %v2636_v27 = vrot.slane %v2635_v43, 1 }
 0x4a2   :  { %v2511_v17 = vadd.f32 %v2510_v56, %v2509_v31  ;;  %v7564_v31 = vld [vmem:[%s15307_s5 + $0x1] ss:$8 sm:$0xf] }
 0x4a3   :  { %v2637_v11 = vadd.f32 %v2636_v27, %v2635_v43  ;;  %v11872_v43 = vld [vmem:[%s15305_s2 + $0x70] sm:$0xff]  ;;  %v7565_v27 = vld [vmem:[%s15307_s5 + $0x1] ss:$8 sm:$0x30]  ;;  %v11889_v56 = vld [vmem:[%s15305_s2 + $0x78] sm:$0xff] }
 0x4a5   :  { %v2703_v54 = vsel %vm1243_vm10, %v2511_v17, %v2637_v11  ;;  %v7566_v11 = vld [vmem:[%s15307_s5 + $0x5] ss:$8 sm:$0xf] }
 0x4c7   :  { %v2714_v57 = vpop.permute.xlu0 %2713 }
 0x4c8   :  { %v2719_v59 = vadd.f32 %v2714_v57, %v11626_v60 }
 0x4ca   :  { %v2712_v23 = vpop.permute.xlu1 %2711  ;;  %v2721_v46 = vadd.f32 %v2719_v59, %v11664_v33  ;;  %v11846_v33 = vld [vmem:[%s15305_s2 + $0x60] sm:$0xff]  ;;  %v15762_v59 = vld [vmem:[#allocation17_spill] sm:$0xff] }
 0x4cb   :  { %v2715_v22 = vsel %vm1256_vm9, %v2712_v23, %v2714_v57  ;;  %7590 = vmatmul.mubr.msk.f32.gmra.mrb[50].mxu0 %vm121_vm1, %v11846_v33  ;;  %7600 = vmatmul.mubr.msk.f32.gmra.mrb[62].mxu1 %vm121_vm1, %v11846_v33  ;;  %v11891_v23 = vor.u32 %v7565_v27, %v7564_v31  ;;  %v7567_v57 = vld [vmem:[%s15307_s5 + $0x5] ss:$8 sm:$0x30] }
 0x4cc   :  { %v2718_v34 = vadd.f32 %v2715_v22, %v2703_v54  ;;  %3154 = vmatprep.mubr.f32.mxu0 %v15755_v63  ;;  %3267 = vmatprep.mubr.f32.mxu1 %v15755_v63  ;;  %v11905_v17 = vor.u32 %v7567_v57, %v7566_v11 }
 0x4cd   :  { %v2834_v22 = vrot.slane %v11891_v23, %v15759_v52  ;;  %v2846_v54 = vrot.slane %v11891_v23, %v15762_v59 }
 0x4ce   :  { %v2720_v19 = vadd.f32 %v2718_v34, %v11645_v10 }
 0x4cf   :  { %7591 = vmatmul.mubr.msk.f32.gmra.mrb[52].mxu0 %vm121_vm1, %v11861_v58  ;;  %7601 = vmatmul.mubr.msk.f32.gmra.mrb[64].mxu1 %vm121_vm1, %v11861_v58 }
 0x4d0   :  { %3160 = vmatprep.mubr.f32.mxu0 %v15755_v63  ;;  %3273 = vmatprep.mubr.f32.mxu1 %v15755_v63 }
 0x4d3   :  { %7592 = vmatmul.mubr.msk.f32.gmra.mrb[54].mxu0 %vm121_vm1, %v11872_v43  ;;  %7602 = vmatmul.mubr.msk.f32.gmra.mrb[66].mxu1 %vm121_vm1, %v11872_v43 }
 0x4d4   :  { %3166 = vmatprep.mubr.f32.mxu0 %v15755_v63  ;;  %3279 = vmatprep.mubr.f32.mxu1 %v15755_v63 }
 0x4d7   :  { %7593 = vmatmul.mubr.msk.f32.gmra.mrb[56].mxu0 %vm121_vm1, %v11889_v56  ;;  %7603 = vmatmul.mubr.msk.f32.gmra.mrb[68].mxu1 %vm121_vm1, %v11889_v56 }
 0x4d8   :  { %3350 = vmatprep.mubr.f32.mxu0 %v15755_v63  ;;  %3600 = vmatprep.mubr.f32.mxu1 %v15755_v63 }
 0x4db   :  { %7606 = vmatmul.mubr.msk.f32.vlgmr.msra.gmra.mrb[58].mxu0 %vm121_vm1, %v11713_v7 }
 0x4dc   :  { %3356 = vmatprep.mubr.f32.mxu0 %v15755_v63 }
 0x4df   :  { %v2725_v51 = vpop.permute.xlu1 %2724  ;;  %7607 = vmatmul.mubr.msk.f32.gmra.mrb[60].mxu0 %vm121_vm1, %v11723_v32 }
 0x4e0   :  { %v2727_v1 = vpop.permute.xlu0 %2726  ;;  %3362 = vmatprep.mubr.f32.mxu0 %v15755_v63 }
 0x4e1   :  { %v2728_v29 = vsel %vm1256_vm9, %v2725_v51, %v2727_v1  ;;  %v11835_v16 = vadd.f32 %v2727_v1, %v2721_v46  ;;  %v2955_v51 = vrot.slane %v11905_v17, %v15762_v59 }
 0x4e2   :  { %v2731_v9 = vadd.f32 %v2728_v29, %v2720_v19  ;;  %v11922_v19 = vrot.slane %v11905_v17, %v15759_v52 }
 0x4e3   :  { %2737 = vrot.lane.b32.xlu0 %v11835_v16, %s8979_s25  ;;  %7608 = vmatmul.mubr.msk.f32.gmra.mrb[62].mxu0 %vm121_vm1, %v11736_v55 }
 0x4e4   :  { %v2743_v42 = vmul.f32 0.00390625, %v2731_v9  ;;  %2735 = vrot.lane.b32.xlu1 %v2731_v9, %s8979_s25  ;;  %3368 = vmatprep.mubr.f32.mxu0 %v15755_v63 }
 0x4e6   :  { %v2746_v60 = vmul.f32 %v2743_v42, %v2743_v42  ;;  %v11841_v30 = vrot.slane %v2743_v42, %v15759_v52 }
 0x4e7   :  { %7609 = vmatmul.mubr.msk.f32.gmra.mrb[64].mxu0 %vm121_vm1, %v11752_v48 }
 0x4e8   :  { %v2752_v10 = vrot.slane %v2746_v60, 7  ;;  %v2779_v53 = vsub.f32 %v15760_v35, %v11841_v30  ;;  %v2785_v12 = vsub.f32 %v15761_v3, %v11841_v30  ;;  %v2776_v46 = vsub.f32 %v11776_v6, %v11841_v30  ;;  %v15765_v3 = vld [vmem:[#allocation10_spill] sm:$0xff]  ;;  %3374 = vmatprep.mubr.f32.mxu0 %v15755_v63 }
 0x4e9   :  { %v2782_v1 = vsub.f32 %v11770_v20, %v11841_v30  ;;  %v2791_v7 = vsub.f32 %v11094_v2, %v11841_v30  ;;  %v2788_v20 = vsub.f32 %v11779_v8, %v11841_v30  ;;  %v2794_v6 = vsub.f32 %v11786_v13, %v11841_v30  ;;  %v15767_v8 = vld [vmem:[#allocation41_spill] sm:$0xff] }
 0x4ea   :  { %v2758_v38 = vsub.f32 %v2743_v42, %v2752_v10  ;;  %v15763_v42 = vld [vmem:[#allocation4_spill] sm:$0xff]  ;;  %v15764_v10 = vld [vmem:[#allocation9_spill] sm:$0xff]  ;;  %v2809_v32 = vsub.f32 %v15765_v3, %v11841_v30  ;;  %v2806_v31 = vsub.f32 %v11802_v24, %v11841_v30  ;;  %v2815_v27 = vsub.f32 %v15767_v8, %v11841_v30 }
 0x4eb   :  { %v2797_v60 = vsub.f32 %v15763_v42, %v11841_v30  ;;  %v2803_v35 = vsub.f32 %v15764_v10, %v11841_v30  ;;  %v15768_v13 = vld [vmem:[#allocation49_spill] sm:$0xff]  ;;  %v2812_v57 = vsub.f32 %v11811_v45, %v11841_v30  ;;  %7610 = vmatmul.mubr.msk.f32.gmra.mrb[66].mxu0 %vm121_vm1, %v11846_v33  ;;  %v15780_v33 = vld [vmem:[#allocation34_spill] sm:$0xff] }
 0x4ec   :  { %v2761_v28 = vmax.f32 %v2758_v38, 0.0  ;;  %v15766_v38 = vld [vmem:[#allocation16_spill] sm:$0xff]  ;;  %v2821_v11 = vsub.f32 %v15768_v13, %v11841_v30  ;;  %3380 = vmatprep.mubr.f32.mxu0 %v15755_v63 }
 0x4ee   :  { %v2824_v47 = vadd.f32 1e-05, %v2761_v28 }
 0x4ef   :  { %7611 = vmatmul.mubr.msk.f32.gmra.mrb[68].mxu0 %vm121_vm1, %v11861_v58  ;;  %v8961_v58 = vld [vmem:[%s15306_s4 + $0x8] sm:$0xff] }
 0x4f0   :  { %8520 = vrsqrt.f32 %v2824_v47  ;;  %v2800_v47 = vsub.f32 %v11795_v49, %v11841_v30  ;;  %3386 = vmatprep.mubr.f32.mxu0 %v15755_v63 }
 0x4f3   :  { %7612 = vmatmul.mubr.msk.f32.gmra.mrb[70].mxu0 %vm121_vm1, %v11872_v43  ;;  %v8962_v43 = vld [vmem:[%s15306_s4 + $0x10] sm:$0xff] }
 0x4f4   :  { %3392 = vmatprep.mubr.f32.mxu0 %v15755_v63 }
 0x4f7   :  { %7613 = vmatmul.mubr.msk.f32.gmra.mrb[72].mxu0 %vm121_vm1, %v11889_v56  ;;  %v8963_v56 = vld [vmem:[%s15306_s4 + $0x20] sm:$0xff] }
 0x4f8   :  { %3487 = vmatprep.mubr.f32.mxu0 %v15755_v63 }
 0x4fa   :  { %v8521_v34 = vpop.eup %8520 }
 0x4fb   :  { %v2861_v29 = vmul.f32 %v8521_v34, %v2834_v22  ;;  %v2864_v9 = vmul.f32 %v8521_v34, %v2846_v54  ;;  %v2818_v22 = vsub.f32 %v11818_v62, %v11841_v30 }
 0x4fd   :  { %v2870_v28 = vrot.slane %v2861_v29, %v15766_v38  ;;  %v2882_v2 = vrot.slane %v2864_v9, %v15766_v38 }
 0x4ff   :  { %v2894_v54 = vmul.f32 %v2882_v2, %v2779_v53  ;;  %v2900_v34 = vmul.f32 %v2882_v2, %v2785_v12  ;;  %v2891_v49 = vmul.f32 %v2870_v28, %v2776_v46  ;;  %v2897_v29 = vmul.f32 %v2870_v28, %v2782_v1 }
 0x500   :  { %v2906_v24 = vmul.f32 %v2882_v2, %v2791_v7  ;;  %v2912_v9 = vmul.f32 %v2882_v2, %v2797_v60  ;;  %v2903_v42 = vmul.f32 %v2870_v28, %v2788_v20  ;;  %v2909_v10 = vmul.f32 %v2870_v28, %v2794_v6  ;;  %v15782_v6 = vld [vmem:[#allocation33_spill] sm:$0xff] }
 0x501   :  { %v2973_v3 = vadd.f32 %v2955_v51, %v2894_v54  ;;  %v2979_v8 = vadd.f32 %v2955_v51, %v2900_v34  ;;  %v11957_v45 = vadd.f32 %v11922_v19, %v2891_v49  ;;  %v11960_v62 = vadd.f32 %v11922_v19, %v2897_v29 }
 0x502   :  { %v11962_v30 = vadd.f32 %v2955_v51, %v2906_v24  ;;  %v11964_v53 = vadd.f32 %v2955_v51, %v2912_v9  ;;  %v11967_v55 = vadd.f32 %v11922_v19, %v2903_v42  ;;  %v11970_v12 = vadd.f32 %v11922_v19, %v2909_v10  ;;  %v8966_v10 = vld [vmem:[%s15306_s4 + $0x28] sm:$0xff] }
 0x503   :  { %v7826_v46 = vpack.c.bf16 %v2979_v8, %v2973_v3  ;;  %v2918_v7 = vmul.f32 %v2882_v2, %v2803_v35  ;;  %v2924_v60 = vmul.f32 %v2882_v2, %v2809_v32  ;;  %v2915_v13 = vmul.f32 %v2870_v28, %v2800_v47  ;;  %v15781_v47 = vld [vmem:[#allocation5_spill] sm:$0xff] }
 0x504   :  { %v2921_v54 = vmul.f32 %v2870_v28, %v2806_v31  ;;  %v2930_v48 = vmul.f32 %v2882_v2, %v2815_v27  ;;  %v2936_v29 = vmul.f32 %v2882_v2, %v2821_v11  ;;  %v2927_v24 = vmul.f32 %v2870_v28, %v2812_v57  ;;  %v8964_v57 = vld [vmem:[%s15306_s4 + $0x18] sm:$0xff] }
 0x505   :  { %7827 = vmatprep.subr.bf16.mxu1 %v7826_v46  ;;  %v11981_v34 = vadd.f32 %v2955_v51, %v2918_v7  ;;  %v11983_v49 = vadd.f32 %v2955_v51, %v2924_v60  ;;  %v11986_v35 = vadd.f32 %v11922_v19, %v2915_v13  ;;  %v2933_v9 = vmul.f32 %v2870_v28, %v2818_v22  ;;  %v8965_v22 = vld [vmem:[%s15306_s4 + $0x30] sm:$0xff]  ;;  %v8967_v60 = vld [vmem:[%s15306_s4 + $0x38] sm:$0xff] }
 0x506   :  { %v11989_v32 = vadd.f32 %v11922_v19, %v2921_v54  ;;  %v11995_v31 = vadd.f32 %v2955_v51, %v2930_v48  ;;  %v11997_v42 = vadd.f32 %v2955_v51, %v2936_v29  ;;  %v12003_v27 = vadd.f32 %v11922_v19, %v2927_v24 }
 0x507   :  { %v12006_v28 = vadd.f32 %v11922_v19, %v2933_v9  ;;  %v8981_v51 = vmov 2   ;;  %v8960_v19 = vld [vmem:[%s15306_s4] sm:$0xff] }
 0x508   :  { %15769 = vst [vmem:[#allocation52_spill] sm:$0xff] %v11995_v31  ;;  %15770 = vst [vmem:[#allocation48_spill] sm:$0xff] %v11997_v42  ;;  %8121 = vset.pattern.permute.xlu1 %v8981_v51  ;;  %8122 = vset.pattern.permute.xlu0 %v8981_v51 }
 0x509   :  { %15771 = vst [vmem:[#allocation43_spill] sm:$0xff] %v12003_v27  ;;  %15772 = vst [vmem:[#allocation40_spill] sm:$0xff] %v12006_v28  ;;  %3763 = vperm.xlu1 %8121, %v8960_v19   ;;  %3767 = vperm.xlu0 %8122, %v8961_v58  }
 0x50d   :  { %3771 = vperm.xlu1 %8121, %v8962_v43   ;;  %3779 = vperm.xlu0 %8122, %v8963_v56  }
 0x511   :  { %3775 = vperm.xlu1 %8121, %v8964_v57   ;;  %3787 = vperm.xlu0 %8122, %v8965_v22  }
 0x515   :  { %3783 = vperm.xlu1 %8121, %v8966_v10   ;;  %v2838_v10 = vrot.slane %v11891_v23, %v15766_v38 }
 0x519   :  { %3791 = vperm.xlu1 %8121, %v8967_v60   ;;  %v15775_v60 = vld [vmem:[#allocation23_spill] sm:$0xff] }
 0x555   :  { %v2738_v3 = vpop.permute.xlu0 %2737 }
 0x556   :  { %v2736_v8 = vpop.permute.xlu1 %2735 }
 0x557   :  { %v2739_v46 = vsel %vm1256_vm9, %v2736_v8, %v2738_v3  ;;  %v2742_v7 = vsel %vm1256_vm9, %v11835_v16, %v2736_v8  ;;  %v15773_v3 = vld [vmem:[#allocation19_spill] sm:$0xff] }
 0x558   :  { %v2744_v13 = vmul.f32 0.00390625, %v2742_v7  ;;  %v2745_v54 = vmul.f32 0.00390625, %v2739_v46  ;;  %v2842_v8 = vrot.slane %v11891_v23, %v15773_v3  ;;  %v15774_v46 = vld [vmem:[#allocation22_spill] sm:$0xff] }
 0x559   :  { %v2850_v7 = vrot.slane %v11891_v23, %v15774_v46 }
 0x55a   :  { %v2747_v48 = vmul.f32 %v2744_v13, %v2744_v13  ;;  %v2748_v29 = vmul.f32 %v2745_v54, %v2745_v54  ;;  %v12049_v16 = vrot.slane %v2744_v13, %v15759_v52  ;;  %v12052_v22 = vrot.slane %v2745_v54, %v15759_v52 }
 0x55c   :  { %v2753_v24 = vrot.slane %v2747_v48, 7  ;;  %v2754_v9 = vrot.slane %v2748_v29, 7  ;;  %v2854_v48 = vrot.slane %v11891_v23, %v15775_v60  ;;  %v12064_v29 = vrot.slane %v11905_v17, %v15766_v38  ;;  %v15778_v23 = vld [vmem:[#allocation32_spill] sm:$0xff] }
 0x55d   :  { %v2789_v2 = vsub.f32 %v15780_v33, %v12049_v16  ;;  %v15786_v33 = vld [vmem:[#allocation6_spill] sm:$0xff] }
 0x55e   :  { %v2759_v51 = vsub.f32 %v2744_v13, %v2753_v24  ;;  %v2760_v19 = vsub.f32 %v2745_v54, %v2754_v9  ;;  %v12068_v13 = vrot.slane %v11905_v17, %v15773_v3  ;;  %v12072_v54 = vrot.slane %v11905_v17, %v15775_v60  ;;  %v15776_v24 = vld [vmem:[#allocation36_spill] sm:$0xff] }
 0x55f   :  { %v2777_v9 = vsub.f32 %v15776_v24, %v12049_v16  ;;  %v2795_v24 = vsub.f32 %v15781_v47, %v12049_v16  ;;  %v15785_v3 = vld [vmem:[#allocation28_spill] sm:$0xff]  ;;  %v2802_v52 = vsub.f32 %v15786_v33, %v12052_v22 }
 0x560   :  { %v2762_v58 = vmax.f32 %v2759_v51, 0.0  ;;  %v2763_v43 = vmax.f32 %v2760_v19, 0.0  ;;  %v15777_v51 = vld [vmem:[#allocation2_spill] sm:$0xff]  ;;  %v15787_v47 = vld [vmem:[#allocation8_spill] sm:$0xff] }
 0x561   :  { %v2783_v19 = vsub.f32 %v15777_v51, %v12049_v16  ;;  %v2790_v51 = vsub.f32 %v15782_v6, %v12052_v22  ;;  %v2808_v37 = vsub.f32 %v15787_v47, %v12052_v22  ;;  %v15788_v6 = vld [vmem:[#allocation50_spill] sm:$0xff]  ;;  %v2781_v47 = vsub.f32 %v11486_v4, %v12052_v22 }
 0x562   :  { %v2825_v56 = vadd.f32 1e-05, %v2762_v58  ;;  %v2826_v57 = vadd.f32 1e-05, %v2763_v43  ;;  %v2778_v58 = vsub.f32 %v15778_v23, %v12052_v22  ;;  %v12082_v43 = vrot.slane %v11905_v17, %v15774_v46  ;;  %v15783_v23 = vld [vmem:[#allocation3_spill] sm:$0xff] }
 0x563   :  { %v2796_v60 = vsub.f32 %v15783_v23, %v12052_v22  ;;  %v15784_v17 = vld [vmem:[#allocation7_spill] sm:$0xff]  ;;  %v2813_v21 = vsub.f32 %v15788_v6, %v12049_v16  ;;  %v2819_v23 = vsub.f32 %v11448_v40, %v12049_v16 }
 0x564   :  { %8522 = vrsqrt.f32 %v2825_v56  ;;  %v2801_v46 = vsub.f32 %v15784_v17, %v12049_v16  ;;  %v15789_v17 = vld [vmem:[#allocation39_spill] sm:$0xff] }
 0x565   :  { %8524 = vrsqrt.f32 %v2826_v57  ;;  %v15779_v57 = vld [vmem:[#allocation35_spill] sm:$0xff]  ;;  %v2814_v63 = vsub.f32 %v15789_v17, %v12052_v22 }
 0x566   :  { %v2784_v11 = vsub.f32 %v15779_v57, %v12052_v22  ;;  %v2807_v57 = vsub.f32 %v15785_v3, %v12049_v16  ;;  %v15790_v3 = vld [vmem:[#allocation31_spill] sm:$0xff] }
 0x56e   :  { %v8523_v56 = vpop.eup %8522 }
 0x56f   :  { %v8525_v20 = vpop.eup %8524  ;;  %v2862_v1 = vmul.f32 %v8523_v56, %v2838_v10  ;;  %v2865_v41 = vmul.f32 %v8523_v56, %v2850_v7 }
 0x570   :  { %v2863_v59 = vmul.f32 %v8525_v20, %v2842_v8  ;;  %v2820_v8 = vsub.f32 %v15790_v3, %v12052_v22  ;;  %v2866_v50 = vmul.f32 %v8525_v20, %v2854_v48 }
 0x571   :  { %v2874_v10 = vrot.slane %v2862_v1, %v15766_v38 }
 0x572   :  { %v2878_v33 = vrot.slane %v2863_v59, %v15766_v38  ;;  %v12119_v59 = vrot.slane %v2866_v50, %v15766_v38 }
 0x573   :  { %v2892_v39 = vmul.f32 %v2874_v10, %v2777_v9  ;;  %v2898_v6 = vmul.f32 %v2874_v10, %v2783_v19  ;;  %v2904_v25 = vmul.f32 %v2874_v10, %v2789_v2  ;;  %v2910_v1 = vmul.f32 %v2874_v10, %v2795_v24 }
 0x574   :  { %v2893_v27 = vmul.f32 %v2878_v33, %v2778_v58  ;;  %v2899_v28 = vmul.f32 %v2878_v33, %v2784_v11  ;;  %v2905_v40 = vmul.f32 %v2878_v33, %v2790_v51  ;;  %v2911_v31 = vmul.f32 %v2878_v33, %v2796_v60 }
 0x575   :  { %v2971_v17 = vadd.f32 %v12064_v29, %v2892_v39  ;;  %v2977_v42 = vadd.f32 %v12064_v29, %v2898_v6  ;;  %v2983_v7 = vadd.f32 %v12064_v29, %v2904_v25  ;;  %v2989_v20 = vadd.f32 %v12064_v29, %v2910_v1 }
 0x576   :  { %v2972_v4 = vadd.f32 %v12068_v13, %v2893_v27  ;;  %v2978_v2 = vadd.f32 %v12068_v13, %v2899_v28  ;;  %v2984_v48 = vadd.f32 %v12068_v13, %v2905_v40  ;;  %v2990_v60 = vadd.f32 %v12068_v13, %v2911_v31 }
 0x577   :  { %v7810_v11 = vpack.c.bf16 %v2977_v42, %v2971_v17  ;;  %v2916_v9 = vmul.f32 %v2874_v10, %v2801_v46  ;;  %v2922_v39 = vmul.f32 %v2874_v10, %v2807_v57  ;;  %v7814_v58 = vpack.c.bf16 %v2989_v20, %v2983_v7  ;;  %v15796_v7 = vld [vmem:[#allocation48_spill] sm:$0xff] }
 0x578   :  { %v7828_v19 = vpack.c.bf16 %v2978_v2, %v2972_v4  ;;  %v2917_v56 = vmul.f32 %v2878_v33, %v2802_v52  ;;  %v2923_v25 = vmul.f32 %v2878_v33, %v2808_v37  ;;  %v2928_v51 = vmul.f32 %v2874_v10, %v2813_v21  ;;  %v15797_v20 = vld [vmem:[#allocation52_spill] sm:$0xff] }
 0x579   :  { %7811 = vmatprep.subr.bf16.mxu0 %v7810_v11  ;;  %v2995_v24 = vadd.f32 %v12064_v29, %v2916_v9  ;;  %v3001_v50 = vadd.f32 %v12064_v29, %v2922_v39  ;;  %v2934_v27 = vmul.f32 %v2874_v10, %v2819_v23  ;;  %v12128_v28 = vrot.slane %v2865_v41, %v15766_v38  ;;  %v15799_v9 = vld [vmem:[#allocation40_spill] sm:$0xff]  ;;  %v15800_v39 = vld [vmem:[#allocation43_spill] sm:$0xff] }
 0x57a   :  { %7829 = vmatpush1.bf16.msra.mxu1 %v7828_v19  ;;  %v15791_v31 = vpack.c.bf16 %v11960_v62, %v11957_v45  ;;  %v2787_v42 = vsub.f32 %v11473_v5, %v12052_v22  ;;  %v2780_v37 = vsub.f32 %v11468_v14, %v12049_v16  ;;  %v15792_v52 = vpack.c.bf16 %v11964_v53, %v11962_v30 }
 0x57b   :  { %v2996_v21 = vadd.f32 %v12068_v13, %v2917_v56  ;;  %v3002_v41 = vadd.f32 %v12068_v13, %v2923_v25  ;;  %v2786_v46 = vsub.f32 %v11461_v15, %v12049_v16  ;;  %v7832_v45 = vpack.c.bf16 %v2990_v60, %v2984_v48  ;;  %v15802_v56 = vld [vmem:[#allocation44_spill] sm:$0xff] }
 0x57c   :  { %7813 = vmatpush1.bf16.msra.mxu0 %v15791_v31  ;;  %7831 = vmatprep.subr.bf16.mxu1 %v15792_v52  ;;  %v7818_v62 = vpack.c.bf16 %v3001_v50, %v2995_v24  ;;  %v2929_v57 = vmul.f32 %v2878_v33, %v2814_v63  ;;  %v2935_v10 = vmul.f32 %v2878_v33, %v2820_v8  ;;  %v15803_v24 = vld [vmem:[#allocation47_spill] sm:$0xff]  ;;  %v15805_v52 = vld [vmem:[#allocation38_spill] sm:$0xff] }
 0x57d   :  { %7815 = vmatprep.subr.bf16.mxu0 %v7814_v58  ;;  %v3007_v5 = vadd.f32 %v12064_v29, %v2928_v51  ;;  %v3013_v14 = vadd.f32 %v12064_v29, %v2934_v27  ;;  %v2896_v23 = vmul.f32 %v12119_v59, %v2781_v47  ;;  %v2902_v30 = vmul.f32 %v12119_v59, %v2787_v42  ;;  %v12194_v58 = vld [vmem:[%s15308_s3 + $0x40] sm:$0xff] }
 0x57e   :  { %7833 = vmatpush1.bf16.msra.mxu1 %v7832_v45  ;;  %v15793_v53 = vpack.c.bf16 %v11970_v12, %v11967_v55  ;;  %v2895_v3 = vmul.f32 %v12128_v28, %v2780_v37  ;;  %v2793_v15 = vsub.f32 %v11501_v61, %v12052_v22  ;;  %v2799_v63 = vsub.f32 %v11563_v26, %v12052_v22  ;;  %v15804_v51 = vld [vmem:[#allocation30_spill] sm:$0xff] }
 0x57f   :  { %v15794_v29 = vpack.c.bf16 %v11983_v49, %v11981_v34  ;;  %v7836_v8 = vpack.c.bf16 %v3002_v41, %v2996_v21  ;;  %v2901_v33 = vmul.f32 %v12128_v28, %v2786_v46  ;;  %v2792_v55 = vsub.f32 %v11491_v44, %v12049_v16 }
 0x580   :  { %7817 = vmatpush1.bf16.msra.mxu0 %v15793_v53  ;;  %v3008_v12 = vadd.f32 %v12068_v13, %v2929_v57  ;;  %v3014_v47 = vadd.f32 %v12068_v13, %v2935_v10  ;;  %v2908_v61 = vmul.f32 %v12119_v59, %v2793_v15  ;;  %v2914_v6 = vmul.f32 %v12119_v59, %v2799_v63  ;;  %v15808_v53 = vld [vmem:[#allocation51_spill] sm:$0xff] }
 0x581   :  { %7835 = vmatprep.subr.bf16.mxu1 %v15794_v29  ;;  %7819 = vmatprep.subr.bf16.mxu0 %v7818_v62  ;;  %v7822_v26 = vpack.c.bf16 %v3013_v14, %v3007_v5  ;;  %v2975_v1 = vadd.f32 %v12072_v54, %v2896_v23  ;;  %v2981_v34 = vadd.f32 %v12072_v54, %v2902_v30  ;;  %v7569_v14 = vld [vmem:[%s15308_s3 + $0x48] sm:$0xff]  ;;  %v15807_v23 = vld [vmem:[#allocation14_spill] sm:$0xff] }
 0x582   :  { %v2798_v49 = vsub.f32 %v11508_v18, %v12049_v16  ;;  %7837 = vmatpush1.bf16.msra.mxu1 %v7836_v8  ;;  %v15795_v44 = vpack.c.bf16 %v11989_v32, %v11986_v35  ;;  %v2974_v40 = vadd.f32 %v12082_v43, %v2895_v3  ;;  %v2805_v13 = vsub.f32 %v11579_v36, %v12052_v22 }
 0x583   :  { %v2811_v17 = vsub.f32 %v11611_v0, %v12052_v22  ;;  %v15798_v4 = vpack.c.bf16 %v15796_v7, %v15797_v20  ;;  %v2980_v18 = vadd.f32 %v12082_v43, %v2901_v33  ;;  %v2907_v2 = vmul.f32 %v12128_v28, %v2792_v55 }
 0x584   :  { %7821 = vmatpush1.bf16.msra.mxu0 %v15795_v44  ;;  %v2913_v35 = vmul.f32 %v12128_v28, %v2798_v49  ;;  %v7840_v32 = vpack.c.bf16 %v3014_v47, %v3008_v12  ;;  %v2987_v48 = vadd.f32 %v12072_v54, %v2908_v61  ;;  %v2993_v11 = vadd.f32 %v12072_v54, %v2914_v6  ;;  %v7570_v12 = vld [vmem:[%s15308_s3 + $0x50] sm:$0xff]  ;;  %v7571_v6 = vld [vmem:[%s15308_s3 + $0x58] sm:$0xff] }
 0x585   :  { %7839 = vmatprep.subr.bf16.mxu1 %v15798_v4  ;;  %7823 = vmatprep.subr.bf16.mxu0 %v7822_v26  ;;  %v2920_v36 = vmul.f32 %v12119_v59, %v2805_v13  ;;  %v7842_v60 = vpack.c.bf16 %v2981_v34, %v2975_v1  ;;  %v2926_v0 = vmul.f32 %v12119_v59, %v2811_v17  ;;  %v7573_v1 = vld [vmem:[%s15308_s3 + $0x68] sm:$0xff]  ;;  %v7574_v34 = vld [vmem:[%s15308_s3 + $0x70] sm:$0xff]  ;;  %v7575_v49 = vld [vmem:[%s15308_s3 + $0x78] sm:$0xff] }
 0x586   :  { %7841 = vmatpush1.bf16.msra.mxu1 %v7840_v32  ;;  %v15801_v19 = vpack.c.bf16 %v15799_v9, %v15800_v39  ;;  %v2804_v25 = vsub.f32 %v15802_v56, %v12049_v16  ;;  %v2810_v50 = vsub.f32 %v15803_v24, %v12049_v16  ;;  %v2817_v27 = vsub.f32 %v15804_v51, %v12052_v22 }
 0x587   :  { %v7844_v31 = vpack.c.bf16 %v2980_v18, %v2974_v40  ;;  %v2986_v42 = vadd.f32 %v12082_v43, %v2907_v2  ;;  %v2992_v37 = vadd.f32 %v12082_v43, %v2913_v35  ;;  %v2823_v21 = vsub.f32 %v15805_v52, %v12052_v22 }
 0x588   :  { %7825 = vmatpush1.bf16.msra.mxu0 %v15801_v19  ;;  %v7846_v41 = vpack.c.bf16 %v2993_v11, %v2987_v48  ;;  %v2999_v46 = vadd.f32 %v12072_v54, %v2920_v36  ;;  %v2919_v45 = vmul.f32 %v12128_v28, %v2804_v25  ;;  %v2925_v62 = vmul.f32 %v12128_v28, %v2810_v50 }
 0x589   :  { %7843 = vmatprep.subr.bf16.mxu0 %v7842_v60  ;;  %7622 = vmatmul.mubr.msk.f32.vlgmr.msra.gmra.mrb[54].mxu1 %vm1256_vm9, %v12194_v58  ;;  %v3005_v57 = vadd.f32 %v12072_v54, %v2926_v0  ;;  %v2932_v10 = vmul.f32 %v12119_v59, %v2817_v27  ;;  %v2938_v5 = vmul.f32 %v12119_v59, %v2823_v21  ;;  %v15806_v22 = vmov 0.0  }
 0x58a   :  { %3606 = vmatprep.mubr.f32.mxu1 %v15806_v22  ;;  %v2816_v30 = vsub.f32 %v15807_v23, %v12049_v16  ;;  %v2822_v3 = vsub.f32 %v15808_v53, %v12049_v16  ;;  %v7848_v15 = vpack.c.bf16 %v2992_v37, %v2986_v42  ;;  %v2998_v63 = vadd.f32 %v12082_v43, %v2919_v45 }
 0x58b   :  { %7614 = vmatmul.mubr.msk.f32.vlgmr.msra.gmra.mrb[42].mxu0 %vm1256_vm9, %v12194_v58  ;;  %v3004_v59 = vadd.f32 %v12082_v43, %v2925_v62  ;;  %v7850_v33 = vpack.c.bf16 %v3005_v57, %v2999_v46  ;;  %v3011_v55 = vadd.f32 %v12072_v54, %v2932_v10  ;;  %v3017_v16 = vadd.f32 %v12072_v54, %v2938_v5  ;;  %v12352_v10 = vpop.permute.xlu1 %3763 }
 0x58c   :  { %7845 = vmatpush1.bf16.msra.mxu0 %v7844_v31  ;;  %3493 = vmatprep.mubr.f32.mxu0 %v15806_v22  ;;  %v2931_v29 = vmul.f32 %v12128_v28, %v2816_v30  ;;  %v2937_v8 = vmul.f32 %v12128_v28, %v2822_v3 }
 0x58d   :  { %7847 = vmatprep.subr.bf16.mxu0 %v7846_v41  ;;  %7623 = vmatmul.mubr.msk.f32.gmra.mrb[56].mxu1 %vm1256_vm9, %v7569_v14  ;;  %v7852_v28 = vpack.c.bf16 %v3004_v59, %v2998_v63  ;;  %v7854_v54 = vpack.c.bf16 %v3017_v16, %v3011_v55 }
 0x58e   :  { %3612 = vmatprep.mubr.f32.mxu1 %v15806_v22  ;;  %v3010_v47 = vadd.f32 %v12082_v43, %v2931_v29  ;;  %v3016_v61 = vadd.f32 %v12082_v43, %v2937_v8  ;;  %v7572_v43 = vld [vmem:[%s15308_s3 + $0x60] sm:$0xff] }
 0x58f   :  { %7615 = vmatmul.mubr.msk.f32.gmra.mrb[44].mxu0 %vm1256_vm9, %v7569_v14 }
 0x590   :  { %7849 = vmatpush1.bf16.msra.mxu0 %v7848_v15  ;;  %3499 = vmatprep.mubr.f32.mxu0 %v15806_v22  ;;  %v7856_v26 = vpack.c.bf16 %v3016_v61, %v3010_v47  ;;  %v12369_v15 = vpop.permute.xlu1 %3771 }
 0x591   :  { %7851 = vmatprep.subr.bf16.mxu0 %v7850_v33  ;;  %7624 = vmatmul.mubr.msk.f32.gmra.mrb[58].mxu1 %vm1256_vm9, %v7570_v12 }
 0x592   :  { %3618 = vmatprep.mubr.f32.mxu1 %v15806_v22 }
 0x593   :  { %7616 = vmatmul.mubr.msk.f32.gmra.mrb[46].mxu0 %vm1256_vm9, %v7570_v12 }
 0x594   :  { %7853 = vmatpush1.bf16.msra.mxu0 %v7852_v28  ;;  %3505 = vmatprep.mubr.f32.mxu0 %v15806_v22 }
 0x595   :  { %7855 = vmatprep.subr.bf16.mxu0 %v7854_v54  ;;  %7625 = vmatmul.mubr.msk.f32.gmra.mrb[60].mxu1 %vm1256_vm9, %v7571_v6  ;;  %v12391_v54 = vpop.permute.xlu1 %3775 }
 0x596   :  { %3624 = vmatprep.mubr.f32.mxu1 %v15806_v22 }
 0x597   :  { %7617 = vmatmul.mubr.msk.f32.gmra.mrb[48].mxu0 %vm1256_vm9, %v7571_v6 }
 0x598   :  { %7857 = vmatpush1.bf16.msra.mxu0 %v7856_v26  ;;  %3511 = vmatprep.mubr.f32.mxu0 %v15806_v22 }
 0x599   :  { %7626 = vmatmul.mubr.msk.f32.gmra.mrb[62].mxu1 %vm1256_vm9, %v7572_v43 }
 0x59a   :  { %3630 = vmatprep.mubr.f32.mxu1 %v15806_v22 }
 0x59b   :  { %7618 = vmatmul.mubr.msk.f32.gmra.mrb[50].mxu0 %vm1256_vm9, %v7572_v43 }
 0x59c   :  { %3517 = vmatprep.mubr.f32.mxu0 %v15806_v22 }
 0x59d   :  { %7627 = vmatmul.mubr.msk.f32.gmra.mrb[64].mxu1 %vm1256_vm9, %v7573_v1 }
 0x59e   :  { %3636 = vmatprep.mubr.f32.mxu1 %v15806_v22 }
 0x59f   :  { %7619 = vmatmul.mubr.msk.f32.gmra.mrb[52].mxu0 %vm1256_vm9, %v7573_v1 }
 0x5a0   :  { %3523 = vmatprep.mubr.f32.mxu0 %v15806_v22 }
 0x5a1   :  { %7628 = vmatmul.mubr.msk.f32.gmra.mrb[66].mxu1 %vm1256_vm9, %v7574_v34 }
 0x5a2   :  { %3642 = vmatprep.mubr.f32.mxu1 %v15806_v22 }
 0x5a3   :  { %7620 = vmatmul.mubr.msk.f32.gmra.mrb[54].mxu0 %vm1256_vm9, %v7574_v34 }
 0x5a4   :  { %3529 = vmatprep.mubr.f32.mxu0 %v15806_v22 }
 0x5a5   :  { %7629 = vmatmul.mubr.msk.f32.gmra.mrb[68].mxu1 %vm1256_vm9, %v7575_v49 }
 0x5a6   :  { %5026 = vmatprep.mubr.f32.mxu1 %v15806_v22 }
 0x5a7   :  { %7621 = vmatmul.mubr.msk.f32.gmra.mrb[56].mxu0 %vm1256_vm9, %v7575_v49 }
 0x5a8   :  { %3713 = vmatprep.mubr.f32.mxu0 %v15806_v22 }
 0x5ab   :  { %7630 = vmatmul.mubr.msk.f32.vlgmr.msra.gmra.mrb[58].mxu0 %vm1256_vm9, %v12194_v58 }
 0x5ac   :  { %3719 = vmatprep.mubr.f32.mxu0 %v15806_v22 }
 0x5af   :  { %7631 = vmatmul.mubr.msk.f32.gmra.mrb[60].mxu0 %vm1256_vm9, %v7569_v14  ;;  %v12356_v14 = vpop.permute.xlu0 %3767 }
 0x5b0   :  { %3725 = vmatprep.mubr.f32.mxu0 %v15806_v22 }
 0x5b3   :  { %7632 = vmatmul.mubr.msk.f32.gmra.mrb[62].mxu0 %vm1256_vm9, %v7570_v12 }
 0x5b4   :  { %3731 = vmatprep.mubr.f32.mxu0 %v15806_v22 }
 0x5b7   :  { %7633 = vmatmul.mubr.msk.f32.gmra.mrb[64].mxu0 %vm1256_vm9, %v7571_v6 }
 0x5b8   :  { %3737 = vmatprep.mubr.f32.mxu0 %v15806_v22 }
 0x5bb   :  { %7634 = vmatmul.mubr.msk.f32.gmra.mrb[66].mxu0 %vm1256_vm9, %v7572_v43 }
 0x5bc   :  { %3743 = vmatprep.mubr.f32.mxu0 %v15806_v22 }
 0x5bf   :  { %7635 = vmatmul.mubr.msk.f32.gmra.mrb[68].mxu0 %vm1256_vm9, %v7573_v1 }
 0x5c0   :  { %3749 = vmatprep.mubr.f32.mxu0 %v15806_v22 }
 0x5c3   :  { %7636 = vmatmul.mubr.msk.f32.gmra.mrb[70].mxu0 %vm1256_vm9, %v7574_v34 }
 0x5c4   :  { %3755 = vmatprep.mubr.f32.mxu0 %v15806_v22 }
 0x5c7   :  { %7637 = vmatmul.mubr.msk.f32.gmra.mrb[72].mxu0 %vm1256_vm9, %v7575_v49 }
 0x5c8   :  { %5252 = vmatprep.mubr.f32.mxu0 %v15806_v22 }
 0x65c   :  { %v3602_v44 = vpop.f32.mrb[54].mxu1 }
 0x65d   :  { %v12298_v13 = vpop.f32.mrb[55].mxu1  ;;  %v12361_v30 = vadd.f32 %v12352_v10, %v3602_v44 }
 0x65e   :  { %v12296_v40 = vpop.f32.mrb[42].mxu0  ;;  %15810 = vst [vmem:[#allocation25_spill] sm:$0xff] %v12298_v13 }
 0x65f   :  { %15809 = vst [vmem:[#allocation27_spill] sm:$0xff] %v12296_v40  ;;  %v3491_v17 = vpop.f32.mrb[43].mxu0  ;;  %v3844_v29 = vmin.f32 %v12361_v30, 20.0  ;;  %vm4084_vm1 = vcmp.gt.f32.partialorder %v12361_v30, 20.0 }
 0x660   :  { %v3608_v7 = vpop.f32.mrb[56].mxu1  ;;  %v12364_v53 = vadd.f32 %v12352_v10, %v3491_v17 }
 0x661   :  { %v12302_v4 = vpop.f32.mrb[57].mxu1  ;;  %v12367_v3 = vadd.f32 %v12356_v14, %v3608_v7  ;;  %v3894_v47 = vmul.f32 1.442695, %v3844_v29 }
 0x662   :  { %v12300_v20 = vpop.f32.mrb[44].mxu0  ;;  %15812 = vst [vmem:[#allocation26_spill] sm:$0xff] %v12302_v4  ;;  %v3843_v8 = vmin.f32 %v12364_v53, 20.0  ;;  %vm4083_vm8 = vcmp.gt.f32.partialorder %v12364_v53, 20.0 }
 0x663   :  { %15811 = vst [vmem:[#allocation24_spill] sm:$0xff] %v12300_v20  ;;  %v3497_v18 = vpop.f32.mrb[45].mxu0  ;;  %v3850_v33 = vmin.f32 %v12367_v3, 20.0  ;;  %8526 = vpow2.f32 %v3894_v47  ;;  %vm4090_vm11 = vcmp.gt.f32.partialorder %v12367_v3, 20.0 }
 0x664   :  { %v3614_v2 = vpop.f32.mrb[58].mxu1  ;;  %v12379_v55 = vadd.f32 %v12356_v14, %v3497_v18  ;;  %v3892_v6 = vmul.f32 1.442695, %v3843_v8 }
 0x665   :  { %v12306_v32 = vpop.f32.mrb[59].mxu1  ;;  %v12384_v12 = vadd.f32 %v12369_v15, %v3614_v2  ;;  %v3906_v26 = vmul.f32 1.442695, %v3850_v33 }
 0x666   :  { %v12304_v35 = vpop.f32.mrb[46].mxu0  ;;  %15814 = vst [vmem:[#allocation18_spill] sm:$0xff] %v12306_v32  ;;  %v3849_v43 = vmin.f32 %v12379_v55, 20.0  ;;  %8528 = vpow2.f32 %v3892_v6  ;;  %v12415_v6 = vpop.permute.xlu0 %3779  ;;  %vm4089_vm12 = vcmp.gt.f32.partialorder %v12379_v55, 20.0 }
 0x667   :  { %15813 = vst [vmem:[#allocation15_spill] sm:$0xff] %v12304_v35  ;;  %v3503_v48 = vpop.f32.mrb[47].mxu0  ;;  %v3856_v34 = vmin.f32 %v12384_v12, 20.0  ;;  %8530 = vpow2.f32 %v3906_v26  ;;  %vm4096_vm13 = vcmp.gt.f32.partialorder %v12384_v12, 20.0 }
 0x668   :  { %v3620_v11 = vpop.f32.mrb[60].mxu1  ;;  %v12389_v61 = vadd.f32 %v12369_v15, %v3503_v48  ;;  %v3904_v7 = vmul.f32 1.442695, %v3849_v43 }
 0x669   :  { %v12310_v60 = vpop.f32.mrb[61].mxu1  ;;  %v12398_v49 = vadd.f32 %v12391_v54, %v3620_v11  ;;  %v3918_v2 = vmul.f32 1.442695, %v3856_v34 }
 0x66a   :  { %v12308_v36 = vpop.f32.mrb[48].mxu0  ;;  %15816 = vst [vmem:[#allocation45_spill] sm:$0xff] %v12310_v60  ;;  %v3855_v17 = vmin.f32 %v12389_v61, 20.0  ;;  %8532 = vpow2.f32 %v3904_v7  ;;  %vm4095_vm14 = vcmp.gt.f32.partialorder %v12389_v61, 20.0 }
 0x66b   :  { %15815 = vst [vmem:[#allocation20_spill] sm:$0xff] %v12308_v36  ;;  %v3509_v0 = vpop.f32.mrb[49].mxu0  ;;  %v3862_v48 = vmin.f32 %v12398_v49, 20.0  ;;  %8534 = vpow2.f32 %v3918_v2  ;;  %vm4102_vm0 = vcmp.gt.f32.partialorder %v12398_v49, 20.0 }
 0x66c   :  { %v12312_v9 = vpop.f32.mrb[62].mxu1  ;;  %v3916_v8 = vmul.f32 1.442695, %v3855_v17  ;;  %v12409_v11 = vadd.f32 %v12391_v54, %v3509_v0 }
 0x66d   :  { %v12316_v19 = vpop.f32.mrb[63].mxu1  ;;  %v3930_v47 = vmul.f32 1.442695, %v3862_v48  ;;  %v8527_v26 = vpop.eup %8526  ;;  %v12420_v17 = vadd.f32 %v12415_v6, %v12312_v9 }
 0x66e   :  { %v12314_v39 = vpop.f32.mrb[50].mxu0  ;;  %15818 = vst [vmem:[#allocation11_spill] sm:$0xff] %v12316_v19  ;;  %8536 = vpow2.f32 %v3916_v8  ;;  %v3861_v43 = vmin.f32 %v12409_v11, 20.0  ;;  %v3988_v0 = vadd.f32 2.0, %v8527_v26  ;;  %v12422_v48 = vpop.permute.xlu1 %3783  ;;  %vm4101_vm15 = vcmp.gt.f32.partialorder %v12409_v11, 20.0 }
 0x66f   :  { %15817 = vst [vmem:[#allocation46_spill] sm:$0xff] %v12314_v39  ;;  %v12318_v58 = vpop.f32.mrb[51].mxu0  ;;  %8538 = vpow2.f32 %v3930_v47  ;;  %v3868_v8 = vmin.f32 %v12420_v17, 20.0  ;;  %vm4108_vm2 = vcmp.gt.f32.partialorder %v12420_v17, 20.0 }
 0x670   :  { %v12320_v56 = vpop.f32.mrb[64].mxu1  ;;  %v8529_v34 = vpop.eup %8528  ;;  %v12429_v47 = vadd.f32 %v12415_v6, %v12318_v58 }
 0x671   :  { %v12324_v24 = vpop.f32.mrb[65].mxu1  ;;  %v8531_v38 = vpop.eup %8530  ;;  %v3987_v7 = vadd.f32 2.0, %v8529_v34  ;;  %v12433_v9 = vadd.f32 %v12422_v48, %v12320_v56  ;;  %v3942_v39 = vmul.f32 1.442695, %v3868_v8 }
 0x672   :  { %v12322_v25 = vpop.f32.mrb[52].mxu0  ;;  %15820 = vst [vmem:[#allocation13_spill] sm:$0xff] %v12324_v24  ;;  %v3994_v2 = vadd.f32 2.0, %v8531_v38  ;;  %v12425_v24 = vmul.f32 %v8527_v26, %v3988_v0  ;;  %v3867_v0 = vmin.f32 %v12429_v47, 20.0  ;;  %vm4107_vm3 = vcmp.gt.f32.partialorder %v12429_v47, 20.0 }
 0x673   :  { %15819 = vst [vmem:[#allocation12_spill] sm:$0xff] %v12322_v25  ;;  %v12326_v50 = vpop.f32.mrb[53].mxu0  ;;  %v4035_v19 = vmul.f32 %v8529_v34, %v3987_v7  ;;  %v3874_v58 = vmin.f32 %v12433_v9, 20.0  ;;  %vm4114_vm4 = vcmp.gt.f32.partialorder %v12433_v9, 20.0 }
 0x674   :  { %v12328_v51 = vpop.f32.mrb[66].mxu1  ;;  %v4132_v32 = vadd.f32 2.0, %v12425_v24  ;;  %v3940_v7 = vmul.f32 1.442695, %v3867_v0  ;;  %v12448_v13 = vadd.f32 %v12422_v48, %v12326_v50 }
 0x675   :  { %v12332_v31 = vpop.f32.mrb[67].mxu1  ;;  %v4131_v35 = vadd.f32 2.0, %v4035_v19  ;;  %v3954_v8 = vmul.f32 1.442695, %v3874_v58 }
 0x676   :  { %v12330_v27 = vpop.f32.mrb[54].mxu0  ;;  %15822 = vst [vmem:[#allocation42_spill] sm:$0xff] %v12332_v31  ;;  %v8533_v31 = vpop.eup %8532  ;;  %vm4113_vm5 = vcmp.gt.f32.partialorder %v12448_v13, 20.0 }
 0x677   :  { %15821 = vst [vmem:[#allocation29_spill] sm:$0xff] %v12330_v27  ;;  %v12334_v42 = vpop.f32.mrb[55].mxu0  ;;  %v3993_v25 = vadd.f32 2.0, %v8533_v31 }
 0x678   :  { %v12336_v37 = vpop.f32.mrb[68].mxu1 }
 0x679   :  { %v12340_v21 = vpop.f32.mrb[69].mxu1  ;;  %v12438_v34 = vmul.f32 %v8533_v31, %v3993_v25  ;;  %v12451_v31 = vpop.permute.xlu1 %3791 }
 0x67a   :  { %v12338_v52 = vpop.f32.mrb[56].mxu0  ;;  %15824 = vst [vmem:[#allocation9_spill] sm:$0xff] %v12340_v21  ;;  %v3928_v21 = vmul.f32 1.442695, %v3861_v43  ;;  %v4042_v43 = vmul.f32 %v8531_v38, %v3994_v2  ;;  %v12444_v2 = vpop.permute.xlu0 %3787  ;;  %15831 = vst [vmem:[#allocation35_spill] sm:$0xff] %v12451_v31 }
 0x67b   :  { %15823 = vst [vmem:[#allocation4_spill] sm:$0xff] %v12338_v52  ;;  %v12342_v41 = vpop.f32.mrb[57].mxu0  ;;  %v8535_v52 = vpop.eup %8534  ;;  %15830 = vst [vmem:[#allocation32_spill] sm:$0xff] %v12444_v2  ;;  %v4137_v25 = vadd.f32 2.0, %v12438_v34  ;;  %v12463_v50 = vadd.f32 %v12444_v2, %v12334_v42 }
 0x67c   :  { %v8537_v27 = vpop.eup %8536  ;;  %8540 = vpow2.f32 %v3928_v21  ;;  %v4000_v60 = vadd.f32 2.0, %v8535_v52  ;;  %v4138_v4 = vadd.f32 2.0, %v4042_v43 }
 0x67d   :  { %v8539_v36 = vpop.eup %8538  ;;  %v3999_v26 = vadd.f32 2.0, %v8537_v27  ;;  %8542 = vpow2.f32 %v3942_v39  ;;  %v3879_v0 = vmin.f32 %v12463_v50, 20.0  ;;  %vm4119_vm7 = vcmp.gt.f32.partialorder %v12463_v50, 20.0 }
 0x67e   :  { %v12344_v46 = vpop.f32.mrb[58].mxu0  ;;  %v12440_v21 = vmul.f32 %v8535_v52, %v4000_v60  ;;  %v4006_v56 = vadd.f32 2.0, %v8539_v36  ;;  %8544 = vrcp.f32 %v4132_v32  ;;  %v12468_v52 = vadd.f32 %v12451_v31, %v12336_v37 }
 0x67f   :  { %v12346_v45 = vpop.f32.mrb[59].mxu0  ;;  %v12442_v38 = vmul.f32 %v8537_v27, %v3999_v26  ;;  %8546 = vrcp.f32 %v4131_v35  ;;  %v12458_v27 = vadd.f32 %v12444_v2, %v12328_v51 }
 0x680   :  { %8548 = vrcp.f32 %v4138_v4  ;;  %v4144_v39 = vadd.f32 2.0, %v12440_v21  ;;  %v12454_v32 = vmul.f32 %v8539_v36, %v4006_v56  ;;  %v3873_v4 = vmin.f32 %v12448_v13, 20.0  ;;  %15832 = vst [vmem:[#allocation34_spill] sm:$0xff] %v12468_v52 }
 0x681   :  { %v4143_v35 = vadd.f32 2.0, %v12442_v38  ;;  %8550 = vpow2.f32 %v3940_v7  ;;  %v3880_v26 = vmin.f32 %v12458_v27, 20.0  ;;  %v3886_v56 = vmin.f32 %v12468_v52, 20.0 }
 0x682   :  { %v12348_v62 = vpop.f32.mrb[60].mxu0  ;;  %8552 = vpow2.f32 %v3954_v8  ;;  %v4150_v51 = vadd.f32 2.0, %v12454_v32  ;;  %v3952_v42 = vmul.f32 1.442695, %v3873_v4  ;;  %vm4120_vm6 = vcmp.gt.f32.partialorder %v12458_v27, 20.0 }
 0x683   :  { %v12350_v57 = vpop.f32.mrb[61].mxu0  ;;  %8554 = vrcp.f32 %v4137_v25  ;;  %v3966_v37 = vmul.f32 1.442695, %v3880_v26 }
 0x684   :  { %8556 = vrcp.f32 %v4144_v39  ;;  %v3964_v39 = vmul.f32 1.442695, %v3879_v0 }
 0x685   :  { %8558 = vrcp.f32 %v4143_v35 }
 0x686   :  { %v12354_v5 = vpop.f32.mrb[62].mxu0  ;;  %v8541_v60 = vpop.eup %8540  ;;  %8560 = vrcp.f32 %v4150_v51 }
 0x687   :  { %v12358_v23 = vpop.f32.mrb[63].mxu0  ;;  %v4005_v36 = vadd.f32 2.0, %v8541_v60  ;;  %v8543_v58 = vpop.eup %8542  ;;  %8562 = vpow2.f32 %v3952_v42 }
 0x688   :  { %v8545_v7 = vpop.eup %8544  ;;  %v4012_v40 = vadd.f32 2.0, %v8543_v58  ;;  %8564 = vpow2.f32 %v3966_v37 }
 0x689   :  { %v12474_v8 = vmul.f32 %v8541_v60, %v4005_v36  ;;  %v8547_v20 = vpop.eup %8546  ;;  %v4183_v2 = vmul.f32 %v8545_v7, %v12425_v24  ;;  %8566 = vpow2.f32 %v3964_v39 }
 0x68a   :  { %v12371_v63 = vpop.f32.mrb[64].mxu0  ;;  %v8549_v25 = vpop.eup %8548  ;;  %v4181_v4 = vmul.f32 %v8547_v20, %v4035_v19  ;;  %v12478_v60 = vmul.f32 %v8543_v58, %v4012_v40  ;;  %v12485_v20 = vadd.f32 %v12451_v31, %v12342_v41 }
 0x68b   :  { %v12373_v59 = vpop.f32.mrb[65].mxu0  ;;  %v4149_v35 = vadd.f32 2.0, %v12474_v8  ;;  %v4276_v42 = vmul.f32 %v4183_v2, %v12361_v30 }
 0x68d   :  { %v12505_v2 = vsel %vm4084_vm1, %v12361_v30, %v4276_v42 }
 0x68e   :  { %v12381_v16 = vpop.f32.mrb[66].mxu0  ;;  %15833 = vst [vmem:[#allocation5_spill] sm:$0xff] %v12505_v2 }
 0x68f   :  { %v12386_v28 = vpop.f32.mrb[67].mxu0 }
 0x692   :  { %v12394_v1 = vpop.f32.mrb[68].mxu0 }
 0x693   :  { %v12400_v44 = vpop.f32.mrb[69].mxu0 }
 0x694   :  { %15825 = vst [vmem:[#allocation10_spill] sm:$0xff] %v12400_v44 }
 0x696   :  { %v12403_v18 = vpop.f32.mrb[70].mxu0 }
 0x697   :  { %15826 = vst [vmem:[#allocation41_spill] sm:$0xff] %v12403_v18  ;;  %v12406_v29 = vpop.f32.mrb[71].mxu0  ;;  %v4195_v18 = vmul.f32 %v8549_v25, %v4042_v43 }
 0x698   :  { %15827 = vst [vmem:[#allocation49_spill] sm:$0xff] %v12406_v29 }
 0x699   :  { %v4282_v44 = vmul.f32 %v4195_v18, %v12367_v3 }
 0x69a   :  { %v12411_v33 = vpop.f32.mrb[72].mxu0 }
 0x69b   :  { %15828 = vst [vmem:[#allocation36_spill] sm:$0xff] %v12411_v33  ;;  %v12413_v22 = vpop.f32.mrb[73].mxu0  ;;  %v8551_v33 = vpop.eup %8550 }
 0x69c   :  { %15829 = vst [vmem:[#allocation2_spill] sm:$0xff] %v12413_v22  ;;  %v3978_v22 = vmul.f32 1.442695, %v3886_v56  ;;  %v8553_v29 = vpop.eup %8552  ;;  %v4011_v51 = vadd.f32 2.0, %v8551_v33  ;;  %v4275_v56 = vmul.f32 %v4181_v4, %v12364_v53 }
 0x69d   :  { %v8555_v52 = vpop.eup %8554  ;;  %v4018_v0 = vadd.f32 2.0, %v8553_v29 }
 0x69e   :  { %v8557_v36 = vpop.eup %8556  ;;  %8568 = vpow2.f32 %v3978_v22  ;;  %v4193_v40 = vmul.f32 %v8555_v52, %v12438_v34  ;;  %v4156_v22 = vadd.f32 2.0, %v12478_v60  ;;  %v12494_v18 = vmul.f32 %v8551_v33, %v4011_v51 }
 0x69f   :  { %v8559_v26 = vpop.eup %8558  ;;  %8570 = vrcp.f32 %v4149_v35  ;;  %v4207_v19 = vmul.f32 %v8557_v36, %v12440_v21  ;;  %v12498_v41 = vmul.f32 %v8553_v29, %v4018_v0  ;;  %v12502_v34 = vadd.f32 %v12352_v10, %v12344_v46 }
 0x6a0   :  { %v8561_v24 = vpop.eup %8560  ;;  %v4205_v43 = vmul.f32 %v8559_v26, %v12442_v38  ;;  %v12508_v52 = vsel %vm4083_vm8, %v12364_v53, %v4275_v56  ;;  %v12511_v33 = vsel %vm4090_vm11, %v12367_v3, %v4282_v44  ;;  %v3885_v38 = vmin.f32 %v12485_v20, 20.0 }
 0x6a1   :  { %v8563_v21 = vpop.eup %8562  ;;  %15834 = vst [vmem:[#allocation33_spill] sm:$0xff] %v12508_v52  ;;  %15835 = vst [vmem:[#allocation3_spill] sm:$0xff] %v12511_v33  ;;  %v4281_v58 = vmul.f32 %v4193_v40, %v12379_v55  ;;  %v4288_v29 = vmul.f32 %v4207_v19, %v12384_v12  ;;  %v4219_v7 = vmul.f32 %v8561_v24, %v12454_v32  ;;  %8572 = vrcp.f32 %v4156_v22 }
 0x6a2   :  { %v8565_v46 = vpop.eup %8564  ;;  %v4287_v30 = vmul.f32 %v4205_v43, %v12389_v61  ;;  %v4155_v53 = vadd.f32 2.0, %v12494_v18  ;;  %v12522_v3 = vadd.f32 %v12352_v10, %v12346_v45  ;;  %v4162_v37 = vadd.f32 2.0, %v12498_v41 }
 0x6a3   :  { %v8567_v44 = vpop.eup %8566  ;;  %v4017_v25 = vadd.f32 2.0, %v8563_v21  ;;  %v3846_v32 = vmin.f32 %v12502_v34, 20.0  ;;  %v4458_v35 = vmul.f32 %v12505_v2, %v12505_v2  ;;  %v4457_v4 = vmul.f32 %v12508_v52, %v12508_v52 }
 0x6a4   :  { %v4464_v36 = vmul.f32 %v12511_v33, %v12511_v33  ;;  %v3976_v45 = vmul.f32 1.442695, %v3885_v38  ;;  %v12536_v26 = vsel %vm4089_vm12, %v12379_v55, %v4281_v58  ;;  %v12541_v0 = vsel %vm4096_vm13, %v12384_v12, %v4288_v29 }
 0x6a5   :  { %15836 = vst [vmem:[#allocation7_spill] sm:$0xff] %v12536_v26  ;;  %15837 = vst [vmem:[#allocation28_spill] sm:$0xff] %v12541_v0  ;;  %v4294_v42 = vmul.f32 %v4219_v7, %v12398_v49  ;;  %v4024_v56 = vadd.f32 2.0, %v8565_v46  ;;  %v12547_v40 = vsel %vm4095_vm14, %v12389_v61, %v4287_v30  ;;  %8574 = vrcp.f32 %v4155_v53 }
 0x6a6   :  { %15838 = vst [vmem:[#allocation6_spill] sm:$0xff] %v12547_v40  ;;  %v4023_v19 = vadd.f32 2.0, %v8567_v44  ;;  %v3847_v22 = vmin.f32 %v12522_v3, 20.0  ;;  %8576 = vrcp.f32 %v4162_v37  ;;  %v12550_v55 = vmul.f32 %v8563_v21, %v4017_v25 }
 0x6a7   :  { %v3898_v43 = vmul.f32 1.442695, %v3846_v32  ;;  %v4404_v12 = vadd.f32 %v12511_v33, %v12505_v2  ;;  %v4530_v38 = vadd.f32 %v4464_v36, %v4458_v35  ;;  %8578 = vpow2.f32 %v3976_v45  ;;  %v15846_v2 = vld [vmem:[#allocation34_spill] sm:$0xff] }
 0x6a8   :  { %v8569_v39 = vpop.eup %8568  ;;  %v4463_v61 = vmul.f32 %v12536_v26, %v12536_v26  ;;  %v4470_v29 = vmul.f32 %v12541_v0, %v12541_v0  ;;  %v12562_v21 = vsel %vm4102_vm0, %v12398_v49, %v4294_v42  ;;  %v12564_v7 = vmul.f32 %v8565_v46, %v4024_v56 }
 0x6a9   :  { %v8571_v51 = vpop.eup %8570  ;;  %v4030_v24 = vadd.f32 2.0, %v8569_v39  ;;  %15839 = vst [vmem:[#allocation8_spill] sm:$0xff] %v12562_v21  ;;  %v4391_v30 = vadd.f32 %v12536_v26, %v12508_v52  ;;  %v12570_v53 = vmul.f32 %v8567_v44, %v4023_v19  ;;  %v3900_v37 = vmul.f32 1.442695, %v3847_v22 }
 0x6aa   :  { %v4217_v58 = vmul.f32 %v8571_v51, %v12474_v8  ;;  %v4469_v8 = vmul.f32 %v12547_v40, %v12547_v40  ;;  %v4161_v32 = vadd.f32 2.0, %v12550_v55  ;;  %8580 = vpow2.f32 %v3898_v43 }
 0x6ab   :  { %v8573_v25 = vpop.eup %8572  ;;  %v12573_v35 = vmul.f32 %v8569_v39, %v4030_v24  ;;  %v12577_v49 = vadd.f32 %v12356_v14, %v12348_v62  ;;  %v4405_v46 = vadd.f32 %v4404_v12, %v12541_v0  ;;  %v4476_v36 = vmul.f32 %v12562_v21, %v12562_v21 }
 0x6ac   :  { %v4293_v44 = vmul.f32 %v4217_v58, %v12409_v11  ;;  %v4517_v45 = vadd.f32 %v4463_v61, %v4457_v4  ;;  %v4531_v51 = vadd.f32 %v4530_v38, %v4470_v29  ;;  %v12585_v42 = vadd.f32 %v4391_v30, %v12547_v40  ;;  %v15853_v40 = vld [vmem:[#allocation2_spill] sm:$0xff] }
 0x6ad   :  { %v4168_v39 = vadd.f32 2.0, %v12564_v7  ;;  %v12589_v56 = vadd.f32 %v4405_v46, %v12562_v21  ;;  %v4231_v62 = vmul.f32 %v8573_v25, %v12478_v60  ;;  %v4167_v19 = vadd.f32 2.0, %v12570_v53 }
 0x6ae   :  { %8582 = vpow2.f32 %v3900_v37  ;;  %v12593_v22 = vadd.f32 %v4517_v45, %v4469_v8  ;;  %v4174_v24 = vadd.f32 2.0, %v12573_v35  ;;  %v3852_v4 = vmin.f32 %v12577_v49, 20.0 }
 0x6af   :  { %8584 = vrcp.f32 %v4161_v32  ;;  %v8575_v43 = vpop.eup %8574  ;;  %v12597_v12 = vadd.f32 %v4531_v51, %v4476_v36  ;;  %v12602_v38 = vsel %vm4101_vm15, %v12409_v11, %v4293_v44  ;;  %v12607_v60 = vadd.f32 %v12356_v14, %v12350_v57 }
 0x6b0   :  { %15840 = vst [vmem:[#allocation50_spill] sm:$0xff] %v12602_v38  ;;  %v8577_v58 = vpop.eup %8576  ;;  %8586 = vrcp.f32 %v4168_v39  ;;  %v3910_v61 = vmul.f32 1.442695, %v3852_v4  ;;  %v12611_v29 = vadd.f32 %v12369_v15, %v12354_v5  ;;  %v12615_v30 = vadd.f32 %v12369_v15, %v12358_v23 }
 0x6b1   :  { %v8579_v8 = vpop.eup %8578  ;;  %v4300_v11 = vmul.f32 %v4231_v62, %v12420_v17  ;;  %8588 = vrcp.f32 %v4167_v19  ;;  %v3853_v37 = vmin.f32 %v12607_v60, 20.0  ;;  %v12621_v57 = vadd.f32 %v12391_v54, %v12371_v63 }
 0x6b2   :  { %v4229_v25 = vmul.f32 %v8575_v43, %v12494_v18  ;;  %8590 = vrcp.f32 %v4174_v24  ;;  %v3858_v5 = vmin.f32 %v12611_v29, 20.0  ;;  %v3859_v23 = vmin.f32 %v12615_v30, 20.0 }
 0x6b3   :  { %v4243_v32 = vmul.f32 %v8577_v58, %v12498_v41  ;;  %8592 = vpow2.f32 %v3910_v61  ;;  %v3912_v46 = vmul.f32 1.442695, %v3853_v37  ;;  %v3864_v36 = vmin.f32 %v12621_v57, 20.0 }
 0x6b4   :  { %v8581_v44 = vpop.eup %8580  ;;  %v4029_v45 = vadd.f32 2.0, %v8579_v8  ;;  %v3922_v51 = vmul.f32 1.442695, %v3858_v5  ;;  %v3924_v63 = vmul.f32 1.442695, %v3859_v23  ;;  %v12631_v39 = vadd.f32 %v12391_v54, %v12373_v59 }
 0x6b5   :  { %8594 = vpow2.f32 %v3912_v46  ;;  %v3934_v18 = vmul.f32 1.442695, %v3864_v36  ;;  %v12635_v62 = vadd.f32 %v12415_v6, %v12381_v16  ;;  %v12639_v41 = vadd.f32 %v12415_v6, %v12386_v28 }
 0x6b6   :  { %v12644_v19 = vsel %vm4108_vm2, %v12420_v17, %v4300_v11  ;;  %8596 = vpow2.f32 %v3922_v51  ;;  %v3865_v24 = vmin.f32 %v12631_v39, 20.0  ;;  %v12649_v59 = vadd.f32 %v12422_v48, %v12394_v1 }
 0x6b7   :  { %15841 = vst [vmem:[#allocation39_spill] sm:$0xff] %v12644_v19  ;;  %v4299_v16 = vmul.f32 %v4229_v25, %v12429_v47  ;;  %v3990_v43 = vadd.f32 2.0, %v8581_v44  ;;  %8598 = vpow2.f32 %v3924_v63  ;;  %v3870_v28 = vmin.f32 %v12635_v62, 20.0 }
 0x6b8   :  { %v8583_v4 = vpop.eup %8582  ;;  %v4475_v61 = vmul.f32 %v12602_v38, %v12602_v38  ;;  %8600 = vpow2.f32 %v3934_v18  ;;  %v3936_v17 = vmul.f32 1.442695, %v3865_v24  ;;  %v3871_v11 = vmin.f32 %v12639_v41, 20.0 }
 0x6b9   :  { %v8585_v58 = vpop.eup %8584  ;;  %v4306_v37 = vmul.f32 %v4243_v32, %v12433_v9  ;;  %v12657_v5 = vmul.f32 %v8579_v8, %v4029_v45  ;;  %v3991_v1 = vadd.f32 2.0, %v8583_v4  ;;  %v3946_v23 = vmul.f32 1.442695, %v3870_v28 }
 0x6ba   :  { %v8587_v46 = vpop.eup %8586  ;;  %v4482_v25 = vmul.f32 %v12644_v19, %v12644_v19  ;;  %8602 = vpow2.f32 %v3936_v17  ;;  %v3948_v36 = vmul.f32 1.442695, %v3871_v11  ;;  %v3876_v51 = vmin.f32 %v12649_v59, 20.0 }
 0x6bb   :  { %v8589_v63 = vpop.eup %8588  ;;  %v12665_v18 = vsel %vm4107_vm3, %v12429_v47, %v4299_v16  ;;  %v4241_v32 = vmul.f32 %v8585_v58, %v12550_v55  ;;  %v12668_v8 = vmul.f32 %v8581_v44, %v3990_v43  ;;  %8604 = vpow2.f32 %v3946_v23 }
 0x6bc   :  { %15842 = vst [vmem:[#allocation31_spill] sm:$0xff] %v12665_v18  ;;  %v12670_v45 = vpop.eup %8590  ;;  %v4393_v24 = vadd.f32 %v12585_v42, %v12602_v38  ;;  %v4519_v28 = vadd.f32 %v12593_v22, %v4475_v61  ;;  %v4407_v47 = vadd.f32 %v12589_v56, %v12644_v19  ;;  %v12680_v55 = vsel %vm4114_vm4, %v12433_v9, %v4306_v37 }
 0x6bd   :  { %v8593_v17 = vpop.eup %8592  ;;  %15843 = vst [vmem:[#allocation48_spill] sm:$0xff] %v12680_v55  ;;  %v4173_v44 = vadd.f32 2.0, %v12657_v5  ;;  %v12683_v16 = vmul.f32 %v8583_v4, %v3991_v1  ;;  %v4533_v43 = vadd.f32 %v12597_v12, %v4482_v25  ;;  %8606 = vpow2.f32 %v3948_v36 }
 0x6be   :  { %v4394_v42 = vadd.f32 %v4393_v24, %v12665_v18  ;;  %v3958_v22 = vmul.f32 1.442695, %v3876_v51  ;;  %v4481_v61 = vmul.f32 %v12665_v18, %v12665_v18  ;;  %v4305_v11 = vmul.f32 %v4241_v32, %v12448_v13  ;;  %v15844_v32 = vld [vmem:[#allocation10_spill] sm:$0xff] }
 0x6bf   :  { %v8595_v58 = vpop.eup %8594  ;;  %v4255_v9 = vmul.f32 %v8587_v46, %v12564_v7  ;;  %v4134_v56 = vadd.f32 2.0, %v12668_v8  ;;  %v4408_v37 = vadd.f32 %v4407_v47, %v12680_v55  ;;  %v4488_v12 = vmul.f32 %v12680_v55, %v12680_v55 }
 0x6c0   :  { %v8597_v4 = vpop.eup %8596  ;;  %v3996_v1 = vadd.f32 2.0, %v8593_v17  ;;  %v3997_v23 = vadd.f32 2.0, %v8595_v58  ;;  %v4253_v36 = vmul.f32 %v8589_v63, %v12570_v53  ;;  %8608 = vrcp.f32 %v4173_v44 }
 0x6c1   :  { %v8599_v25 = vpop.eup %8598  ;;  %v4135_v51 = vadd.f32 2.0, %v12683_v16  ;;  %v12701_v7 = vadd.f32 %v12422_v48, %v15844_v32  ;;  %v4002_v55 = vadd.f32 2.0, %v8597_v4  ;;  %8610 = vpow2.f32 %v3958_v22 }
 0x6c2   :  { %v8601_v46 = vpop.eup %8600  ;;  %v12703_v24 = vmul.f32 %v8593_v17, %v3996_v1  ;;  %v12705_v47 = vmul.f32 %v8595_v58, %v3997_v23  ;;  %v12710_v19 = vsel %vm4113_vm5, %v12448_v13, %v4305_v11  ;;  %v4312_v53 = vmul.f32 %v4255_v9, %v12458_v27 }
 0x6c3   :  { %15845 = vst [vmem:[#allocation52_spill] sm:$0xff] %v12710_v19  ;;  %8612 = vrcp.f32 %v4134_v56  ;;  %v4003_v63 = vadd.f32 2.0, %v8599_v25  ;;  %v12715_v17 = vmul.f32 %v8597_v4, %v4002_v55  ;;  %v4008_v58 = vadd.f32 2.0, %v8601_v46 }
 0x6c4   :  { %v8603_v44 = vpop.eup %8602  ;;  %v4140_v32 = vadd.f32 2.0, %v12703_v24  ;;  %v4141_v21 = vadd.f32 2.0, %v12705_v47  ;;  %v4311_v22 = vmul.f32 %v4253_v36, %v12463_v50  ;;  %8614 = vrcp.f32 %v4135_v51 }
 0x6c5   :  { %v8605_v1 = vpop.eup %8604  ;;  %v12718_v23 = vmul.f32 %v8599_v25, %v4003_v63  ;;  %v4009_v13 = vadd.f32 2.0, %v8603_v44  ;;  %v4146_v11 = vadd.f32 2.0, %v12715_v17  ;;  %v12721_v9 = vmul.f32 %v8601_v46, %v4008_v58 }
 0x6c6   :  { %8616 = vrcp.f32 %v4140_v32  ;;  %v3877_v56 = vmin.f32 %v12701_v7, 20.0  ;;  %v4520_v0 = vadd.f32 %v4519_v28, %v4481_v61  ;;  %v4534_v33 = vadd.f32 %v4533_v43, %v4488_v12  ;;  %v15848_v43 = vld [vmem:[#allocation41_spill] sm:$0xff] }
 0x6c7   :  { %vm4126_vm1 = vcmp.gt.f32.partialorder %v15846_v2, 20.0  ;;  %8618 = vrcp.f32 %v4141_v21  ;;  %v4147_v55 = vadd.f32 2.0, %v12718_v23  ;;  %v8607_v4 = vpop.eup %8606  ;;  %v4487_v25 = vmul.f32 %v12710_v19, %v12710_v19  ;;  %v15849_v21 = vld [vmem:[#allocation32_spill] sm:$0xff]  ;;  %v15850_v12 = vld [vmem:[#allocation49_spill] sm:$0xff] }
 0x6c8   :  { %v12731_v36 = vsel %vm4120_vm6, %v12458_v27, %v4312_v53  ;;  %v4267_v51 = vmul.f32 %v12670_v45, %v12573_v35  ;;  %v4014_v46 = vadd.f32 2.0, %v8605_v1  ;;  %8620 = vrcp.f32 %v4146_v11 }
 0x6c9   :  { %15847 = vst [vmem:[#allocation40_spill] sm:$0xff] %v12731_v36  ;;  %v4152_v28 = vadd.f32 2.0, %v12721_v9  ;;  %v12738_v61 = vadd.f32 %v15849_v21, %v15848_v43  ;;  %v12742_v63 = vadd.f32 %v15849_v21, %v15850_v12  ;;  %v12747_v27 = vsel %vm4119_vm7, %v12463_v50, %v4311_v22 }
 0x6ca   :  { %15851 = vst [vmem:[#allocation43_spill] sm:$0xff] %v12747_v27  ;;  %8622 = vrcp.f32 %v4147_v55  ;;  %v12749_v53 = vmul.f32 %v8603_v44, %v4009_v13  ;;  %v3960_v35 = vmul.f32 1.442695, %v3877_v56  ;;  %v8609_v45 = vpop.eup %8608  ;;  %v4395_v32 = vadd.f32 %v4394_v42, %v12710_v19  ;;  %v15852_v19 = vld [vmem:[#allocation36_spill] sm:$0xff] }
 0x6cb   :  { %v4409_v58 = vadd.f32 %v4408_v37, %v12731_v36  ;;  %v4015_v11 = vadd.f32 2.0, %v8607_v4  ;;  %v3882_v43 = vmin.f32 %v12738_v61, 20.0  ;;  %v8611_v18 = vpop.eup %8610  ;;  %v4494_v12 = vmul.f32 %v12731_v36, %v12731_v36 }
 0x6cc   :  { %v4318_v38 = vmul.f32 %v4267_v51, %v15846_v2  ;;  %v12757_v50 = vmul.f32 %v8605_v1, %v4014_v46  ;;  %v3883_v44 = vmin.f32 %v12742_v63, 20.0  ;;  %v4521_v13 = vadd.f32 %v4520_v0, %v4487_v25 }
 0x6cd   :  { %v8613_v22 = vpop.eup %8612  ;;  %v4493_v42 = vmul.f32 %v12747_v27, %v12747_v27  ;;  %8624 = vrcp.f32 %v4152_v28  ;;  %v3970_v37 = vmul.f32 1.442695, %v3882_v43  ;;  %v4153_v56 = vadd.f32 2.0, %v12749_v53 }
 0x6ce   :  { %8626 = vpow2.f32 %v3960_v35  ;;  %v3972_v55 = vmul.f32 1.442695, %v3883_v44  ;;  %v12765_v36 = vadd.f32 %v12451_v31, %v15852_v19  ;;  %v8615_v51 = vpop.eup %8614  ;;  %v12767_v1 = vmul.f32 %v8607_v4, %v4015_v11 }
 0x6cf   :  { %v4020_v46 = vadd.f32 2.0, %v8611_v18  ;;  %8628 = vpow2.f32 %v3970_v37  ;;  %v12771_v0 = vadd.f32 %v12451_v31, %v15853_v40  ;;  %v12776_v28 = vsel %vm4126_vm1, %v15846_v2, %v4318_v38 }
 0x6d0   :  { %v8617_v25 = vpop.eup %8616  ;;  %15854 = vst [vmem:[#allocation44_spill] sm:$0xff] %v12776_v28  ;;  %vm4125_vm8 = vcmp.gt.f32.partialorder %v12485_v20, 20.0  ;;  %v4265_v19 = vmul.f32 %v8609_v45, %v12657_v5  ;;  %v4158_v35 = vadd.f32 2.0, %v12757_v50  ;;  %v3888_v4 = vmin.f32 %v12765_v36, 20.0 }
 0x6d1   :  { %v8619_v11 = vpop.eup %8618  ;;  %vm4086_vm11 = vcmp.gt.f32.partialorder %v12502_v34, 20.0  ;;  %v4187_v40 = vmul.f32 %v8613_v22, %v12668_v8  ;;  %v4199_v43 = vmul.f32 %v8617_v25, %v12703_v24  ;;  %8630 = vpow2.f32 %v3972_v55 }
 0x6d2   :  { %v3889_v44 = vmin.f32 %v12771_v0, 20.0  ;;  %v12786_v2 = vadd.f32 %v4534_v33, %v4494_v12  ;;  %v4189_v38 = vmul.f32 %v8615_v51, %v12683_v16  ;;  %v4201_v5 = vmul.f32 %v8619_v11, %v12705_v47  ;;  %v8621_v37 = vpop.eup %8620 }
 0x6d3   :  { %v3982_v45 = vmul.f32 1.442695, %v3888_v4  ;;  %8632 = vrcp.f32 %v4153_v56  ;;  %v4159_v26 = vadd.f32 2.0, %v12767_v1  ;;  %v12791_v52 = vmul.f32 %v8611_v18, %v4020_v46 }
 0x6d4   :  { %v3984_v31 = vmul.f32 1.442695, %v3889_v44  ;;  %v8623_v8 = vpop.eup %8622  ;;  %v4396_v24 = vadd.f32 %v4395_v32, %v12747_v27  ;;  %v12794_v22 = vadd.f32 %v4521_v13, %v4493_v42  ;;  %v4410_v33 = vadd.f32 %v4409_v58, %v12776_v28 }
 0x6d5   :  { %8634 = vrcp.f32 %v4158_v35  ;;  %v4317_v16 = vmul.f32 %v4265_v19, %v12485_v20  ;;  %v4278_v47 = vmul.f32 %v4187_v40, %v12502_v34  ;;  %v4284_v12 = vmul.f32 %v4199_v43, %v12577_v49 }
 0x6d6   :  { %8636 = vpow2.f32 %v3982_v45  ;;  %v4279_v56 = vmul.f32 %v4189_v38, %v12522_v3  ;;  %v4285_v18 = vmul.f32 %v4201_v5, %v12607_v60  ;;  %v4211_v55 = vmul.f32 %v8621_v37, %v12715_v17 }
 0x6d7   :  { %8638 = vpow2.f32 %v3984_v31  ;;  %v8625_v32 = vpop.eup %8624  ;;  %vm4087_vm12 = vcmp.gt.f32.partialorder %v12522_v3, 20.0  ;;  %v4213_v58 = vmul.f32 %v8623_v8, %v12718_v23  ;;  %v4164_v13 = vadd.f32 2.0, %v12791_v52 }
 0x6d8   :  { %8640 = vrcp.f32 %v4159_v26  ;;  %v8627_v42 = vpop.eup %8626  ;;  %v4500_v51 = vmul.f32 %v12776_v28, %v12776_v28  ;;  %vm4092_vm13 = vcmp.gt.f32.partialorder %v12577_v49, 20.0  ;;  %vm4093_vm14 = vcmp.gt.f32.partialorder %v12607_v60, 20.0 }
 0x6d9   :  { %v4411_v46 = vrot.slane %v4410_v33, 4  ;;  %v8629_v25 = vpop.eup %8628  ;;  %v12813_v31 = vsel %vm4125_vm8, %v12485_v20, %v4317_v16  ;;  %v12816_v17 = vsel %vm4092_vm13, %v12577_v49, %v4284_v12  ;;  %vm4098_vm0 = vcmp.gt.f32.partialorder %v12611_v29, 20.0 }
 0x6da   :  { %15855 = vst [vmem:[#allocation47_spill] sm:$0xff] %v12813_v31  ;;  %vm4099_vm15 = vcmp.gt.f32.partialorder %v12615_v30, 20.0  ;;  %v12823_v26 = vsel %vm4086_vm11, %v12502_v34, %v4278_v47  ;;  %v12826_v23 = vsel %vm4087_vm12, %v12522_v3, %v4279_v56  ;;  %v12829_v19 = vsel %vm4093_vm14, %v12607_v60, %v4285_v18 }
 0x6db   :  { %v4290_v20 = vmul.f32 %v4211_v55, %v12611_v29  ;;  %vm4104_vm2 = vcmp.gt.f32.partialorder %v12621_v57, 20.0  ;;  %v8631_v49 = vpop.eup %8630  ;;  %v4291_v35 = vmul.f32 %v4213_v58, %v12615_v30  ;;  %v4223_v4 = vmul.f32 %v8625_v32, %v12721_v9 }
 0x6dc   :  { %8642 = vrcp.f32 %v4164_v13  ;;  %v4021_v11 = vadd.f32 2.0, %v8627_v42  ;;  %v4397_v34 = vadd.f32 %v4396_v24, %v12813_v31  ;;  %v4466_v3 = vmul.f32 %v12816_v17, %v12816_v17 }
 0x6dd   :  { %v4026_v40 = vadd.f32 2.0, %v8629_v25  ;;  %v4412_v43 = vadd.f32 %v4411_v46, %v4410_v33  ;;  %v8633_v60 = vpop.eup %8632  ;;  %v4499_v44 = vmul.f32 %v12813_v31, %v12813_v31  ;;  %v4460_v38 = vmul.f32 %v12823_v26, %v12823_v26 }
 0x6de   :  { %v4467_v5 = vmul.f32 %v12829_v19, %v12829_v19  ;;  %v12844_v9 = vmul.f32 %v8627_v42, %v4021_v11  ;;  %v4461_v37 = vmul.f32 %v12826_v23, %v12826_v23  ;;  %v12851_v8 = vsel %vm4098_vm0, %v12611_v29, %v4290_v20 }
 0x6df   :  { %v8635_v45 = vpop.eup %8634  ;;  %v12853_v24 = vmul.f32 %v8629_v25, %v4026_v40  ;;  %v4027_v33 = vadd.f32 2.0, %v8631_v49  ;;  %v4430_v47 = vadd.f32 %v12816_v17, %v12823_v26  ;;  %v12860_v12 = vsel %vm4099_vm15, %v12615_v30, %v4291_v35 }
 0x6e0   :  { %v8637_v16 = vpop.eup %8636  ;;  %v4296_v56 = vmul.f32 %v4223_v4, %v12621_v57  ;;  %v4536_v18 = vadd.f32 %v12786_v2, %v4500_v51  ;;  %v4556_v32 = vadd.f32 %v4466_v3, %v4460_v38  ;;  %v4443_v29 = vadd.f32 %v12829_v19, %v12826_v23 }
 0x6e1   :  { %v8639_v55 = vpop.eup %8638  ;;  %v4413_v58 = vrot.slane %v4412_v43, 2  ;;  %v4398_v13 = vrot.slane %v4397_v34, 4  ;;  %v4569_v46 = vadd.f32 %v4467_v5, %v4461_v37  ;;  %v4431_v25 = vadd.f32 %v4430_v47, %v12851_v8 }
 0x6e2   :  { %v8641_v42 = vpop.eup %8640  ;;  %v4472_v20 = vmul.f32 %v12851_v8, %v12851_v8  ;;  %vm4105_vm3 = vcmp.gt.f32.partialorder %v12631_v39, 20.0  ;;  %v4165_v30 = vadd.f32 2.0, %v12844_v9  ;;  %v4444_v2 = vadd.f32 %v4443_v29, %v12860_v12 }
 0x6e3   :  { %v4225_v51 = vmul.f32 %v8633_v60, %v12749_v53  ;;  %v4170_v35 = vadd.f32 2.0, %v12853_v24  ;;  %v12874_v4 = vmul.f32 %v8631_v49, %v4027_v33  ;;  %v12879_v11 = vsel %vm4104_vm2, %v12621_v57, %v4296_v56 }
 0x6e4   :  { %vm4110_vm4 = vcmp.gt.f32.partialorder %v12635_v62, 20.0  ;;  %8644 = vrcp.f32 %v4165_v30  ;;  %v4032_v3 = vadd.f32 2.0, %v8637_v16  ;;  %v4033_v40 = vadd.f32 2.0, %v8639_v55 }
 0x6e5   :  { %v4235_v38 = vmul.f32 %v8635_v45, %v12757_v50  ;;  %v4237_v5 = vmul.f32 %v8641_v42, %v12767_v1  ;;  %8646 = vrcp.f32 %v4170_v35  ;;  %v4171_v53 = vadd.f32 2.0, %v12874_v4 }
 0x6e6   :  { %v8643_v60 = vpop.eup %8642  ;;  %vm4111_vm5 = vcmp.gt.f32.partialorder %v12639_v41, 20.0  ;;  %v12886_v49 = vmul.f32 %v8637_v16, %v4032_v3  ;;  %v12888_v37 = vmul.f32 %v8639_v55, %v4033_v40  ;;  %v4537_v57 = vrot.slane %v4536_v18, 4 }
 0x6e7   :  { %v4399_v33 = vadd.f32 %v4398_v13, %v4397_v34  ;;  %v4297_v47 = vmul.f32 %v4225_v51, %v12631_v39  ;;  %8648 = vrcp.f32 %v4171_v53  ;;  %v4414_v56 = vadd.f32 %v4413_v58, %v4412_v43 }
 0x6e8   :  { %v4523_v50 = vadd.f32 %v12794_v22, %v4499_v44  ;;  %vm4116_vm6 = vcmp.gt.f32.partialorder %v12649_v59, 20.0  ;;  %v4176_v1 = vadd.f32 2.0, %v12886_v49  ;;  %v4177_v45 = vadd.f32 2.0, %v12888_v37 }
 0x6e9   :  { %v4538_v29 = vadd.f32 %v4537_v57, %v4536_v18  ;;  %v4400_v42 = vrot.slane %v4399_v33, 2  ;;  %v4473_v16 = vmul.f32 %v12860_v12, %v12860_v12  ;;  %v4302_v55 = vmul.f32 %v4235_v38, %v12635_v62 }
 0x6ea   :  { %v4247_v34 = vmul.f32 %v8643_v60, %v12791_v52  ;;  %v4524_v13 = vrot.slane %v4523_v50, 4  ;;  %v4478_v43 = vmul.f32 %v12879_v11, %v12879_v11  ;;  %v4303_v22 = vmul.f32 %v4237_v5, %v12639_v41 }
 0x6eb   :  { %vm4117_vm7 = vcmp.gt.f32.partialorder %v12701_v7, 20.0  ;;  %8650 = vrcp.f32 %v4176_v1  ;;  %v4539_v44 = vrot.slane %v4538_v29, 2  ;;  %v12906_v18 = vsel %vm4105_vm3, %v12631_v39, %v4297_v47 }
 0x6ec   :  { %vm4122_vm1 = vcmp.gt.f32.partialorder %v12738_v61, 20.0  ;;  %8652 = vrcp.f32 %v4177_v45  ;;  %v4401_v58 = vadd.f32 %v4400_v42, %v4399_v33  ;;  %v4525_v52 = vadd.f32 %v4524_v13, %v4523_v50 }
 0x6ed   :  { %v4557_v30 = vadd.f32 %v4556_v32, %v4472_v20  ;;  %v4432_v51 = vadd.f32 %v4431_v25, %v12879_v11  ;;  %v4415_v35 = vrot.slane %v4414_v56, 1  ;;  %v4540_v3 = vadd.f32 %v4539_v44, %v4538_v29 }
 0x6ee   :  { %v4570_v40 = vadd.f32 %v4569_v46, %v4473_v16  ;;  %v12913_v38 = vsel %vm4110_vm4, %v12635_v62, %v4302_v55  ;;  %v4308_v5 = vmul.f32 %v4247_v34, %v12649_v59  ;;  %vm4123_vm8 = vcmp.gt.f32.partialorder %v12742_v63, 20.0  ;;  %v8645_v53 = vpop.eup %8644 }
 0x6ef   :  { %v4526_v39 = vrot.slane %v4525_v52, 2  ;;  %v4558_v60 = vadd.f32 %v4557_v30, %v4478_v43  ;;  %v4445_v57 = vadd.f32 %v4444_v2, %v12906_v18  ;;  %v4479_v32 = vmul.f32 %v12906_v18, %v12906_v18  ;;  %v8647_v20 = vpop.eup %8646 }
 0x6f0   :  { %v4541_v25 = vrot.slane %v4540_v3, 1  ;;  %v12923_v46 = vsel %vm4111_vm5, %v12639_v41, %v4303_v22  ;;  %v4249_v62 = vmul.f32 %v8645_v53, %v12844_v9  ;;  %v4402_v33 = vrot.slane %v4401_v58, 1 }
 0x6f1   :  { %v4527_v47 = vadd.f32 %v4526_v39, %v4525_v52  ;;  %v4433_v50 = vadd.f32 %v4432_v51, %v12913_v38  ;;  %v4259_v1 = vmul.f32 %v8647_v20, %v12853_v24  ;;  %v4416_v45 = vadd.f32 %v4415_v35, %v4414_v56  ;;  %v8649_v29 = vpop.eup %8648 }
 0x6f2   :  { %v4542_v2 = vadd.f32 %v4541_v25, %v4540_v3  ;;  %v4484_v42 = vmul.f32 %v12913_v38, %v12913_v38  ;;  %v12933_v16 = vsel %vm4116_vm6, %v12649_v59, %v4308_v5  ;;  %v4309_v41 = vmul.f32 %v4249_v62, %v12701_v7 }
 0x6f3   :  { %v4528_v9 = vrot.slane %v4527_v47, 1  ;;  %v4485_v55 = vmul.f32 %v12923_v46, %v12923_v46  ;;  %v4314_v34 = vmul.f32 %v4259_v1, %v12738_v61  ;;  %v4261_v24 = vmul.f32 %v8649_v29, %v12874_v4 }
 0x6f4   :  { %v4584_v56 = vsel %vm1243_vm10, %v4416_v45, %v4542_v2  ;;  %v4571_v13 = vadd.f32 %v4570_v40, %v4479_v32  ;;  %v12944_v43 = vsel %vm4117_vm7, %v12701_v7, %v4309_v41  ;;  %v4403_v59 = vadd.f32 %v4402_v33, %v4401_v58 }
 0x6f5   :  { %4592 = vrot.lane.b32.xlu1 %v4584_v56, %s8979_s25  ;;  %v4529_v22 = vadd.f32 %v4528_v9, %v4527_v47  ;;  %v8651_v44 = vpop.eup %8650  ;;  %v4446_v52 = vadd.f32 %v4445_v57, %v12923_v46  ;;  %v4490_v30 = vmul.f32 %v12933_v16, %v12933_v16  ;;  %v12953_v4 = vsel %vm4122_vm1, %v12738_v61, %v4314_v34 }
 0x6f6   :  { %15856 = vst [vmem:[#allocation30_spill] sm:$0xff] %v12953_v4  ;;  %v4315_v51 = vmul.f32 %v4261_v24, %v12742_v63  ;;  %v8653_v35 = vpop.eup %8652  ;;  %v4559_v7 = vadd.f32 %v4558_v60, %v4484_v42  ;;  %v4491_v3 = vmul.f32 %v12944_v43, %v12944_v43  ;;  %v4271_v58 = vmul.f32 %v8651_v44, %v12886_v49 }
 0x6f7   :  { %v12960_v40 = vsel %vm1243_vm10, %v4403_v59, %v4529_v22  ;;  %v4434_v5 = vadd.f32 %v4433_v50, %v12933_v16  ;;  %v4496_v39 = vmul.f32 %v12953_v4, %v12953_v4  ;;  %v4273_v53 = vmul.f32 %v8653_v35, %v12888_v37 }
 0x6f8   :  { %v12968_v61 = vsel %vm4123_vm8, %v12742_v63, %v4315_v51  ;;  %4590 = vrot.lane.b32.xlu0 %v12960_v40, %s8979_s25  ;;  %v4572_v60 = vadd.f32 %v4571_v13, %v4485_v55  ;;  %v4447_v49 = vadd.f32 %v4446_v52, %v12944_v43  ;;  %v4320_v32 = vmul.f32 %v4271_v58, %v12765_v36 }
 0x6f9   :  { %15857 = vst [vmem:[#allocation38_spill] sm:$0xff] %v12968_v61  ;;  %v4497_v57 = vmul.f32 %v12968_v61, %v12968_v61  ;;  %v4560_v25 = vadd.f32 %v4559_v7, %v4490_v30  ;;  %v4435_v20 = vadd.f32 %v4434_v5, %v12953_v4  ;;  %vm4128_vm11 = vcmp.gt.f32.partialorder %v12765_v36, 20.0 }
 0x6fa   :  { %v4321_v63 = vmul.f32 %v4273_v53, %v12771_v0  ;;  %v4573_v62 = vadd.f32 %v4572_v60, %v4491_v3  ;;  %v4448_v37 = vadd.f32 %v4447_v49, %v12968_v61  ;;  %v12982_v33 = vsel %vm4128_vm11, %v12765_v36, %v4320_v32 }
 0x6fb   :  { %15858 = vst [vmem:[#allocation14_spill] sm:$0xff] %v12982_v33  ;;  %vm4129_vm12 = vcmp.gt.f32.partialorder %v12771_v0, 20.0  ;;  %v4561_v47 = vadd.f32 %v4560_v25, %v4496_v39  ;;  %v4436_v50 = vadd.f32 %v4435_v20, %v12982_v33  ;;  %v4502_v1 = vmul.f32 %v12982_v33, %v12982_v33  ;;  %v15860_v20 = vld [vmem:[#allocation27_spill] sm:$0xff] }
 0x6fc   :  { %v12989_v45 = vsel %vm4129_vm12, %v12771_v0, %v4321_v63  ;;  %v4574_v2 = vadd.f32 %v4573_v62, %v4497_v57  ;;  %v12999_v63 = vadd.f32 %v12352_v10, %v15860_v20  ;;  %v15872_v20 = vld [vmem:[#allocation13_spill] sm:$0xff] }
 0x6fd   :  { %15859 = vst [vmem:[#allocation51_spill] sm:$0xff] %v12989_v45  ;;  %v4449_v29 = vadd.f32 %v4448_v37, %v12989_v45  ;;  %v4503_v42 = vmul.f32 %v12989_v45, %v12989_v45  ;;  %v4437_v41 = vrot.slane %v4436_v50, 4  ;;  %v4562_v36 = vadd.f32 %v4561_v47, %v4502_v1  ;;  %v15861_v37 = vld [vmem:[#allocation24_spill] sm:$0xff] }
 0x6fe   :  { %v13006_v47 = vadd.f32 %v12356_v14, %v15861_v37  ;;  %vm4082_vm14 = vcmp.gt.f32.partialorder %v12999_v63, 20.0 }
 0x6ff   :  { %v4450_v9 = vrot.slane %v4449_v29, 4  ;;  %v4575_v55 = vadd.f32 %v4574_v2, %v4503_v42  ;;  %v4438_v34 = vadd.f32 %v4437_v41, %v4436_v50  ;;  %v4563_v24 = vrot.slane %v4562_v36, 4  ;;  %v15862_v50 = vld [vmem:[#allocation25_spill] sm:$0xff]  ;;  %v15863_v2 = vld [vmem:[#allocation26_spill] sm:$0xff] }
 0x700   :  { %v13011_v1 = vadd.f32 %v12352_v10, %v15862_v50  ;;  %v3842_v42 = vmin.f32 %v12999_v63, 20.0  ;;  %v3848_v41 = vmin.f32 %v13006_v47, 20.0  ;;  %vm4088_vm13 = vcmp.gt.f32.partialorder %v13006_v47, 20.0 }
 0x701   :  { %v4451_v56 = vadd.f32 %v4450_v9, %v4449_v29  ;;  %v4576_v13 = vrot.slane %v4575_v55, 4  ;;  %v4439_v59 = vrot.slane %v4438_v34, 2  ;;  %v4564_v22 = vadd.f32 %v4563_v24, %v4562_v36  ;;  %v15864_v36 = vld [vmem:[#allocation15_spill] sm:$0xff]  ;;  %v15865_v24 = vld [vmem:[#allocation18_spill] sm:$0xff] }
 0x702   :  { %v13015_v29 = vadd.f32 %v12356_v14, %v15863_v2  ;;  %v13021_v9 = vadd.f32 %v12369_v15, %v15864_v36  ;;  %v13027_v10 = vadd.f32 %v12369_v15, %v15865_v24  ;;  %v15874_v2 = vld [vmem:[#allocation35_spill] sm:$0xff]  ;;  %vm4085_vm0 = vcmp.gt.f32.partialorder %v13011_v1, 20.0 }
 0x703   :  { %v4452_v44 = vrot.slane %v4451_v56, 2  ;;  %v4577_v52 = vadd.f32 %v4576_v13, %v4575_v55  ;;  %v4440_v0 = vadd.f32 %v4439_v59, %v4438_v34  ;;  %v4565_v30 = vrot.slane %v4564_v22, 2  ;;  %v15866_v59 = vld [vmem:[#allocation20_spill] sm:$0xff] }
 0x704   :  { %v3845_v55 = vmin.f32 %v13011_v1, 20.0  ;;  %v3851_v34 = vmin.f32 %v13015_v29, 20.0  ;;  %v3902_v13 = vmul.f32 1.442695, %v3848_v41  ;;  %v3854_v14 = vmin.f32 %v13021_v9, 20.0 }
 0x705   :  { %v4453_v51 = vadd.f32 %v4452_v44, %v4451_v56  ;;  %v4578_v35 = vrot.slane %v4577_v52, 2  ;;  %v4441_v7 = vrot.slane %v4440_v0, 1  ;;  %v4566_v3 = vadd.f32 %v4565_v30, %v4564_v22  ;;  %v15867_v30 = vld [vmem:[#allocation46_spill] sm:$0xff] }
 0x706   :  { %v3890_v56 = vmul.f32 1.442695, %v3842_v42  ;;  %v13032_v22 = vadd.f32 %v12391_v54, %v15866_v59  ;;  %v3896_v44 = vmul.f32 1.442695, %v3845_v55  ;;  %v15876_v59 = vld [vmem:[#allocation9_spill] sm:$0xff]  ;;  %vm4091_vm15 = vcmp.gt.f32.partialorder %v13015_v29, 20.0 }
 0x707   :  { %v4454_v58 = vrot.slane %v4453_v51, 1  ;;  %v4579_v5 = vadd.f32 %v4578_v35, %v4577_v52  ;;  %v4567_v39 = vrot.slane %v4566_v3, 1  ;;  %v4442_v60 = vadd.f32 %v4441_v7, %v4440_v0  ;;  %v15868_v35 = vld [vmem:[#allocation45_spill] sm:$0xff] }
 0x708   :  { %v3908_v52 = vmul.f32 1.442695, %v3851_v34  ;;  %v3857_v0 = vmin.f32 %v13027_v10, 20.0  ;;  %8654 = vpow2.f32 %v3890_v56  ;;  %v13041_v15 = vadd.f32 %v12391_v54, %v15868_v35  ;;  %v15875_v34 = vld [vmem:[#allocation42_spill] sm:$0xff] }
 0x709   :  { %v4580_v53 = vrot.slane %v4579_v5, 1  ;;  %v4568_v49 = vadd.f32 %v4567_v39, %v4566_v3  ;;  %v4455_v57 = vadd.f32 %v4454_v58, %v4453_v51  ;;  %v13037_v51 = vadd.f32 %v12415_v6, %v15867_v30  ;;  %v15869_v58 = vld [vmem:[#allocation12_spill] sm:$0xff]  ;;  %v15870_v39 = vld [vmem:[#allocation11_spill] sm:$0xff] }
 0x70a   :  { %8656 = vpow2.f32 %v3902_v13  ;;  %v3914_v7 = vmul.f32 1.442695, %v3854_v14  ;;  %v3860_v3 = vmin.f32 %v13032_v22, 20.0  ;;  %v13071_v24 = vadd.f32 %v15849_v21, %v15875_v34 }
 0x70b   :  { %v4581_v32 = vadd.f32 %v4580_v53, %v4579_v5  ;;  %v12995_v25 = vsel %vm1243_vm10, %v4442_v60, %v4568_v49  ;;  %v13046_v5 = vadd.f32 %v12422_v48, %v15869_v58  ;;  %8658 = vpow2.f32 %v3896_v44 }
 0x70c   :  { %4603 = vrot.lane.b32.xlu0 %v12995_v25, %s8979_s25  ;;  %v13050_v53 = vadd.f32 %v12415_v6, %v15870_v39  ;;  %8660 = vpow2.f32 %v3908_v52  ;;  %v3920_v60 = vmul.f32 1.442695, %v3857_v0  ;;  %v3866_v49 = vmin.f32 %v13037_v51, 20.0  ;;  %v15873_v6 = vld [vmem:[#allocation4_spill] sm:$0xff] }
 0x70d   :  { %v4587_v62 = vsel %vm1243_vm10, %v4455_v57, %v4581_v32  ;;  %v15871_v57 = vld [vmem:[#allocation29_spill] sm:$0xff]  ;;  %v3863_v32 = vmin.f32 %v13041_v15, 20.0  ;;  %8662 = vpow2.f32 %v3914_v7  ;;  %v3926_v37 = vmul.f32 1.442695, %v3860_v3 }
 0x70e   :  { %4605 = vrot.lane.b32.xlu1 %v4587_v62, %s8979_s25  ;;  %v13055_v54 = vadd.f32 %v15849_v21, %v15871_v57  ;;  %v13060_v62 = vadd.f32 %v12422_v48, %v15872_v20  ;;  %v3872_v50 = vmin.f32 %v13046_v5, 20.0  ;;  %v13065_v42 = vadd.f32 %v15874_v2, %v15873_v6 }
 0x70f   :  { %v3869_v41 = vmin.f32 %v13050_v53, 20.0  ;;  %8664 = vpow2.f32 %v3920_v60  ;;  %v3938_v36 = vmul.f32 1.442695, %v3866_v49  ;;  %v3932_v48 = vmul.f32 1.442695, %v3863_v32 }
 0x710   :  { %v3878_v55 = vmin.f32 %v13055_v54, 20.0  ;;  %v3875_v56 = vmin.f32 %v13060_v62, 20.0  ;;  %8666 = vpow2.f32 %v3926_v37  ;;  %v3950_v13 = vmul.f32 1.442695, %v3872_v50 }
 0x711   :  { %v3884_v14 = vmin.f32 %v13065_v42, 20.0  ;;  %v13077_v44 = vadd.f32 %v15874_v2, %v15876_v59  ;;  %v3944_v0 = vmul.f32 1.442695, %v3869_v41  ;;  %8668 = vpow2.f32 %v3938_v36 }
 0x712   :  { %v8655_v52 = vpop.eup %8654  ;;  %v3962_v35 = vmul.f32 1.442695, %v3878_v55  ;;  %v3881_v7 = vmin.f32 %v13071_v24, 20.0  ;;  %8670 = vpow2.f32 %v3932_v48  ;;  %v3956_v3 = vmul.f32 1.442695, %v3875_v56 }
 0x713   :  { %v3986_v39 = vadd.f32 2.0, %v8655_v52  ;;  %8672 = vpow2.f32 %v3950_v13  ;;  %v3974_v60 = vmul.f32 1.442695, %v3884_v14  ;;  %v3887_v49 = vmin.f32 %v13077_v44, 20.0 }
 0x714   :  { %v8657_v30 = vpop.eup %8656  ;;  %8674 = vpow2.f32 %v3944_v0  ;;  %v3968_v37 = vmul.f32 1.442695, %v3881_v7  ;;  %vm4094_vm2 = vcmp.gt.f32.partialorder %v13021_v9, 20.0  ;;  %vm4097_vm3 = vcmp.gt.f32.partialorder %v13027_v10, 20.0 }
 0x715   :  { %v8659_v21 = vpop.eup %8658  ;;  %v3992_v57 = vadd.f32 2.0, %v8657_v30  ;;  %8676 = vpow2.f32 %v3962_v35  ;;  %v13081_v2 = vmul.f32 %v8655_v52, %v3986_v39  ;;  %v3980_v41 = vmul.f32 1.442695, %v3887_v49 }
 0x716   :  { %v8661_v58 = vpop.eup %8660  ;;  %v3989_v20 = vadd.f32 2.0, %v8659_v21  ;;  %8678 = vpow2.f32 %v3956_v3  ;;  %vm4100_vm4 = vcmp.gt.f32.partialorder %v13032_v22, 20.0  ;;  %vm4103_vm5 = vcmp.gt.f32.partialorder %v13041_v15, 20.0 }
 0x717   :  { %v8663_v32 = vpop.eup %8662  ;;  %v3995_v50 = vadd.f32 2.0, %v8661_v58  ;;  %8680 = vpow2.f32 %v3974_v60  ;;  %v13083_v36 = vmul.f32 %v8657_v30, %v3992_v57  ;;  %v4130_v59 = vadd.f32 2.0, %v13081_v2 }
 0x718   :  { %v3998_v55 = vadd.f32 2.0, %v8663_v32  ;;  %v13085_v48 = vmul.f32 %v8659_v21, %v3989_v20  ;;  %8682 = vpow2.f32 %v3968_v37  ;;  %vm4106_vm6 = vcmp.gt.f32.partialorder %v13037_v51, 20.0 }
 0x719   :  { %v8665_v6 = vpop.eup %8664  ;;  %v13087_v56 = vmul.f32 %v8661_v58, %v3995_v50  ;;  %8684 = vpow2.f32 %v3980_v41  ;;  %v4136_v52 = vadd.f32 2.0, %v13083_v36  ;;  %vm4112_vm7 = vcmp.gt.f32.partialorder %v13046_v5, 20.0 }
 0x71a   :  { %v8667_v34 = vpop.eup %8666  ;;  %v4001_v13 = vadd.f32 2.0, %v8665_v6  ;;  %v13091_v35 = vmul.f32 %v8663_v32, %v3998_v55  ;;  %v4133_v3 = vadd.f32 2.0, %v13085_v48  ;;  %8686 = vrcp.f32 %v4130_v59 }
 0x71b   :  { %v8669_v14 = vpop.eup %8668  ;;  %v4004_v7 = vadd.f32 2.0, %v8667_v34  ;;  %v4139_v21 = vadd.f32 2.0, %v13087_v56  ;;  %8688 = vrcp.f32 %v4136_v52  ;;  %vm4109_vm1 = vcmp.gt.f32.partialorder %v13050_v53, 20.0 }
 0x71c   :  { %v8671_v0 = vpop.eup %8670  ;;  %v13095_v60 = vmul.f32 %v8665_v6, %v4001_v13  ;;  %v4010_v58 = vadd.f32 2.0, %v8669_v14  ;;  %v4142_v37 = vadd.f32 2.0, %v13091_v35  ;;  %8690 = vrcp.f32 %v4133_v3 }
 0x71d   :  { %v8673_v30 = vpop.eup %8672  ;;  %v4007_v57 = vadd.f32 2.0, %v8671_v0  ;;  %v13098_v50 = vmul.f32 %v8667_v34, %v4004_v7  ;;  %8692 = vrcp.f32 %v4139_v21  ;;  %vm4118_vm8 = vcmp.gt.f32.partialorder %v13055_v54, 20.0 }
 0x71e   :  { %v8675_v39 = vpop.eup %8674  ;;  %v4016_v32 = vadd.f32 2.0, %v8673_v30  ;;  %v4145_v28 = vadd.f32 2.0, %v13095_v60  ;;  %v13101_v33 = vmul.f32 %v8669_v14, %v4010_v58  ;;  %8694 = vrcp.f32 %v4142_v37 }
 0x71f   :  { %v8677_v49 = vpop.eup %8676  ;;  %v4013_v55 = vadd.f32 2.0, %v8675_v39  ;;  %v13103_v4 = vmul.f32 %v8671_v0, %v4007_v57  ;;  %v4148_v52 = vadd.f32 2.0, %v13098_v50  ;;  %vm4115_vm11 = vcmp.gt.f32.partialorder %v13060_v62, 20.0 }
 0x720   :  { %v8679_v20 = vpop.eup %8678  ;;  %v4022_v6 = vadd.f32 2.0, %v8677_v49  ;;  %v13106_v45 = vmul.f32 %v8673_v30, %v4016_v32  ;;  %8696 = vrcp.f32 %v4145_v28  ;;  %v4154_v3 = vadd.f32 2.0, %v13101_v33 }
 0x721   :  { %v8681_v41 = vpop.eup %8680  ;;  %v4019_v59 = vadd.f32 2.0, %v8679_v20  ;;  %v13108_v61 = vmul.f32 %v8675_v39, %v4013_v55  ;;  %v4151_v58 = vadd.f32 2.0, %v13103_v4  ;;  %8698 = vrcp.f32 %v4148_v52 }
 0x722   :  { %v8683_v13 = vpop.eup %8682  ;;  %v4028_v34 = vadd.f32 2.0, %v8681_v41  ;;  %v13111_v21 = vmul.f32 %v8677_v49, %v4022_v6  ;;  %v4160_v57 = vadd.f32 2.0, %v13106_v45  ;;  %8700 = vrcp.f32 %v4154_v3 }
 0x723   :  { %v8685_v7 = vpop.eup %8684  ;;  %v4025_v14 = vadd.f32 2.0, %v8683_v13  ;;  %v13114_v0 = vmul.f32 %v8679_v20, %v4019_v59  ;;  %v4157_v39 = vadd.f32 2.0, %v13108_v61  ;;  %8702 = vrcp.f32 %v4151_v58 }
 0x724   :  { %v13117_v37 = vmul.f32 %v8681_v41, %v4028_v34  ;;  %v4031_v30 = vadd.f32 2.0, %v8685_v7  ;;  %v8687_v32 = vpop.eup %8686  ;;  %v4166_v28 = vadd.f32 2.0, %v13111_v21  ;;  %8704 = vrcp.f32 %v4160_v57 }
 0x725   :  { %v8689_v55 = vpop.eup %8688  ;;  %v13121_v49 = vmul.f32 %v8683_v13, %v4025_v14  ;;  %v4163_v20 = vadd.f32 2.0, %v13114_v0  ;;  %8706 = vrcp.f32 %v4157_v39  ;;  %v4179_v3 = vmul.f32 %v8687_v32, %v13081_v2 }
 0x726   :  { %v8691_v6 = vpop.eup %8690  ;;  %v4172_v52 = vadd.f32 2.0, %v13117_v37  ;;  %v13125_v41 = vmul.f32 %v8685_v7, %v4031_v30  ;;  %v4191_v34 = vmul.f32 %v8689_v55, %v13083_v36  ;;  %8708 = vrcp.f32 %v4166_v28 }
 0x727   :  { %v8693_v59 = vpop.eup %8692  ;;  %v4169_v13 = vadd.f32 2.0, %v13121_v49  ;;  %v4185_v14 = vmul.f32 %v8691_v6, %v13085_v48  ;;  %8710 = vrcp.f32 %v4163_v20  ;;  %v4274_v39 = vmul.f32 %v4179_v3, %v12999_v63 }
 0x728   :  { %v8695_v31 = vpop.eup %8694  ;;  %v4197_v58 = vmul.f32 %v8693_v59, %v13087_v56  ;;  %8712 = vrcp.f32 %v4172_v52  ;;  %v4175_v57 = vadd.f32 2.0, %v13125_v41  ;;  %v4280_v7 = vmul.f32 %v4191_v34, %v13006_v47 }
 0x729   :  { %v4203_v36 = vmul.f32 %v8695_v31, %v13091_v35  ;;  %8714 = vrcp.f32 %v4169_v13  ;;  %v4277_v2 = vmul.f32 %v4185_v14, %v13011_v1  ;;  %v13147_v20 = vsel %vm4082_vm14, %v12999_v63, %v4274_v39 }
 0x72a   :  { %v8697_v27 = vpop.eup %8696  ;;  %v4283_v32 = vmul.f32 %v4197_v58, %v13015_v29  ;;  %8716 = vrcp.f32 %v4175_v57  ;;  %v13142_v28 = vsel %vm4088_vm13, %v13006_v47, %v4280_v7  ;;  %v4456_v14 = vmul.f32 %v13147_v20, %v13147_v20 }
 0x72b   :  { %v8699_v30 = vpop.eup %8698  ;;  %v4209_v48 = vmul.f32 %v8697_v27, %v13095_v60  ;;  %v4286_v31 = vmul.f32 %v4203_v36, %v13021_v9  ;;  %v13153_v60 = vsel %vm4085_vm0, %v13011_v1, %v4277_v2  ;;  %v4462_v63 = vmul.f32 %v13142_v28, %v13142_v28 }
 0x72c   :  { %v8701_v56 = vpop.eup %8700  ;;  %v4215_v35 = vmul.f32 %v8699_v30, %v13098_v50  ;;  %v13156_v47 = vsel %vm4091_vm15, %v13015_v29, %v4283_v32  ;;  %v4459_v58 = vmul.f32 %v13153_v60, %v13153_v60  ;;  %vm4124_vm12 = vcmp.gt.f32.partialorder %v13065_v42, 20.0 }
 0x72d   :  { %v8703_v55 = vpop.eup %8702  ;;  %v4289_v59 = vmul.f32 %v4209_v48, %v13027_v10  ;;  %v4227_v50 = vmul.f32 %v8701_v56, %v13101_v33  ;;  %v13166_v1 = vsel %vm4094_vm2, %v13021_v9, %v4286_v31  ;;  %v4465_v9 = vmul.f32 %v13156_v47, %v13156_v47 }
 0x72e   :  { %v8705_v6 = vpop.eup %8704  ;;  %v4221_v34 = vmul.f32 %v8703_v55, %v13103_v4  ;;  %v4292_v29 = vmul.f32 %v4215_v35, %v13032_v22  ;;  %v4378_v4 = vadd.f32 %v13142_v28, %v13147_v20  ;;  %v4504_v39 = vadd.f32 %v4462_v63, %v4456_v14 }
 0x72f   :  { %v8707_v27 = vpop.eup %8706  ;;  %v4239_v33 = vmul.f32 %v8705_v6, %v13106_v45  ;;  %v13180_v57 = vsel %vm4097_vm3, %v13027_v10, %v4289_v59  ;;  %v4298_v7 = vmul.f32 %v4227_v50, %v13037_v51  ;;  %v4417_v2 = vadd.f32 %v13156_v47, %v13153_v60 }
 0x730   :  { %v8709_v52 = vpop.eup %8708  ;;  %v4233_v45 = vmul.f32 %v8707_v27, %v13108_v61  ;;  %v4468_v32 = vmul.f32 %v13166_v1, %v13166_v1  ;;  %v4295_v48 = vmul.f32 %v4221_v34, %v13041_v15  ;;  %v13193_v10 = vsel %vm4100_vm4, %v13032_v22, %v4292_v29 }
 0x731   :  { %v8711_v3 = vpop.eup %8710  ;;  %v4251_v36 = vmul.f32 %v8709_v52, %v13111_v21  ;;  %v4304_v56 = vmul.f32 %v4239_v33, %v13046_v5  ;;  %v4543_v31 = vadd.f32 %v4465_v9, %v4459_v58  ;;  %v4379_v35 = vadd.f32 %v4378_v4, %v13166_v1 }
 0x732   :  { %v8713_v13 = vpop.eup %8712  ;;  %v4245_v61 = vmul.f32 %v8711_v3, %v13114_v0  ;;  %v4471_v6 = vmul.f32 %v13180_v57, %v13180_v57  ;;  %v13203_v27 = vsel %vm4106_vm6, %v13037_v51, %v4298_v7  ;;  %v4301_v22 = vmul.f32 %v4233_v45, %v13050_v53 }
 0x733   :  { %v8715_v30 = vpop.eup %8714  ;;  %v4263_v21 = vmul.f32 %v8713_v13, %v13117_v37  ;;  %v4310_v59 = vmul.f32 %v4251_v36, %v13055_v54  ;;  %v4505_v50 = vadd.f32 %v4504_v39, %v4468_v32  ;;  %v4474_v37 = vmul.f32 %v13193_v10, %v13193_v10 }
 0x734   :  { %v8717_v55 = vpop.eup %8716  ;;  %v4257_v0 = vmul.f32 %v8715_v30, %v13121_v49  ;;  %v13213_v52 = vsel %vm4103_vm5, %v13041_v15, %v4295_v48  ;;  %v13217_v51 = vsel %vm4112_vm7, %v13046_v5, %v4304_v56  ;;  %v4307_v63 = vmul.f32 %v4245_v61, %v13060_v62 }
 0x735   :  { %v4316_v34 = vmul.f32 %v4263_v21, %v13065_v42  ;;  %v4269_v49 = vmul.f32 %v8717_v55, %v13125_v41  ;;  %v4544_v3 = vadd.f32 %v4543_v31, %v4471_v6  ;;  %v4480_v29 = vmul.f32 %v13203_v27, %v13203_v27 }
 0x736   :  { %v4477_v15 = vmul.f32 %v13213_v52, %v13213_v52  ;;  %v13229_v5 = vsel %vm4109_vm1, %v13050_v53, %v4301_v22  ;;  %v13232_v33 = vsel %vm4118_vm8, %v13055_v54, %v4310_v59  ;;  %v4313_v13 = vmul.f32 %v4257_v0, %v13071_v24 }
 0x737   :  { %v4506_v41 = vadd.f32 %v4505_v50, %v4474_v37  ;;  %v4486_v14 = vmul.f32 %v13217_v51, %v13217_v51  ;;  %v4380_v58 = vadd.f32 %v4379_v35, %v13193_v10  ;;  %v13241_v4 = vsel %vm4115_vm11, %v13060_v62, %v4307_v63 }
 0x738   :  { %v13244_v53 = vsel %vm4124_vm12, %v13065_v42, %v4316_v34  ;;  %v4319_v54 = vmul.f32 %v4269_v49, %v13077_v44  ;;  %v4483_v7 = vmul.f32 %v13229_v5, %v13229_v5  ;;  %v4492_v45 = vmul.f32 %v13232_v33, %v13232_v33 }
 0x739   :  { %v4507_v9 = vadd.f32 %v4506_v41, %v4480_v29  ;;  %vm4121_vm13 = vcmp.gt.f32.partialorder %v13071_v24, 20.0  ;;  %v4418_v36 = vadd.f32 %v4417_v2, %v13180_v57  ;;  %v4545_v30 = vadd.f32 %v4544_v3, %v4477_v15 }
 0x73a   :  { %v13254_v62 = vsel %vm4121_vm13, %v13071_v24, %v4313_v13  ;;  %vm4127_vm14 = vcmp.gt.f32.partialorder %v13077_v44, 20.0  ;;  %v4381_v42 = vadd.f32 %v4380_v58, %v13203_v27  ;;  %v4489_v32 = vmul.f32 %v13241_v4, %v13241_v4 }
 0x73b   :  { %15877 = vst [vmem:[#allocation10_spill] sm:$0xff] %v13254_v62  ;;  %v4508_v39 = vadd.f32 %v4507_v9, %v4486_v14  ;;  %v4498_v48 = vmul.f32 %v13244_v53, %v13244_v53  ;;  %v4419_v56 = vadd.f32 %v4418_v36, %v13213_v52  ;;  %v13264_v61 = vsel %vm4127_vm14, %v13077_v44, %v4319_v54 }
 0x73c   :  { %15878 = vst [vmem:[#allocation34_spill] sm:$0xff] %v13264_v61  ;;  %v4546_v2 = vadd.f32 %v4545_v30, %v4483_v7  ;;  %v4382_v24 = vadd.f32 %v4381_v42, %v13217_v51  ;;  %v4495_v55 = vmul.f32 %v13254_v62, %v13254_v62  ;;  %v4501_v59 = vmul.f32 %v13264_v61, %v13264_v61 }
 0x73d   :  { %v4509_v21 = vadd.f32 %v4508_v39, %v4492_v45  ;;  %v4420_v31 = vadd.f32 %v4419_v56, %v13229_v5 }
 0x73e   :  { %v4547_v35 = vadd.f32 %v4546_v2, %v4489_v32  ;;  %v4383_v6 = vadd.f32 %v4382_v24, %v13232_v33 }
 0x73f   :  { %v4510_v22 = vadd.f32 %v4509_v21, %v4498_v48  ;;  %v4421_v0 = vadd.f32 %v4420_v31, %v13241_v4 }
 0x740   :  { %v4548_v44 = vadd.f32 %v4547_v35, %v4495_v55  ;;  %v4384_v50 = vadd.f32 %v4383_v6, %v13244_v53 }
 0x741   :  { %v4422_v37 = vadd.f32 %v4421_v0, %v13254_v62  ;;  %v4511_v34 = vrot.slane %v4510_v22, 4 }
 0x742   :  { %v4549_v63 = vadd.f32 %v4548_v44, %v4501_v59  ;;  %v4385_v49 = vrot.slane %v4384_v50, 4 }
 0x743   :  { %v4423_v3 = vadd.f32 %v4422_v37, %v13264_v61  ;;  %v4512_v15 = vadd.f32 %v4511_v34, %v4510_v22 }
 0x744   :  { %v4550_v29 = vrot.slane %v4549_v63, 4  ;;  %v4386_v41 = vadd.f32 %v4385_v49, %v4384_v50 }
 0x745   :  { %v4424_v13 = vrot.slane %v4423_v3, 4  ;;  %v4513_v14 = vrot.slane %v4512_v15, 2 }
 0x746   :  { %v4551_v58 = vadd.f32 %v4550_v29, %v4549_v63  ;;  %v4387_v9 = vrot.slane %v4386_v41, 2 }
 0x747   :  { %v4425_v54 = vadd.f32 %v4424_v13, %v4423_v3  ;;  %v4514_v7 = vadd.f32 %v4513_v14, %v4512_v15 }
 0x748   :  { %v4552_v45 = vrot.slane %v4551_v58, 2  ;;  %v4388_v36 = vadd.f32 %v4387_v9, %v4386_v41  ;;  %v8982_v9 = vmov 3  }
 0x749   :  { %v4426_v30 = vrot.slane %v4425_v54, 2  ;;  %v4515_v42 = vrot.slane %v4514_v7, 1  ;;  %8123 = vset.pattern.permute.xlu0 %v8982_v9  ;;  %8124 = vset.pattern.permute.xlu1 %v8982_v9 }
 0x74a   :  { %v4553_v39 = vadd.f32 %v4552_v45, %v4551_v58  ;;  %v4389_v32 = vrot.slane %v4388_v36, 1  ;;  %v7638_v45 = vld [vmem:[%s15307_s5 + $0x2] ss:$8 sm:$0xf] }
 0x74b   :  { %v4427_v48 = vadd.f32 %v4426_v30, %v4425_v54  ;;  %v4516_v2 = vadd.f32 %v4515_v42, %v4514_v7  ;;  %v8969_v7 = vld [vmem:[%s15306_s4 + $0x8] sm:$0xff]  ;;  %v8970_v30 = vld [vmem:[%s15306_s4 + $0x10] sm:$0xff]  ;;  %v8971_v42 = vld [vmem:[%s15306_s4 + $0x18] sm:$0xff] }
 0x74c   :  { %v4554_v24 = vrot.slane %v4553_v39, 1  ;;  %v4390_v55 = vadd.f32 %v4389_v32, %v4388_v36  ;;  %v7639_v36 = vld [vmem:[%s15307_s5 + $0x2] ss:$8 sm:$0x30] }
 0x74d   :  { %v4428_v35 = vrot.slane %v4427_v48, 1  ;;  %v8972_v32 = vld [vmem:[%s15306_s4 + $0x20] sm:$0xff] }
 0x74e   :  { %v4582_v22 = vsel %vm1243_vm10, %v4390_v55, %v4516_v2  ;;  %v4555_v59 = vadd.f32 %v4554_v24, %v4553_v39  ;;  %v13303_v39 = vor.u32 %v7639_v36, %v7638_v45  ;;  %v7641_v2 = vld [vmem:[%s15307_s5 + $0x6] ss:$8 sm:$0x30]  ;;  %v15879_v24 = vld [vmem:[#allocation21_spill] sm:$0xff] }
 0x74f   :  { %v4429_v44 = vadd.f32 %v4428_v35, %v4427_v48  ;;  %v8973_v48 = vld [vmem:[%s15306_s4 + $0x28] sm:$0xff]  ;;  %v8975_v35 = vld [vmem:[%s15306_s4 + $0x38] sm:$0xff] }
 0x751   :  { %v4585_v37 = vsel %vm1243_vm10, %v4429_v44, %v4555_v59 }
 0x767   :  { %v4593_v21 = vpop.permute.xlu1 %4592 }
 0x768   :  { %v4598_v6 = vadd.f32 %v4593_v21, %v12960_v40 }
 0x76a   :  { %v4591_v56 = vpop.permute.xlu0 %4590  ;;  %v4600_v63 = vadd.f32 %v4598_v6, %v12995_v25  ;;  %v8968_v25 = vld [vmem:[%s15306_s4] sm:$0xff] }
 0x76b   :  { %v4594_v31 = vsel %vm1256_vm9, %v4591_v56, %v4593_v21  ;;  %v7640_v56 = vld [vmem:[%s15307_s5 + $0x6] ss:$8 sm:$0xf]  ;;  %v4713_v21 = vrot.slane %v13303_v39, %v15879_v24 }
 0x76c   :  { %v4597_v0 = vadd.f32 %v4594_v31, %v4582_v22  ;;  %v8974_v31 = vld [vmem:[%s15306_s4 + $0x30] sm:$0xff]  ;;  %v13325_v6 = vor.u32 %v7641_v2, %v7640_v56 }
 0x76e   :  { %v4599_v34 = vadd.f32 %v4597_v0, %v4585_v37 }
 0x77e   :  { %v4604_v50 = vpop.permute.xlu0 %4603 }
 0x780   :  { %v4606_v49 = vpop.permute.xlu1 %4605 }
 0x781   :  { %v4607_v3 = vsel %vm1256_vm9, %v4604_v50, %v4606_v49  ;;  %v4611_v29 = vadd.f32 %v4606_v49, %v4600_v63  ;;  %v15880_v50 = vld [vmem:[#allocation17_spill] sm:$0xff] }
 0x782   :  { %v4610_v15 = vadd.f32 %v4607_v3, %v4599_v34  ;;  %v4725_v37 = vrot.slane %v13303_v39, %v15880_v50 }
 0x783   :  { %4616 = vrot.lane.b32.xlu1 %v4611_v29, %s8979_s25 }
 0x784   :  { %4614 = vrot.lane.b32.xlu0 %v4610_v15, %s8979_s25  ;;  %v4622_v40 = vmul.f32 0.00390625, %v4610_v15  ;;  %v4822_v15 = vrot.slane %v13325_v6, %v15879_v24 }
 0x786   :  { %v4625_v13 = vmul.f32 %v4622_v40, %v4622_v40  ;;  %v13328_v59 = vrot.slane %v4622_v40, %v15879_v24 }
 0x787   :  { %4911 = vperm.xlu1 %8124, %v8969_v7  }
 0x788   :  { %v4631_v41 = vrot.slane %v4625_v13, 7  ;;  %4907 = vperm.xlu0 %8123, %v8968_v25   ;;  %v13338_v13 = vrot.slane %v13325_v6, %v15880_v50  ;;  %v15884_v25 = vld [vmem:[#allocation23_spill] sm:$0xff]  ;;  %v4679_v56 = vsub.f32 %v13203_v27, %v13328_v59 }
 0x78a   :  { %v4637_v14 = vsub.f32 %v4622_v40, %v4631_v41  ;;  %v15881_v40 = vld [vmem:[#allocation16_spill] sm:$0xff] }
 0x78b   :  { %4915 = vperm.xlu1 %8124, %v8970_v30   ;;  %v4717_v41 = vrot.slane %v13303_v39, %v15881_v40  ;;  %v4655_v30 = vsub.f32 %v13147_v20, %v13328_v59  ;;  %v4691_v20 = vsub.f32 %v13232_v33, %v13328_v59 }
 0x78c   :  { %v4640_v58 = vmax.f32 %v4637_v14, 0.0  ;;  %4919 = vperm.xlu0 %8123, %v8971_v42   ;;  %v15882_v14 = vld [vmem:[#allocation19_spill] sm:$0xff]  ;;  %v4661_v42 = vsub.f32 %v13142_v28, %v13328_v59  ;;  %v4697_v28 = vsub.f32 %v13244_v53, %v13328_v59 }
 0x78e   :  { %v4703_v54 = vadd.f32 1e-05, %v4640_v58  ;;  %v15904_v58 = vld [vmem:[#allocation5_spill] sm:$0xff] }
 0x78f   :  { %4923 = vperm.xlu1 %8124, %v8972_v32   ;;  %v4667_v32 = vsub.f32 %v13166_v1, %v13328_v59  ;;  %v4658_v1 = vsub.f32 %v13153_v60, %v13328_v59  ;;  %v4670_v60 = vsub.f32 %v13180_v57, %v13328_v59 }
 0x790   :  { %8718 = vrsqrt.f32 %v4703_v54  ;;  %4927 = vperm.xlu0 %8123, %v8973_v48   ;;  %v15883_v54 = vld [vmem:[#allocation22_spill] sm:$0xff]  ;;  %v4673_v48 = vsub.f32 %v13193_v10, %v13328_v59  ;;  %v4664_v10 = vsub.f32 %v13156_v47, %v13328_v59  ;;  %v4676_v47 = vsub.f32 %v13213_v52, %v13328_v59 }
 0x791   :  { %v4729_v9 = vrot.slane %v13303_v39, %v15883_v54 }
 0x793   :  { %4931 = vperm.xlu1 %8124, %v8974_v31   ;;  %v4685_v31 = vsub.f32 %v13217_v51, %v13328_v59 }
 0x794   :  { %4935 = vperm.xlu0 %8123, %v8975_v35  }
 0x79a   :  { %v8719_v55 = vpop.eup %8718 }
 0x79b   :  { %v4740_v0 = vmul.f32 %v8719_v55, %v4713_v21  ;;  %v4743_v35 = vmul.f32 %v8719_v55, %v4725_v37 }
 0x79d   :  { %v4749_v7 = vrot.slane %v4740_v0, %v15881_v40  ;;  %v13370_v53 = vrot.slane %v4743_v35, %v15881_v40 }
 0x79f   :  { %v4770_v0 = vmul.f32 %v4749_v7, %v4655_v30  ;;  %v4794_v51 = vmul.f32 %v4749_v7, %v4679_v56  ;;  %v4806_v55 = vmul.f32 %v4749_v7, %v4691_v20  ;;  %v4812_v37 = vmul.f32 %v4749_v7, %v4697_v28 }
 0x7a0   :  { %v4682_v30 = vsub.f32 %v13229_v5, %v13328_v59  ;;  %v4773_v20 = vmul.f32 %v13370_v53, %v4658_v1  ;;  %v4779_v35 = vmul.f32 %v13370_v53, %v4664_v10  ;;  %v13414_v1 = vrot.slane %v13325_v6, %v15884_v25 }
 0x7a1   :  { %v13388_v57 = vadd.f32 %v4822_v15, %v4794_v51  ;;  %v13394_v5 = vadd.f32 %v4822_v15, %v4812_v37  ;;  %v13433_v51 = vmul.f32 %v13370_v53, %v4670_v60  ;;  %v15890_v37 = vld [vmem:[#allocation33_spill] sm:$0xff]  ;;  %v15901_v10 = vrot.slane %v13303_v39, %v15884_v25 }
 0x7a3   :  { %15886 = vst [vmem:[#allocation32_spill] sm:$0xff] %v13394_v5 }
 0x7f5   :  { %v4617_v22 = vpop.permute.xlu1 %4616 }
 0x7f6   :  { %v4615_v44 = vpop.permute.xlu0 %4614 }
 0x7f7   :  { %v4618_v63 = vsel %vm1256_vm9, %v4615_v44, %v4617_v22  ;;  %v4621_v34 = vsel %vm1256_vm9, %v4611_v29, %v4615_v44  ;;  %v4776_v44 = vmul.f32 %v4749_v7, %v4661_v42 }
 0x7f8   :  { %v4623_v49 = vmul.f32 0.00390625, %v4621_v34  ;;  %v4624_v3 = vmul.f32 0.00390625, %v4618_v63  ;;  %v4782_v63 = vmul.f32 %v4749_v7, %v4667_v32  ;;  %v4788_v34 = vmul.f32 %v4749_v7, %v4673_v48 }
 0x7f9   :  { %v13378_v48 = vadd.f32 %v4822_v15, %v4770_v0  ;;  %v13408_v0 = vrot.slane %v13325_v6, %v15881_v40 }
 0x7fa   :  { %v4626_v45 = vmul.f32 %v4623_v49, %v4623_v49  ;;  %v4627_v36 = vmul.f32 %v4624_v3, %v4624_v3 }
 0x7fc   :  { %v4632_v2 = vrot.slane %v4626_v45, 7  ;;  %v4633_v21 = vrot.slane %v4627_v36, 7  ;;  %v4800_v45 = vmul.f32 %v4749_v7, %v4685_v31  ;;  %v13382_v7 = vadd.f32 %v4822_v15, %v4776_v44 }
 0x7fd   :  { %v13392_v31 = vadd.f32 %v4822_v15, %v4806_v55  ;;  %v13445_v55 = vmul.f32 %v13370_v53, %v4682_v30  ;;  %v15892_v30 = vld [vmem:[#allocation6_spill] sm:$0xff] }
 0x7fe   :  { %v4638_v22 = vsub.f32 %v4623_v49, %v4632_v2  ;;  %v4639_v27 = vsub.f32 %v4624_v3, %v4633_v21  ;;  %v13384_v2 = vadd.f32 %v4822_v15, %v4782_v63  ;;  %v13386_v21 = vadd.f32 %v4822_v15, %v4788_v34 }
 0x7ff   :  { %v13390_v52 = vadd.f32 %v4822_v15, %v4800_v45  ;;  %15885 = vst [vmem:[#allocation41_spill] sm:$0xff] %v13392_v31  ;;  %v13430_v34 = vrot.slane %v13325_v6, %v15882_v14  ;;  %v13436_v45 = vadd.f32 %v13338_v13, %v4773_v20  ;;  %15889 = vst [vmem:[#allocation2_spill] sm:$0xff] %v13445_v55 }
 0x800   :  { %v4641_v36 = vmax.f32 %v4638_v22, 0.0  ;;  %v4642_v33 = vmax.f32 %v4639_v27, 0.0  ;;  %v13401_v22 = vrot.slane %v4623_v49, %v15879_v24  ;;  %v13404_v27 = vrot.slane %v4624_v3, %v15879_v24 }
 0x801   :  { %v13420_v49 = vrot.slane %v13325_v6, %v15883_v54  ;;  %v15891_v6 = vld [vmem:[#allocation7_spill] sm:$0xff]  ;;  %v15900_v3 = vrot.slane %v13303_v39, %v15882_v14  ;;  %v15903_v54 = vld [vmem:[#allocation14_spill] sm:$0xff] }
 0x802   :  { %v4704_v42 = vadd.f32 1e-05, %v4641_v36  ;;  %v4705_v32 = vadd.f32 1e-05, %v4642_v33  ;;  %v13439_v36 = vadd.f32 %v13338_v13, %v4779_v35  ;;  %v13442_v33 = vmul.f32 %v13370_v53, %v4676_v47 }
 0x803   :  { %v4660_v60 = vsub.f32 %v12826_v23, %v13404_v27  ;;  %v4666_v20 = vsub.f32 %v12829_v19, %v13404_v27  ;;  %v4659_v35 = vsub.f32 %v12823_v26, %v13401_v22  ;;  %v4665_v47 = vsub.f32 %v12816_v17, %v13401_v22  ;;  %v15894_v17 = vld [vmem:[#allocation31_spill] sm:$0xff] }
 0x804   :  { %8720 = vrsqrt.f32 %v4704_v42  ;;  %15887 = vst [vmem:[#allocation49_spill] sm:$0xff] %v13439_v36  ;;  %15888 = vst [vmem:[#allocation36_spill] sm:$0xff] %v13442_v33  ;;  %v4656_v42 = vsub.f32 %v15890_v37, %v13401_v22  ;;  %v4668_v15 = vsub.f32 %v15892_v30, %v13401_v22  ;;  %v15893_v37 = vld [vmem:[#allocation50_spill] sm:$0xff]  ;;  %v4678_v23 = vsub.f32 %v12906_v18, %v13404_v27  ;;  %v15895_v30 = vld [vmem:[#allocation52_spill] sm:$0xff] }
 0x805   :  { %8722 = vrsqrt.f32 %v4705_v32  ;;  %v4662_v32 = vsub.f32 %v15891_v6, %v13401_v22  ;;  %v4674_v28 = vsub.f32 %v15893_v37, %v13401_v22  ;;  %v4672_v6 = vsub.f32 %v12860_v12, %v13404_v27  ;;  %v15898_v18 = vld [vmem:[#allocation38_spill] sm:$0xff] }
 0x806   :  { %v4671_v19 = vsub.f32 %v12851_v8, %v13401_v22  ;;  %v4677_v26 = vsub.f32 %v12879_v11, %v13401_v22  ;;  %v4680_v63 = vsub.f32 %v15894_v17, %v13401_v22  ;;  %v4686_v56 = vsub.f32 %v15895_v30, %v13401_v22  ;;  %v15896_v11 = vld [vmem:[#allocation43_spill] sm:$0xff] }
 0x807   :  { %v4684_v37 = vsub.f32 %v12923_v46, %v13404_v27  ;;  %v15897_v17 = vld [vmem:[#allocation47_spill] sm:$0xff] }
 0x808   :  { %v15899_v8 = vld [vmem:[#allocation51_spill] sm:$0xff] }
 0x80e   :  { %v8721_v44 = vpop.eup %8720 }
 0x80f   :  { %v8723_v30 = vpop.eup %8722  ;;  %v4741_v46 = vmul.f32 %v8721_v44, %v4717_v41  ;;  %v4744_v12 = vmul.f32 %v8721_v44, %v4729_v9  ;;  %v15902_v41 = vld [vmem:[#allocation30_spill] sm:$0xff]  ;;  %v15907_v9 = vld [vmem:[#allocation8_spill] sm:$0xff] }
 0x810   :  { %v4742_v50 = vmul.f32 %v8723_v30, %v15900_v3  ;;  %v4745_v24 = vmul.f32 %v8723_v30, %v15901_v10  ;;  %v15905_v3 = vld [vmem:[#allocation3_spill] sm:$0xff]  ;;  %v15906_v30 = vld [vmem:[#allocation28_spill] sm:$0xff] }
 0x811   :  { %v4753_v44 = vrot.slane %v4741_v46, %v15881_v40  ;;  %v13509_v29 = vrot.slane %v4744_v12, %v15881_v40 }
 0x812   :  { %v13516_v39 = vrot.slane %v4742_v50, %v15881_v40  ;;  %v4769_v10 = vrot.slane %v4745_v24, %v15881_v40 }
 0x813   :  { %v4771_v25 = vmul.f32 %v4753_v44, %v4656_v42  ;;  %v4777_v12 = vmul.f32 %v4753_v44, %v4662_v32  ;;  %v4774_v62 = vmul.f32 %v13509_v29, %v4659_v35  ;;  %v4780_v61 = vmul.f32 %v13509_v29, %v4665_v47 }
 0x814   :  { %v4775_v31 = vmul.f32 %v4769_v10, %v4660_v60  ;;  %v4781_v5 = vmul.f32 %v4769_v10, %v4666_v20  ;;  %v4783_v14 = vmul.f32 %v4753_v44, %v4668_v15  ;;  %v4789_v33 = vmul.f32 %v4753_v44, %v4674_v28 }
 0x815   :  { %v4850_v50 = vadd.f32 %v13408_v0, %v4771_v25  ;;  %v4856_v24 = vadd.f32 %v13408_v0, %v4777_v12  ;;  %v4853_v40 = vadd.f32 %v13420_v49, %v4774_v62  ;;  %v4859_v55 = vadd.f32 %v13420_v49, %v4780_v61 }
 0x816   :  { %v4854_v46 = vadd.f32 %v13414_v1, %v4775_v31  ;;  %v4860_v42 = vadd.f32 %v13414_v1, %v4781_v5  ;;  %v4862_v32 = vadd.f32 %v13408_v0, %v4783_v14  ;;  %v4868_v35 = vadd.f32 %v13408_v0, %v4789_v33 }
 0x817   :  { %v7858_v60 = vpack.c.bf16 %v4856_v24, %v4850_v50  ;;  %v7892_v20 = vpack.c.bf16 %v4859_v55, %v4853_v40  ;;  %v4787_v15 = vmul.f32 %v4769_v10, %v4672_v6  ;;  %v4793_v28 = vmul.f32 %v4769_v10, %v4678_v23 }
 0x818   :  { %v7890_v47 = vpack.c.bf16 %v4860_v42, %v4854_v46  ;;  %v7862_v25 = vpack.c.bf16 %v4868_v35, %v4862_v32  ;;  %v4786_v12 = vmul.f32 %v13509_v29, %v4671_v19  ;;  %v4792_v62 = vmul.f32 %v13509_v29, %v4677_v26 }
 0x819   :  { %7859 = vmatprep.subr.bf16.mxu1 %v7858_v60  ;;  %v4866_v61 = vadd.f32 %v13414_v1, %v4787_v15  ;;  %v4872_v31 = vadd.f32 %v13414_v1, %v4793_v28  ;;  %v4795_v5 = vmul.f32 %v4753_v44, %v4680_v63  ;;  %v4801_v36 = vmul.f32 %v4753_v44, %v4686_v56 }
 0x81a   :  { %7891 = vmatprep.subr.bf16.mxu0 %v7890_v47  ;;  %v15908_v14 = vpack.c.bf16 %v13382_v7, %v13378_v48  ;;  %v4865_v40 = vadd.f32 %v13420_v49, %v4786_v12  ;;  %v4871_v33 = vadd.f32 %v13420_v49, %v4792_v62  ;;  %v4799_v55 = vmul.f32 %v4769_v10, %v4684_v37 }
 0x81b   :  { %7893 = vmatpush1.bf16.msra.mxu0 %v7892_v20  ;;  %v7894_v6 = vpack.c.bf16 %v4872_v31, %v4866_v61  ;;  %v4874_v23 = vadd.f32 %v13408_v0, %v4795_v5  ;;  %v4880_v19 = vadd.f32 %v13408_v0, %v4801_v36  ;;  %v15909_v56 = vsub.f32 %v12944_v43, %v13404_v27 }
 0x81c   :  { %7861 = vmatpush1.bf16.msra.mxu1 %v15908_v14  ;;  %v7896_v26 = vpack.c.bf16 %v4871_v33, %v4865_v40  ;;  %v4878_v48 = vadd.f32 %v13414_v1, %v4799_v55  ;;  %v15910_v7 = vsub.f32 %v12913_v38, %v13401_v22  ;;  %v15911_v50 = vsub.f32 %v12933_v16, %v13401_v22 }
 0x81d   :  { %7863 = vmatprep.subr.bf16.mxu1 %v7862_v25  ;;  %v4805_v63 = vmul.f32 %v4769_v10, %v15909_v56  ;;  %7895 = vmatprep.subr.bf16.mxu0 %v7894_v6  ;;  %v7866_v37 = vpack.c.bf16 %v4880_v19, %v4874_v23  ;;  %v15912_v36 = vsub.f32 %v15896_v11, %v13401_v22  ;;  %v15926_v6 = vld [vmem:[#allocation36_spill] sm:$0xff]  ;;  %v15927_v19 = vld [vmem:[#allocation39_spill] sm:$0xff] }
 0x81e   :  { %v4798_v46 = vmul.f32 %v13509_v29, %v15910_v7  ;;  %v4804_v24 = vmul.f32 %v13509_v29, %v15911_v50  ;;  %v15913_v43 = vsub.f32 %v15897_v17, %v13401_v22  ;;  %v15914_v38 = vpack.c.bf16 %v13386_v21, %v13384_v2  ;;  %v15928_v56 = vld [vmem:[#allocation32_spill] sm:$0xff] }
 0x81f   :  { %v4807_v42 = vmul.f32 %v4753_v44, %v15912_v36  ;;  %v4884_v35 = vadd.f32 %v13414_v1, %v4805_v63  ;;  %v15915_v16 = vsub.f32 %v15898_v18, %v13404_v27  ;;  %v15916_v11 = vsub.f32 %v15899_v8, %v13404_v27  ;;  %7897 = vmatpush1.bf16.msra.mxu0 %v7896_v26  ;;  %v15929_v63 = vld [vmem:[#allocation41_spill] sm:$0xff] }
 0x820   :  { %v4813_v32 = vmul.f32 %v4753_v44, %v15913_v43  ;;  %7865 = vmatpush1.bf16.msra.mxu1 %v15914_v38  ;;  %v4877_v60 = vadd.f32 %v13420_v49, %v4798_v46  ;;  %v4883_v17 = vadd.f32 %v13420_v49, %v4804_v24  ;;  %v15917_v18 = vsub.f32 %v15902_v41, %v13401_v22  ;;  %v15932_v46 = vld [vmem:[#allocation10_spill] sm:$0xff] }
 0x821   :  { %v4811_v20 = vmul.f32 %v4769_v10, %v15915_v16  ;;  %v4817_v15 = vmul.f32 %v4769_v10, %v15916_v11  ;;  %7867 = vmatprep.subr.bf16.mxu1 %v7866_v37  ;;  %v4886_v44 = vadd.f32 %v13408_v0, %v4807_v42  ;;  %v7898_v21 = vpack.c.bf16 %v4884_v35, %v4878_v48  ;;  %v15931_v48 = vld [vmem:[#allocation48_spill] sm:$0xff]  ;;  %v15934_v24 = vld [vmem:[#allocation34_spill] sm:$0xff] }
 0x822   :  { %v4892_v2 = vadd.f32 %v13408_v0, %v4813_v32  ;;  %v4810_v25 = vmul.f32 %v13509_v29, %v15917_v18  ;;  %v7900_v8 = vpack.c.bf16 %v4883_v17, %v4877_v60  ;;  %v15918_v12 = vsub.f32 %v15903_v54, %v13401_v22  ;;  %v15936_v16 = vld [vmem:[#allocation2_spill] sm:$0xff]  ;;  %v15938_v17 = vld [vmem:[#allocation44_spill] sm:$0xff] }
 0x823   :  { %v4890_v28 = vadd.f32 %v13414_v1, %v4811_v20  ;;  %v4896_v47 = vadd.f32 %v13414_v1, %v4817_v15  ;;  %v15919_v0 = vsub.f32 %v15904_v58, %v13404_v27  ;;  %7899 = vmatprep.subr.bf16.mxu0 %v7898_v21  ;;  %v15920_v1 = vpack.c.bf16 %v13390_v52, %v13388_v57 }
 0x824   :  { %v7870_v10 = vpack.c.bf16 %v4892_v2, %v4886_v44  ;;  %v4816_v62 = vmul.f32 %v13509_v29, %v15918_v12  ;;  %v4889_v31 = vadd.f32 %v13420_v49, %v4810_v25  ;;  %v15921_v5 = vsub.f32 %v15905_v3, %v13404_v27  ;;  %7901 = vmatpush1.bf16.msra.mxu0 %v7900_v8  ;;  %v7644_v12 = vld [vmem:[%s15308_s3 + $0x90] sm:$0xff] }
 0x825   :  { %v4772_v61 = vmul.f32 %v13516_v39, %v15919_v0  ;;  %7869 = vmatpush1.bf16.msra.mxu1 %v15920_v1  ;;  %v7902_v41 = vpack.c.bf16 %v4896_v47, %v4890_v28  ;;  %v4864_v58 = vadd.f32 %v13338_v13, %v13433_v51  ;;  %v15922_v22 = vsub.f32 %v13241_v4, %v13328_v59  ;;  %v15925_v4 = vld [vmem:[#allocation49_spill] sm:$0xff] }
 0x826   :  { %v4778_v54 = vmul.f32 %v13516_v39, %v15921_v5  ;;  %7871 = vmatprep.subr.bf16.mxu1 %v7870_v10  ;;  %v4895_v29 = vadd.f32 %v13420_v49, %v4816_v62  ;;  %v15923_v3 = vsub.f32 %v15906_v30, %v13404_v27  ;;  %v15924_v49 = vsub.f32 %v15907_v9, %v13404_v27  ;;  %v13627_v9 = vld [vmem:[%s15308_s3 + $0x80] sm:$0xff]  ;;  %v7649_v5 = vld [vmem:[%s15308_s3 + $0xb8] sm:$0xff] }
 0x827   :  { %v4803_v57 = vmul.f32 %v13370_v53, %v15922_v22  ;;  %7903 = vmatprep.subr.bf16.mxu0 %v7902_v41  ;;  %v4851_v52 = vadd.f32 %v13430_v34, %v4772_v61  ;;  %v7874_v55 = vpack.c.bf16 %v15925_v4, %v13436_v45  ;;  %v4870_v23 = vadd.f32 %v13338_v13, %v15926_v6  ;;  %v7645_v61 = vld [vmem:[%s15308_s3 + $0x98] sm:$0xff]  ;;  %v7647_v41 = vld [vmem:[%s15308_s3 + $0xa8] sm:$0xff] }
 0x828   :  { %v4857_v14 = vadd.f32 %v13430_v34, %v4778_v54  ;;  %v4784_v40 = vmul.f32 %v13516_v39, %v15923_v3  ;;  %v4790_v51 = vmul.f32 %v13516_v39, %v15924_v49  ;;  %v7904_v33 = vpack.c.bf16 %v4895_v29, %v4889_v31  ;;  %v7648_v31 = vld [vmem:[%s15308_s3 + $0xb0] sm:$0xff] }
 0x829   :  { %v4681_v26 = vsub.f32 %v15927_v19, %v13404_v27  ;;  %v15930_v30 = vpack.c.bf16 %v15928_v56, %v15929_v63  ;;  %v4687_v7 = vsub.f32 %v15931_v48, %v13404_v27  ;;  %v15933_v37 = vsub.f32 %v15932_v46, %v13328_v59 }
 0x82a   :  { %7905 = vmatpush1.bf16.msra.mxu0 %v7904_v33  ;;  %v15935_v36 = vsub.f32 %v15934_v24, %v13328_v59  ;;  %v7876_v43 = vpack.c.bf16 %v4857_v14, %v4851_v52  ;;  %v4863_v32 = vadd.f32 %v13430_v34, %v4784_v40  ;;  %v4869_v38 = vadd.f32 %v13430_v34, %v4790_v51  ;;  %v15937_v59 = vld [vmem:[#allocation40_spill] sm:$0xff] }
 0x82b   :  { %7873 = vmatpush1.bf16.msra.mxu1 %v15930_v30  ;;  %v4796_v45 = vmul.f32 %v13516_v39, %v4681_v26  ;;  %v4809_v50 = vmul.f32 %v13370_v53, %v15933_v37  ;;  %v4802_v35 = vmul.f32 %v13516_v39, %v4687_v7  ;;  %v7878_v60 = vpack.c.bf16 %v4870_v23, %v4864_v58 }
 0x82c   :  { %7875 = vmatprep.subr.bf16.mxu1 %v7874_v55  ;;  %v4815_v42 = vmul.f32 %v13370_v53, %v15935_v36  ;;  %v4876_v20 = vadd.f32 %v13338_v13, %v15936_v16  ;;  %v4882_v11 = vadd.f32 %v13338_v13, %v4803_v57  ;;  %v4693_v15 = vsub.f32 %v15937_v59, %v13404_v27  ;;  %v7643_v53 = vld [vmem:[%s15308_s3 + $0x88] sm:$0xff] }
 0x82d   :  { %7666 = vmatmul.mubr.msk.f32.vlgmr.msra.gmra.mrb[74].mxu0 %vm1256_vm9, %v13627_v9  ;;  %v4699_v44 = vsub.f32 %v15938_v17, %v13404_v27  ;;  %v15939_v2 = vmov 0.0   ;;  %v7880_v28 = vpack.c.bf16 %v4869_v38, %v4863_v32  ;;  %v4875_v47 = vadd.f32 %v13430_v34, %v4796_v45 }
 0x82e   :  { %7650 = vmatmul.mubr.msk.f32.vlgmr.msra.gmra.mrb[70].mxu1 %vm1256_vm9, %v13627_v9  ;;  %v4808_v21 = vmul.f32 %v13516_v39, %v4693_v15  ;;  %5258 = vmatprep.mubr.f32.mxu0 %v15939_v2  ;;  %v4881_v18 = vadd.f32 %v13430_v34, %v4802_v35  ;;  %v7882_v8 = vpack.c.bf16 %v4882_v11, %v4876_v20  ;;  %v13784_v35 = vpop.permute.xlu0 %4907  ;;  %v13793_v11 = vpop.permute.xlu1 %4911 }
 0x82f   :  { %7877 = vmatpush1.bf16.msra.mxu1 %v7876_v43  ;;  %5032 = vmatprep.mubr.f32.mxu1 %v15939_v2  ;;  %v4814_v25 = vmul.f32 %v13516_v39, %v4699_v44  ;;  %v4888_v10 = vadd.f32 %v13338_v13, %v4809_v50  ;;  %v4894_v27 = vadd.f32 %v13338_v13, %v4815_v42 }
 0x830   :  { %7879 = vmatprep.subr.bf16.mxu1 %v7878_v60  ;;  %v7884_v39 = vpack.c.bf16 %v4881_v18, %v4875_v47  ;;  %v4887_v62 = vadd.f32 %v13430_v34, %v4808_v21  ;;  %15949 = vst [vmem:[#allocation12_spill] sm:$0xff] %v13784_v35 }
 0x831   :  { %7667 = vmatmul.mubr.msk.f32.gmra.mrb[76].mxu0 %vm1256_vm9, %v7643_v53  ;;  %v4893_v0 = vadd.f32 %v13430_v34, %v4814_v25  ;;  %v7886_v13 = vpack.c.bf16 %v4894_v27, %v4888_v10  ;;  %v7646_v34 = vld [vmem:[%s15308_s3 + $0xa0] sm:$0xff] }
 0x832   :  { %7651 = vmatmul.mubr.msk.f32.gmra.mrb[72].mxu1 %vm1256_vm9, %v7643_v53  ;;  %5264 = vmatprep.mubr.f32.mxu0 %v15939_v2  ;;  %v13813_v18 = vpop.permute.xlu1 %4915 }
 0x833   :  { %7881 = vmatpush1.bf16.msra.mxu1 %v7880_v28  ;;  %5038 = vmatprep.mubr.f32.mxu1 %v15939_v2  ;;  %v7888_v1 = vpack.c.bf16 %v4893_v0, %v4887_v62  ;;  %15953 = vst [vmem:[#allocation4_spill] sm:$0xff] %v13813_v18 }
 0x834   :  { %7883 = vmatprep.subr.bf16.mxu1 %v7882_v8 }
 0x835   :  { %7668 = vmatmul.mubr.msk.f32.gmra.mrb[78].mxu0 %vm1256_vm9, %v7644_v12 }
 0x836   :  { %7652 = vmatmul.mubr.msk.f32.gmra.mrb[74].mxu1 %vm1256_vm9, %v7644_v12  ;;  %5270 = vmatprep.mubr.f32.mxu0 %v15939_v2 }
 0x837   :  { %7885 = vmatpush1.bf16.msra.mxu1 %v7884_v39  ;;  %5044 = vmatprep.mubr.f32.mxu1 %v15939_v2 }
 0x838   :  { %7887 = vmatprep.subr.bf16.mxu1 %v7886_v13 }
 0x839   :  { %7669 = vmatmul.mubr.msk.f32.gmra.mrb[80].mxu0 %vm1256_vm9, %v7645_v61 }
 0x83a   :  { %7653 = vmatmul.mubr.msk.f32.gmra.mrb[76].mxu1 %vm1256_vm9, %v7645_v61  ;;  %5276 = vmatprep.mubr.f32.mxu0 %v15939_v2 }
 0x83b   :  { %7889 = vmatpush1.bf16.msra.mxu1 %v7888_v1  ;;  %5050 = vmatprep.mubr.f32.mxu1 %v15939_v2 }
 0x83d   :  { %7670 = vmatmul.mubr.msk.f32.gmra.mrb[82].mxu0 %vm1256_vm9, %v7646_v34 }
 0x83e   :  { %7654 = vmatmul.mubr.msk.f32.gmra.mrb[78].mxu1 %vm1256_vm9, %v7646_v34  ;;  %5282 = vmatprep.mubr.f32.mxu0 %v15939_v2 }
 0x83f   :  { %5056 = vmatprep.mubr.f32.mxu1 %v15939_v2 }
 0x841   :  { %7671 = vmatmul.mubr.msk.f32.gmra.mrb[84].mxu0 %vm1256_vm9, %v7647_v41 }
 0x842   :  { %7655 = vmatmul.mubr.msk.f32.gmra.mrb[80].mxu1 %vm1256_vm9, %v7647_v41  ;;  %5288 = vmatprep.mubr.f32.mxu0 %v15939_v2 }
 0x843   :  { %5062 = vmatprep.mubr.f32.mxu1 %v15939_v2 }
 0x845   :  { %7672 = vmatmul.mubr.msk.f32.gmra.mrb[86].mxu0 %vm1256_vm9, %v7648_v31 }
 0x846   :  { %7656 = vmatmul.mubr.msk.f32.gmra.mrb[82].mxu1 %vm1256_vm9, %v7648_v31  ;;  %5294 = vmatprep.mubr.f32.mxu0 %v15939_v2 }
 0x847   :  { %5068 = vmatprep.mubr.f32.mxu1 %v15939_v2 }
 0x849   :  { %7673 = vmatmul.mubr.msk.f32.gmra.mrb[88].mxu0 %vm1256_vm9, %v7649_v5 }
 0x84a   :  { %7657 = vmatmul.mubr.msk.f32.gmra.mrb[84].mxu1 %vm1256_vm9, %v7649_v5  ;;  %6637 = vmatprep.mubr.f32.mxu0 %v15939_v2 }
 0x84b   :  { %5139 = vmatprep.mubr.f32.mxu1 %v15939_v2 }
 0x84e   :  { %7658 = vmatmul.mubr.msk.f32.vlgmr.msra.gmra.mrb[86].mxu1 %vm1256_vm9, %v13627_v9 }
 0x84f   :  { %5145 = vmatprep.mubr.f32.mxu1 %v15939_v2 }
 0x852   :  { %7659 = vmatmul.mubr.msk.f32.gmra.mrb[88].mxu1 %vm1256_vm9, %v7643_v53 }
 0x853   :  { %5151 = vmatprep.mubr.f32.mxu1 %v15939_v2 }
 0x856   :  { %7660 = vmatmul.mubr.msk.f32.gmra.mrb[90].mxu1 %vm1256_vm9, %v7644_v12 }
 0x857   :  { %5157 = vmatprep.mubr.f32.mxu1 %v15939_v2 }
 0x85a   :  { %7661 = vmatmul.mubr.msk.f32.gmra.mrb[92].mxu1 %vm1256_vm9, %v7645_v61 }
 0x85b   :  { %5163 = vmatprep.mubr.f32.mxu1 %v15939_v2 }
 0x85e   :  { %7662 = vmatmul.mubr.msk.f32.gmra.mrb[94].mxu1 %vm1256_vm9, %v7646_v34 }
 0x85f   :  { %5169 = vmatprep.mubr.f32.mxu1 %v15939_v2 }
 0x862   :  { %7663 = vmatmul.mubr.msk.f32.gmra.mrb[96].mxu1 %vm1256_vm9, %v7647_v41 }
 0x863   :  { %5175 = vmatprep.mubr.f32.mxu1 %v15939_v2 }
 0x866   :  { %7664 = vmatmul.mubr.msk.f32.gmra.mrb[98].mxu1 %vm1256_vm9, %v7648_v31 }
 0x867   :  { %5181 = vmatprep.mubr.f32.mxu1 %v15939_v2 }
 0x86a   :  { %7665 = vmatmul.mubr.msk.f32.gmra.mrb[100].mxu1 %vm1256_vm9, %v7649_v5 }
 0x86b   :  { %6459 = vmatprep.mubr.f32.mxu1 %v15939_v2 }
 0x900   :  { %v5254_v58 = vpop.f32.mrb[74].mxu0 }
 0x901   :  { %v13730_v54 = vpop.f32.mrb[70].mxu1  ;;  %v5256_v22 = vpop.f32.mrb[75].mxu0  ;;  %v13800_v53 = vadd.f32 %v5254_v58, %v13784_v35 }
 0x902   :  { %15940 = vst [vmem:[#allocation27_spill] sm:$0xff] %v13730_v54  ;;  %v5030_v29 = vpop.f32.mrb[71].mxu1  ;;  %v13817_v8 = vadd.f32 %v5256_v22, %v13784_v35  ;;  %v13837_v22 = vpop.permute.xlu0 %4919 }
 0x903   :  { %v13791_v20 = vadd.f32 %v5030_v29, %v13784_v35  ;;  %v5305_v25 = vmin.f32 %v13800_v53, 20.0  ;;  %15956 = vst [vmem:[#allocation9_spill] sm:$0xff] %v13837_v22  ;;  %vm5545_vm15 = vcmp.gt.f32.partialorder %v13800_v53, 20.0 }
 0x904   :  { %v5260_v14 = vpop.f32.mrb[76].mxu0  ;;  %v5306_v61 = vmin.f32 %v13817_v8, 20.0  ;;  %vm5546_vm2 = vcmp.gt.f32.partialorder %v13817_v8, 20.0 }
 0x905   :  { %v13732_v57 = vpop.f32.mrb[72].mxu1  ;;  %v5262_v3 = vpop.f32.mrb[77].mxu0  ;;  %v5302_v17 = vmin.f32 %v13791_v20, 20.0  ;;  %v13807_v21 = vadd.f32 %v5260_v14, %v13793_v11  ;;  %v5357_v13 = vmul.f32 1.442695, %v5305_v25  ;;  %vm5542_vm0 = vcmp.gt.f32.partialorder %v13791_v20, 20.0 }
 0x906   :  { %15941 = vst [vmem:[#allocation24_spill] sm:$0xff] %v13732_v57  ;;  %v5036_v52 = vpop.f32.mrb[73].mxu1  ;;  %v5359_v29 = vmul.f32 1.442695, %v5306_v61  ;;  %v13835_v58 = vadd.f32 %v5262_v3, %v13793_v11 }
 0x907   :  { %v13804_v44 = vadd.f32 %v5036_v52, %v13793_v11  ;;  %v5351_v10 = vmul.f32 1.442695, %v5302_v17  ;;  %v5311_v12 = vmin.f32 %v13807_v21, 20.0  ;;  %vm5551_vm4 = vcmp.gt.f32.partialorder %v13807_v21, 20.0 }
 0x908   :  { %v13736_v51 = vpop.f32.mrb[78].mxu0  ;;  %v5312_v25 = vmin.f32 %v13835_v58, 20.0  ;;  %vm5552_vm6 = vcmp.gt.f32.partialorder %v13835_v58, 20.0 }
 0x909   :  { %v13734_v40 = vpop.f32.mrb[74].mxu1  ;;  %v13738_v33 = vpop.f32.mrb[79].mxu0  ;;  %v5308_v27 = vmin.f32 %v13804_v44, 20.0  ;;  %8724 = vpow2.f32 %v5351_v10  ;;  %v5369_v34 = vmul.f32 1.442695, %v5311_v12  ;;  %v13845_v17 = vadd.f32 %v13736_v51, %v13813_v18 }
 0x90a   :  { %15942 = vst [vmem:[#allocation25_spill] sm:$0xff] %v13734_v40  ;;  %v5042_v49 = vpop.f32.mrb[75].mxu1  ;;  %8726 = vpow2.f32 %v5357_v13  ;;  %v13856_v12 = vadd.f32 %v13738_v33, %v13813_v18  ;;  %v5371_v51 = vmul.f32 1.442695, %v5312_v25  ;;  %vm5548_vm3 = vcmp.gt.f32.partialorder %v13804_v44, 20.0 }
 0x90b   :  { %v13824_v62 = vadd.f32 %v5042_v49, %v13813_v18  ;;  %v5363_v1 = vmul.f32 1.442695, %v5308_v27  ;;  %v5317_v61 = vmin.f32 %v13845_v17, 20.0  ;;  %vm5557_vm7 = vcmp.gt.f32.partialorder %v13845_v17, 20.0 }
 0x90c   :  { %v13744_v6 = vpop.f32.mrb[80].mxu0  ;;  %vm5558_vm8 = vcmp.gt.f32.partialorder %v13856_v12, 20.0 }
 0x90d   :  { %v13740_v4 = vpop.f32.mrb[76].mxu1  ;;  %v13746_v23 = vpop.f32.mrb[81].mxu0  ;;  %v5314_v31 = vmin.f32 %v13824_v62, 20.0  ;;  %8728 = vpow2.f32 %v5363_v1  ;;  %vm5554_vm5 = vcmp.gt.f32.partialorder %v13824_v62, 20.0 }
 0x90e   :  { %15943 = vst [vmem:[#allocation26_spill] sm:$0xff] %v13740_v4  ;;  %v13742_v55 = vpop.f32.mrb[77].mxu1  ;;  %8730 = vpow2.f32 %v5369_v34 }
 0x90f   :  { %v5375_v14 = vmul.f32 1.442695, %v5314_v31  ;;  %8732 = vpow2.f32 %v5359_v29  ;;  %v13850_v10 = vadd.f32 %v13742_v55, %v13837_v22  ;;  %v5318_v55 = vmin.f32 %v13856_v12, 20.0 }
 0x910   :  { %v13752_v56 = vpop.f32.mrb[82].mxu0 }
 0x911   :  { %v13748_v19 = vpop.f32.mrb[78].mxu1  ;;  %v13754_v63 = vpop.f32.mrb[83].mxu0  ;;  %8734 = vpow2.f32 %v5375_v14  ;;  %v5320_v1 = vmin.f32 %v13850_v10, 20.0  ;;  %vm5560_vm1 = vcmp.gt.f32.partialorder %v13850_v10, 20.0 }
 0x912   :  { %15944 = vst [vmem:[#allocation15_spill] sm:$0xff] %v13748_v19  ;;  %v13750_v26 = vpop.f32.mrb[79].mxu1  ;;  %8736 = vpow2.f32 %v5371_v51  ;;  %v13865_v51 = vadd.f32 %v13744_v6, %v13837_v22 }
 0x913   :  { %v8725_v27 = vpop.eup %8724  ;;  %v5387_v14 = vmul.f32 1.442695, %v5320_v1 }
 0x914   :  { %v13758_v9 = vpop.f32.mrb[84].mxu0  ;;  %v8727_v34 = vpop.eup %8726  ;;  %v5446_v31 = vadd.f32 2.0, %v8725_v27  ;;  %vm5563_vm11 = vcmp.gt.f32.partialorder %v13865_v51, 20.0 }
 0x915   :  { %v13756_v30 = vpop.f32.mrb[80].mxu1  ;;  %v13762_v7 = vpop.f32.mrb[85].mxu0 }
 0x916   :  { %15945 = vst [vmem:[#allocation18_spill] sm:$0xff] %v13756_v30  ;;  %v13760_v48 = vpop.f32.mrb[81].mxu1  ;;  %v5494_v33 = vmul.f32 %v8725_v27, %v5446_v31 }
 0x917   :  { %v8729_v29 = vpop.eup %8728 }
 0x918   :  { %v13766_v46 = vpop.f32.mrb[86].mxu0  ;;  %v8731_v2 = vpop.eup %8730  ;;  %v5590_v19 = vadd.f32 2.0, %v5494_v33 }
 0x919   :  { %v13764_v45 = vpop.f32.mrb[82].mxu1  ;;  %v13770_v50 = vpop.f32.mrb[87].mxu0 }
 0x91a   :  { %15946 = vst [vmem:[#allocation20_spill] sm:$0xff] %v13764_v45  ;;  %v13768_v37 = vpop.f32.mrb[83].mxu1  ;;  %v5452_v45 = vadd.f32 2.0, %v8729_v29 }
 0x91c   :  { %v13774_v36 = vpop.f32.mrb[88].mxu0 }
 0x91d   :  { %v13772_v24 = vpop.f32.mrb[84].mxu1  ;;  %v13778_v43 = vpop.f32.mrb[89].mxu0 }
 0x91e   :  { %15947 = vst [vmem:[#allocation46_spill] sm:$0xff] %v13772_v24  ;;  %v13776_v42 = vpop.f32.mrb[85].mxu1  ;;  %v5449_v24 = vadd.f32 2.0, %v8727_v34 }
 0x920   :  { %v5497_v25 = vmul.f32 %v8727_v34, %v5449_v24  ;;  %v5323_v34 = vmin.f32 %v13865_v51, 20.0 }
 0x921   :  { %v13780_v32 = vpop.f32.mrb[86].mxu1 }
 0x922   :  { %v13782_v38 = vpop.f32.mrb[87].mxu1  ;;  %v5593_v4 = vadd.f32 2.0, %v5497_v25 }
 0x923   :  { %15948 = vst [vmem:[#allocation45_spill] sm:$0xff] %v13782_v38 }
 0x925   :  { %v13786_v60 = vpop.f32.mrb[88].mxu1 }
 0x926   :  { %v13788_v16 = vpop.f32.mrb[89].mxu1 }
 0x927   :  { %15950 = vst [vmem:[#allocation11_spill] sm:$0xff] %v13788_v16 }
 0x929   :  { %v13795_v59 = vpop.f32.mrb[90].mxu1 }
 0x92a   :  { %v13797_v15 = vpop.f32.mrb[91].mxu1 }
 0x92b   :  { %15951 = vst [vmem:[#allocation29_spill] sm:$0xff] %v13797_v15  ;;  %v5500_v15 = vmul.f32 %v8729_v29, %v5452_v45 }
 0x92d   :  { %v13809_v28 = vpop.f32.mrb[92].mxu1  ;;  %v5596_v27 = vadd.f32 2.0, %v5500_v15 }
 0x92e   :  { %v13811_v47 = vpop.f32.mrb[93].mxu1 }
 0x92f   :  { %15952 = vst [vmem:[#allocation13_spill] sm:$0xff] %v13811_v47 }
 0x931   :  { %v13821_v39 = vpop.f32.mrb[94].mxu1 }
 0x932   :  { %v13826_v0 = vpop.f32.mrb[95].mxu1 }
 0x933   :  { %15954 = vst [vmem:[#allocation35_spill] sm:$0xff] %v13826_v0  ;;  %v5455_v0 = vadd.f32 2.0, %v8731_v2 }
 0x935   :  { %v13829_v41 = vpop.f32.mrb[96].mxu1  ;;  %v5503_v38 = vmul.f32 %v8731_v2, %v5455_v0 }
 0x936   :  { %v13832_v5 = vpop.f32.mrb[97].mxu1 }
 0x937   :  { %15955 = vst [vmem:[#allocation42_spill] sm:$0xff] %v13832_v5  ;;  %v8733_v5 = vpop.eup %8732  ;;  %v5599_v31 = vadd.f32 2.0, %v5503_v38 }
 0x938   :  { %v8735_v30 = vpop.eup %8734  ;;  %v5450_v47 = vadd.f32 2.0, %v8733_v5 }
 0x939   :  { %v13839_v52 = vpop.f32.mrb[98].mxu1  ;;  %v5458_v16 = vadd.f32 2.0, %v8735_v30  ;;  %v8737_v1 = vpop.eup %8736 }
 0x93a   :  { %v13841_v49 = vpop.f32.mrb[99].mxu1  ;;  %v5456_v2 = vadd.f32 2.0, %v8737_v1 }
 0x93b   :  { %15957 = vst [vmem:[#allocation33_spill] sm:$0xff] %v13841_v49  ;;  %v5381_v49 = vmul.f32 1.442695, %v5317_v61  ;;  %v5498_v61 = vmul.f32 %v8733_v5, %v5450_v47 }
 0x93d   :  { %v13852_v3 = vpop.f32.mrb[100].mxu1  ;;  %8738 = vpow2.f32 %v5381_v49  ;;  %v13867_v49 = vmul.f32 %v8735_v30, %v5458_v16  ;;  %v5594_v24 = vadd.f32 2.0, %v5498_v61  ;;  %v13873_v16 = vpop.permute.xlu1 %4923 }
 0x93e   :  { %v13858_v13 = vpop.f32.mrb[101].mxu1  ;;  %8740 = vpow2.f32 %v5387_v14  ;;  %15959 = vst [vmem:[#allocation6_spill] sm:$0xff] %v13873_v16  ;;  %v13879_v14 = vadd.f32 %v13746_v23, %v13837_v22 }
 0x93f   :  { %15958 = vst [vmem:[#allocation7_spill] sm:$0xff] %v13858_v13  ;;  %v5383_v13 = vmul.f32 1.442695, %v5318_v55  ;;  %v5602_v47 = vadd.f32 2.0, %v13867_v49 }
 0x940   :  { %vm5564_vm12 = vcmp.gt.f32.partialorder %v13879_v14, 20.0 }
 0x941   :  { %8742 = vpow2.f32 %v5383_v13  ;;  %v13871_v13 = vmul.f32 %v8737_v1, %v5456_v2 }
 0x942   :  { %8744 = vrcp.f32 %v5590_v19  ;;  %v5393_v19 = vmul.f32 1.442695, %v5323_v34  ;;  %v13886_v34 = vadd.f32 %v13750_v26, %v13873_v16 }
 0x943   :  { %8746 = vrcp.f32 %v5593_v4 }
 0x944   :  { %8748 = vrcp.f32 %v5596_v27  ;;  %v5600_v27 = vadd.f32 2.0, %v13871_v13  ;;  %vm5566_vm13 = vcmp.gt.f32.partialorder %v13886_v34, 20.0 }
 0x945   :  { %8750 = vrcp.f32 %v5599_v31 }
 0x946   :  { %8752 = vrcp.f32 %v5594_v24 }
 0x947   :  { %v8739_v45 = vpop.eup %8738  ;;  %8754 = vrcp.f32 %v5602_v47 }
 0x948   :  { %v8741_v0 = vpop.eup %8740  ;;  %v5461_v6 = vadd.f32 2.0, %v8739_v45  ;;  %8756 = vpow2.f32 %v5393_v19  ;;  %v5324_v19 = vmin.f32 %v13879_v14, 20.0 }
 0x949   :  { %v5464_v29 = vadd.f32 2.0, %v8741_v0  ;;  %8758 = vrcp.f32 %v5600_v27 }
 0x94a   :  { %v13875_v55 = vmul.f32 %v8739_v45, %v5461_v6  ;;  %v13890_v45 = vpop.permute.xlu0 %4927 }
 0x94b   :  { %v8743_v5 = vpop.eup %8742  ;;  %v13882_v31 = vmul.f32 %v8741_v0, %v5464_v29  ;;  %15960 = vst [vmem:[#allocation50_spill] sm:$0xff] %v13890_v45  ;;  %v13897_v0 = vadd.f32 %v13752_v56, %v13873_v16  ;;  %v13910_v56 = vadd.f32 %v13760_v48, %v13890_v45 }
 0x94c   :  { %v8745_v30 = vpop.eup %8744  ;;  %v5462_v4 = vadd.f32 2.0, %v8743_v5  ;;  %v5605_v23 = vadd.f32 2.0, %v13875_v55 }
 0x94d   :  { %v8747_v24 = vpop.eup %8746  ;;  %v5640_v1 = vmul.f32 %v8745_v30, %v5494_v33  ;;  %15961 = vst [vmem:[#allocation31_spill] sm:$0xff] %v13897_v0  ;;  %v5608_v26 = vadd.f32 2.0, %v13882_v31  ;;  %v13903_v33 = vadd.f32 %v13754_v63, %v13873_v16  ;;  %v13915_v63 = vadd.f32 %v13762_v7, %v13890_v45 }
 0x94e   :  { %v8749_v2 = vpop.eup %8748  ;;  %v13888_v47 = vmul.f32 %v8743_v5, %v5462_v4  ;;  %v5646_v30 = vmul.f32 %v8747_v24, %v5497_v25  ;;  %v5326_v4 = vmin.f32 %v13886_v34, 20.0  ;;  %8760 = vrcp.f32 %v5605_v23 }
 0x94f   :  { %v8751_v6 = vpop.eup %8750  ;;  %v5734_v29 = vmul.f32 %v5640_v1, %v13791_v20  ;;  %v5652_v40 = vmul.f32 %v8749_v2, %v5500_v15  ;;  %v5395_v25 = vmul.f32 1.442695, %v5324_v19  ;;  %v5329_v24 = vmin.f32 %v13897_v0, 20.0 }
 0x950   :  { %v8753_v5 = vpop.eup %8752  ;;  %v5658_v27 = vmul.f32 %v8751_v6, %v5503_v38  ;;  %v5606_v54 = vadd.f32 2.0, %v13888_v47  ;;  %8762 = vrcp.f32 %v5608_v26  ;;  %v5330_v48 = vmin.f32 %v13903_v33, 20.0  ;;  %v13921_v38 = vpop.permute.xlu1 %4931 }
 0x951   :  { %v8755_v1 = vpop.eup %8754  ;;  %v5648_v57 = vmul.f32 %v8753_v5, %v5498_v61  ;;  %15962 = vst [vmem:[#allocation52_spill] sm:$0xff] %v13921_v38  ;;  %v13926_v7 = vsel %vm5542_vm0, %v13791_v20, %v5734_v29  ;;  %v5737_v2 = vmul.f32 %v5646_v30, %v13800_v53  ;;  %v5399_v6 = vmul.f32 1.442695, %v5326_v4  ;;  %v13934_v5 = vpop.permute.xlu0 %4935 }
 0x952   :  { %v8757_v15 = vpop.eup %8756  ;;  %15963 = vst [vmem:[#allocation43_spill] sm:$0xff] %v13926_v7  ;;  %v5332_v23 = vmin.f32 %v13910_v56, 20.0  ;;  %v5740_v61 = vmul.f32 %v5652_v40, %v13804_v44  ;;  %v5743_v19 = vmul.f32 %v5658_v27, %v13807_v21  ;;  %8764 = vrcp.f32 %v5606_v54 }
 0x953   :  { %v5336_v26 = vmin.f32 %v13915_v63, 20.0  ;;  %v5664_v0 = vmul.f32 %v8755_v1, %v13867_v49  ;;  %8766 = vpow2.f32 %v5395_v25  ;;  %v5405_v20 = vmul.f32 1.442695, %v5329_v24 }
 0x954   :  { %v13939_v29 = vadd.f32 %v13768_v37, %v13921_v38  ;;  %v5916_v40 = vmul.f32 %v13926_v7, %v13926_v7  ;;  %v5738_v30 = vmul.f32 %v5648_v57, %v13817_v8  ;;  %v5467_v4 = vadd.f32 2.0, %v8757_v15  ;;  %v8759_v37 = vpop.eup %8758 }
 0x955   :  { %v5407_v27 = vmul.f32 1.442695, %v5330_v48  ;;  %v13947_v54 = vsel %vm5545_vm15, %v13800_v53, %v5737_v2  ;;  %8768 = vpow2.f32 %v5399_v6  ;;  %v5411_v49 = vmul.f32 1.442695, %v5332_v23 }
 0x956   :  { %15964 = vst [vmem:[#allocation47_spill] sm:$0xff] %v13947_v54  ;;  %v13951_v25 = vadd.f32 %v13776_v42, %v13934_v5  ;;  %v13956_v24 = vsel %vm5548_vm3, %v13804_v44, %v5740_v61  ;;  %v13961_v57 = vsel %vm5551_vm4, %v13807_v21, %v5743_v19  ;;  %v13965_v53 = vadd.f32 %v13758_v9, %v13890_v45 }
 0x957   :  { %15966 = vst [vmem:[#allocation51_spill] sm:$0xff] %v13956_v24  ;;  %15967 = vst [vmem:[#allocation30_spill] sm:$0xff] %v13961_v57  ;;  %v5419_v1 = vmul.f32 1.442695, %v5336_v26  ;;  %v5746_v48 = vmul.f32 %v5664_v0, %v13824_v62  ;;  %8770 = vpow2.f32 %v5405_v20  ;;  %v5338_v42 = vmin.f32 %v13939_v29, 20.0 }
 0x958   :  { %15965 = vst [vmem:[#allocation38_spill] sm:$0xff] %v13951_v25  ;;  %15968 = vst [vmem:[#allocation14_spill] sm:$0xff] %v13965_v53  ;;  %v13972_v44 = vadd.f32 %v13770_v50, %v13921_v38  ;;  %v13977_v21 = vsel %vm5546_vm2, %v13817_v8, %v5738_v30  ;;  %v13979_v2 = vmul.f32 %v8757_v15, %v5467_v4  ;;  %8772 = vpow2.f32 %v5407_v27  ;;  %v8761_v0 = vpop.eup %8760 }
 0x959   :  { %15969 = vst [vmem:[#allocation5_spill] sm:$0xff] %v13977_v21  ;;  %v13983_v9 = vadd.f32 %v13766_v46, %v13921_v38  ;;  %v5922_v6 = vmul.f32 %v13956_v24, %v13956_v24  ;;  %v5919_v50 = vmul.f32 %v13947_v54, %v13947_v54  ;;  %8774 = vpow2.f32 %v5411_v49 }
 0x95a   :  { %v5344_v23 = vmin.f32 %v13951_v25, 20.0  ;;  %v8763_v61 = vpop.eup %8762  ;;  %v5925_v8 = vmul.f32 %v13961_v57, %v13961_v57  ;;  %v5660_v15 = vmul.f32 %v8759_v37, %v13871_v13  ;;  %v5335_v19 = vmin.f32 %v13965_v53, 20.0 }
 0x95b   :  { %8776 = vpow2.f32 %v5419_v1  ;;  %v13997_v46 = vsel %vm5554_vm5, %v13824_v62, %v5746_v48  ;;  %v14001_v26 = vmul.f32 %v13977_v21, %v13977_v21  ;;  %v5423_v20 = vmul.f32 1.442695, %v5338_v42 }
 0x95c   :  { %15970 = vst [vmem:[#allocation3_spill] sm:$0xff] %v13997_v46  ;;  %v5342_v30 = vmin.f32 %v13972_v44, 20.0  ;;  %v8765_v4 = vpop.eup %8764  ;;  %v5850_v27 = vadd.f32 %v13956_v24, %v13926_v7  ;;  %v14008_v13 = vadd.f32 %v13961_v57, %v13947_v54  ;;  %v5611_v49 = vadd.f32 2.0, %v13979_v2 }
 0x95d   :  { %v5341_v62 = vmin.f32 %v13983_v9, 20.0  ;;  %v8767_v37 = vpop.eup %8766  ;;  %v5976_v1 = vadd.f32 %v5922_v6, %v5916_v40  ;;  %v5670_v48 = vmul.f32 %v8761_v0, %v13875_v55  ;;  %v5435_v53 = vmul.f32 1.442695, %v5344_v23 }
 0x95e   :  { %v14015_v42 = vadd.f32 %v13780_v32, %v13784_v35  ;;  %v14018_v25 = vadd.f32 %v5850_v27, %v13997_v46  ;;  %v14020_v24 = vadd.f32 %v5925_v8, %v5919_v50  ;;  %v5744_v57 = vmul.f32 %v5660_v15, %v13835_v58 }
 0x95f   :  { %v5417_v54 = vmul.f32 1.442695, %v5335_v19  ;;  %v8769_v7 = vpop.eup %8768  ;;  %v5928_v40 = vmul.f32 %v13997_v46, %v13997_v46  ;;  %8778 = vpow2.f32 %v5423_v20  ;;  %v5431_v55 = vmul.f32 1.442695, %v5342_v30 }
 0x960   :  { %v14028_v32 = vadd.f32 %v13778_v43, %v13934_v5  ;;  %v5676_v0 = vmul.f32 %v8763_v61, %v13882_v31  ;;  %8780 = vrcp.f32 %v5611_v49  ;;  %v5468_v6 = vadd.f32 2.0, %v8767_v37 }
 0x961   :  { %v5429_v50 = vmul.f32 1.442695, %v5341_v62  ;;  %v8771_v23 = vpop.eup %8770  ;;  %v5749_v8 = vmul.f32 %v5670_v48, %v13845_v17  ;;  %8782 = vpow2.f32 %v5435_v53  ;;  %v5303_v15 = vmin.f32 %v14015_v42, 20.0 }
 0x962   :  { %v14035_v19 = vadd.f32 %v13786_v60, %v13793_v11  ;;  %v8773_v20 = vpop.eup %8772  ;;  %v14040_v43 = vsel %vm5552_vm6, %v13835_v58, %v5744_v57  ;;  %v5470_v31 = vadd.f32 2.0, %v8769_v7  ;;  %8784 = vpow2.f32 %v5417_v54 }
 0x963   :  { %15971 = vst [vmem:[#allocation28_spill] sm:$0xff] %v14040_v43  ;;  %v14044_v61 = vadd.f32 %v13795_v59, %v13813_v18  ;;  %v8775_v30 = vpop.eup %8774  ;;  %v5672_v53 = vmul.f32 %v8765_v4, %v13888_v47  ;;  %8786 = vpow2.f32 %v5431_v55  ;;  %v5348_v27 = vmin.f32 %v14028_v32, 20.0 }
 0x964   :  { %v5309_v60 = vmin.f32 %v14035_v19, 20.0  ;;  %v14049_v62 = vadd.f32 %v5976_v1, %v5928_v40  ;;  %v14051_v48 = vmul.f32 %v8767_v37, %v5468_v6  ;;  %8788 = vpow2.f32 %v5429_v50 }
 0x965   :  { %v8777_v49 = vpop.eup %8776  ;;  %v5315_v58 = vmin.f32 %v14044_v61, 20.0  ;;  %v14056_v59 = vadd.f32 %v14040_v43, %v13977_v21  ;;  %v5473_v54 = vadd.f32 2.0, %v8771_v23  ;;  %v5353_v57 = vmul.f32 1.442695, %v5303_v15 }
 0x966   :  { %v5365_v47 = vmul.f32 1.442695, %v5309_v60  ;;  %v14059_v4 = vmul.f32 %v8769_v7, %v5470_v31  ;;  %v5474_v55 = vadd.f32 2.0, %v8773_v20  ;;  %v14063_v37 = vadd.f32 %v13809_v28, %v13837_v22 }
 0x967   :  { %v5377_v46 = vmul.f32 1.442695, %v5315_v58  ;;  %v5476_v1 = vadd.f32 2.0, %v8775_v30  ;;  %v5480_v40 = vadd.f32 2.0, %v8777_v49  ;;  %v5443_v6 = vmul.f32 1.442695, %v5348_v27 }
 0x968   :  { %v14067_v50 = vadd.f32 %v13821_v39, %v13873_v16  ;;  %v5926_v15 = vmul.f32 %v14040_v43, %v14040_v43  ;;  %v5612_v7 = vadd.f32 2.0, %v14051_v48  ;;  %8790 = vpow2.f32 %v5365_v47 }
 0x969   :  { %v5321_v31 = vmin.f32 %v14063_v37, 20.0  ;;  %v8779_v60 = vpop.eup %8778  ;;  %v14077_v28 = vsel %vm5557_vm7, %v13845_v17, %v5749_v8  ;;  %v14079_v27 = vmul.f32 %v8771_v23, %v5473_v54  ;;  %8792 = vpow2.f32 %v5353_v57 }
 0x96a   :  { %15972 = vst [vmem:[#allocation8_spill] sm:$0xff] %v14077_v28  ;;  %v5327_v39 = vmin.f32 %v14067_v50, 20.0  ;;  %v8781_v58 = vpop.eup %8780  ;;  %v5614_v43 = vadd.f32 2.0, %v14059_v4  ;;  %v14083_v21 = vmul.f32 %v8773_v20, %v5474_v55  ;;  %8794 = vpow2.f32 %v5377_v46 }
 0x96b   :  { %v5389_v47 = vmul.f32 1.442695, %v5321_v31  ;;  %v8783_v16 = vpop.eup %8782  ;;  %v5752_v22 = vmul.f32 %v5676_v0, %v13850_v10  ;;  %v14086_v18 = vmul.f32 %v8775_v30, %v5476_v1  ;;  %v14088_v35 = vmul.f32 %v8777_v49, %v5480_v40 }
 0x96c   :  { %8796 = vpow2.f32 %v5443_v6  ;;  %v8785_v17 = vpop.eup %8784  ;;  %v5482_v23 = vadd.f32 2.0, %v8779_v60  ;;  %v5401_v8 = vmul.f32 1.442695, %v5327_v39  ;;  %v14092_v54 = vadd.f32 %v13829_v41, %v13890_v45 }
 0x96d   :  { %8798 = vrcp.f32 %v5612_v7  ;;  %v8787_v20 = vpop.eup %8786  ;;  %v14096_v46 = vadd.f32 %v14008_v13, %v14077_v28  ;;  %v5931_v0 = vmul.f32 %v14077_v28, %v14077_v28  ;;  %v5617_v30 = vadd.f32 2.0, %v14079_v27 }
 0x96e   :  { %8800 = vpow2.f32 %v5389_v47  ;;  %v8789_v49 = vpop.eup %8788  ;;  %v5750_v57 = vmul.f32 %v5672_v53, %v13856_v12  ;;  %v5618_v41 = vadd.f32 2.0, %v14083_v21  ;;  %v5488_v55 = vadd.f32 2.0, %v8783_v16 }
 0x96f   :  { %8802 = vrcp.f32 %v5614_v43  ;;  %v14107_v13 = vsel %vm5560_vm1, %v13850_v10, %v5752_v22  ;;  %v5620_v1 = vadd.f32 2.0, %v14086_v18  ;;  %v5624_v40 = vadd.f32 2.0, %v14088_v35 }
 0x970   :  { %15973 = vst [vmem:[#allocation49_spill] sm:$0xff] %v14107_v13  ;;  %v5479_v6 = vadd.f32 2.0, %v8785_v17  ;;  %v14111_v7 = vmul.f32 %v8779_v60, %v5482_v23  ;;  %v5486_v31 = vadd.f32 2.0, %v8787_v20  ;;  %8804 = vpow2.f32 %v5401_v8 }
 0x971   :  { %v5333_v53 = vmin.f32 %v14092_v54, 20.0  ;;  %v6028_v43 = vadd.f32 %v5926_v15, %v14001_v26  ;;  %v5682_v39 = vmul.f32 %v8781_v58, %v13979_v2  ;;  %8806 = vrcp.f32 %v5617_v30 }
 0x972   :  { %v5485_v47 = vadd.f32 2.0, %v8789_v49  ;;  %v8791_v28 = vpop.eup %8790  ;;  %v14118_v22 = vadd.f32 %v14018_v25, %v14107_v13  ;;  %v5934_v10 = vmul.f32 %v14107_v13, %v14107_v13  ;;  %8808 = vrcp.f32 %v5618_v41 }
 0x973   :  { %v14122_v60 = vmul.f32 %v8783_v16, %v5488_v55  ;;  %v8793_v23 = vpop.eup %8792  ;;  %v14127_v26 = vsel %vm5558_vm8, %v13856_v12, %v5750_v57  ;;  %8810 = vrcp.f32 %v5620_v1  ;;  %v14129_v2 = vmul.f32 %v8785_v17, %v5479_v6 }
 0x974   :  { %15974 = vst [vmem:[#allocation36_spill] sm:$0xff] %v14127_v26  ;;  %v5413_v15 = vmul.f32 1.442695, %v5333_v53  ;;  %v8795_v58 = vpop.eup %8794  ;;  %v14132_v25 = vadd.f32 %v14020_v24, %v5931_v0  ;;  %8812 = vrcp.f32 %v5624_v40  ;;  %v5626_v8 = vadd.f32 2.0, %v14111_v7 }
 0x975   :  { %v14135_v30 = vmul.f32 %v8787_v20, %v5486_v31  ;;  %v5755_v41 = vmul.f32 %v5682_v39, %v13865_v51  ;;  %v14138_v55 = vmul.f32 %v8789_v49, %v5485_v47  ;;  %v5453_v12 = vadd.f32 2.0, %v8791_v28 }
 0x976   :  { %v8797_v16 = vpop.eup %8796  ;;  %8814 = vpow2.f32 %v5413_v15  ;;  %v14142_v17 = vadd.f32 %v14056_v59, %v14127_v26  ;;  %v5932_v24 = vmul.f32 %v14127_v26, %v14127_v26  ;;  %v5632_v0 = vadd.f32 2.0, %v14122_v60 }
 0x977   :  { %v8799_v57 = vpop.eup %8798  ;;  %v5447_v1 = vadd.f32 2.0, %v8793_v23  ;;  %v14148_v40 = vadd.f32 %v14049_v62, %v5934_v10  ;;  %v5623_v49 = vadd.f32 2.0, %v14129_v2  ;;  %v5459_v6 = vadd.f32 2.0, %v8795_v58 }
 0x978   :  { %v8801_v20 = vpop.eup %8800  ;;  %v14153_v31 = vadd.f32 %v13839_v52, %v13921_v38  ;;  %8816 = vrcp.f32 %v5626_v8  ;;  %v5630_v59 = vadd.f32 2.0, %v14135_v30  ;;  %v14158_v39 = vadd.f32 %v13774_v36, %v13934_v5 }
 0x979   :  { %v8803_v53 = vpop.eup %8802  ;;  %v5492_v47 = vadd.f32 2.0, %v8797_v16  ;;  %v14163_v62 = vsel %vm5563_vm11, %v13865_v51, %v5755_v41  ;;  %v5684_v10 = vmul.f32 %v8799_v57, %v14051_v48  ;;  %v5629_v52 = vadd.f32 2.0, %v14138_v55 }
 0x97a   :  { %v14168_v15 = vmul.f32 %v8791_v28, %v5453_v12  ;;  %v8805_v8 = vpop.eup %8804  ;;  %8818 = vrcp.f32 %v5632_v0  ;;  %v14170_v26 = vmul.f32 %v8793_v23, %v5447_v1  ;;  %v5465_v36 = vadd.f32 2.0, %v8801_v20 }
 0x97b   :  { %v5339_v13 = vmin.f32 %v14153_v31, 20.0  ;;  %v8807_v38 = vpop.eup %8806  ;;  %v14173_v45 = vadd.f32 %v6028_v43, %v5932_v24  ;;  %v5688_v51 = vmul.f32 %v8803_v53, %v14059_v4  ;;  %8820 = vrcp.f32 %v5623_v49 }
 0x97c   :  { %v14176_v41 = vmul.f32 %v8795_v58, %v5459_v6  ;;  %v8809_v48 = vpop.eup %8808  ;;  %8822 = vrcp.f32 %v5630_v59  ;;  %v14178_v57 = vmul.f32 %v8797_v16, %v5492_v47  ;;  %v5471_v28 = vadd.f32 2.0, %v8805_v8  ;;  %v15975_v59 = vld [vmem:[#allocation31_spill] sm:$0xff] }
 0x97d   :  { %v5425_v12 = vmul.f32 1.442695, %v5339_v13  ;;  %v8811_v0 = vpop.eup %8810  ;;  %v14182_v23 = vadd.f32 %v14096_v46, %v14163_v62  ;;  %v5347_v43 = vmin.f32 %v14158_v39, 20.0  ;;  %v5597_v4 = vadd.f32 2.0, %v14168_v15 }
 0x97e   :  { %v8813_v24 = vpop.eup %8812  ;;  %v5756_v58 = vmul.f32 %v5684_v10, %v13879_v14  ;;  %vm5570_vm14 = vcmp.gt.f32.partialorder %v13903_v33, 20.0  ;;  %8824 = vrcp.f32 %v5629_v52  ;;  %v5591_v16 = vadd.f32 2.0, %v14170_v26 }
 0x97f   :  { %v14190_v13 = vmul.f32 %v8801_v20, %v5465_v36  ;;  %v5696_v46 = vmul.f32 %v8809_v48, %v14083_v21  ;;  %v5603_v49 = vadd.f32 2.0, %v14176_v41  ;;  %8826 = vpow2.f32 %v5425_v12 }
 0x980   :  { %v8815_v1 = vpop.eup %8814  ;;  %v14196_v6 = vadd.f32 %v13852_v3, %v13934_v5  ;;  %v5758_v53 = vmul.f32 %v5688_v51, %v13886_v34  ;;  %vm5569_vm0 = vcmp.gt.f32.partialorder %v15975_v59, 20.0  ;;  %v5636_v47 = vadd.f32 2.0, %v14178_v57 }
 0x981   :  { %v14201_v10 = vmul.f32 %v8805_v8, %v5471_v28  ;;  %v5477_v20 = vadd.f32 2.0, %v8815_v1  ;;  %v5694_v52 = vmul.f32 %v8807_v38, %v14079_v27  ;;  %vm5572_vm15 = vcmp.gt.f32.partialorder %v13910_v56, 20.0 }
 0x982   :  { %v5700_v21 = vmul.f32 %v8811_v0, %v14086_v18  ;;  %vm5576_vm2 = vcmp.gt.f32.partialorder %v13915_v63, 20.0  ;;  %8828 = vrcp.f32 %v5597_v4  ;;  %v5345_v3 = vmin.f32 %v14196_v6, 20.0  ;;  %v8817_v36 = vpop.eup %8816 }
 0x983   :  { %v5708_v51 = vmul.f32 %v8813_v24, %v14088_v35  ;;  %8830 = vrcp.f32 %v5591_v16  ;;  %v5609_v48 = vadd.f32 2.0, %v14190_v13  ;;  %v14210_v8 = vmul.f32 %v8815_v1, %v5477_v20 }
 0x984   :  { %v5762_v28 = vmul.f32 %v5696_v46, %v13903_v33  ;;  %v5441_v38 = vmul.f32 1.442695, %v5347_v43  ;;  %8832 = vrcp.f32 %v5603_v49  ;;  %v5437_v27 = vmul.f32 1.442695, %v5345_v3  ;;  %v8819_v12 = vpop.eup %8818 }
 0x985   :  { %v14215_v18 = vmul.f32 %v14163_v62, %v14163_v62  ;;  %v14220_v0 = vsel %vm5564_vm12, %v13879_v14, %v5756_v58  ;;  %vm5578_vm3 = vcmp.gt.f32.partialorder %v13939_v29, 20.0  ;;  %8834 = vrcp.f32 %v5636_v47  ;;  %v8821_v4 = vpop.eup %8820 }
 0x986   :  { %v5615_v35 = vadd.f32 2.0, %v14201_v10  ;;  %v14227_v43 = vsel %vm5566_vm13, %v13886_v34, %v5758_v53  ;;  %v5761_v24 = vmul.f32 %v5694_v52, %v15975_v59  ;;  %v5712_v16 = vmul.f32 %v8817_v36, %v14111_v7  ;;  %v8823_v1 = vpop.eup %8822  ;;  %v15976_v52 = vld [vmem:[#allocation38_spill] sm:$0xff] }
 0x987   :  { %8836 = vpow2.f32 %v5437_v27  ;;  %v5764_v14 = vmul.f32 %v5700_v21, %v13910_v56  ;;  %v5768_v58 = vmul.f32 %v5708_v51, %v13915_v63  ;;  %v5621_v46 = vadd.f32 2.0, %v14210_v8 }
 0x988   :  { %8838 = vrcp.f32 %v5609_v48  ;;  %v5938_v49 = vmul.f32 %v14220_v0, %v14220_v0  ;;  %v14239_v34 = vsel %vm5570_vm14, %v13903_v33, %v5762_v28  ;;  %v5724_v7 = vmul.f32 %v8819_v12, %v14122_v60  ;;  %v8825_v53 = vpop.eup %8824 }
 0x989   :  { %8840 = vpow2.f32 %v5441_v38  ;;  %v5904_v47 = vadd.f32 %v14142_v17, %v14220_v0  ;;  %v5940_v20 = vmul.f32 %v14227_v43, %v14227_v43  ;;  %vm5582_vm4 = vcmp.gt.f32.partialorder %v13972_v44, 20.0  ;;  %v8827_v21 = vpop.eup %8826 }
 0x98a   :  { %vm5584_vm5 = vcmp.gt.f32.partialorder %v15976_v52, 20.0  ;;  %8842 = vrcp.f32 %v5615_v35  ;;  %v14251_v33 = vsel %vm5569_vm0, %v15975_v59, %v5761_v24  ;;  %v5706_v60 = vmul.f32 %v8821_v4, %v14129_v2 }
 0x98b   :  { %v5770_v3 = vmul.f32 %v5712_v16, %v13939_v29  ;;  %v5720_v17 = vmul.f32 %v8823_v1, %v14135_v30  ;;  %v5944_v36 = vmul.f32 %v14239_v34, %v14239_v34  ;;  %v14261_v51 = vsel %vm5572_vm15, %v13910_v56, %v5764_v14  ;;  %v15977_v14 = vld [vmem:[#allocation14_spill] sm:$0xff] }
 0x98c   :  { %v14266_v48 = vsel %vm5576_vm2, %v13915_v63, %v5768_v58  ;;  %8844 = vrcp.f32 %v5621_v46  ;;  %v8829_v59 = vpop.eup %8828  ;;  %v6030_v2 = vadd.f32 %v14173_v45, %v5938_v49  ;;  %v5853_v30 = vadd.f32 %v14118_v22, %v14227_v43 }
 0x98d   :  { %v5718_v28 = vmul.f32 %v8825_v53, %v14138_v55  ;;  %v5776_v38 = vmul.f32 %v5724_v7, %v15976_v52  ;;  %v8831_v27 = vpop.eup %8830  ;;  %v5979_v56 = vadd.f32 %v14148_v40, %v5940_v20  ;;  %v14276_v12 = vmul.f32 %v14251_v33, %v14251_v33 }
 0x98e   :  { %v5905_v63 = vadd.f32 %v5904_v47, %v14239_v34  ;;  %v5483_v35 = vadd.f32 2.0, %v8827_v21  ;;  %v8833_v4 = vpop.eup %8832  ;;  %v5946_v45 = vmul.f32 %v14261_v51, %v14261_v51  ;;  %v5950_v22 = vmul.f32 %v14266_v48, %v14266_v48 }
 0x98f   :  { %v14286_v55 = vsel %vm5578_vm3, %v13939_v29, %v5770_v3  ;;  %v5774_v40 = vmul.f32 %v5720_v17, %v13972_v44  ;;  %v8835_v24 = vpop.eup %8834  ;;  %v6031_v16 = vadd.f32 %v6030_v2, %v5944_v36  ;;  %v5854_v1 = vadd.f32 %v5853_v30, %v14261_v51 }
 0x990   :  { %v14291_v58 = vmul.f32 %v5706_v60, %v15977_v14  ;;  %v5654_v46 = vmul.f32 %v8829_v59, %v14168_v15  ;;  %v14295_v7 = vmul.f32 %v5718_v28, %v13983_v9  ;;  %v14300_v29 = vsel %vm5584_vm5, %v15976_v52, %v5776_v38 }
 0x991   :  { %v8837_v49 = vpop.eup %8836  ;;  %v5642_v53 = vmul.f32 %v8831_v27, %v14170_v26  ;;  %v14303_v47 = vmul.f32 %v8827_v21, %v5483_v35  ;;  %v5855_v3 = vadd.f32 %v5854_v1, %v14286_v55  ;;  %v5952_v60 = vmul.f32 %v14286_v55, %v14286_v55 }
 0x992   :  { %v8839_v20 = vpop.eup %8838  ;;  %v5666_v15 = vmul.f32 %v8833_v4, %v14176_v41  ;;  %v5489_v17 = vadd.f32 2.0, %v8837_v49  ;;  %v5980_v59 = vadd.f32 %v5979_v56, %v5946_v45  ;;  %v14310_v2 = vadd.f32 %v5905_v63, %v14266_v48 }
 0x993   :  { %v8841_v36 = vpop.eup %8840  ;;  %v6032_v52 = vadd.f32 %v6031_v16, %v5950_v22  ;;  %v14315_v26 = vsel %vm5582_vm4, %v13972_v44, %v5774_v40  ;;  %vm5588_vm6 = vcmp.gt.f32.partialorder %v14028_v32, 20.0  ;;  %v5856_v30 = vadd.f32 %v5855_v3, %v14300_v29 }
 0x994   :  { %15978 = vst [vmem:[#allocation39_spill] sm:$0xff] %v14315_v26  ;;  %v8843_v21 = vpop.eup %8842  ;;  %v5732_v28 = vmul.f32 %v8835_v24, %v14178_v57  ;;  %v5741_v41 = vmul.f32 %v5654_v46, %v14035_v19  ;;  %v5627_v38 = vadd.f32 2.0, %v14303_v47  ;;  %v5958_v27 = vmul.f32 %v14300_v29, %v14300_v29 }
 0x995   :  { %v5735_v56 = vmul.f32 %v5642_v53, %v14015_v42  ;;  %v5678_v63 = vmul.f32 %v8839_v20, %v14190_v13  ;;  %v14326_v44 = vmul.f32 %v8837_v49, %v5489_v17  ;;  %v5981_v4 = vadd.f32 %v5980_v59, %v5952_v60 }
 0x996   :  { %v8845_v35 = vpop.eup %8844  ;;  %v5956_v45 = vmul.f32 %v14315_v26, %v14315_v26  ;;  %vm5543_vm7 = vcmp.gt.f32.partialorder %v14015_v42, 20.0  ;;  %v5747_v57 = vmul.f32 %v5666_v15, %v14044_v61  ;;  %vm5549_vm1 = vcmp.gt.f32.partialorder %v14035_v19, 20.0 }
 0x997   :  { %v5690_v22 = vmul.f32 %v8843_v21, %v14201_v10  ;;  %8846 = vrcp.f32 %v5627_v38  ;;  %v5633_v40 = vadd.f32 2.0, %v14326_v44  ;;  %v5780_v13 = vmul.f32 %v5732_v28, %v14028_v32 }
 0x998   :  { %v14337_v24 = vsel %vm5549_vm1, %v14035_v19, %v5741_v41  ;;  %vm5555_vm8 = vcmp.gt.f32.partialorder %v14044_v61, 20.0  ;;  %v5857_v16 = vrot.slane %v5856_v30, 4  ;;  %v14341_v1 = vsel %vm5543_vm7, %v14015_v42, %v5735_v56 }
 0x999   :  { %15979 = vst [vmem:[#allocation32_spill] sm:$0xff] %v14337_v24  ;;  %15980 = vst [vmem:[#allocation41_spill] sm:$0xff] %v14341_v1  ;;  %v5753_v46 = vmul.f32 %v5678_v63, %v14063_v37  ;;  %v5702_v49 = vmul.f32 %v8845_v35, %v14210_v8  ;;  %v5982_v53 = vadd.f32 %v5981_v4, %v5958_v27  ;;  %vm5575_vm11 = vcmp.gt.f32.partialorder %v15977_v14, 20.0 }
 0x99a   :  { %v14347_v10 = vsel %vm5555_vm8, %v14044_v61, %v5747_v57  ;;  %8848 = vrcp.f32 %v5633_v40  ;;  %v5858_v20 = vadd.f32 %v5857_v16, %v5856_v30  ;;  %v5491_v19 = vadd.f32 2.0, %v8841_v36 }
 0x99b   :  { %15981 = vst [vmem:[#allocation48_spill] sm:$0xff] %v14347_v10  ;;  %v5923_v3 = vmul.f32 %v14337_v24, %v14337_v24  ;;  %vm5561_vm12 = vcmp.gt.f32.partialorder %v14063_v37, 20.0  ;;  %v5759_v42 = vmul.f32 %v5690_v22, %v14067_v50  ;;  %v5983_v60 = vrot.slane %v5982_v53, 4 }
 0x99c   :  { %v14356_v8 = vsel %vm5588_vm6, %v14028_v32, %v5780_v13  ;;  %v5917_v61 = vmul.f32 %v14341_v1, %v14341_v1  ;;  %v5859_v15 = vrot.slane %v5858_v20, 2  ;;  %v14360_v17 = vmul.f32 %v8841_v36, %v5491_v19 }
 0x99d   :  { %15982 = vst [vmem:[#allocation10_spill] sm:$0xff] %v14356_v8  ;;  %v5929_v59 = vmul.f32 %v14347_v10, %v14347_v10  ;;  %v14365_v21 = vsel %vm5561_vm12, %v14063_v37, %v5753_v46  ;;  %v5765_v30 = vmul.f32 %v5702_v49, %v14092_v54  ;;  %v5984_v28 = vadd.f32 %v5983_v60, %v5982_v53 }
 0x99e   :  { %15983 = vst [vmem:[#allocation34_spill] sm:$0xff] %v14365_v21  ;;  %vm5581_vm13 = vcmp.gt.f32.partialorder %v13983_v9, 20.0  ;;  %v5863_v32 = vadd.f32 %v14337_v24, %v14341_v1  ;;  %vm5567_vm14 = vcmp.gt.f32.partialorder %v14067_v50, 20.0  ;;  %v5860_v41 = vadd.f32 %v5859_v15, %v5858_v20 }
 0x99f   :  { %v5635_v36 = vadd.f32 2.0, %v14360_v17  ;;  %v5962_v38 = vmul.f32 %v14356_v8, %v14356_v8  ;;  %v5989_v27 = vadd.f32 %v5923_v3, %v5917_v61  ;;  %v14376_v37 = vsel %vm5567_vm14, %v14067_v50, %v5759_v42 }
 0x9a0   :  { %15984 = vst [vmem:[#allocation2_spill] sm:$0xff] %v14376_v37  ;;  %v5985_v56 = vrot.slane %v5984_v28, 2  ;;  %v5864_v63 = vadd.f32 %v5863_v32, %v14347_v10  ;;  %v5935_v35 = vmul.f32 %v14365_v21, %v14365_v21  ;;  %vm5573_vm0 = vcmp.gt.f32.partialorder %v14092_v54, 20.0 }
 0x9a1   :  { %8850 = vrcp.f32 %v5635_v36  ;;  %v8847_v4 = vpop.eup %8846  ;;  %v6033_v57 = vadd.f32 %v6032_v52, %v5956_v45  ;;  %v5990_v22 = vadd.f32 %v5989_v27, %v5929_v59  ;;  %v14383_v40 = vsel %vm5573_vm0, %v14092_v54, %v5765_v30 }
 0x9a2   :  { %15985 = vst [vmem:[#allocation40_spill] sm:$0xff] %v14383_v40  ;;  %v5986_v13 = vadd.f32 %v5985_v56, %v5984_v28  ;;  %v5865_v16 = vadd.f32 %v5864_v63, %v14365_v21  ;;  %v5941_v50 = vmul.f32 %v14376_v37, %v14376_v37  ;;  %v5714_v46 = vmul.f32 %v8847_v4, %v14303_v47 }
 0x9a3   :  { %v5861_v49 = vrot.slane %v5860_v41, 1  ;;  %v14393_v53 = vsel %vm5575_vm11, %v15977_v14, %v14291_v58  ;;  %v5907_v52 = vadd.f32 %v14310_v2, %v14315_v26  ;;  %v6034_v45 = vadd.f32 %v6033_v57, %v5962_v38 }
 0x9a4   :  { %v5987_v54 = vrot.slane %v5986_v13, 1  ;;  %v8849_v20 = vpop.eup %8848  ;;  %v5991_v19 = vadd.f32 %v5990_v22, %v5935_v35  ;;  %v5866_v3 = vadd.f32 %v5865_v16, %v14376_v37  ;;  %v5947_v42 = vmul.f32 %v14383_v40, %v14383_v40 }
 0x9a5   :  { %v5771_v47 = vmul.f32 %v5714_v46, %v14153_v31  ;;  %v5908_v60 = vadd.f32 %v5907_v52, %v14356_v8  ;;  %vm5579_vm15 = vcmp.gt.f32.partialorder %v14153_v31, 20.0  ;;  %v5726_v14 = vmul.f32 %v8849_v20, %v14326_v44 }
 0x9a6   :  { %v5988_v58 = vadd.f32 %v5987_v54, %v5986_v13  ;;  %v5992_v61 = vadd.f32 %v5991_v19, %v5941_v50  ;;  %v5867_v2 = vadd.f32 %v5866_v3, %v14383_v40  ;;  %v5862_v59 = vadd.f32 %v5861_v49, %v5860_v41 }
 0x9a7   :  { %v14406_v15 = vsel %vm5579_vm15, %v14153_v31, %v5771_v47  ;;  %v14412_v30 = vsel %vm5581_vm13, %v13983_v9, %v14295_v7  ;;  %v5777_v32 = vmul.f32 %v5726_v14, %v14196_v6  ;;  %v6035_v44 = vrot.slane %v6034_v45, 4 }
 0x9a8   :  { %15986 = vst [vmem:[#allocation44_spill] sm:$0xff] %v14406_v15  ;;  %15987 = vst [vmem:[#allocation31_spill] sm:$0xff] %v14412_v30  ;;  %v5953_v28 = vmul.f32 %v14406_v15, %v14406_v15  ;;  %v5993_v36 = vadd.f32 %v5992_v61, %v5947_v42  ;;  %v5868_v38 = vadd.f32 %v5867_v2, %v14406_v15  ;;  %vm5585_vm2 = vcmp.gt.f32.partialorder %v14196_v6, 20.0 }
 0x9a9   :  { %v14420_v31 = vsel %vm1243_vm10, %v5862_v59, %v5988_v58  ;;  %v6017_v41 = vadd.f32 %v14132_v25, %v14215_v18  ;;  %v5949_v9 = vmul.f32 %v14393_v53, %v14393_v53  ;;  %v14427_v7 = vsel %vm5585_vm2, %v14196_v6, %v5777_v32 }
 0x9aa   :  { %15988 = vst [vmem:[#allocation38_spill] sm:$0xff] %v14427_v7  ;;  %6049 = vrot.lane.b32.xlu1 %v14420_v31, %s8979_s25  ;;  %v5909_v27 = vrot.slane %v5908_v60, 4  ;;  %v5892_v63 = vadd.f32 %v14182_v23, %v14251_v33  ;;  %v5994_v35 = vadd.f32 %v5993_v36, %v5953_v28  ;;  %v5869_v4 = vadd.f32 %v5868_v38, %v14427_v7 }
 0x9ab   :  { %v8851_v56 = vpop.eup %8850  ;;  %v5959_v25 = vmul.f32 %v14427_v7, %v14427_v7  ;;  %v6018_v18 = vadd.f32 %v6017_v41, %v14276_v12  ;;  %v5955_v6 = vmul.f32 %v14412_v30, %v14412_v30  ;;  %v6036_v22 = vadd.f32 %v6035_v44, %v6034_v45 }
 0x9ac   :  { %v5730_v57 = vmul.f32 %v8851_v56, %v14360_v17  ;;  %v5893_v13 = vadd.f32 %v5892_v63, %v14393_v53  ;;  %v5870_v16 = vrot.slane %v5869_v4, 4  ;;  %v5910_v49 = vadd.f32 %v5909_v27, %v5908_v60 }
 0x9ad   :  { %v5995_v50 = vadd.f32 %v5994_v35, %v5959_v25  ;;  %v6019_v46 = vadd.f32 %v6018_v18, %v5949_v9  ;;  %vm5587_vm3 = vcmp.gt.f32.partialorder %v14158_v39, 20.0  ;;  %v6037_v17 = vrot.slane %v6036_v22, 2 }
 0x9ae   :  { %v5779_v23 = vmul.f32 %v5730_v57, %v14158_v39  ;;  %v5894_v52 = vadd.f32 %v5893_v13, %v14412_v30  ;;  %v5871_v54 = vadd.f32 %v5870_v16, %v5869_v4  ;;  %v5911_v14 = vrot.slane %v5910_v49, 2 }
 0x9af   :  { %v5996_v12 = vrot.slane %v5995_v50, 4  ;;  %v6020_v20 = vadd.f32 %v6019_v46, %v5955_v6  ;;  %v6038_v59 = vadd.f32 %v6037_v17, %v6036_v22  ;;  %v15990_v22 = vld [vmem:[#allocation24_spill] sm:$0xff] }
 0x9b0   :  { %v14445_v19 = vsel %vm5587_vm3, %v14158_v39, %v5779_v23  ;;  %v5872_v42 = vrot.slane %v5871_v54, 2  ;;  %v5912_v39 = vadd.f32 %v5911_v14, %v5910_v49  ;;  %v14453_v16 = vadd.f32 %v15990_v22, %v13793_v11  ;;  %v15991_v46 = vld [vmem:[#allocation12_spill] sm:$0xff]  ;;  %v15992_v23 = vld [vmem:[#allocation27_spill] sm:$0xff]  ;;  %v15996_v14 = vld [vmem:[#allocation26_spill] sm:$0xff] }
 0x9b1   :  { %15989 = vst [vmem:[#allocation14_spill] sm:$0xff] %v14445_v19  ;;  %v5895_v45 = vadd.f32 %v5894_v52, %v14445_v19  ;;  %v5961_v3 = vmul.f32 %v14445_v19, %v14445_v19  ;;  %v5997_v47 = vadd.f32 %v5996_v12, %v5995_v50  ;;  %v6039_v27 = vrot.slane %v6038_v59, 1  ;;  %v15994_v12 = vld [vmem:[#allocation25_spill] sm:$0xff] }
 0x9b2   :  { %v5873_v61 = vadd.f32 %v5872_v42, %v5871_v54  ;;  %v5913_v25 = vrot.slane %v5912_v39, 1  ;;  %v14458_v49 = vadd.f32 %v15992_v23, %v15991_v46  ;;  %v15993_v54 = vld [vmem:[#allocation4_spill] sm:$0xff]  ;;  %v5307_v42 = vmin.f32 %v14453_v16, 20.0 }
 0x9b3   :  { %v5896_v60 = vrot.slane %v5895_v45, 4  ;;  %v6021_v58 = vadd.f32 %v6020_v20, %v5961_v3  ;;  %v5998_v2 = vrot.slane %v5997_v47, 2  ;;  %v6040_v13 = vadd.f32 %v6039_v27, %v6038_v59  ;;  %v15999_v27 = vld [vmem:[#allocation29_spill] sm:$0xff] }
 0x9b4   :  { %v5874_v36 = vrot.slane %v5873_v61, 1  ;;  %v5914_v52 = vadd.f32 %v5913_v25, %v5912_v39  ;;  %v14462_v20 = vadd.f32 %v15994_v12, %v15993_v54  ;;  %v5361_v59 = vmul.f32 1.442695, %v5307_v42  ;;  %v15997_v39 = vld [vmem:[#allocation11_spill] sm:$0xff]  ;;  %v16007_v12 = vld [vmem:[#allocation20_spill] sm:$0xff]  ;;  %v16008_v42 = vld [vmem:[#allocation42_spill] sm:$0xff] }
 0x9b5   :  { %v5897_v28 = vadd.f32 %v5896_v60, %v5895_v45  ;;  %v6022_v32 = vrot.slane %v6021_v58, 4  ;;  %v5999_v44 = vadd.f32 %v5998_v2, %v5997_v47  ;;  %v15995_v47 = vld [vmem:[#allocation9_spill] sm:$0xff]  ;;  %vm5547_vm4 = vcmp.gt.f32.partialorder %v14453_v16, 20.0 }
 0x9b6   :  { %v5875_v4 = vadd.f32 %v5874_v36, %v5873_v61  ;;  %v6046_v3 = vsel %vm1243_vm10, %v5914_v52, %v6040_v13  ;;  %v14468_v60 = vadd.f32 %v15996_v14, %v15995_v47  ;;  %v5301_v61 = vmin.f32 %v14458_v49, 20.0 }
 0x9b7   :  { %v5898_v38 = vrot.slane %v5897_v28, 2  ;;  %v6023_v41 = vadd.f32 %v6022_v32, %v6021_v58  ;;  %v6000_v9 = vrot.slane %v5999_v44, 1  ;;  %v5313_v2 = vmin.f32 %v14462_v20, 20.0 }
 0x9b8   :  { %v5349_v32 = vmul.f32 1.442695, %v5301_v61  ;;  %8852 = vpow2.f32 %v5361_v59  ;;  %v16009_v61 = vld [vmem:[#allocation46_spill] sm:$0xff]  ;;  %vm5541_vm5 = vcmp.gt.f32.partialorder %v14458_v49, 20.0  ;;  %vm5553_vm6 = vcmp.gt.f32.partialorder %v14462_v20, 20.0 }
 0x9b9   :  { %v5899_v56 = vadd.f32 %v5898_v38, %v5897_v28  ;;  %v6024_v63 = vrot.slane %v6023_v41, 2  ;;  %v6001_v35 = vadd.f32 %v6000_v9, %v5999_v44  ;;  %v5319_v28 = vmin.f32 %v14468_v60, 20.0 }
 0x9ba   :  { %v5373_v44 = vmul.f32 1.442695, %v5313_v2  ;;  %v14481_v38 = vadd.f32 %v15997_v39, %v13793_v11  ;;  %8854 = vpow2.f32 %v5349_v32  ;;  %v16002_v11 = vld [vmem:[#allocation13_spill] sm:$0xff]  ;;  %v14523_v2 = vadd.f32 %v16009_v61, %v13934_v5 }
 0x9bb   :  { %v5900_v18 = vrot.slane %v5899_v56, 1  ;;  %v6025_v6 = vadd.f32 %v6024_v63, %v6023_v41  ;;  %v6043_v57 = vsel %vm1243_vm10, %v5875_v4, %v6001_v35  ;;  %v5385_v36 = vmul.f32 1.442695, %v5319_v28  ;;  %v15998_v41 = vld [vmem:[#allocation45_spill] sm:$0xff]  ;;  %v16000_v63 = vld [vmem:[#allocation6_spill] sm:$0xff]  ;;  %v16001_v35 = vld [vmem:[#allocation15_spill] sm:$0xff] }
 0x9bc   :  { %6051 = vrot.lane.b32.xlu0 %v6043_v57, %s8979_s25  ;;  %v14485_v9 = vadd.f32 %v15998_v41, %v15991_v46  ;;  %8856 = vpow2.f32 %v5373_v44  ;;  %v14493_v4 = vadd.f32 %v16001_v35, %v16000_v63  ;;  %v5310_v25 = vmin.f32 %v14481_v38, 20.0  ;;  %v16004_v57 = vld [vmem:[#allocation18_spill] sm:$0xff]  ;;  %v16005_v46 = vld [vmem:[#allocation35_spill] sm:$0xff] }
 0x9bd   :  { %v6026_v50 = vrot.slane %v6025_v6, 1  ;;  %v5901_v17 = vadd.f32 %v5900_v18, %v5899_v56  ;;  %v14489_v56 = vadd.f32 %v15999_v27, %v15993_v54  ;;  %8858 = vpow2.f32 %v5385_v36  ;;  %v16006_v54 = vld [vmem:[#allocation52_spill] sm:$0xff]  ;;  %v16010_v36 = vld [vmem:[#allocation33_spill] sm:$0xff] }
 0x9be   :  { %v14498_v18 = vadd.f32 %v16002_v11, %v15995_v47  ;;  %v5304_v22 = vmin.f32 %v14485_v9, 20.0  ;;  %v14508_v23 = vadd.f32 %v16005_v46, %v16000_v63  ;;  %v5325_v52 = vmin.f32 %v14493_v4, 20.0 }
 0x9bf   :  { %v6027_v45 = vadd.f32 %v6026_v50, %v6025_v6  ;;  %v16003_v6 = vld [vmem:[#allocation50_spill] sm:$0xff]  ;;  %v5316_v50 = vmin.f32 %v14489_v56, 20.0  ;;  %v14528_v39 = vadd.f32 %v16010_v36, %v16006_v54  ;;  %v5343_v46 = vmin.f32 %v14523_v2, 20.0 }
 0x9c0   :  { %6064 = vrot.lane.b32.xlu0 %v6046_v3, %s8979_s25  ;;  %v14502_v13 = vadd.f32 %v16004_v57, %v16003_v6  ;;  %v5322_v3 = vmin.f32 %v14498_v18, 20.0  ;;  %v14518_v47 = vadd.f32 %v16008_v42, %v16003_v6  ;;  %v5355_v59 = vmul.f32 1.442695, %v5304_v22  ;;  %v16011_v6 = vld [vmem:[#allocation7_spill] sm:$0xff] }
 0x9c1   :  { %v14471_v58 = vsel %vm1243_vm10, %v5901_v17, %v6027_v45  ;;  %v14513_v17 = vadd.f32 %v16007_v12, %v16006_v54  ;;  %v5367_v45 = vmul.f32 1.442695, %v5310_v25  ;;  %v5379_v32 = vmul.f32 1.442695, %v5316_v50 }
 0x9c2   :  { %6062 = vrot.lane.b32.xlu1 %v14471_v58, %s8979_s25  ;;  %v5331_v14 = vmin.f32 %v14502_v13, 20.0  ;;  %v8853_v28 = vpop.eup %8852  ;;  %v5328_v44 = vmin.f32 %v14508_v23, 20.0  ;;  %v5397_v27 = vmul.f32 1.442695, %v5325_v52  ;;  %v5391_v25 = vmul.f32 1.442695, %v5322_v3 }
 0x9c3   :  { %v5337_v63 = vmin.f32 %v14513_v17, 20.0  ;;  %8860 = vpow2.f32 %v5367_v45  ;;  %v5334_v11 = vmin.f32 %v14518_v47, 20.0  ;;  %v14534_v57 = vadd.f32 %v16011_v6, %v13934_v5 }
 0x9c4   :  { %v8855_v41 = vpop.eup %8854  ;;  %v5451_v22 = vadd.f32 2.0, %v8853_v28  ;;  %v5409_v50 = vmul.f32 1.442695, %v5331_v14  ;;  %8862 = vpow2.f32 %v5355_v59  ;;  %v5403_v52 = vmul.f32 1.442695, %v5328_v44 }
 0x9c5   :  { %v5445_v12 = vadd.f32 2.0, %v8855_v41  ;;  %8864 = vpow2.f32 %v5379_v32  ;;  %v5340_v42 = vmin.f32 %v14528_v39, 20.0  ;;  %v5421_v45 = vmul.f32 1.442695, %v5337_v63 }
 0x9c6   :  { %v8857_v35 = vpop.eup %8856  ;;  %8866 = vpow2.f32 %v5397_v27  ;;  %v5415_v3 = vmul.f32 1.442695, %v5334_v11  ;;  %v5346_v36 = vmin.f32 %v14534_v57, 20.0  ;;  %v14539_v5 = vmul.f32 %v8853_v28, %v5451_v22 }
 0x9c7   :  { %v8859_v54 = vpop.eup %8858  ;;  %v5457_v61 = vadd.f32 2.0, %v8857_v35  ;;  %8868 = vpow2.f32 %v5391_v25  ;;  %v5433_v14 = vmul.f32 1.442695, %v5343_v46  ;;  %v14541_v7 = vmul.f32 %v8855_v41, %v5445_v12 }
 0x9c8   :  { %v5463_v6 = vadd.f32 2.0, %v8859_v54  ;;  %8870 = vpow2.f32 %v5409_v50  ;;  %v5427_v59 = vmul.f32 1.442695, %v5340_v42  ;;  %v5439_v44 = vmul.f32 1.442695, %v5346_v36 }
 0x9c9   :  { %8872 = vpow2.f32 %v5403_v52  ;;  %v14543_v32 = vmul.f32 %v8857_v35, %v5457_v61  ;;  %v5595_v27 = vadd.f32 2.0, %v14539_v5  ;;  %v5589_v28 = vadd.f32 2.0, %v14541_v7 }
 0x9ca   :  { %8874 = vpow2.f32 %v5421_v45  ;;  %v14546_v63 = vmul.f32 %v8859_v54, %v5463_v6  ;;  %vm5559_vm7 = vcmp.gt.f32.partialorder %v14468_v60, 20.0  ;;  %vm5565_vm1 = vcmp.gt.f32.partialorder %v14493_v4, 20.0 }
 0x9cb   :  { %8876 = vpow2.f32 %v5415_v3  ;;  %v5601_v41 = vadd.f32 2.0, %v14543_v32  ;;  %vm5550_vm8 = vcmp.gt.f32.partialorder %v14481_v38, 20.0  ;;  %vm5571_vm11 = vcmp.gt.f32.partialorder %v14502_v13, 20.0 }
 0x9cc   :  { %8878 = vpow2.f32 %v5433_v14  ;;  %v5607_v35 = vadd.f32 2.0, %v14546_v63  ;;  %vm5544_vm12 = vcmp.gt.f32.partialorder %v14485_v9, 20.0  ;;  %vm5556_vm13 = vcmp.gt.f32.partialorder %v14489_v56, 20.0 }
 0x9cd   :  { %v8861_v25 = vpop.eup %8860  ;;  %8880 = vpow2.f32 %v5427_v59  ;;  %vm5562_vm14 = vcmp.gt.f32.partialorder %v14498_v18, 20.0  ;;  %vm5577_vm0 = vcmp.gt.f32.partialorder %v14513_v17, 20.0  ;;  %vm5568_vm15 = vcmp.gt.f32.partialorder %v14508_v23, 20.0 }
 0x9ce   :  { %v8863_v11 = vpop.eup %8862  ;;  %8882 = vpow2.f32 %v5439_v44  ;;  %v5454_v46 = vadd.f32 2.0, %v8861_v25  ;;  %vm5574_vm2 = vcmp.gt.f32.partialorder %v14518_v47, 20.0  ;;  %vm5583_vm3 = vcmp.gt.f32.partialorder %v14523_v2, 20.0 }
 0x9cf   :  { %v8865_v22 = vpop.eup %8864  ;;  %8884 = vrcp.f32 %v5595_v27  ;;  %v5448_v52 = vadd.f32 2.0, %v8863_v11 }
 0x9d0   :  { %v8867_v50 = vpop.eup %8866  ;;  %8886 = vrcp.f32 %v5589_v28  ;;  %v5460_v42 = vadd.f32 2.0, %v8865_v22  ;;  %v14551_v36 = vmul.f32 %v8861_v25, %v5454_v46 }
 0x9d1   :  { %v8869_v12 = vpop.eup %8868  ;;  %8888 = vrcp.f32 %v5601_v41  ;;  %v5469_v45 = vadd.f32 2.0, %v8867_v50  ;;  %v14553_v44 = vmul.f32 %v8863_v11, %v5448_v52 }
 0x9d2   :  { %v8871_v54 = vpop.eup %8870  ;;  %8890 = vrcp.f32 %v5607_v35  ;;  %v5466_v6 = vadd.f32 2.0, %v8869_v12  ;;  %v14555_v15 = vmul.f32 %v8865_v22, %v5460_v42  ;;  %v5598_v21 = vadd.f32 2.0, %v14551_v36 }
 0x9d3   :  { %v8873_v61 = vpop.eup %8872  ;;  %v5475_v59 = vadd.f32 2.0, %v8871_v54  ;;  %v14557_v37 = vmul.f32 %v8867_v50, %v5469_v45  ;;  %v5592_v11 = vadd.f32 2.0, %v14553_v44 }
 0x9d4   :  { %v8875_v3 = vpop.eup %8874  ;;  %v5472_v40 = vadd.f32 2.0, %v8873_v61  ;;  %v14560_v10 = vmul.f32 %v8869_v12, %v5466_v6  ;;  %v5604_v22 = vadd.f32 2.0, %v14555_v15  ;;  %8892 = vrcp.f32 %v5598_v21 }
 0x9d5   :  { %v8877_v14 = vpop.eup %8876  ;;  %v5481_v41 = vadd.f32 2.0, %v8875_v3  ;;  %v14562_v46 = vmul.f32 %v8871_v54, %v5475_v59  ;;  %v5613_v45 = vadd.f32 2.0, %v14557_v37  ;;  %8894 = vrcp.f32 %v5592_v11 }
 0x9d6   :  { %v8879_v27 = vpop.eup %8878  ;;  %v5478_v35 = vadd.f32 2.0, %v8877_v14  ;;  %v14566_v42 = vmul.f32 %v8873_v61, %v5472_v40  ;;  %v5610_v6 = vadd.f32 2.0, %v14560_v10  ;;  %8896 = vrcp.f32 %v5604_v22 }
 0x9d7   :  { %v8881_v28 = vpop.eup %8880  ;;  %v5487_v24 = vadd.f32 2.0, %v8879_v27  ;;  %v14569_v19 = vmul.f32 %v8875_v3, %v5481_v41  ;;  %v5619_v8 = vadd.f32 2.0, %v14562_v46  ;;  %8898 = vrcp.f32 %v5613_v45 }
 0x9d8   :  { %v8883_v25 = vpop.eup %8882  ;;  %v5484_v1 = vadd.f32 2.0, %v8881_v28  ;;  %v14572_v54 = vmul.f32 %v8877_v14, %v5478_v35  ;;  %v5616_v61 = vadd.f32 2.0, %v14566_v42  ;;  %8900 = vrcp.f32 %v5610_v6 }
 0x9d9   :  { %v8885_v52 = vpop.eup %8884  ;;  %v5490_v59 = vadd.f32 2.0, %v8883_v25  ;;  %v14576_v26 = vmul.f32 %v8879_v27, %v5487_v24  ;;  %v5625_v14 = vadd.f32 2.0, %v14569_v19  ;;  %8902 = vrcp.f32 %v5619_v8 }
 0x9da   :  { %v8887_v50 = vpop.eup %8886  ;;  %v5650_v30 = vmul.f32 %v8885_v52, %v14539_v5  ;;  %v14579_v3 = vmul.f32 %v8881_v28, %v5484_v1  ;;  %v5622_v5 = vadd.f32 2.0, %v14572_v54  ;;  %8904 = vrcp.f32 %v5616_v61 }
 0x9db   :  { %v8889_v12 = vpop.eup %8888  ;;  %v5638_v21 = vmul.f32 %v8887_v50, %v14541_v7  ;;  %v14585_v35 = vmul.f32 %v8883_v25, %v5490_v59  ;;  %v5631_v1 = vadd.f32 2.0, %v14576_v26  ;;  %8906 = vrcp.f32 %v5625_v14 }
 0x9dc   :  { %v8891_v40 = vpop.eup %8890  ;;  %v5662_v41 = vmul.f32 %v8889_v12, %v14543_v32  ;;  %v5739_v24 = vmul.f32 %v5650_v30, %v14453_v16  ;;  %v5628_v7 = vadd.f32 2.0, %v14579_v3  ;;  %8908 = vrcp.f32 %v5622_v5 }
 0x9dd   :  { %v5674_v27 = vmul.f32 %v8891_v40, %v14546_v63  ;;  %v5733_v32 = vmul.f32 %v5638_v21, %v14458_v49  ;;  %v5634_v25 = vadd.f32 2.0, %v14585_v35  ;;  %8910 = vrcp.f32 %v5631_v1 }
 0x9de   :  { %v5745_v28 = vmul.f32 %v5662_v41, %v14462_v20  ;;  %v14596_v30 = vsel %vm5547_vm4, %v14453_v16, %v5739_v24  ;;  %v8893_v63 = vpop.eup %8892  ;;  %8912 = vrcp.f32 %v5628_v7  ;;  %vm5580_vm4 = vcmp.gt.f32.partialorder %v14528_v39, 20.0 }
 0x9df   :  { %v5751_v8 = vmul.f32 %v5674_v27, %v14468_v60  ;;  %v8895_v11 = vpop.eup %8894  ;;  %v14602_v52 = vsel %vm5541_vm5, %v14458_v49, %v5733_v32  ;;  %v5921_v16 = vmul.f32 %v14596_v30, %v14596_v30  ;;  %8914 = vrcp.f32 %v5634_v25 }
 0x9e0   :  { %v14605_v22 = vsel %vm5553_vm6, %v14462_v20, %v5745_v28  ;;  %v8897_v50 = vpop.eup %8896  ;;  %v5656_v6 = vmul.f32 %v8893_v63, %v14551_v36  ;;  %v5915_v49 = vmul.f32 %v14602_v52, %v14602_v52  ;;  %v5837_v61 = vadd.f32 %v14596_v30, %v14602_v52 }
 0x9e1   :  { %v8899_v45 = vpop.eup %8898  ;;  %v14611_v12 = vsel %vm5559_vm7, %v14468_v60, %v5751_v8  ;;  %v5927_v20 = vmul.f32 %v14605_v22, %v14605_v22  ;;  %v5644_v21 = vmul.f32 %v8895_v11, %v14553_v44  ;;  %v5668_v41 = vmul.f32 %v8897_v50, %v14555_v15 }
 0x9e2   :  { %v8901_v59 = vpop.eup %8900  ;;  %v5963_v60 = vadd.f32 %v5921_v16, %v5915_v49  ;;  %v5933_v36 = vmul.f32 %v14611_v12, %v14611_v12  ;;  %v5686_v5 = vmul.f32 %v8899_v45, %v14557_v37  ;;  %v5838_v27 = vadd.f32 %v5837_v61, %v14605_v22 }
 0x9e3   :  { %v8903_v40 = vpop.eup %8902  ;;  %v5742_v1 = vmul.f32 %v5656_v6, %v14481_v38  ;;  %v5680_v7 = vmul.f32 %v8901_v59, %v14560_v10  ;;  %v5736_v8 = vmul.f32 %v5644_v21, %v14485_v9  ;;  %v5748_v37 = vmul.f32 %v5668_v41, %v14489_v56 }
 0x9e4   :  { %v8905_v14 = vpop.eup %8904  ;;  %v5964_v28 = vadd.f32 %v5963_v60, %v5927_v20  ;;  %v5698_v15 = vmul.f32 %v8903_v40, %v14562_v46  ;;  %v5839_v25 = vadd.f32 %v5838_v27, %v14611_v12  ;;  %v5757_v16 = vmul.f32 %v5686_v5, %v14493_v4 }
 0x9e5   :  { %v8907_v24 = vpop.eup %8906  ;;  %v5692_v63 = vmul.f32 %v8905_v14, %v14566_v42  ;;  %v14639_v46 = vsel %vm5550_vm8, %v14481_v38, %v5742_v1  ;;  %v5754_v45 = vmul.f32 %v5680_v7, %v14498_v18  ;;  %v14651_v20 = vsel %vm5556_vm13, %v14489_v56, %v5748_v37 }
 0x9e6   :  { %v8909_v32 = vpop.eup %8908  ;;  %v5965_v50 = vadd.f32 %v5964_v28, %v5933_v36  ;;  %v5710_v10 = vmul.f32 %v8907_v24, %v14569_v19  ;;  %v5763_v42 = vmul.f32 %v5698_v15, %v14502_v13  ;;  %v14648_v19 = vsel %vm5544_vm12, %v14485_v9, %v5736_v8 }
 0x9e7   :  { %v8911_v44 = vpop.eup %8910  ;;  %v5704_v6 = vmul.f32 %v8909_v32, %v14572_v54  ;;  %v5760_v38 = vmul.f32 %v5692_v63, %v14508_v23  ;;  %v14658_v54 = vsel %vm5565_vm1, %v14493_v4, %v5757_v16  ;;  %v5924_v61 = vmul.f32 %v14639_v46, %v14639_v46 }
 0x9e8   :  { %v8913_v11 = vpop.eup %8912  ;;  %v5722_v49 = vmul.f32 %v8911_v44, %v14576_v26  ;;  %v5769_v26 = vmul.f32 %v5710_v10, %v14513_v17  ;;  %v14666_v9 = vsel %vm5562_vm14, %v14498_v18, %v5754_v45  ;;  %v14673_v4 = vsel %vm5571_vm11, %v14502_v13, %v5763_v42 }
 0x9e9   :  { %v8915_v59 = vpop.eup %8914  ;;  %v5716_v40 = vmul.f32 %v8913_v11, %v14579_v3  ;;  %v5766_v56 = vmul.f32 %v5704_v6, %v14518_v47  ;;  %v5918_v21 = vmul.f32 %v14648_v19, %v14648_v19  ;;  %v5930_v41 = vmul.f32 %v14651_v20, %v14651_v20 }
 0x9ea   :  { %v5728_v3 = vmul.f32 %v8915_v59, %v14585_v35  ;;  %v5939_v18 = vmul.f32 %v14658_v54, %v14658_v54  ;;  %v5775_v14 = vmul.f32 %v5722_v49, %v14523_v2  ;;  %v14684_v35 = vsel %vm5568_vm15, %v14508_v23, %v5760_v38 }
 0x9eb   :  { %v5772_v60 = vmul.f32 %v5716_v40, %v14528_v39  ;;  %v14688_v13 = vsel %vm5577_vm0, %v14513_v17, %v5769_v26  ;;  %v6002_v36 = vadd.f32 %v5924_v61, %v5918_v21  ;;  %v5936_v5 = vmul.f32 %v14666_v9, %v14666_v9 }
 0x9ec   :  { %v5945_v24 = vmul.f32 %v14673_v4, %v14673_v4  ;;  %v14697_v27 = vsel %vm5574_vm2, %v14518_v47, %v5766_v56  ;;  %v5778_v23 = vmul.f32 %v5728_v3, %v14534_v57  ;;  %v5876_v17 = vadd.f32 %v14639_v46, %v14648_v19 }
 0x9ed   :  { %v6003_v1 = vadd.f32 %v6002_v36, %v5930_v41  ;;  %v5942_v7 = vmul.f32 %v14684_v35, %v14684_v35  ;;  %v5966_v32 = vadd.f32 %v5965_v50, %v5939_v18  ;;  %v5951_v28 = vmul.f32 %v14688_v13, %v14688_v13 }
 0x9ee   :  { %v14708_v15 = vsel %vm5583_vm3, %v14523_v2, %v5775_v14  ;;  %v14711_v47 = vsel %vm5580_vm4, %v14528_v39, %v5772_v60  ;;  %v5877_v44 = vadd.f32 %v5876_v17, %v14651_v20  ;;  %v5948_v37 = vmul.f32 %v14697_v27, %v14697_v27 }
 0x9ef   :  { %v6004_v8 = vadd.f32 %v6003_v1, %v5936_v5  ;;  %vm5586_vm5 = vcmp.gt.f32.partialorder %v14534_v57, 20.0  ;;  %v5840_v63 = vadd.f32 %v5839_v25, %v14658_v54  ;;  %v5967_v11 = vadd.f32 %v5966_v32, %v5945_v24 }
 0x9f0   :  { %v14719_v50 = vsel %vm5586_vm5, %v14534_v57, %v5778_v23  ;;  %v5957_v2 = vmul.f32 %v14708_v15, %v14708_v15  ;;  %v5878_v39 = vadd.f32 %v5877_v44, %v14666_v9  ;;  %v5954_v10 = vmul.f32 %v14711_v47, %v14711_v47 }
 0x9f1   :  { %16012 = vst [vmem:[#allocation24_spill] sm:$0xff] %v14719_v50  ;;  %v6005_v16 = vadd.f32 %v6004_v8, %v5942_v7  ;;  %v5841_v45 = vadd.f32 %v5840_v63, %v14673_v4  ;;  %v5968_v6 = vadd.f32 %v5967_v11, %v5951_v28  ;;  %v5960_v25 = vmul.f32 %v14719_v50, %v14719_v50 }
 0x9f2   :  { %v5879_v59 = vadd.f32 %v5878_v39, %v14684_v35  ;;  %vm6369_vm6 = vcmask 31744   ;;  %vm6971_vm7 = vcmask 261120  }
 0x9f3   :  { %v6006_v42 = vadd.f32 %v6005_v16, %v5948_v37  ;;  %v5842_v57 = vadd.f32 %v5841_v45, %v14688_v13  ;;  %v5969_v49 = vadd.f32 %v5968_v6, %v5957_v2 }
 0x9f4   :  { %v5880_v38 = vadd.f32 %v5879_v59, %v14697_v27 }
 0x9f5   :  { %v6007_v40 = vadd.f32 %v6006_v42, %v5954_v10  ;;  %v5843_v26 = vadd.f32 %v5842_v57, %v14708_v15  ;;  %v5970_v21 = vrot.slane %v5969_v49, 4 }
 0x9f6   :  { %v5881_v61 = vadd.f32 %v5880_v38, %v14711_v47 }
 0x9f7   :  { %v6008_v56 = vadd.f32 %v6007_v40, %v5960_v25  ;;  %v5844_v41 = vrot.slane %v5843_v26, 4  ;;  %v5971_v60 = vadd.f32 %v5970_v21, %v5969_v49 }
 0x9f8   :  { %v5882_v3 = vadd.f32 %v5881_v61, %v14719_v50 }
 0x9f9   :  { %v6009_v18 = vrot.slane %v6008_v56, 4  ;;  %v5845_v36 = vadd.f32 %v5844_v41, %v5843_v26  ;;  %v5972_v23 = vrot.slane %v5971_v60, 2 }
 0x9fa   :  { %v5883_v14 = vrot.slane %v5882_v3, 4 }
 0x9fb   :  { %v6010_v5 = vadd.f32 %v6009_v18, %v6008_v56  ;;  %v5846_v17 = vrot.slane %v5845_v36, 2  ;;  %v5973_v7 = vadd.f32 %v5972_v23, %v5971_v60  ;;  %v6357_v23 = vld [vmem:[%s15310_s1 + $0x8] sm:$0xff] }
 0x9fc   :  { %v5884_v24 = vadd.f32 %v5883_v14, %v5882_v3  ;;  %v6356_v14 = vld [vmem:[%s15310_s1] sm:$0xff] }
 0x9fd   :  { %v6011_v1 = vrot.slane %v6010_v5, 2  ;;  %v5847_v28 = vadd.f32 %v5846_v17, %v5845_v36  ;;  %v5974_v8 = vrot.slane %v5973_v7, 1  ;;  %v6361_v36 = vld [vmem:[%s15309_s9 + $0x8] sm:$0xff]  ;;  %v6358_v17 = vld [vmem:[%s15310_s1 + $0x10] sm:$0xff] }
 0x9fe   :  { %v5885_v32 = vrot.slane %v5884_v24, 2 }
 0x9ff   :  { %v6012_v44 = vadd.f32 %v6011_v1, %v6010_v5  ;;  %v5848_v63 = vrot.slane %v5847_v28, 1  ;;  %v5975_v2 = vadd.f32 %v5974_v8, %v5973_v7  ;;  %v6367_v5 = vcombine.high %v6361_v36, %v6361_v36  ;;  %v6359_v1 = vld [vmem:[%s15310_s1 + $0x18] sm:$0xff] }
 0xa00   :  { %v5886_v37 = vadd.f32 %v5885_v32, %v5884_v24  ;;  %v16013_v24 = vmov 0.0  }
 0xa01   :  { %v6013_v11 = vrot.slane %v6012_v44, 1  ;;  %v5849_v10 = vadd.f32 %v5848_v63, %v5847_v28  ;;  %v7674_v63 = vld [vmem:[%s15307_s5 + $0x3] ss:$8 sm:$0xf] }
 0xa02   :  { %v5887_v39 = vrot.slane %v5886_v37, 1 }
 0xa03   :  { %v6014_v45 = vadd.f32 %v6013_v11, %v6012_v44  ;;  %v6041_v59 = vsel %vm1243_vm10, %v5849_v10, %v5975_v2  ;;  %v7675_v11 = vld [vmem:[%s15307_s5 + $0x3] ss:$8 sm:$0x30]  ;;  %v16014_v10 = vld [vmem:[#allocation21_spill] sm:$0xff] }
 0xa04   :  { %v5888_v57 = vadd.f32 %v5887_v39, %v5886_v37  ;;  %v14803_v2 = vor.u32 %v7675_v11, %v7674_v63  ;;  %v7676_v39 = vld [vmem:[%s15307_s5 + $0x7] ss:$8 sm:$0xf] }
 0xa06   :  { %v6044_v38 = vsel %vm1243_vm10, %v5888_v57, %v6014_v45  ;;  %vm6382_vm10 = vcmask 1043456   ;;  %v6172_v45 = vrot.slane %v14803_v2, %v16014_v10 }
 0xa1c   :  { %v6050_v16 = vpop.permute.xlu1 %6049 }
 0xa2e   :  { %v6052_v6 = vpop.permute.xlu0 %6051 }
 0xa2f   :  { %v6053_v42 = vsel %vm1256_vm9, %v6050_v16, %v6052_v6  ;;  %v6057_v25 = vadd.f32 %v6052_v6, %v14420_v31  ;;  %v6360_v31 = vld [vmem:[%s15309_s9] sm:$0xff] }
 0xa30   :  { %v6056_v49 = vadd.f32 %v6053_v42, %v6041_v59  ;;  %v6366_v18 = vcombine.high %v6360_v31, %v6360_v31  ;;  %v7677_v16 = vld [vmem:[%s15307_s5 + $0x7] ss:$8 sm:$0x30] }
 0xa31   :  { %v6059_v40 = vadd.f32 %v6057_v25, %v14471_v58  ;;  %v6362_v58 = vld [vmem:[%s15309_s9 + $0x10] sm:$0xff]  ;;  %v14813_v42 = vor.u32 %v7677_v16, %v7676_v39 }
 0xa32   :  { %v6065_v26 = vpop.permute.xlu0 %6064  ;;  %v6058_v61 = vadd.f32 %v6056_v49, %v6044_v38  ;;  %v6368_v60 = vcombine.high %v6362_v58, %v6362_v58  ;;  %7678 = vmatprep.subr.msk.mxu1 %vm6382_vm10, %v6366_v18  ;;  %v16015_v38 = vld [vmem:[#allocation17_spill] sm:$0xff]  ;;  %v16016_v18 = vld [vmem:[#allocation16_spill] sm:$0xff] }
 0xa33   :  { %v14740_v3 = vadd.f32 %v6065_v26, %v6059_v40  ;;  %7679 = vmatpush1.msk.msra.mxu1 %vm6382_vm10, %v6360_v31  ;;  %v6184_v40 = vrot.slane %v14803_v2, %v16015_v38  ;;  %v14827_v31 = vrot.slane %v14813_v42, %v16015_v38 }
 0xa34   :  { %v6063_v56 = vpop.permute.xlu1 %6062  ;;  %7690 = vmatprep.subr.msk.mxu0 %vm6382_vm10, %v6368_v60  ;;  %7680 = vmatmul.mubr.msk.f32.vlgmr.msra.gmra.mrb[102].mxu1 %vm6369_vm6, %v6356_v14 }
 0xa35   :  { %v6066_v21 = vsel %vm1256_vm9, %v6063_v56, %v6065_v26  ;;  %6075 = vrot.lane.b32.xlu0 %v14740_v3, %s8979_s25  ;;  %7691 = vmatpush1.msk.msra.mxu0 %vm6382_vm10, %v6362_v58  ;;  %v6176_v58 = vrot.slane %v14803_v2, %v16016_v18 }
 0xa36   :  { %v6069_v41 = vadd.f32 %v6066_v21, %v6058_v61  ;;  %6465 = vmatprep.mubr.f32.mxu1 %v16013_v24  ;;  %7684 = vmatprep.subr.msk.mxu1 %vm6382_vm10, %v6367_v5 }
 0xa37   :  { %7685 = vmatpush1.msk.msra.mxu1 %vm6382_vm10, %v6361_v36  ;;  %7692 = vmatmul.mubr.msk.f32.vlgmr.msra.gmra.mrb[90].mxu0 %vm6369_vm6, %v6356_v14  ;;  %v16018_v36 = vld [vmem:[#allocation22_spill] sm:$0xff] }
 0xa38   :  { %6073 = vrot.lane.b32.xlu1 %v6069_v41, %s8979_s25  ;;  %6643 = vmatprep.mubr.f32.mxu0 %v16013_v24  ;;  %v6081_v7 = vmul.f32 0.00390625, %v6069_v41  ;;  %v6281_v41 = vrot.slane %v14813_v42, %v16014_v10  ;;  %v6188_v5 = vrot.slane %v14803_v2, %v16018_v36 }
 0xa39   :  { %7681 = vmatmul.mubr.msk.f32.gmra.mrb[104].mxu1 %vm6369_vm6, %v6357_v23 }
 0xa3a   :  { %6471 = vmatprep.mubr.f32.mxu1 %v16013_v24  ;;  %v6084_v32 = vmul.f32 %v6081_v7, %v6081_v7  ;;  %v14816_v25 = vrot.slane %v6081_v7, %v16014_v10 }
 0xa3b   :  { %7693 = vmatmul.mubr.msk.f32.gmra.mrb[92].mxu0 %vm6369_vm6, %v6357_v23 }
 0xa3c   :  { %6649 = vmatprep.mubr.f32.mxu0 %v16013_v24  ;;  %v6090_v28 = vrot.slane %v6084_v32, 7  ;;  %v6114_v32 = vsub.f32 %v14602_v52, %v14816_v25  ;;  %v6144_v39 = vsub.f32 %v14673_v4, %v14816_v25  ;;  %v6150_v52 = vsub.f32 %v14688_v13, %v14816_v25 }
 0xa3d   :  { %7682 = vmatmul.mubr.msk.f32.gmra.mrb[106].mxu1 %vm6369_vm6, %v6358_v17 }
 0xa3e   :  { %6477 = vmatprep.mubr.f32.mxu1 %v16013_v24  ;;  %v6096_v44 = vsub.f32 %v6081_v7, %v6090_v28  ;;  %v6120_v28 = vsub.f32 %v14596_v30, %v14816_v25  ;;  %v6156_v30 = vsub.f32 %v14708_v15, %v14816_v25 }
 0xa3f   :  { %7694 = vmatmul.mubr.msk.f32.gmra.mrb[94].mxu0 %vm6369_vm6, %v6358_v17 }
 0xa40   :  { %6655 = vmatprep.mubr.f32.mxu0 %v16013_v24  ;;  %v6099_v8 = vmax.f32 %v6096_v44, 0.0  ;;  %v6126_v44 = vsub.f32 %v14605_v22, %v14816_v25  ;;  %v6117_v22 = vsub.f32 %v14648_v19, %v14816_v25  ;;  %v6129_v19 = vsub.f32 %v14651_v20, %v14816_v25 }
 0xa41   :  { %7683 = vmatmul.mubr.msk.f32.gmra.mrb[108].mxu1 %vm6369_vm6, %v6359_v1 }
 0xa42   :  { %6548 = vmatprep.mubr.f32.mxu1 %v16013_v24  ;;  %v6162_v37 = vadd.f32 1e-05, %v6099_v8  ;;  %v6132_v8 = vsub.f32 %v14611_v12, %v14816_v25  ;;  %v6123_v12 = vsub.f32 %v14639_v46, %v14816_v25  ;;  %v6135_v46 = vsub.f32 %v14666_v9, %v14816_v25 }
 0xa43   :  { %7695 = vmatmul.mubr.msk.f32.gmra.mrb[96].mxu0 %vm6369_vm6, %v6359_v1 }
 0xa44   :  { %6920 = vmatprep.mubr.f32.mxu0 %v16013_v24  ;;  %8916 = vrsqrt.f32 %v6162_v37  ;;  %v6138_v37 = vsub.f32 %v14658_v54, %v14816_v25 }
 0xa45   :  { %7686 = vmatmul.mubr.msk.f32.vlgmr.msra.gmra.mrb[110].mxu1 %vm6369_vm6, %v6356_v14  ;;  %v16017_v14 = vld [vmem:[#allocation19_spill] sm:$0xff] }
 0xa46   :  { %6554 = vmatprep.mubr.f32.mxu1 %v16013_v24  ;;  %v6180_v60 = vrot.slane %v14803_v2, %v16017_v14 }
 0xa49   :  { %7687 = vmatmul.mubr.msk.f32.gmra.mrb[112].mxu1 %vm6369_vm6, %v6357_v23  ;;  %v16019_v23 = vld [vmem:[#allocation23_spill] sm:$0xff] }
 0xa4a   :  { %6560 = vmatprep.mubr.f32.mxu1 %v16013_v24 }
 0xa4d   :  { %7688 = vmatmul.mubr.msk.f32.gmra.mrb[114].mxu1 %vm6369_vm6, %v6358_v17 }
 0xa4e   :  { %6566 = vmatprep.mubr.f32.mxu1 %v16013_v24  ;;  %v8917_v6 = vpop.eup %8916 }
 0xa4f   :  { %v6199_v57 = vmul.f32 %v8917_v6, %v6172_v45  ;;  %v6202_v16 = vmul.f32 %v8917_v6, %v6184_v40 }
 0xa51   :  { %7689 = vmatmul.mubr.msk.f32.gmra.mrb[116].mxu1 %vm6369_vm6, %v6359_v1  ;;  %v6208_v17 = vrot.slane %v6199_v57, %v16016_v18  ;;  %v14859_v15 = vrot.slane %v6202_v16, %v16016_v18 }
 0xa52   :  { %6742 = vmatprep.mubr.f32.mxu1 %v16013_v24 }
 0xa53   :  { %v6235_v57 = vmul.f32 %v6208_v17, %v6120_v28  ;;  %v6247_v38 = vmul.f32 %v6208_v17, %v6132_v8  ;;  %v6253_v4 = vmul.f32 %v6208_v17, %v6138_v37  ;;  %v6265_v6 = vmul.f32 %v6208_v17, %v6150_v52 }
 0xa54   :  { %v6271_v40 = vmul.f32 %v6208_v17, %v6156_v30  ;;  %v6232_v9 = vmul.f32 %v14859_v15, %v6117_v22  ;;  %v6238_v52 = vmul.f32 %v14859_v15, %v6123_v12  ;;  %v14887_v22 = vrot.slane %v14813_v42, %v16019_v23 }
 0xa55   :  { %v6314_v8 = vadd.f32 %v6281_v41, %v6235_v57  ;;  %v6326_v37 = vadd.f32 %v6281_v41, %v6247_v38  ;;  %v14905_v57 = vmul.f32 %v14859_v15, %v6135_v46 }
 0xa56   :  { %v6350_v20 = vadd.f32 %v6281_v41, %v6271_v40  ;;  %v14911_v38 = vadd.f32 %v14827_v31, %v6238_v52  ;;  %v16030_v52 = vld [vmem:[#allocation8_spill] sm:$0xff] }
 0xaa7   :  { %v6076_v59 = vpop.permute.xlu0 %6075 }
 0xaaa   :  { %v6074_v49 = vpop.permute.xlu1 %6073 }
 0xaab   :  { %v6077_v26 = vsel %vm1256_vm9, %v6074_v49, %v6076_v59  ;;  %v6080_v61 = vsel %vm1256_vm9, %v14740_v3, %v6074_v49  ;;  %v6192_v3 = vrot.slane %v14803_v2, %v16019_v23  ;;  %v6229_v59 = vmul.f32 %v6208_v17, %v6114_v32 }
 0xaac   :  { %v6082_v56 = vmul.f32 0.00390625, %v6080_v61  ;;  %v6083_v21 = vmul.f32 0.00390625, %v6077_v26  ;;  %v6241_v49 = vmul.f32 %v6208_v17, %v6126_v44  ;;  %v6259_v26 = vmul.f32 %v6208_v17, %v6144_v39  ;;  %v16035_v44 = vld [vmem:[#allocation41_spill] sm:$0xff] }
 0xaad   :  { %v6308_v28 = vadd.f32 %v6281_v41, %v6229_v59  ;;  %v6344_v39 = vadd.f32 %v6281_v41, %v6265_v6  ;;  %v14902_v59 = vmul.f32 %v14859_v15, %v6129_v19  ;;  %v16022_v6 = vld [vmem:[#allocation51_spill] sm:$0xff]  ;;  %v16023_v19 = vld [vmem:[#allocation5_spill] sm:$0xff] }
 0xaae   :  { %v6085_v1 = vmul.f32 %v6082_v56, %v6082_v56  ;;  %v6086_v7 = vmul.f32 %v6083_v21, %v6083_v21  ;;  %v6320_v17 = vadd.f32 %v6281_v41, %v6241_v49  ;;  %v14874_v16 = vrot.slane %v6082_v56, %v16014_v10 }
 0xaaf   :  { %v14877_v30 = vrot.slane %v6083_v21, %v16014_v10  ;;  %v14889_v12 = vpack.c.bf16 %v6314_v8, %v6308_v28  ;;  %v14908_v49 = vadd.f32 %v14827_v31, %v6232_v9  ;;  %v16025_v28 = vld [vmem:[#allocation47_spill] sm:$0xff] }
 0xab0   :  { %v6091_v63 = vrot.slane %v6085_v1, 7  ;;  %v6092_v11 = vrot.slane %v6086_v7, 7  ;;  %v6141_v1 = vsub.f32 %v14684_v35, %v14816_v25  ;;  %v6121_v40 = vsub.f32 %v16022_v6, %v14874_v16  ;;  %v16032_v35 = vld [vmem:[#allocation10_spill] sm:$0xff] }
 0xab1   :  { %v6119_v46 = vsub.f32 %v16023_v19, %v14877_v30  ;;  %v6118_v8 = vsub.f32 %v16025_v28, %v14874_v16  ;;  %v6137_v9 = vsub.f32 %v14220_v0, %v14877_v30  ;;  %v6136_v6 = vsub.f32 %v14163_v62, %v14874_v16 }
 0xab2   :  { %v6097_v45 = vsub.f32 %v6082_v56, %v6091_v63  ;;  %v6098_v54 = vsub.f32 %v6083_v21, %v6092_v11  ;;  %v6332_v63 = vadd.f32 %v6281_v41, %v6253_v4  ;;  %v6338_v11 = vadd.f32 %v6281_v41, %v6259_v26 }
 0xab3   :  { %v14893_v56 = vrot.slane %v14813_v42, %v16018_v36  ;;  %v14899_v21 = vpack.c.bf16 %v6350_v20, %v6344_v39  ;;  %v14915_v4 = vrot.slane %v14813_v42, %v16017_v14  ;;  %v14918_v26 = vmul.f32 %v14859_v15, %v6141_v1  ;;  %v16027_v1 = vld [vmem:[#allocation3_spill] sm:$0xff]  ;;  %v16029_v39 = vld [vmem:[#allocation36_spill] sm:$0xff]  ;;  %v16034_v36 = vld [vmem:[#allocation14_spill] sm:$0xff] }
 0xab4   :  { %v6100_v61 = vmax.f32 %v6097_v45, 0.0  ;;  %v6101_v13 = vmax.f32 %v6098_v54, 0.0  ;;  %v14881_v45 = vrot.slane %v14813_v42, %v16016_v18  ;;  %v14895_v54 = vpack.c.bf16 %v6326_v37, %v6320_v17  ;;  %v16026_v42 = vld [vmem:[#allocation30_spill] sm:$0xff]  ;;  %v16036_v14 = vld [vmem:[#allocation32_spill] sm:$0xff] }
 0xab5   :  { %v14897_v10 = vpack.c.bf16 %v6338_v11, %v6332_v63  ;;  %16020 = vst [vmem:[#allocation12_spill] sm:$0xff] %v14918_v26  ;;  %v6124_v17 = vsub.f32 %v16026_v42, %v14874_v16  ;;  %v6127_v37 = vsub.f32 %v16027_v1, %v14874_v16  ;;  %v16028_v63 = vld [vmem:[#allocation49_spill] sm:$0xff]  ;;  %v6131_v20 = vsub.f32 %v16029_v39, %v14877_v30 }
 0xab6   :  { %v6163_v7 = vadd.f32 1e-05, %v6100_v61  ;;  %v6164_v32 = vadd.f32 1e-05, %v6101_v13  ;;  %v16021_v61 = vld [vmem:[#allocation43_spill] sm:$0xff]  ;;  %v6133_v11 = vsub.f32 %v16028_v63, %v14874_v16  ;;  %v6139_v19 = vsub.f32 %v14227_v43, %v14874_v16 }
 0xab7   :  { %v6115_v13 = vsub.f32 %v16021_v61, %v14874_v16  ;;  %v6130_v61 = vsub.f32 %v16030_v52, %v14874_v16  ;;  %v6143_v28 = vsub.f32 %v14239_v34, %v14877_v30  ;;  %v16031_v52 = vld [vmem:[#allocation39_spill] sm:$0xff] }
 0xab8   :  { %8918 = vrsqrt.f32 %v6163_v7  ;;  %v16024_v7 = vld [vmem:[#allocation28_spill] sm:$0xff] }
 0xab9   :  { %8920 = vrsqrt.f32 %v6164_v32  ;;  %v6125_v32 = vsub.f32 %v16024_v7, %v14877_v30  ;;  %v6145_v7 = vsub.f32 %v14261_v51, %v14874_v16 }
 0xac2   :  { %v8919_v1 = vpop.eup %8918 }
 0xac3   :  { %v8921_v51 = vpop.eup %8920  ;;  %v6200_v34 = vmul.f32 %v8919_v1, %v6176_v58  ;;  %v6203_v39 = vmul.f32 %v8919_v1, %v6188_v5  ;;  %v16033_v58 = vld [vmem:[#allocation31_spill] sm:$0xff]  ;;  %v16038_v5 = vld [vmem:[#allocation34_spill] sm:$0xff] }
 0xac4   :  { %v6201_v62 = vmul.f32 %v8921_v51, %v6180_v60  ;;  %v6204_v43 = vmul.f32 %v8921_v51, %v6192_v3  ;;  %v16037_v3 = vld [vmem:[#allocation48_spill] sm:$0xff] }
 0xac5   :  { %v6212_v1 = vrot.slane %v6200_v34, %v16016_v18  ;;  %v14982_v41 = vrot.slane %v6203_v39, %v16016_v18 }
 0xac6   :  { %v14989_v2 = vrot.slane %v6201_v62, %v16016_v18  ;;  %v6228_v23 = vrot.slane %v6204_v43, %v16016_v18 }
 0xac7   :  { %v6230_v63 = vmul.f32 %v6212_v1, %v6115_v13  ;;  %v6236_v39 = vmul.f32 %v6212_v1, %v6121_v40  ;;  %v6233_v42 = vmul.f32 %v14982_v41, %v6118_v8  ;;  %v6239_v0 = vmul.f32 %v14982_v41, %v6124_v17 }
 0xac8   :  { %v6234_v24 = vmul.f32 %v6228_v23, %v6119_v46  ;;  %v6240_v26 = vmul.f32 %v6228_v23, %v6125_v32  ;;  %v6242_v60 = vmul.f32 %v6212_v1, %v6127_v37  ;;  %v6248_v50 = vmul.f32 %v6212_v1, %v6133_v11 }
 0xac9   :  { %v6309_v62 = vadd.f32 %v14881_v45, %v6230_v63  ;;  %v6315_v18 = vadd.f32 %v14881_v45, %v6236_v39  ;;  %v6312_v43 = vadd.f32 %v14893_v56, %v6233_v42  ;;  %v6318_v51 = vadd.f32 %v14893_v56, %v6239_v0 }
 0xaca   :  { %v6313_v34 = vadd.f32 %v14887_v22, %v6234_v24  ;;  %v6319_v13 = vadd.f32 %v14887_v22, %v6240_v26  ;;  %v6321_v40 = vadd.f32 %v14881_v45, %v6242_v60  ;;  %v6327_v8 = vadd.f32 %v14881_v45, %v6248_v50 }
 0xacb   :  { %v15006_v46 = vpack.c.bf16 %v6315_v18, %v6309_v62  ;;  %v15008_v32 = vpack.c.bf16 %v6318_v51, %v6312_v43  ;;  %v6246_v17 = vmul.f32 %v6228_v23, %v6131_v20  ;;  %v6252_v37 = vmul.f32 %v6228_v23, %v6137_v9 }
 0xacc   :  { %v15010_v11 = vpack.c.bf16 %v6319_v13, %v6313_v34  ;;  %v15012_v63 = vpack.c.bf16 %v6327_v8, %v6321_v40  ;;  %v6245_v42 = vmul.f32 %v14982_v41, %v6130_v61  ;;  %v6251_v24 = vmul.f32 %v14982_v41, %v6136_v6 }
 0xacd   :  { %7907 = vmatprep.subr.bf16.mxu1 %v15006_v46  ;;  %v6325_v26 = vadd.f32 %v14887_v22, %v6246_v17  ;;  %v6331_v50 = vadd.f32 %v14887_v22, %v6252_v37  ;;  %v6254_v0 = vmul.f32 %v6212_v1, %v6139_v19  ;;  %v6260_v60 = vmul.f32 %v6212_v1, %v6145_v7 }
 0xace   :  { %7939 = vmatprep.subr.bf16.mxu0 %v15010_v11  ;;  %7909 = vmatpush1.bf16.msra.mxu1 %v14889_v12  ;;  %v6324_v20 = vadd.f32 %v14893_v56, %v6245_v42  ;;  %v6330_v9 = vadd.f32 %v14893_v56, %v6251_v24  ;;  %v6258_v51 = vmul.f32 %v6228_v23, %v6143_v28 }
 0xacf   :  { %7941 = vmatpush1.bf16.msra.mxu0 %v15008_v32  ;;  %7911 = vmatprep.subr.bf16.mxu1 %v15012_v63  ;;  %v15025_v61 = vpack.c.bf16 %v6331_v50, %v6325_v26  ;;  %v6333_v6 = vadd.f32 %v14881_v45, %v6254_v0  ;;  %v6339_v19 = vadd.f32 %v14881_v45, %v6260_v60 }
 0xad0   :  { %v15029_v7 = vpack.c.bf16 %v6330_v9, %v6324_v20  ;;  %v16039_v34 = vsub.f32 %v14266_v48, %v14877_v30  ;;  %v6337_v62 = vadd.f32 %v14887_v22, %v6258_v51  ;;  %v16040_v28 = vsub.f32 %v14251_v33, %v14874_v16 }
 0xad1   :  { %7943 = vmatprep.subr.bf16.mxu0 %v15025_v61  ;;  %v15040_v43 = vpack.c.bf16 %v6339_v19, %v6333_v6  ;;  %v16041_v13 = vsub.f32 %v14393_v53, %v14874_v16  ;;  %v16042_v48 = vsub.f32 %v14286_v55, %v14874_v16  ;;  %v16043_v17 = vsub.f32 %v14300_v29, %v14874_v16 }
 0xad2   :  { %v6264_v39 = vmul.f32 %v6228_v23, %v16039_v34  ;;  %v6257_v18 = vmul.f32 %v14982_v41, %v16040_v28  ;;  %7913 = vmatpush1.bf16.msra.mxu1 %v14895_v54  ;;  %v16044_v24 = vsub.f32 %v16031_v52, %v14877_v30  ;;  %v16045_v26 = vsub.f32 %v16032_v35, %v14877_v30 }
 0xad3   :  { %v6263_v40 = vmul.f32 %v14982_v41, %v16041_v13  ;;  %v6266_v8 = vmul.f32 %v6212_v1, %v16042_v48  ;;  %v6272_v37 = vmul.f32 %v6212_v1, %v16043_v17  ;;  %7945 = vmatpush1.bf16.msra.mxu0 %v15029_v7  ;;  %7915 = vmatprep.subr.bf16.mxu1 %v15040_v43  ;;  %v16053_v48 = vld [vmem:[#allocation2_spill] sm:$0xff] }
 0xad4   :  { %v6343_v33 = vadd.f32 %v14887_v22, %v6264_v39  ;;  %v6336_v42 = vadd.f32 %v14893_v56, %v6257_v18  ;;  %v6270_v53 = vmul.f32 %v6228_v23, %v16044_v24  ;;  %v6276_v50 = vmul.f32 %v6228_v23, %v16045_v26 }
 0xad5   :  { %v6342_v55 = vadd.f32 %v14893_v56, %v6263_v40  ;;  %v6345_v29 = vadd.f32 %v14881_v45, %v6266_v8  ;;  %v6351_v1 = vadd.f32 %v14881_v45, %v6272_v37  ;;  %v16046_v35 = vsub.f32 %v16033_v58, %v14874_v16  ;;  %v16056_v37 = vld [vmem:[#allocation24_spill] sm:$0xff] }
 0xad6   :  { %v15066_v0 = vpack.c.bf16 %v6343_v33, %v6337_v62  ;;  %v6349_v60 = vadd.f32 %v14887_v22, %v6270_v53  ;;  %v6355_v52 = vadd.f32 %v14887_v22, %v6276_v50  ;;  %v16047_v51 = vsub.f32 %v16034_v36, %v14874_v16  ;;  %7917 = vmatpush1.bf16.msra.mxu1 %v14897_v10 }
 0xad7   :  { %v6269_v23 = vmul.f32 %v14982_v41, %v16046_v35  ;;  %v15074_v20 = vpack.c.bf16 %v6342_v55, %v6336_v42  ;;  %v15076_v9 = vpack.c.bf16 %v6351_v1, %v6345_v29  ;;  %v16048_v6 = vsub.f32 %v16035_v44, %v14877_v30  ;;  %v16061_v35 = vld [vmem:[#allocation38_spill] sm:$0xff] }
 0xad8   :  { %v6275_v45 = vmul.f32 %v14982_v41, %v16047_v51  ;;  %7947 = vmatprep.subr.bf16.mxu0 %v15066_v0  ;;  %v15088_v22 = vpack.c.bf16 %v6355_v52, %v6349_v60  ;;  %v16049_v34 = vsub.f32 %v16036_v14, %v14877_v30  ;;  %v6323_v41 = vadd.f32 %v14827_v31, %v14902_v59  ;;  %v6663_v52 = vld [vmem:[%s15311_s6 + $0x8] sm:$0xff] }
 0xad9   :  { %v6231_v19 = vmul.f32 %v14989_v2, %v16048_v6  ;;  %v6348_v58 = vadd.f32 %v14893_v56, %v6269_v23  ;;  %7949 = vmatpush1.bf16.msra.mxu0 %v15074_v20  ;;  %7919 = vmatprep.subr.bf16.mxu1 %v15076_v9  ;;  %v16050_v36 = vsub.f32 %v14697_v27, %v14816_v25  ;;  %v16060_v60 = vmov 0.0  }
 0xada   :  { %v6237_v16 = vmul.f32 %v14989_v2, %v16049_v34  ;;  %v6354_v44 = vadd.f32 %v14893_v56, %v6275_v45  ;;  %7951 = vmatprep.subr.bf16.mxu0 %v15088_v22  ;;  %v16051_v28 = vsub.f32 %v16037_v3, %v14877_v30  ;;  %v16052_v56 = vsub.f32 %v16038_v5, %v14877_v30  ;;  %v6662_v5 = vld [vmem:[%s15311_s6] sm:$0xff]  ;;  %v16054_v3 = vld [vmem:[#allocation40_spill] sm:$0xff] }
 0xadb   :  { %v6262_v39 = vmul.f32 %v14859_v15, %v16050_v36  ;;  %v6310_v14 = vadd.f32 %v14915_v4, %v6231_v19  ;;  %v15119_v27 = vpack.c.bf16 %v14911_v38, %v14908_v49  ;;  %v6329_v40 = vadd.f32 %v14827_v31, %v14905_v57  ;;  %7921 = vmatpush1.bf16.msra.mxu1 %v14899_v21 }
 0xadc   :  { %v6316_v62 = vadd.f32 %v14915_v4, %v6237_v16  ;;  %v6243_v18 = vmul.f32 %v14989_v2, %v16051_v28  ;;  %v6249_v59 = vmul.f32 %v14989_v2, %v16052_v56  ;;  %v15115_v13 = vpack.c.bf16 %v6354_v44, %v6348_v58  ;;  %v6664_v44 = vld [vmem:[%s15311_s6 + $0x10] sm:$0xff] }
 0xadd   :  { %v6140_v8 = vsub.f32 %v16053_v48, %v14877_v30  ;;  %v6146_v17 = vsub.f32 %v16054_v3, %v14877_v30  ;;  %7923 = vmatprep.subr.bf16.mxu1 %v15119_v27  ;;  %v16055_v57 = vsub.f32 %v14711_v47, %v14816_v25  ;;  %v16057_v33 = vsub.f32 %v16056_v37, %v14816_v25  ;;  %v16058_v47 = vld [vmem:[#allocation12_spill] sm:$0xff] }
 0xade   :  { %7953 = vmatpush1.bf16.msra.mxu0 %v15115_v13  ;;  %v15142_v24 = vpack.c.bf16 %v6316_v62, %v6310_v14  ;;  %v6322_v53 = vadd.f32 %v14915_v4, %v6243_v18  ;;  %v6328_v26 = vadd.f32 %v14915_v4, %v6249_v59  ;;  %7696 = vmatmul.mubr.msk.f32.vlgmr.msra.gmra.mrb[102].mxu1 %vm1256_vm9, %v6662_v5  ;;  %v16059_v25 = vld [vmem:[#allocation44_spill] sm:$0xff]  ;;  %v8976_v62 = vld [vmem:[%s15306_s4] sm:$0xff] }
 0xadf   :  { %v6255_v49 = vmul.f32 %v14989_v2, %v6140_v8  ;;  %v6268_v38 = vmul.f32 %v14859_v15, %v16055_v57  ;;  %v6274_v42 = vmul.f32 %v14859_v15, %v16057_v33  ;;  %v6261_v50 = vmul.f32 %v14989_v2, %v6146_v17  ;;  %6748 = vmatprep.mubr.f32.mxu1 %v16060_v60 }
 0xae0   :  { %v15148_v55 = vpack.c.bf16 %v6329_v40, %v6323_v41  ;;  %v6335_v29 = vadd.f32 %v14827_v31, %v16058_v47  ;;  %v6341_v1 = vadd.f32 %v14827_v31, %v6262_v39  ;;  %v6152_v15 = vsub.f32 %v16059_v25, %v14877_v30  ;;  %7925 = vmatpush1.bf16.msra.mxu1 %v15142_v24  ;;  %v6665_v39 = vld [vmem:[%s15311_s6 + $0x18] sm:$0xff] }
 0xae1   :  { %v6158_v23 = vsub.f32 %v16061_v35, %v14877_v30  ;;  %7704 = vmatmul.mubr.msk.f32.vlgmr.msra.gmra.mrb[90].mxu0 %vm1256_vm9, %v6662_v5  ;;  %v15165_v45 = vpack.c.bf16 %v6328_v26, %v6322_v53  ;;  %v6334_v6 = vadd.f32 %v14915_v4, %v6255_v49  ;;  %v6340_v19 = vadd.f32 %v14915_v4, %v6261_v50 }
 0xae2   :  { %7927 = vmatprep.subr.bf16.mxu1 %v15148_v55  ;;  %v6267_v51 = vmul.f32 %v14989_v2, %v6152_v15  ;;  %6926 = vmatprep.mubr.f32.mxu0 %v16060_v60  ;;  %v15172_v34 = vpack.c.bf16 %v6341_v1, %v6335_v29  ;;  %v6347_v30 = vadd.f32 %v14827_v31, %v6268_v38 }
 0xae3   :  { %v6273_v58 = vmul.f32 %v14989_v2, %v6158_v23  ;;  %7697 = vmatmul.mubr.msk.f32.gmra.mrb[104].mxu1 %vm1256_vm9, %v6663_v52  ;;  %v6353_v16 = vadd.f32 %v14827_v31, %v6274_v42  ;;  %v15183_v2 = vpack.c.bf16 %v6340_v19, %v6334_v6 }
 0xae4   :  { %7929 = vmatpush1.bf16.msra.mxu1 %v15165_v45  ;;  %6754 = vmatprep.mubr.f32.mxu1 %v16060_v60  ;;  %v6346_v41 = vadd.f32 %v14915_v4, %v6267_v51 }
 0xae5   :  { %7931 = vmatprep.subr.bf16.mxu1 %v15172_v34  ;;  %7705 = vmatmul.mubr.msk.f32.gmra.mrb[92].mxu0 %vm1256_vm9, %v6663_v52  ;;  %v6352_v31 = vadd.f32 %v14915_v4, %v6273_v58  ;;  %v15189_v36 = vpack.c.bf16 %v6353_v16, %v6347_v30  ;;  %v8983_v4 = vmov 4  }
 0xae6   :  { %6932 = vmatprep.mubr.f32.mxu0 %v16060_v60  ;;  %8125 = vset.pattern.permute.xlu1 %v8983_v4 }
 0xae7   :  { %7698 = vmatmul.mubr.msk.f32.gmra.mrb[106].mxu1 %vm1256_vm9, %v6664_v44  ;;  %v15198_v14 = vpack.c.bf16 %v6352_v31, %v6346_v41  ;;  %8126 = vset.pattern.permute.xlu0 %v8983_v4 }
 0xae8   :  { %7933 = vmatpush1.bf16.msra.mxu1 %v15183_v2  ;;  %6760 = vmatprep.mubr.f32.mxu1 %v16060_v60 }
 0xae9   :  { %7935 = vmatprep.subr.bf16.mxu1 %v15189_v36  ;;  %7706 = vmatmul.mubr.msk.f32.gmra.mrb[94].mxu0 %vm1256_vm9, %v6664_v44 }
 0xaea   :  { %6938 = vmatprep.mubr.f32.mxu0 %v16060_v60  ;;  %7405 = vperm.xlu1 %8125, %v8976_v62  }
 0xaeb   :  { %7699 = vmatmul.mubr.msk.f32.gmra.mrb[108].mxu1 %vm1256_vm9, %v6665_v39 }
 0xaec   :  { %7937 = vmatpush1.bf16.msra.mxu1 %v15198_v14  ;;  %6831 = vmatprep.mubr.f32.mxu1 %v16060_v60 }
 0xaed   :  { %7707 = vmatmul.mubr.msk.f32.gmra.mrb[96].mxu0 %vm1256_vm9, %v6665_v39 }
 0xaee   :  { %7039 = vmatprep.mubr.f32.mxu0 %v16060_v60 }
 0xaef   :  { %7700 = vmatmul.mubr.msk.f32.vlgmr.msra.gmra.mrb[110].mxu1 %vm1256_vm9, %v6662_v5 }
 0xaf0   :  { %6837 = vmatprep.mubr.f32.mxu1 %v16060_v60 }
 0xaf3   :  { %7701 = vmatmul.mubr.msk.f32.gmra.mrb[112].mxu1 %vm1256_vm9, %v6663_v52 }
 0xaf4   :  { %6843 = vmatprep.mubr.f32.mxu1 %v16060_v60 }
 0xaf7   :  { %7702 = vmatmul.mubr.msk.f32.gmra.mrb[114].mxu1 %vm1256_vm9, %v6664_v44 }
 0xaf8   :  { %6849 = vmatprep.mubr.f32.mxu1 %v16060_v60 }
 0xafb   :  { %7703 = vmatmul.mubr.msk.f32.gmra.mrb[116].mxu1 %vm1256_vm9, %v6665_v39 }
 0xafc   :  { %7110 = vmatprep.mubr.f32.mxu1 %v16060_v60 }
 0xbb1   :  { %v6744_v28 = vpop.f32.mrb[102].mxu1 }
 0xbb2   :  { %v6746_v18 = vpop.f32.mrb[103].mxu1  ;;  %v6945_v48 = vmax.f32 %v6744_v28, 0.0 }
 0xbb3   :  { %v6946_v3 = vmax.f32 %v6746_v18, 0.0 }
 0xbb4   :  { %v6922_v56 = vpop.f32.mrb[90].mxu0 }
 0xbb5   :  { %v6924_v59 = vpop.f32.mrb[91].mxu0  ;;  %v6949_v38 = vmax.f32 %v6922_v56, 0.0 }
 0xbb6   :  { %v6750_v40 = vpop.f32.mrb[104].mxu1  ;;  %v6950_v53 = vmax.f32 %v6924_v59, 0.0  ;;  %v6970_v59 = vld [vmem:[%s15312_s8] sm:$0xf] }
 0xbb7   :  { %v6951_v8 = vmax.f32 %v6750_v40, 0.0  ;;  %v6752_v5 = vpop.f32.mrb[105].mxu1 }
 0xbb8   :  { %v6952_v17 = vmax.f32 %v6752_v5, 0.0  ;;  %v6928_v49 = vpop.f32.mrb[92].mxu0 }
 0xbb9   :  { %v7956_v57 = vpack.c.bf16 %v6951_v8, %v6945_v48  ;;  %v6955_v37 = vmax.f32 %v6928_v49, 0.0  ;;  %v6930_v33 = vpop.f32.mrb[93].mxu0 }
 0xbba   :  { %v7954_v42 = vpack.c.bf16 %v6952_v17, %v6946_v3  ;;  %v6756_v26 = vpop.f32.mrb[106].mxu1  ;;  %v6956_v50 = vmax.f32 %v6930_v33, 0.0 }
 0xbbb   :  { %v7972_v47 = vpack.c.bf16 %v6955_v37, %v6949_v38  ;;  %v6758_v29 = vpop.f32.mrb[107].mxu1  ;;  %v6957_v35 = vmax.f32 %v6756_v26, 0.0 }
 0xbbc   :  { %v7970_v1 = vpack.c.bf16 %v6956_v50, %v6950_v53  ;;  %7955 = vmatprep.subr.bf16.mxu0 %v7954_v42  ;;  %v6934_v25 = vpop.f32.mrb[94].mxu0  ;;  %v6958_v6 = vmax.f32 %v6758_v29, 0.0 }
 0xbbd   :  { %7957 = vmatpush1.bf16.msra.mxu0 %v7956_v57  ;;  %v6936_v15 = vpop.f32.mrb[95].mxu0  ;;  %v6961_v16 = vmax.f32 %v6934_v25, 0.0 }
 0xbbe   :  { %v6762_v52 = vpop.f32.mrb[108].mxu1  ;;  %v6962_v39 = vmax.f32 %v6936_v15, 0.0 }
 0xbbf   :  { %v6963_v23 = vmax.f32 %v6762_v52, 0.0  ;;  %v6764_v51 = vpop.f32.mrb[109].mxu1 }
 0xbc0   :  { %v6964_v19 = vmax.f32 %v6764_v51, 0.0  ;;  %v6940_v58 = vpop.f32.mrb[96].mxu0 }
 0xbc1   :  { %v7960_v30 = vpack.c.bf16 %v6963_v23, %v6957_v35  ;;  %v6967_v44 = vmax.f32 %v6940_v58, 0.0  ;;  %v6942_v41 = vpop.f32.mrb[97].mxu0 }
 0xbc2   :  { %v7958_v31 = vpack.c.bf16 %v6964_v19, %v6958_v6  ;;  %v6833_v4 = vpop.f32.mrb[110].mxu1  ;;  %v6968_v62 = vmax.f32 %v6942_v41, 0.0 }
 0xbc3   :  { %v7976_v28 = vpack.c.bf16 %v6967_v44, %v6961_v16  ;;  %v6835_v18 = vpop.f32.mrb[111].mxu1  ;;  %v6947_v48 = vmax.f32 %v6833_v4, 0.0 }
 0xbc4   :  { %v7974_v56 = vpack.c.bf16 %v6968_v62, %v6962_v39  ;;  %7959 = vmatprep.subr.bf16.mxu0 %v7958_v31  ;;  %v6948_v3 = vmax.f32 %v6835_v18, 0.0  ;;  %v16062_v18 = vld [vmem:[#allocation37_spill] sm:$0xff] }
 0xbc5   :  { %7961 = vmatpush1.bf16.msra.mxu0 %v7960_v30 }
 0xbc6   :  { %v6839_v40 = vpop.f32.mrb[112].mxu1  ;;  %7971 = vmatprep.subr.bf16.mxu0 %v7970_v1 }
 0xbc7   :  { %v6953_v8 = vmax.f32 %v6839_v40, 0.0  ;;  %v6841_v5 = vpop.f32.mrb[113].mxu1 }
 0xbc8   :  { %v6954_v17 = vmax.f32 %v6841_v5, 0.0  ;;  %7708 = vmatmul.mubr.msk.f32.vlgmr.msra.gmra.mrb[98].mxu0 %vm6971_vm7, %v6970_v59 }
 0xbc9   :  { %v7964_v49 = vpack.c.bf16 %v6953_v8, %v6947_v48  ;;  %7973 = vmatpush1.bf16.msra.mxu0 %v7972_v47  ;;  %7181 = vmatprep.mubr.f32.mxu0 %v16060_v60 }
 0xbca   :  { %v7962_v57 = vpack.c.bf16 %v6954_v17, %v6948_v3  ;;  %v6845_v38 = vpop.f32.mrb[114].mxu1  ;;  %7975 = vmatprep.subr.bf16.mxu0 %v7974_v56 }
 0xbcb   :  { %v6847_v37 = vpop.f32.mrb[115].mxu1  ;;  %v6959_v42 = vmax.f32 %v6845_v38, 0.0 }
 0xbcc   :  { %7963 = vmatprep.subr.bf16.mxu1 %v7962_v57  ;;  %v6960_v50 = vmax.f32 %v6847_v37, 0.0 }
 0xbcd   :  { %7965 = vmatpush1.bf16.msra.mxu1 %v7964_v49  ;;  %7977 = vmatpush1.bf16.msra.mxu0 %v7976_v28 }
 0xbce   :  { %v6851_v33 = vpop.f32.mrb[116].mxu1  ;;  %7979 = vmatprep.subr.bf16.mxu0 %v15006_v46 }
 0xbcf   :  { %v6965_v53 = vmax.f32 %v6851_v33, 0.0  ;;  %v6853_v26 = vpop.f32.mrb[117].mxu1 }
 0xbd0   :  { %v6966_v29 = vmax.f32 %v6853_v26, 0.0  ;;  %7710 = vmatmul.mubr.msk.f32.vlgmr.msra.gmra.mrb[100].mxu0 %vm6971_vm7, %v6970_v59 }
 0xbd1   :  { %v7968_v47 = vpack.c.bf16 %v6965_v53, %v6959_v42  ;;  %7981 = vmatpush1.bf16.msra.mxu0 %v14889_v12  ;;  %7255 = vmatprep.mubr.f32.mxu0 %v16060_v60  ;;  %v6969_v12 = vld [vmem:[%s15313_s7] sm:$0xf] }
 0xbd2   :  { %v7966_v1 = vpack.c.bf16 %v6966_v29, %v6960_v50  ;;  %7983 = vmatprep.subr.bf16.mxu0 %v15012_v63 }
 0xbd4   :  { %7967 = vmatprep.subr.bf16.mxu1 %v7966_v1 }
 0xbd5   :  { %7969 = vmatpush1.bf16.msra.mxu1 %v7968_v47  ;;  %7985 = vmatpush1.bf16.msra.mxu0 %v14895_v54  ;;  %v7406_v54 = vpop.permute.xlu1 %7405 }
 0xbd6   :  { %7987 = vmatprep.subr.bf16.mxu0 %v15040_v43  ;;  %7995 = vmatprep.subr.bf16.mxu1 %v15119_v27 }
 0xbd8   :  { %7709 = vmatmul.mubr.msk.f32.vlgmr.msra.gmra.mrb[118].mxu1 %vm6971_vm7, %v6970_v59 }
 0xbd9   :  { %7989 = vmatpush1.bf16.msra.mxu0 %v14897_v10  ;;  %7997 = vmatpush1.bf16.msra.mxu1 %v15142_v24 }
 0xbda   :  { %7991 = vmatprep.subr.bf16.mxu0 %v15076_v9  ;;  %7999 = vmatprep.subr.bf16.mxu1 %v15148_v55 }
 0xbdb   :  { %7326 = vmatprep.mubr.f32.mxu1 %v16060_v60 }
 0xbdd   :  { %7993 = vmatpush1.bf16.msra.mxu0 %v14899_v21  ;;  %8001 = vmatpush1.bf16.msra.mxu1 %v15165_v45 }
 0xbde   :  { %8003 = vmatprep.subr.bf16.mxu1 %v15172_v34  ;;  %8011 = vmatprep.subr.bf16.mxu0 %v15010_v11 }
 0xbe0   :  { %7711 = vmatmul.mubr.msk.f32.vlgmr.msra.gmra.mrb[98].mxu0 %vm1256_vm9, %v6969_v12 }
 0xbe1   :  { %8005 = vmatpush1.bf16.msra.mxu1 %v15183_v2  ;;  %8013 = vmatpush1.bf16.msra.mxu0 %v15008_v32 }
 0xbe2   :  { %8007 = vmatprep.subr.bf16.mxu1 %v15189_v36  ;;  %8015 = vmatprep.subr.bf16.mxu0 %v15025_v61 }
 0xbe3   :  { %7397 = vmatprep.mubr.f32.mxu0 %v16060_v60 }
 0xbe5   :  { %8009 = vmatpush1.bf16.msra.mxu1 %v15198_v14  ;;  %8017 = vmatpush1.bf16.msra.mxu0 %v15029_v7 }
 0xbe6   :  { %8019 = vmatprep.subr.bf16.mxu0 %v15066_v0 }
 0xbe8   :  { %7712 = vmatmul.mubr.msk.f32.vlgmr.msra.gmra.mrb[118].mxu1 %vm1256_vm9, %v6969_v12 }
 0xbe9   :  { %8021 = vmatpush1.bf16.msra.mxu0 %v15074_v20 }
 0xbea   :  { %8023 = vmatprep.subr.bf16.mxu0 %v15088_v22 }
 0xbed   :  { %8025 = vmatpush1.bf16.msra.mxu0 %v15115_v13 }
 0xbf0   :  { %7713 = vmatmul.mubr.msk.f32.vlgmr.msra.gmra.mrb[100].mxu0 %vm1256_vm9, %v6969_v12  ;;  %vm7476_vm9 = vcmp.eq.s32.totalorder %v16062_v18, 0 }
 0xcb3   :  { %v7257_v10 = vpop.f32.mrb[98].mxu0 }
 0xcb4   :  { %v7408_v21 = vadd.f32 %v7406_v54, %v7257_v10  ;;  %v7259_v46 = vpop.f32.mrb[99].mxu0 }
 0xcb5   :  { %v15257_v32 = vadd.f32 %v7406_v54, %v7259_v46 }
 0xcb6   :  { %v7414_v11 = vand.u32 2147483647, %v7408_v21  ;;  %vm7438_vm1 = vcmp.ge.f32.partialorder %v7408_v21, 0.0  ;;  %v7477_v56 = vmax.f32 %v7408_v21, 0.0 }
 0xcb7   :  { %v7415_v63 = vand.u32 2147483647, %v15257_v32  ;;  %vm7439_vm8 = vcmp.ge.f32.partialorder %v15257_v32, 0.0  ;;  %v7478_v8 = vmax.f32 %v15257_v32, 0.0 }
 0xcb8   :  { %v7420_v61 = vsub.f32 0.0, %v7414_v11 }
 0xcb9   :  { %v7421_v7 = vsub.f32 0.0, %v7415_v63 }
 0xcba   :  { %v7426_v43 = vmul.f32 1.442695, %v7420_v61 }
 0xcbb   :  { %v7428_v0 = vmul.f32 1.442695, %v7421_v7  ;;  %v7328_v20 = vpop.f32.mrb[118].mxu1 }
 0xcbc   :  { %8922 = vpow2.f32 %v7426_v43  ;;  %v15260_v9 = vadd.f32 %v7406_v54, %v7328_v20  ;;  %v7330_v22 = vpop.f32.mrb[119].mxu1 }
 0xcbd   :  { %8924 = vpow2.f32 %v7428_v0  ;;  %v15262_v13 = vadd.f32 %v7406_v54, %v7330_v22 }
 0xcbe   :  { %v7416_v27 = vand.u32 2147483647, %v15260_v9  ;;  %vm7440_vm11 = vcmp.ge.f32.partialorder %v15260_v9, 0.0  ;;  %v7479_v26 = vmax.f32 %v15260_v9, 0.0 }
 0xcbf   :  { %v7417_v24 = vand.u32 2147483647, %v15262_v13  ;;  %vm7441_vm12 = vcmp.ge.f32.partialorder %v15262_v13, 0.0  ;;  %v7480_v47 = vmax.f32 %v15262_v13, 0.0 }
 0xcc0   :  { %v7422_v55 = vsub.f32 0.0, %v7416_v27 }
 0xcc1   :  { %v7423_v60 = vsub.f32 0.0, %v7417_v24 }
 0xcc2   :  { %v7430_v45 = vmul.f32 1.442695, %v7422_v55 }
 0xcc3   :  { %v7432_v34 = vmul.f32 1.442695, %v7423_v60  ;;  %v7399_v2 = vpop.f32.mrb[100].mxu0 }
 0xcc4   :  { %8926 = vpow2.f32 %v7430_v45  ;;  %v15266_v36 = vadd.f32 %v7406_v54, %v7399_v2  ;;  %v7401_v14 = vpop.f32.mrb[101].mxu0 }
 0xcc5   :  { %8928 = vpow2.f32 %v7432_v34  ;;  %v15268_v25 = vadd.f32 %v7406_v54, %v7401_v14 }
 0xcc6   :  { %v8923_v15 = vpop.eup %8922  ;;  %v7418_v52 = vand.u32 2147483647, %v15266_v36  ;;  %vm7442_vm13 = vcmp.ge.f32.partialorder %v15266_v36, 0.0  ;;  %v7481_v11 = vmax.f32 %v15266_v36, 0.0 }
 0xcc7   :  { %v8925_v35 = vpop.eup %8924  ;;  %v7444_v23 = vadd.f32 1.0, %v8923_v15  ;;  %v7419_v51 = vand.u32 2147483647, %v15268_v25  ;;  %vm7443_vm14 = vcmp.ge.f32.partialorder %v15268_v25, 0.0  ;;  %v7482_v7 = vmax.f32 %v15268_v25, 0.0 }
 0xcc8   :  { %v7445_v6 = vadd.f32 1.0, %v8925_v35  ;;  %v7424_v19 = vsub.f32 0.0, %v7418_v52 }
 0xcc9   :  { %8930 = vrcp.f32 %v7444_v23  ;;  %v7425_v58 = vsub.f32 0.0, %v7419_v51 }
 0xcca   :  { %8932 = vrcp.f32 %v7445_v6  ;;  %v7434_v30 = vmul.f32 1.442695, %v7424_v19 }
 0xccb   :  { %v7436_v16 = vmul.f32 1.442695, %v7425_v58 }
 0xccc   :  { %8934 = vpow2.f32 %v7434_v30 }
 0xccd   :  { %8936 = vpow2.f32 %v7436_v16 }
 0xcce   :  { %v8927_v44 = vpop.eup %8926 }
 0xccf   :  { %v8929_v41 = vpop.eup %8928  ;;  %v7446_v31 = vadd.f32 1.0, %v8927_v44 }
 0xcd0   :  { %v7447_v39 = vadd.f32 1.0, %v8929_v41 }
 0xcd1   :  { %8938 = vrcp.f32 %v7446_v31 }
 0xcd2   :  { %8940 = vrcp.f32 %v7447_v39 }
 0xcd3   :  { %v8931_v4 = vpop.eup %8930 }
 0xcd4   :  { %v8933_v62 = vpop.eup %8932  ;;  %v7462_v28 = vmul.f32 %v8931_v4, %v8923_v15 }
 0xcd5   :  { %v7463_v59 = vmul.f32 %v8933_v62, %v8925_v35 }
 0xcd6   :  { %v8935_v40 = vpop.eup %8934  ;;  %v7468_v48 = vsel %vm7438_vm1, %v8931_v4, %v7462_v28 }
 0xcd7   :  { %v8937_v5 = vpop.eup %8936  ;;  %v7483_v3 = vsel %vm7476_vm9, %v7477_v56, %v7468_v48  ;;  %v7469_v17 = vsel %vm7439_vm8, %v8933_v62, %v7463_v59  ;;  %v7448_v49 = vadd.f32 1.0, %v8935_v40 }
 0xcd8   :  { %v7484_v57 = vsel %vm7476_vm9, %v7478_v8, %v7469_v17  ;;  %v7449_v38 = vadd.f32 1.0, %v8937_v5 }
 0xcd9   :  { %v7495_v37 = vcombine.low %v7483_v3, %v7484_v57  ;;  %8942 = vrcp.f32 %v7448_v49 }
 0xcda   :  { %8944 = vrcp.f32 %v7449_v38 }
 0xcdb   :  { %v8939_v33 = vpop.eup %8938  ;;  %7501 = vst [vmem:[%s15314_s10] sm:$0xff] %v7495_v37 }
 0xcdc   :  { %v8941_v42 = vpop.eup %8940  ;;  %v7464_v53 = vmul.f32 %v8939_v33, %v8927_v44 }
 0xcdd   :  { %v7465_v50 = vmul.f32 %v8941_v42, %v8929_v41 }
 0xcde   :  { %v7470_v29 = vsel %vm7440_vm11, %v8939_v33, %v7464_v53 }
 0xcdf   :  { %v7485_v1 = vsel %vm7476_vm9, %v7479_v26, %v7470_v29  ;;  %v7471_v12 = vsel %vm7441_vm12, %v8941_v42, %v7465_v50 }
 0xce0   :  { %v7486_v54 = vsel %vm7476_vm9, %v7480_v47, %v7471_v12 }
 0xce1   :  { %v7496_v10 = vcombine.low %v7485_v1, %v7486_v54 }
 0xce3   :  { %v8943_v21 = vpop.eup %8942  ;;  %7502 = vst [vmem:[%s15314_s10 + $0x8] sm:$0xff] %v7496_v10 }
 0xce4   :  { %v8945_v46 = vpop.eup %8944  ;;  %v7466_v32 = vmul.f32 %v8943_v21, %v8935_v40 }
 0xce5   :  { %v7467_v63 = vmul.f32 %v8945_v46, %v8937_v5 }
 0xce6   :  { %v7472_v61 = vsel %vm7442_vm13, %v8943_v21, %v7466_v32 }
 0xce7   :  { %v7487_v43 = vsel %vm7476_vm9, %v7481_v11, %v7472_v61  ;;  %v7473_v0 = vsel %vm7443_vm14, %v8945_v46, %v7467_v63 }
 0xce8   :  { %v7488_v20 = vsel %vm7476_vm9, %v7482_v7, %v7473_v0 }
 0xce9   :  { %v7497_v9 = vcombine.low %v7487_v43, %v7488_v20 }
 0xceb   :  { %7503 = vst [vmem:[%s15314_s10 + $0x10] sm:$0xff] %v7497_v9 }

</bundles_post_ra>
